<compile_context>
chip_gen: v5e
topology: v5e:2x2
jax: 0.10.0
libtpu: 0.0.40
codegen_flags: <defaults>
</compile_context>

<pallas_src>
import functools

import jax
import jax.numpy as jnp
from jax.experimental import pallas as pl
from jax.experimental.pallas import tpu as pltpu


def _round_up(x, m):
    return ((x + m - 1) // m) * m


def _largest_divisor_leq(n, cap):
    cap = max(1, min(n, cap))
    for d in range(cap, 0, -1):
        if n % d == 0:
            return d
    return 1


# ------------------------------------------------------------------
# Runtime feature / hardware probes (cached; safe fallbacks everywhere).
# ------------------------------------------------------------------
@functools.lru_cache(maxsize=None)
def _vmem_budgets():
    """(vmem_limit_bytes, per-time-chunk VMEM budget) for this generation."""
    cap = None
    try:
        cap = getattr(pltpu.get_tpu_info(), "vmem_capacity_bytes", None)
    except Exception:
        cap = None
    if cap is None:
        cap = 64 * 1024 * 1024          # conservative: assume v7x-sized VMEM
    if cap >= 100 * 1024 * 1024:        # v5e / v6e: 128 MiB physical VMEM
        return 96 * 1024 * 1024, 16 * 1024 * 1024
    return 48 * 1024 * 1024, 6 * 1024 * 1024   # v7x: 64 MiB physical VMEM


@functools.lru_cache(maxsize=None)
def _want_batch_split():
    """True on chips with 2 TensorCores behind one device (v7x)."""
    try:
        kind = jax.devices()[0].device_kind.lower()
    except Exception:
        return False
    return "7" in kind


@functools.lru_cache(maxsize=None)
def _buffered_pipeline_supported():
    """Probe whether pl.BlockSpec(..., pipeline_mode=pl.Buffered(k)) works."""
    if not hasattr(pl, "Buffered"):
        return False

    def _probe_kernel(x_ref, w_ref, o_ref):
        o_ref[...] = x_ref[...] + w_ref[...]

    try:
        x = jnp.zeros((4, 16, 128), jnp.float32)
        w = jnp.zeros((8, 128), jnp.float32)
        fn = pl.pallas_call(
            _probe_kernel,
            out_shape=jax.ShapeDtypeStruct((4, 16, 128), jnp.float32),
            grid_spec=pltpu.PrefetchScalarGridSpec(
                num_scalar_prefetch=0,
                grid=(2, 4),
                in_specs=[
                    pl.BlockSpec((1, 8, 128), lambda i, j: (j, i, 0),
                                 pipeline_mode=pl.Buffered(3)),
                    pl.BlockSpec((8, 128), lambda i, j: (0, 0),
                                 pipeline_mode=pl.Buffered(1)),
                ],
                out_specs=pl.BlockSpec((1, 8, 128), lambda i, j: (j, i, 0)),
            ),
            compiler_params=pltpu.CompilerParams(
                dimension_semantics=("parallel", "arbitrary")),
        )
        jax.block_until_ready(fn(x, w))
        return True
    except Exception:
        return False


# ------------------------------------------------------------------
# Block / chunk size heuristics.
# ------------------------------------------------------------------
def _pick_batch_block(b_pad, want_split):
    # b_pad is a multiple of 8; keep the block a multiple of 8 (sublane rule).
    if b_pad <= 128:
        bb = b_pad
    else:
        bb = 8
        for d in range(128, 0, -8):
            if b_pad % d == 0:
                bb = d
                break
    # On v7x, guarantee >= 2 programs on the "parallel" batch axis so the
    # second TensorCore gets an independent half of the sequential sweep.
    if want_split and b_pad // bb < 2 and b_pad >= 16:
        start = (b_pad // 2) // 8 * 8
        for d in range(start, 7, -8):
            if b_pad % d == 0:
                bb = d
                break
    return bb


def _pick_time_chunk(t, bb, d_in, h_pad, act_itemsize, chunk_budget, has_seq_out):
    # Per-timestep VMEM inside one chunk: f32 gate scratch (single copy),
    # the pipelined activation input block (<=3 buffers) and, for non-final
    # layers, the pipelined output block (2 buffers).
    bytes_per_step = bb * (
        4 * h_pad * 4
        + d_in * act_itemsize * 3
        + (h_pad * act_itemsize * 2 if has_seq_out else 0))
    cap = max(1, min(32, chunk_budget // max(bytes_per_step, 1)))
    # TODO(synk): handle ragged / prime T with a pl.cdiv grid + in-kernel step
    # masking instead of requiring ts to divide T (do NOT zero-pad time:
    # sigmoid(0)=0.5 corrupts h/c).
    return _largest_divisor_leq(t, cap)


def _make_x_spec(ts, bb, d_in, n_time_steps, buffered):
    if buffered and n_time_steps >= 3:
        return pl.BlockSpec((ts, bb, d_in), lambda i, j: (j, i, 0),
                            pipeline_mode=pl.Buffered(3))
    return pl.BlockSpec((ts, bb, d_in), lambda i, j: (j, i, 0))


def _make_invariant_spec(shape, buffered):
    index_map = lambda i, j: (0,) * len(shape)
    if buffered:
        # Grid-invariant block: single buffer instead of the default double
        # buffering (saves ~4.5 MiB per bf16 weight matrix at H=768).
        return pl.BlockSpec(shape, index_map, pipeline_mode=pl.Buffered(1))
    return pl.BlockSpec(shape, index_map)


# ------------------------------------------------------------------
# In-kernel helpers.
# ------------------------------------------------------------------
def _compute_chunk_gates(x_ref, wih_ref, b_ref, g_scr):
    """g_scr[s] = x[s] @ W_ih + (b_ih + b_hh) for the whole time chunk."""
    ts, bb, d_in = x_ref.shape
    g4 = g_scr.shape[-1]
    packed_sublanes = 32 // jnp.dtype(x_ref.dtype).itemsize   # 8 f32 / 16 bf16
    if bb % packed_sublanes == 0:
        # One lane-dense MXU call for the whole chunk (leading-dim collapse is
        # a pure relayout when bb spans whole packed vregs).
        x2 = x_ref[...].reshape(ts * bb, d_in)
        g = jnp.dot(x2, wih_ref[...],
                    preferred_element_type=jnp.float32) + b_ref[...]
        g_scr[...] = g.reshape(ts, bb, g4)
    else:
        # Tiny-batch fallback: one small matmul per timestep (latency-bound
        # regime anyway; avoids sub-vreg relayouts).
        for s in range(ts):
            g_scr[s] = jnp.dot(x_ref[s], wih_ref[...],
                               preferred_element_type=jnp.float32) + b_ref[...]


def _lstm_chunk(g_ref, whh_ref, h0, c0, out_ref=None):
    """Recurrence over one (TS, BB, 4H) precomputed-gate chunk."""
    h_pad = h0.shape[-1]
    ts = g_ref.shape[0]

    def step(s, carry):
        h, c = carry
        gates = g_ref[s] + jnp.dot(
            h.astype(whh_ref.dtype), whh_ref[...],
            preferred_element_type=jnp.float32)
        # PyTorch gate order [i|f|g|o]; slices are lane-aligned (h_pad % 128 == 0).
        i_g = jax.nn.sigmoid(gates[:, 0 * h_pad:1 * h_pad])
        f_g = jax.nn.sigmoid(gates[:, 1 * h_pad:2 * h_pad])
        g_g = jnp.tanh(gates[:, 2 * h_pad:3 * h_pad])
        o_g = jax.nn.sigmoid(gates[:, 3 * h_pad:4 * h_pad])
        c = f_g * c + i_g * g_g
        h = o_g * jnp.tanh(c)
        if out_ref is not None:
            out_ref[s] = h.astype(out_ref.dtype)
        return h, c

    # TODO(synk): at tiny bb, interleave two independent batch sub-blocks here
    # so one block's EUP/VPU work hides the other's MXU latency.
    # Partial unroll: LLO scheduling visibility without huge live ranges.
    return jax.lax.fori_loop(0, ts, step, (h0, c0), unroll=min(ts, 8))


# ------------------------------------------------------------------
# Fused LSTM-layer kernels (input projection + recurrence, no HBM gates).
# ------------------------------------------------------------------
def _lstm_seq_kernel(x_ref, wih_ref, whh_ref, b_ref, out_ref,
                     h_scr, c_scr, g_scr):
    tc = pl.program_id(1)

    @pl.when(tc == 0)
    def _():
        h_scr[...] = jnp.zeros_like(h_scr)
        c_scr[...] = jnp.zeros_like(c_scr)

    _compute_chunk_gates(x_ref, wih_ref, b_ref, g_scr)
    h, c = _lstm_chunk(g_scr, whh_ref, h_scr[...], c_scr[...], out_ref)
    h_scr[...] = h
    c_scr[...] = c


def _lstm_final_kernel(x_ref, wih_ref, whh_ref, b_ref, wp_ref, bp_ref,
                       out_ref, h_scr, c_scr, g_scr):
    tc = pl.program_id(1)

    @pl.when(tc == 0)
    def _():
        h_scr[...] = jnp.zeros_like(h_scr)
        c_scr[...] = jnp.zeros_like(c_scr)

    _compute_chunk_gates(x_ref, wih_ref, b_ref, g_scr)
    h, c = _lstm_chunk(g_scr, whh_ref, h_scr[...], c_scr[...], None)
    h_scr[...] = h
    c_scr[...] = c

    @pl.when(tc == pl.num_programs(1) - 1)
    def _():
        # Fused projection + L2 normalization of the final hidden state.
        # TODO(synk): optionally run the gate nonlinearities in bf16 on
        # v6e/v7x once re-validated against the reference tolerance.
        y = (jnp.dot(h.astype(wp_ref.dtype), wp_ref[...],
                     preferred_element_type=jnp.float32) + bp_ref[...])
        # NOTE: matches the PyTorch module exactly (no epsilon in the norm).
        inv = jax.lax.rsqrt(jnp.sum(y * y, axis=1, keepdims=True))
        out_ref[...] = (y * inv).astype(out_ref.dtype)


def _lstm_layer_seq(x_seq, w_ih, w_hh, bias, out_dtype):
    t, b_pad, d_in = x_seq.shape
    h_pad, g4 = w_hh.shape
    vmem_limit, chunk_budget = _vmem_budgets()
    bb = _pick_batch_block(b_pad, _want_batch_split())
    ts = _pick_time_chunk(t, bb, d_in, h_pad,
                          jnp.dtype(x_seq.dtype).itemsize, chunk_budget, True)
    n_time = t // ts
    buffered = _buffered_pipeline_supported()
    return pl.pallas_call(
        _lstm_seq_kernel,
        out_shape=jax.ShapeDtypeStruct((t, b_pad, h_pad), out_dtype),
        grid_spec=pltpu.PrefetchScalarGridSpec(
            num_scalar_prefetch=0,
            grid=(b_pad // bb, n_time),
            in_specs=[
                _make_x_spec(ts, bb, d_in, n_time, buffered),
                _make_invariant_spec((d_in, g4), buffered),
                _make_invariant_spec((h_pad, g4), buffered),
                _make_invariant_spec((1, g4), buffered),
            ],
            out_specs=pl.BlockSpec((ts, bb, h_pad), lambda i, j: (j, i, 0)),
            scratch_shapes=[
                pltpu.VMEM((bb, h_pad), jnp.float32),      # h state (f32)
                pltpu.VMEM((bb, h_pad), jnp.float32),      # c state (f32)
                pltpu.VMEM((ts, bb, g4), jnp.float32),     # chunk gates (f32)
            ]),
        compiler_params=pltpu.CompilerParams(
            dimension_semantics=("parallel", "arbitrary"),
            vmem_limit_bytes=vmem_limit),
    )(x_seq, w_ih, w_hh, bias)


def _lstm_layer_final(x_seq, w_ih, w_hh, bias, w_p, b_p):
    t, b_pad, d_in = x_seq.shape
    h_pad, g4 = w_hh.shape
    p_pad = w_p.shape[1]
    vmem_limit, chunk_budget = _vmem_budgets()
    bb = _pick_batch_block(b_pad, _want_batch_split())
    ts = _pick_time_chunk(t, bb, d_in, h_pad,
                          jnp.dtype(x_seq.dtype).itemsize, chunk_budget, False)
    n_time = t // ts
    buffered = _buffered_pipeline_supported()
    return pl.pallas_call(
        _lstm_final_kernel,
        out_shape=jax.ShapeDtypeStruct((b_pad, p_pad), jnp.float32),
        grid_spec=pltpu.PrefetchScalarGridSpec(
            num_scalar_prefetch=0,
            grid=(b_pad // bb, n_time),
            in_specs=[
                _make_x_spec(ts, bb, d_in, n_time, buffered),
                _make_invariant_spec((d_in, g4), buffered),
                _make_invariant_spec((h_pad, g4), buffered),
                _make_invariant_spec((1, g4), buffered),
                _make_invariant_spec((h_pad, p_pad), buffered),
                _make_invariant_spec((1, p_pad), buffered),
            ],
            out_specs=pl.BlockSpec((bb, p_pad), lambda i, j: (i, 0)),
            scratch_shapes=[
                pltpu.VMEM((bb, h_pad), jnp.float32),
                pltpu.VMEM((bb, h_pad), jnp.float32),
                pltpu.VMEM((ts, bb, g4), jnp.float32),
            ]),
        compiler_params=pltpu.CompilerParams(
            dimension_semantics=("parallel", "arbitrary"),
            vmem_limit_bytes=vmem_limit),
    )(x_seq, w_ih, w_hh, bias, w_p, b_p)


# ------------------------------------------------------------------
# Parameters: mirrors PyTorch __init__ (xavier_normal_ LSTM weights,
# zero LSTM biases, default nn.Linear init).  Stored pre-transposed
# ((D_in,4H)/(H,4H)/(H,P), gate order [i|f|g|o]) and zero-padded to
# lane/sublane-friendly shapes; matmul weights cast to compute dtype.
# Zero padding is exact: padded gate columns have zero weights & bias,
# so padded h/c stay exactly 0 and never contaminate real columns.
# ------------------------------------------------------------------
def _pad_gate_matrix(w, rows_pad, h, h_pad):
    rows = w.shape[0]
    w4 = w.reshape(rows, 4, h)
    w4 = jnp.pad(w4, ((0, rows_pad - rows), (0, 0), (0, h_pad - h)))
    return w4.reshape(rows_pad, 4 * h_pad)


def init_params(key, nmels, hidden, num_layers, proj, compute_dtype=jnp.bfloat16):
    d_pad = _round_up(nmels, 128)
    h_pad = _round_up(hidden, 128)
    p_pad = _round_up(proj, 128)

    lstm = []
    for layer in range(num_layers):
        d_in = nmels if layer == 0 else hidden
        d_in_pad = d_pad if layer == 0 else h_pad
        key, k1, k2 = jax.random.split(key, 3)
        std_ih = (2.0 / (d_in + 4 * hidden)) ** 0.5
        std_hh = (2.0 / (hidden + 4 * hidden)) ** 0.5
        w_ih = std_ih * jax.random.normal(k1, (d_in, 4 * hidden), jnp.float32)
        w_hh = std_hh * jax.random.normal(k2, (hidden, 4 * hidden), jnp.float32)
        bias = jnp.zeros((1, 4 * hidden), jnp.float32)   # b_ih + b_hh (both 0)
        lstm.append((
            _pad_gate_matrix(w_ih, d_in_pad, hidden, h_pad).astype(compute_dtype),
            _pad_gate_matrix(w_hh, h_pad, hidden, h_pad).astype(compute_dtype),
            _pad_gate_matrix(bias, 1, hidden, h_pad),     # stays f32
        ))

    key, kp, kb = jax.random.split(key, 3)
    bound = 1.0 / (hidden ** 0.5)                         # nn.Linear default init
    w_p = jax.random.uniform(kp, (hidden, proj), jnp.float32, -bound, bound)
    b_p = jax.random.uniform(kb, (1, proj), jnp.float32, -bound, bound)
    w_p = jnp.pad(w_p, ((0, h_pad - hidden), (0, p_pad - proj))).astype(compute_dtype)
    b_p = jnp.pad(b_p, ((0, 0), (0, p_pad - proj)))       # padded cols 0 -> norm exact
    return {"lstm": lstm, "proj": (w_p, b_p)}


# ------------------------------------------------------------------
# Forward pass (matches SpeechEmbedder.forward semantics).
# ------------------------------------------------------------------
def speech_embedder_forward(x, params, proj_dim, compute_dtype=jnp.bfloat16):
    """x: (B, T, nmels), batch-first.  Returns (B, proj_dim) f32 unit-norm rows."""
    b, t, d = x.shape
    d_pad = params["lstm"][0][0].shape[0]
    b_pad = _round_up(max(b, 8), 8)

    # (B, T, D) -> time-major, zero-padded (T, B_pad, D_pad), compute dtype.
    x_tm = jnp.transpose(x.astype(jnp.float32), (1, 0, 2))
    x_tm = jnp.pad(x_tm, ((0, 0), (0, b_pad - b), (0, d_pad - d)))
    h_seq = x_tm.astype(compute_dtype)

    n_layers = len(params["lstm"])
    emb = None
    for layer, (w_ih, w_hh, bias) in enumerate(params["lstm"]):
        if layer < n_layers - 1:
            h_seq = _lstm_layer_seq(h_seq, w_ih, w_hh, bias, compute_dtype)
        else:
            w_p, b_p = params["proj"]
            emb = _lstm_layer_final(h_seq, w_ih, w_hh, bias, w_p, b_p)
    return emb[:b, :proj_dim]


# ------------------------------------------------------------------
# Pure-XLA reference with identical dtype handling (for verification).
# ------------------------------------------------------------------
def _reference_forward(x, params, proj_dim, compute_dtype=jnp.bfloat16):
    b, t, d = x.shape
    d_pad = params["lstm"][0][0].shape[0]
    b_pad = _round_up(max(b, 8), 8)
    x_tm = jnp.transpose(x.astype(jnp.float32), (1, 0, 2))
    h_seq = jnp.pad(x_tm, ((0, 0), (0, b_pad - b), (0, d_pad - d)))

    h_last = None
    for (w_ih, w_hh, bias) in params["lstm"]:
        h_pad = w_hh.shape[0]
        g_all = jnp.einsum("tbd,dg->tbg", h_seq.astype(compute_dtype), w_ih,
                           preferred_element_type=jnp.float32) + bias

        def step(carry, g_t, w_hh=w_hh, h_pad=h_pad):
            h, c = carry
            gates = g_t + jnp.dot(h.astype(compute_dtype), w_hh,
                                  preferred_element_type=jnp.float32)
            i_g = jax.nn.sigmoid(gates[:, 0 * h_pad:1 * h_pad])
            f_g = jax.nn.sigmoid(gates[:, 1 * h_pad:2 * h_pad])
            g_g = jnp.tanh(gates[:, 2 * h_pad:3 * h_pad])
            o_g = jax.nn.sigmoid(gates[:, 3 * h_pad:4 * h_pad])
            c = f_g * c + i_g * g_g
            h = o_g * jnp.tanh(c)
            return (h, c), h

        init = (jnp.zeros((b_pad, h_pad), jnp.float32),
                jnp.zeros((b_pad, h_pad), jnp.float32))
        (h_last, _), h_stack = jax.lax.scan(step, init, g_all)
        h_seq = h_stack

    w_p, b_p = params["proj"]
    y = jnp.dot(h_last.astype(compute_dtype), w_p,
                preferred_element_type=jnp.float32) + b_p
    y = y / jnp.linalg.norm(y, axis=1, keepdims=True)
    return y[:b, :proj_dim]


if __name__ == "__main__":
    # Small, synthetic hyperparameters consistent with the module's shapes.
    B, T = 2, 8
    NMELS, HIDDEN, NUM_LAYERS, PROJ = 16, 32, 3, 16
    COMPUTE_DTYPE = jnp.bfloat16

    key = jax.random.PRNGKey(0)
    key, kx = jax.random.split(key)
    x = jax.random.normal(kx, (B, T, NMELS), jnp.float32)

    params = init_params(key, NMELS, HIDDEN, NUM_LAYERS, PROJ,
                         compute_dtype=COMPUTE_DTYPE)

    # Prime the runtime feature probes outside the jitted trace.
    _buffered_pipeline_supported()
    _vmem_budgets()
    _want_batch_split()

    forward = jax.jit(functools.partial(
        speech_embedder_forward, proj_dim=PROJ, compute_dtype=COMPUTE_DTYPE))
    out = jax.block_until_ready(forward(x, params))

    assert out.shape == (B, PROJ), out.shape
    # Rows are unit-norm (the module divides by the L2 norm).
    norms = jnp.linalg.norm(out, axis=1)
    assert bool(jnp.all(jnp.abs(norms - 1.0) < 1e-3)), norms

    # Verify against a pure-XLA reference with identical dtype handling.
    ref = _reference_forward(x, params, PROJ, COMPUTE_DTYPE)
    max_err = float(jnp.max(jnp.abs(out - ref)))
    assert max_err < 1e-2, f"max abs error vs reference: {max_err}"

    print("KERNEL_OK")
</pallas_src>

<mosaic_0001>
module attributes {stable_mosaic.version = 11 : i64} {
  func.func @_lstm_seq_kernel(%arg0: i32, %arg1: i32, %arg2: memref<8x8x128xbf16, #tpu.memory_space<vmem>>, %arg3: memref<128x512xbf16, #tpu.memory_space<vmem>>, %arg4: memref<128x512xbf16, #tpu.memory_space<vmem>>, %arg5: memref<1x512xf32, #tpu.memory_space<vmem>>, %arg6: memref<8x8x128xbf16, #tpu.memory_space<vmem>>, %arg7: memref<8x128xf32, #tpu.memory_space<vmem>>, %arg8: memref<8x128xf32, #tpu.memory_space<vmem>>, %arg9: memref<8x8x512xf32, #tpu.memory_space<vmem>>) attributes {dimension_semantics = [#tpu.dimension_semantics<parallel>, #tpu.dimension_semantics<arbitrary>], iteration_bounds = array<i64: 1, 1>, scalar_prefetch = 0 : i64, scratch_operands = 3 : i64, tpu.core_type = #tpu.core_type<tc>, window_params = [{transform_indices = @transform_0, window_bounds = array<i64: 8, 8, 128>}, {pipeline_mode = #tpu.pipeline_mode<synchronous>, transform_indices = @transform_1, window_bounds = array<i64: 128, 512>}, {pipeline_mode = #tpu.pipeline_mode<synchronous>, transform_indices = @transform_2, window_bounds = array<i64: 128, 512>}, {pipeline_mode = #tpu.pipeline_mode<synchronous>, transform_indices = @transform_3, window_bounds = array<i64: 1, 512>}, {transform_indices = @transform_4, window_bounds = array<i64: 8, 8, 128>}]} {
    %c0_i32 = arith.constant 0 : i32
    %0 = arith.cmpi eq, %arg1, %c0_i32 : i32
    %1 = arith.extui %0 : i1 to i32
    %c0_i32_0 = arith.constant 0 : i32
    %2 = arith.cmpi ne, %1, %c0_i32_0 : i32
    scf.if %2 {
      %cst_169 = arith.constant 0.000000e+00 : f32
      %383 = vector.broadcast %cst_169 : f32 to vector<8x128xf32>
      %c0_170 = arith.constant 0 : index
      %c0_171 = arith.constant 0 : index
      %384 = vector.load %arg7[%c0_170, %c0_171] : memref<8x128xf32, #tpu.memory_space<vmem>>, vector<8x128xf32>
      tpu.vector_store %arg7[%c0_170, %c0_171], %383 {strides = array<i32>} : memref<8x128xf32, #tpu.memory_space<vmem>>, vector<8x128xf32>,
      %cst_172 = arith.constant 0.000000e+00 : f32
      %385 = vector.broadcast %cst_172 : f32 to vector<8x128xf32>
      %c0_173 = arith.constant 0 : index
      %c0_174 = arith.constant 0 : index
      %386 = vector.load %arg8[%c0_173, %c0_174] : memref<8x128xf32, #tpu.memory_space<vmem>>, vector<8x128xf32>
      tpu.vector_store %arg8[%c0_173, %c0_174], %385 {strides = array<i32>} : memref<8x128xf32, #tpu.memory_space<vmem>>, vector<8x128xf32>,
    } else {
    }
    %c0 = arith.constant 0 : index
    %c0_1 = arith.constant 0 : index
    %c0_2 = arith.constant 0 : index
    %3 = vector.load %arg2[%c0, %c0_1, %c0_2] : memref<8x8x128xbf16, #tpu.memory_space<vmem>>, vector<1x8x128xbf16>
    %4 = vector.shape_cast %3 : vector<1x8x128xbf16> to vector<8x128xbf16>
    %c0_3 = arith.constant 0 : index
    %c0_4 = arith.constant 0 : index
    %5 = vector.load %arg3[%c0_3, %c0_4] : memref<128x512xbf16, #tpu.memory_space<vmem>>, vector<128x512xbf16>
    %cst = arith.constant dense<0.000000e+00> : vector<8x512xf32>
    %6 = tpu.matmul %4, %5, %cst {dimension_numbers = #tpu.dot_dimension_numbers<[1], [0], [0], [1], [0, 0, 1, 1], [], []>} : vector<8x128xbf16>, vector<128x512xbf16>, vector<8x512xf32> -> vector<8x512xf32>
    %c0_5 = arith.constant 0 : index
    %c0_6 = arith.constant 0 : index
    %7 = vector.load %arg5[%c0_5, %c0_6] : memref<1x512xf32, #tpu.memory_space<vmem>>, vector<1x512xf32>
    %8 = vector.broadcast %7 : vector<1x512xf32> to vector<8x512xf32>
    %9 = arith.addf %6, %8 : vector<8x512xf32>
    %c0_7 = arith.constant 0 : index
    %c0_8 = arith.constant 0 : index
    %c0_9 = arith.constant 0 : index
    %10 = vector.load %arg9[%c0_7, %c0_8, %c0_9] : memref<8x8x512xf32, #tpu.memory_space<vmem>>, vector<1x8x512xf32>
    %11 = vector.shape_cast %10 : vector<1x8x512xf32> to vector<8x512xf32>
    %12 = vector.shape_cast %9 : vector<8x512xf32> to vector<1x8x512xf32>
    tpu.vector_store %arg9[%c0_7, %c0_8, %c0_9], %12 {strides = array<i32>} : memref<8x8x512xf32, #tpu.memory_space<vmem>>, vector<1x8x512xf32>,
    %c1 = arith.constant 1 : index
    %c0_10 = arith.constant 0 : index
    %c0_11 = arith.constant 0 : index
    %13 = vector.load %arg2[%c1, %c0_10, %c0_11] : memref<8x8x128xbf16, #tpu.memory_space<vmem>>, vector<1x8x128xbf16>
    %14 = vector.shape_cast %13 : vector<1x8x128xbf16> to vector<8x128xbf16>
    %c0_12 = arith.constant 0 : index
    %c0_13 = arith.constant 0 : index
    %15 = vector.load %arg3[%c0_12, %c0_13] : memref<128x512xbf16, #tpu.memory_space<vmem>>, vector<128x512xbf16>
    %cst_14 = arith.constant dense<0.000000e+00> : vector<8x512xf32>
    %16 = tpu.matmul %14, %15, %cst_14 {dimension_numbers = #tpu.dot_dimension_numbers<[1], [0], [0], [1], [0, 0, 1, 1], [], []>} : vector<8x128xbf16>, vector<128x512xbf16>, vector<8x512xf32> -> vector<8x512xf32>
    %c0_15 = arith.constant 0 : index
    %c0_16 = arith.constant 0 : index
    %17 = vector.load %arg5[%c0_15, %c0_16] : memref<1x512xf32, #tpu.memory_space<vmem>>, vector<1x512xf32>
    %18 = vector.broadcast %17 : vector<1x512xf32> to vector<8x512xf32>
    %19 = arith.addf %16, %18 : vector<8x512xf32>
    %c1_17 = arith.constant 1 : index
    %c0_18 = arith.constant 0 : index
    %c0_19 = arith.constant 0 : index
    %20 = vector.load %arg9[%c1_17, %c0_18, %c0_19] : memref<8x8x512xf32, #tpu.memory_space<vmem>>, vector<1x8x512xf32>
    %21 = vector.shape_cast %20 : vector<1x8x512xf32> to vector<8x512xf32>
    %22 = vector.shape_cast %19 : vector<8x512xf32> to vector<1x8x512xf32>
    tpu.vector_store %arg9[%c1_17, %c0_18, %c0_19], %22 {strides = array<i32>} : memref<8x8x512xf32, #tpu.memory_space<vmem>>, vector<1x8x512xf32>,
    %c2 = arith.constant 2 : index
    %c0_20 = arith.constant 0 : index
    %c0_21 = arith.constant 0 : index
    %23 = vector.load %arg2[%c2, %c0_20, %c0_21] : memref<8x8x128xbf16, #tpu.memory_space<vmem>>, vector<1x8x128xbf16>
    %24 = vector.shape_cast %23 : vector<1x8x128xbf16> to vector<8x128xbf16>
    %c0_22 = arith.constant 0 : index
    %c0_23 = arith.constant 0 : index
    %25 = vector.load %arg3[%c0_22, %c0_23] : memref<128x512xbf16, #tpu.memory_space<vmem>>, vector<128x512xbf16>
    %cst_24 = arith.constant dense<0.000000e+00> : vector<8x512xf32>
    %26 = tpu.matmul %24, %25, %cst_24 {dimension_numbers = #tpu.dot_dimension_numbers<[1], [0], [0], [1], [0, 0, 1, 1], [], []>} : vector<8x128xbf16>, vector<128x512xbf16>, vector<8x512xf32> -> vector<8x512xf32>
    %c0_25 = arith.constant 0 : index
    %c0_26 = arith.constant 0 : index
    %27 = vector.load %arg5[%c0_25, %c0_26] : memref<1x512xf32, #tpu.memory_space<vmem>>, vector<1x512xf32>
    %28 = vector.broadcast %27 : vector<1x512xf32> to vector<8x512xf32>
    %29 = arith.addf %26, %28 : vector<8x512xf32>
    %c2_27 = arith.constant 2 : index
    %c0_28 = arith.constant 0 : index
    %c0_29 = arith.constant 0 : index
    %30 = vector.load %arg9[%c2_27, %c0_28, %c0_29] : memref<8x8x512xf32, #tpu.memory_space<vmem>>, vector<1x8x512xf32>
    %31 = vector.shape_cast %30 : vector<1x8x512xf32> to vector<8x512xf32>
    %32 = vector.shape_cast %29 : vector<8x512xf32> to vector<1x8x512xf32>
    tpu.vector_store %arg9[%c2_27, %c0_28, %c0_29], %32 {strides = array<i32>} : memref<8x8x512xf32, #tpu.memory_space<vmem>>, vector<1x8x512xf32>,
    %c3 = arith.constant 3 : index
    %c0_30 = arith.constant 0 : index
    %c0_31 = arith.constant 0 : index
    %33 = vector.load %arg2[%c3, %c0_30, %c0_31] : memref<8x8x128xbf16, #tpu.memory_space<vmem>>, vector<1x8x128xbf16>
    %34 = vector.shape_cast %33 : vector<1x8x128xbf16> to vector<8x128xbf16>
    %c0_32 = arith.constant 0 : index
    %c0_33 = arith.constant 0 : index
    %35 = vector.load %arg3[%c0_32, %c0_33] : memref<128x512xbf16, #tpu.memory_space<vmem>>, vector<128x512xbf16>
    %cst_34 = arith.constant dense<0.000000e+00> : vector<8x512xf32>
    %36 = tpu.matmul %34, %35, %cst_34 {dimension_numbers = #tpu.dot_dimension_numbers<[1], [0], [0], [1], [0, 0, 1, 1], [], []>} : vector<8x128xbf16>, vector<128x512xbf16>, vector<8x512xf32> -> vector<8x512xf32>
    %c0_35 = arith.constant 0 : index
    %c0_36 = arith.constant 0 : index
    %37 = vector.load %arg5[%c0_35, %c0_36] : memref<1x512xf32, #tpu.memory_space<vmem>>, vector<1x512xf32>
    %38 = vector.broadcast %37 : vector<1x512xf32> to vector<8x512xf32>
    %39 = arith.addf %36, %38 : vector<8x512xf32>
    %c3_37 = arith.constant 3 : index
    %c0_38 = arith.constant 0 : index
    %c0_39 = arith.constant 0 : index
    %40 = vector.load %arg9[%c3_37, %c0_38, %c0_39] : memref<8x8x512xf32, #tpu.memory_space<vmem>>, vector<1x8x512xf32>
    %41 = vector.shape_cast %40 : vector<1x8x512xf32> to vector<8x512xf32>
    %42 = vector.shape_cast %39 : vector<8x512xf32> to vector<1x8x512xf32>
    tpu.vector_store %arg9[%c3_37, %c0_38, %c0_39], %42 {strides = array<i32>} : memref<8x8x512xf32, #tpu.memory_space<vmem>>, vector<1x8x512xf32>,
    %c4 = arith.constant 4 : index
    %c0_40 = arith.constant 0 : index
    %c0_41 = arith.constant 0 : index
    %43 = vector.load %arg2[%c4, %c0_40, %c0_41] : memref<8x8x128xbf16, #tpu.memory_space<vmem>>, vector<1x8x128xbf16>
    %44 = vector.shape_cast %43 : vector<1x8x128xbf16> to vector<8x128xbf16>
    %c0_42 = arith.constant 0 : index
    %c0_43 = arith.constant 0 : index
    %45 = vector.load %arg3[%c0_42, %c0_43] : memref<128x512xbf16, #tpu.memory_space<vmem>>, vector<128x512xbf16>
    %cst_44 = arith.constant dense<0.000000e+00> : vector<8x512xf32>
    %46 = tpu.matmul %44, %45, %cst_44 {dimension_numbers = #tpu.dot_dimension_numbers<[1], [0], [0], [1], [0, 0, 1, 1], [], []>} : vector<8x128xbf16>, vector<128x512xbf16>, vector<8x512xf32> -> vector<8x512xf32>
    %c0_45 = arith.constant 0 : index
    %c0_46 = arith.constant 0 : index
    %47 = vector.load %arg5[%c0_45, %c0_46] : memref<1x512xf32, #tpu.memory_space<vmem>>, vector<1x512xf32>
    %48 = vector.broadcast %47 : vector<1x512xf32> to vector<8x512xf32>
    %49 = arith.addf %46, %48 : vector<8x512xf32>
    %c4_47 = arith.constant 4 : index
    %c0_48 = arith.constant 0 : index
    %c0_49 = arith.constant 0 : index
    %50 = vector.load %arg9[%c4_47, %c0_48, %c0_49] : memref<8x8x512xf32, #tpu.memory_space<vmem>>, vector<1x8x512xf32>
    %51 = vector.shape_cast %50 : vector<1x8x512xf32> to vector<8x512xf32>
    %52 = vector.shape_cast %49 : vector<8x512xf32> to vector<1x8x512xf32>
    tpu.vector_store %arg9[%c4_47, %c0_48, %c0_49], %52 {strides = array<i32>} : memref<8x8x512xf32, #tpu.memory_space<vmem>>, vector<1x8x512xf32>,
    %c5 = arith.constant 5 : index
    %c0_50 = arith.constant 0 : index
    %c0_51 = arith.constant 0 : index
    %53 = vector.load %arg2[%c5, %c0_50, %c0_51] : memref<8x8x128xbf16, #tpu.memory_space<vmem>>, vector<1x8x128xbf16>
    %54 = vector.shape_cast %53 : vector<1x8x128xbf16> to vector<8x128xbf16>
    %c0_52 = arith.constant 0 : index
    %c0_53 = arith.constant 0 : index
    %55 = vector.load %arg3[%c0_52, %c0_53] : memref<128x512xbf16, #tpu.memory_space<vmem>>, vector<128x512xbf16>
    %cst_54 = arith.constant dense<0.000000e+00> : vector<8x512xf32>
    %56 = tpu.matmul %54, %55, %cst_54 {dimension_numbers = #tpu.dot_dimension_numbers<[1], [0], [0], [1], [0, 0, 1, 1], [], []>} : vector<8x128xbf16>, vector<128x512xbf16>, vector<8x512xf32> -> vector<8x512xf32>
    %c0_55 = arith.constant 0 : index
    %c0_56 = arith.constant 0 : index
    %57 = vector.load %arg5[%c0_55, %c0_56] : memref<1x512xf32, #tpu.memory_space<vmem>>, vector<1x512xf32>
    %58 = vector.broadcast %57 : vector<1x512xf32> to vector<8x512xf32>
    %59 = arith.addf %56, %58 : vector<8x512xf32>
    %c5_57 = arith.constant 5 : index
    %c0_58 = arith.constant 0 : index
    %c0_59 = arith.constant 0 : index
    %60 = vector.load %arg9[%c5_57, %c0_58, %c0_59] : memref<8x8x512xf32, #tpu.memory_space<vmem>>, vector<1x8x512xf32>
    %61 = vector.shape_cast %60 : vector<1x8x512xf32> to vector<8x512xf32>
    %62 = vector.shape_cast %59 : vector<8x512xf32> to vector<1x8x512xf32>
    tpu.vector_store %arg9[%c5_57, %c0_58, %c0_59], %62 {strides = array<i32>} : memref<8x8x512xf32, #tpu.memory_space<vmem>>, vector<1x8x512xf32>,
    %c6 = arith.constant 6 : index
    %c0_60 = arith.constant 0 : index
    %c0_61 = arith.constant 0 : index
    %63 = vector.load %arg2[%c6, %c0_60, %c0_61] : memref<8x8x128xbf16, #tpu.memory_space<vmem>>, vector<1x8x128xbf16>
    %64 = vector.shape_cast %63 : vector<1x8x128xbf16> to vector<8x128xbf16>
    %c0_62 = arith.constant 0 : index
    %c0_63 = arith.constant 0 : index
    %65 = vector.load %arg3[%c0_62, %c0_63] : memref<128x512xbf16, #tpu.memory_space<vmem>>, vector<128x512xbf16>
    %cst_64 = arith.constant dense<0.000000e+00> : vector<8x512xf32>
    %66 = tpu.matmul %64, %65, %cst_64 {dimension_numbers = #tpu.dot_dimension_numbers<[1], [0], [0], [1], [0, 0, 1, 1], [], []>} : vector<8x128xbf16>, vector<128x512xbf16>, vector<8x512xf32> -> vector<8x512xf32>
    %c0_65 = arith.constant 0 : index
    %c0_66 = arith.constant 0 : index
    %67 = vector.load %arg5[%c0_65, %c0_66] : memref<1x512xf32, #tpu.memory_space<vmem>>, vector<1x512xf32>
    %68 = vector.broadcast %67 : vector<1x512xf32> to vector<8x512xf32>
    %69 = arith.addf %66, %68 : vector<8x512xf32>
    %c6_67 = arith.constant 6 : index
    %c0_68 = arith.constant 0 : index
    %c0_69 = arith.constant 0 : index
    %70 = vector.load %arg9[%c6_67, %c0_68, %c0_69] : memref<8x8x512xf32, #tpu.memory_space<vmem>>, vector<1x8x512xf32>
    %71 = vector.shape_cast %70 : vector<1x8x512xf32> to vector<8x512xf32>
    %72 = vector.shape_cast %69 : vector<8x512xf32> to vector<1x8x512xf32>
    tpu.vector_store %arg9[%c6_67, %c0_68, %c0_69], %72 {strides = array<i32>} : memref<8x8x512xf32, #tpu.memory_space<vmem>>, vector<1x8x512xf32>,
    %c7 = arith.constant 7 : index
    %c0_70 = arith.constant 0 : index
    %c0_71 = arith.constant 0 : index
    %73 = vector.load %arg2[%c7, %c0_70, %c0_71] : memref<8x8x128xbf16, #tpu.memory_space<vmem>>, vector<1x8x128xbf16>
    %74 = vector.shape_cast %73 : vector<1x8x128xbf16> to vector<8x128xbf16>
    %c0_72 = arith.constant 0 : index
    %c0_73 = arith.constant 0 : index
    %75 = vector.load %arg3[%c0_72, %c0_73] : memref<128x512xbf16, #tpu.memory_space<vmem>>, vector<128x512xbf16>
    %cst_74 = arith.constant dense<0.000000e+00> : vector<8x512xf32>
    %76 = tpu.matmul %74, %75, %cst_74 {dimension_numbers = #tpu.dot_dimension_numbers<[1], [0], [0], [1], [0, 0, 1, 1], [], []>} : vector<8x128xbf16>, vector<128x512xbf16>, vector<8x512xf32> -> vector<8x512xf32>
    %c0_75 = arith.constant 0 : index
    %c0_76 = arith.constant 0 : index
    %77 = vector.load %arg5[%c0_75, %c0_76] : memref<1x512xf32, #tpu.memory_space<vmem>>, vector<1x512xf32>
    %78 = vector.broadcast %77 : vector<1x512xf32> to vector<8x512xf32>
    %79 = arith.addf %76, %78 : vector<8x512xf32>
    %c7_77 = arith.constant 7 : index
    %c0_78 = arith.constant 0 : index
    %c0_79 = arith.constant 0 : index
    %80 = vector.load %arg9[%c7_77, %c0_78, %c0_79] : memref<8x8x512xf32, #tpu.memory_space<vmem>>, vector<1x8x512xf32>
    %81 = vector.shape_cast %80 : vector<1x8x512xf32> to vector<8x512xf32>
    %82 = vector.shape_cast %79 : vector<8x512xf32> to vector<1x8x512xf32>
    tpu.vector_store %arg9[%c7_77, %c0_78, %c0_79], %82 {strides = array<i32>} : memref<8x8x512xf32, #tpu.memory_space<vmem>>, vector<1x8x512xf32>,
    %c0_80 = arith.constant 0 : index
    %c0_81 = arith.constant 0 : index
    %83 = vector.load %arg7[%c0_80, %c0_81] : memref<8x128xf32, #tpu.memory_space<vmem>>, vector<8x128xf32>
    %c0_82 = arith.constant 0 : index
    %c0_83 = arith.constant 0 : index
    %84 = vector.load %arg8[%c0_82, %c0_83] : memref<8x128xf32, #tpu.memory_space<vmem>>, vector<8x128xf32>
    %c0_i32_84 = arith.constant 0 : i32
    %85 = arith.index_cast %c0_i32_84 : i32 to index
    %c0_85 = arith.constant 0 : index
    %c0_86 = arith.constant 0 : index
    %86 = vector.load %arg9[%85, %c0_85, %c0_86] : memref<8x8x512xf32, #tpu.memory_space<vmem>>, vector<1x8x512xf32>
    %87 = vector.shape_cast %86 : vector<1x8x512xf32> to vector<8x512xf32>
    %88 = arith.truncf %83 : vector<8x128xf32> to vector<8x128xbf16>
    %c0_87 = arith.constant 0 : index
    %c0_88 = arith.constant 0 : index
    %89 = vector.load %arg4[%c0_87, %c0_88] : memref<128x512xbf16, #tpu.memory_space<vmem>>, vector<128x512xbf16>
    %cst_89 = arith.constant dense<0.000000e+00> : vector<8x512xf32>
    %90 = tpu.matmul %88, %89, %cst_89 {dimension_numbers = #tpu.dot_dimension_numbers<[1], [0], [0], [1], [0, 0, 1, 1], [], []>} : vector<8x128xbf16>, vector<128x512xbf16>, vector<8x512xf32> -> vector<8x512xf32>
    %91 = arith.addf %87, %90 : vector<8x512xf32>
    %92 = vector.extract_strided_slice %91 {offsets = [0, 0], sizes = [8, 128], strides = [1, 1]} : vector<8x512xf32> to vector<8x128xf32>
    %93 = arith.negf %92 : vector<8x128xf32>
    %94 = math.exp %93 : vector<8x128xf32>
    %cst_90 = arith.constant 1.000000e+00 : f32
    %95 = vector.broadcast %cst_90 : f32 to vector<8x128xf32>
    %96 = arith.addf %95, %94 : vector<8x128xf32>
    %97 = arith.divf %95, %96 : vector<8x128xf32>
    %98 = vector.extract_strided_slice %91 {offsets = [0, 128], sizes = [8, 128], strides = [1, 1]} : vector<8x512xf32> to vector<8x128xf32>
    %99 = arith.negf %98 : vector<8x128xf32>
    %100 = math.exp %99 : vector<8x128xf32>
    %cst_91 = arith.constant 1.000000e+00 : f32
    %101 = vector.broadcast %cst_91 : f32 to vector<8x128xf32>
    %102 = arith.addf %101, %100 : vector<8x128xf32>
    %103 = arith.divf %101, %102 : vector<8x128xf32>
    %104 = vector.extract_strided_slice %91 {offsets = [0, 256], sizes = [8, 128], strides = [1, 1]} : vector<8x512xf32> to vector<8x128xf32>
    %105 = math.tanh %104 : vector<8x128xf32>
    %106 = vector.extract_strided_slice %91 {offsets = [0, 384], sizes = [8, 128], strides = [1, 1]} : vector<8x512xf32> to vector<8x128xf32>
    %107 = arith.negf %106 : vector<8x128xf32>
    %108 = math.exp %107 : vector<8x128xf32>
    %cst_92 = arith.constant 1.000000e+00 : f32
    %109 = vector.broadcast %cst_92 : f32 to vector<8x128xf32>
    %110 = arith.addf %109, %108 : vector<8x128xf32>
    %111 = arith.divf %109, %110 : vector<8x128xf32>
    %112 = arith.mulf %103, %84 : vector<8x128xf32>
    %113 = arith.mulf %97, %105 : vector<8x128xf32>
    %114 = arith.addf %112, %113 : vector<8x128xf32>
    %115 = math.tanh %114 : vector<8x128xf32>
    %116 = arith.mulf %111, %115 : vector<8x128xf32>
    %117 = arith.truncf %116 : vector<8x128xf32> to vector<8x128xbf16>
    %118 = arith.index_cast %c0_i32_84 : i32 to index
    %c0_93 = arith.constant 0 : index
    %c0_94 = arith.constant 0 : index
    %119 = vector.load %arg6[%118, %c0_93, %c0_94] : memref<8x8x128xbf16, #tpu.memory_space<vmem>>, vector<1x8x128xbf16>
    %120 = vector.shape_cast %119 : vector<1x8x128xbf16> to vector<8x128xbf16>
    %121 = vector.shape_cast %117 : vector<8x128xbf16> to vector<1x8x128xbf16>
    tpu.vector_store %arg6[%118, %c0_93, %c0_94], %121 {strides = array<i32>} : memref<8x8x128xbf16, #tpu.memory_space<vmem>>, vector<1x8x128xbf16>,
    %c1_i32 = arith.constant 1 : i32
    %122 = arith.index_cast %c1_i32 : i32 to index
    %c0_95 = arith.constant 0 : index
    %c0_96 = arith.constant 0 : index
    %123 = vector.load %arg9[%122, %c0_95, %c0_96] : memref<8x8x512xf32, #tpu.memory_space<vmem>>, vector<1x8x512xf32>
    %124 = vector.shape_cast %123 : vector<1x8x512xf32> to vector<8x512xf32>
    %125 = arith.truncf %116 : vector<8x128xf32> to vector<8x128xbf16>
    %c0_97 = arith.constant 0 : index
    %c0_98 = arith.constant 0 : index
    %126 = vector.load %arg4[%c0_97, %c0_98] : memref<128x512xbf16, #tpu.memory_space<vmem>>, vector<128x512xbf16>
    %cst_99 = arith.constant dense<0.000000e+00> : vector<8x512xf32>
    %127 = tpu.matmul %125, %126, %cst_99 {dimension_numbers = #tpu.dot_dimension_numbers<[1], [0], [0], [1], [0, 0, 1, 1], [], []>} : vector<8x128xbf16>, vector<128x512xbf16>, vector<8x512xf32> -> vector<8x512xf32>
    %128 = arith.addf %124, %127 : vector<8x512xf32>
    %129 = vector.extract_strided_slice %128 {offsets = [0, 0], sizes = [8, 128], strides = [1, 1]} : vector<8x512xf32> to vector<8x128xf32>
    %130 = arith.negf %129 : vector<8x128xf32>
    %131 = math.exp %130 : vector<8x128xf32>
    %cst_100 = arith.constant 1.000000e+00 : f32
    %132 = vector.broadcast %cst_100 : f32 to vector<8x128xf32>
    %133 = arith.addf %132, %131 : vector<8x128xf32>
    %134 = arith.divf %132, %133 : vector<8x128xf32>
    %135 = vector.extract_strided_slice %128 {offsets = [0, 128], sizes = [8, 128], strides = [1, 1]} : vector<8x512xf32> to vector<8x128xf32>
    %136 = arith.negf %135 : vector<8x128xf32>
    %137 = math.exp %136 : vector<8x128xf32>
    %cst_101 = arith.constant 1.000000e+00 : f32
    %138 = vector.broadcast %cst_101 : f32 to vector<8x128xf32>
    %139 = arith.addf %138, %137 : vector<8x128xf32>
    %140 = arith.divf %138, %139 : vector<8x128xf32>
    %141 = vector.extract_strided_slice %128 {offsets = [0, 256], sizes = [8, 128], strides = [1, 1]} : vector<8x512xf32> to vector<8x128xf32>
    %142 = math.tanh %141 : vector<8x128xf32>
    %143 = vector.extract_strided_slice %128 {offsets = [0, 384], sizes = [8, 128], strides = [1, 1]} : vector<8x512xf32> to vector<8x128xf32>
    %144 = arith.negf %143 : vector<8x128xf32>
    %145 = math.exp %144 : vector<8x128xf32>
    %cst_102 = arith.constant 1.000000e+00 : f32
    %146 = vector.broadcast %cst_102 : f32 to vector<8x128xf32>
    %147 = arith.addf %146, %145 : vector<8x128xf32>
    %148 = arith.divf %146, %147 : vector<8x128xf32>
    %149 = arith.mulf %140, %114 : vector<8x128xf32>
    %150 = arith.mulf %134, %142 : vector<8x128xf32>
    %151 = arith.addf %149, %150 : vector<8x128xf32>
    %152 = math.tanh %151 : vector<8x128xf32>
    %153 = arith.mulf %148, %152 : vector<8x128xf32>
    %154 = arith.truncf %153 : vector<8x128xf32> to vector<8x128xbf16>
    %155 = arith.index_cast %c1_i32 : i32 to index
    %c0_103 = arith.constant 0 : index
    %c0_104 = arith.constant 0 : index
    %156 = vector.load %arg6[%155, %c0_103, %c0_104] : memref<8x8x128xbf16, #tpu.memory_space<vmem>>, vector<1x8x128xbf16>
    %157 = vector.shape_cast %156 : vector<1x8x128xbf16> to vector<8x128xbf16>
    %158 = vector.shape_cast %154 : vector<8x128xbf16> to vector<1x8x128xbf16>
    tpu.vector_store %arg6[%155, %c0_103, %c0_104], %158 {strides = array<i32>} : memref<8x8x128xbf16, #tpu.memory_space<vmem>>, vector<1x8x128xbf16>,
    %c2_i32 = arith.constant 2 : i32
    %159 = arith.index_cast %c2_i32 : i32 to index
    %c0_105 = arith.constant 0 : index
    %c0_106 = arith.constant 0 : index
    %160 = vector.load %arg9[%159, %c0_105, %c0_106] : memref<8x8x512xf32, #tpu.memory_space<vmem>>, vector<1x8x512xf32>
    %161 = vector.shape_cast %160 : vector<1x8x512xf32> to vector<8x512xf32>
    %162 = arith.truncf %153 : vector<8x128xf32> to vector<8x128xbf16>
    %c0_107 = arith.constant 0 : index
    %c0_108 = arith.constant 0 : index
    %163 = vector.load %arg4[%c0_107, %c0_108] : memref<128x512xbf16, #tpu.memory_space<vmem>>, vector<128x512xbf16>
    %cst_109 = arith.constant dense<0.000000e+00> : vector<8x512xf32>
    %164 = tpu.matmul %162, %163, %cst_109 {dimension_numbers = #tpu.dot_dimension_numbers<[1], [0], [0], [1], [0, 0, 1, 1], [], []>} : vector<8x128xbf16>, vector<128x512xbf16>, vector<8x512xf32> -> vector<8x512xf32>
    %165 = arith.addf %161, %164 : vector<8x512xf32>
    %166 = vector.extract_strided_slice %165 {offsets = [0, 0], sizes = [8, 128], strides = [1, 1]} : vector<8x512xf32> to vector<8x128xf32>
    %167 = arith.negf %166 : vector<8x128xf32>
    %168 = math.exp %167 : vector<8x128xf32>
    %cst_110 = arith.constant 1.000000e+00 : f32
    %169 = vector.broadcast %cst_110 : f32 to vector<8x128xf32>
    %170 = arith.addf %169, %168 : vector<8x128xf32>
    %171 = arith.divf %169, %170 : vector<8x128xf32>
    %172 = vector.extract_strided_slice %165 {offsets = [0, 128], sizes = [8, 128], strides = [1, 1]} : vector<8x512xf32> to vector<8x128xf32>
    %173 = arith.negf %172 : vector<8x128xf32>
    %174 = math.exp %173 : vector<8x128xf32>
    %cst_111 = arith.constant 1.000000e+00 : f32
    %175 = vector.broadcast %cst_111 : f32 to vector<8x128xf32>
    %176 = arith.addf %175, %174 : vector<8x128xf32>
    %177 = arith.divf %175, %176 : vector<8x128xf32>
    %178 = vector.extract_strided_slice %165 {offsets = [0, 256], sizes = [8, 128], strides = [1, 1]} : vector<8x512xf32> to vector<8x128xf32>
    %179 = math.tanh %178 : vector<8x128xf32>
    %180 = vector.extract_strided_slice %165 {offsets = [0, 384], sizes = [8, 128], strides = [1, 1]} : vector<8x512xf32> to vector<8x128xf32>
    %181 = arith.negf %180 : vector<8x128xf32>
    %182 = math.exp %181 : vector<8x128xf32>
    %cst_112 = arith.constant 1.000000e+00 : f32
    %183 = vector.broadcast %cst_112 : f32 to vector<8x128xf32>
    %184 = arith.addf %183, %182 : vector<8x128xf32>
    %185 = arith.divf %183, %184 : vector<8x128xf32>
    %186 = arith.mulf %177, %151 : vector<8x128xf32>
    %187 = arith.mulf %171, %179 : vector<8x128xf32>
    %188 = arith.addf %186, %187 : vector<8x128xf32>
    %189 = math.tanh %188 : vector<8x128xf32>
    %190 = arith.mulf %185, %189 : vector<8x128xf32>
    %191 = arith.truncf %190 : vector<8x128xf32> to vector<8x128xbf16>
    %192 = arith.index_cast %c2_i32 : i32 to index
    %c0_113 = arith.constant 0 : index
    %c0_114 = arith.constant 0 : index
    %193 = vector.load %arg6[%192, %c0_113, %c0_114] : memref<8x8x128xbf16, #tpu.memory_space<vmem>>, vector<1x8x128xbf16>
    %194 = vector.shape_cast %193 : vector<1x8x128xbf16> to vector<8x128xbf16>
    %195 = vector.shape_cast %191 : vector<8x128xbf16> to vector<1x8x128xbf16>
    tpu.vector_store %arg6[%192, %c0_113, %c0_114], %195 {strides = array<i32>} : memref<8x8x128xbf16, #tpu.memory_space<vmem>>, vector<1x8x128xbf16>,
    %c3_i32 = arith.constant 3 : i32
    %196 = arith.index_cast %c3_i32 : i32 to index
    %c0_115 = arith.constant 0 : index
    %c0_116 = arith.constant 0 : index
    %197 = vector.load %arg9[%196, %c0_115, %c0_116] : memref<8x8x512xf32, #tpu.memory_space<vmem>>, vector<1x8x512xf32>
    %198 = vector.shape_cast %197 : vector<1x8x512xf32> to vector<8x512xf32>
    %199 = arith.truncf %190 : vector<8x128xf32> to vector<8x128xbf16>
    %c0_117 = arith.constant 0 : index
    %c0_118 = arith.constant 0 : index
    %200 = vector.load %arg4[%c0_117, %c0_118] : memref<128x512xbf16, #tpu.memory_space<vmem>>, vector<128x512xbf16>
    %cst_119 = arith.constant dense<0.000000e+00> : vector<8x512xf32>
    %201 = tpu.matmul %199, %200, %cst_119 {dimension_numbers = #tpu.dot_dimension_numbers<[1], [0], [0], [1], [0, 0, 1, 1], [], []>} : vector<8x128xbf16>, vector<128x512xbf16>, vector<8x512xf32> -> vector<8x512xf32>
    %202 = arith.addf %198, %201 : vector<8x512xf32>
    %203 = vector.extract_strided_slice %202 {offsets = [0, 0], sizes = [8, 128], strides = [1, 1]} : vector<8x512xf32> to vector<8x128xf32>
    %204 = arith.negf %203 : vector<8x128xf32>
    %205 = math.exp %204 : vector<8x128xf32>
    %cst_120 = arith.constant 1.000000e+00 : f32
    %206 = vector.broadcast %cst_120 : f32 to vector<8x128xf32>
    %207 = arith.addf %206, %205 : vector<8x128xf32>
    %208 = arith.divf %206, %207 : vector<8x128xf32>
    %209 = vector.extract_strided_slice %202 {offsets = [0, 128], sizes = [8, 128], strides = [1, 1]} : vector<8x512xf32> to vector<8x128xf32>
    %210 = arith.negf %209 : vector<8x128xf32>
    %211 = math.exp %210 : vector<8x128xf32>
    %cst_121 = arith.constant 1.000000e+00 : f32
    %212 = vector.broadcast %cst_121 : f32 to vector<8x128xf32>
    %213 = arith.addf %212, %211 : vector<8x128xf32>
    %214 = arith.divf %212, %213 : vector<8x128xf32>
    %215 = vector.extract_strided_slice %202 {offsets = [0, 256], sizes = [8, 128], strides = [1, 1]} : vector<8x512xf32> to vector<8x128xf32>
    %216 = math.tanh %215 : vector<8x128xf32>
    %217 = vector.extract_strided_slice %202 {offsets = [0, 384], sizes = [8, 128], strides = [1, 1]} : vector<8x512xf32> to vector<8x128xf32>
    %218 = arith.negf %217 : vector<8x128xf32>
    %219 = math.exp %218 : vector<8x128xf32>
    %cst_122 = arith.constant 1.000000e+00 : f32
    %220 = vector.broadcast %cst_122 : f32 to vector<8x128xf32>
    %221 = arith.addf %220, %219 : vector<8x128xf32>
    %222 = arith.divf %220, %221 : vector<8x128xf32>
    %223 = arith.mulf %214, %188 : vector<8x128xf32>
    %224 = arith.mulf %208, %216 : vector<8x128xf32>
    %225 = arith.addf %223, %224 : vector<8x128xf32>
    %226 = math.tanh %225 : vector<8x128xf32>
    %227 = arith.mulf %222, %226 : vector<8x128xf32>
    %228 = arith.truncf %227 : vector<8x128xf32> to vector<8x128xbf16>
    %229 = arith.index_cast %c3_i32 : i32 to index
    %c0_123 = arith.constant 0 : index
    %c0_124 = arith.constant 0 : index
    %230 = vector.load %arg6[%229, %c0_123, %c0_124] : memref<8x8x128xbf16, #tpu.memory_space<vmem>>, vector<1x8x128xbf16>
    %231 = vector.shape_cast %230 : vector<1x8x128xbf16> to vector<8x128xbf16>
    %232 = vector.shape_cast %228 : vector<8x128xbf16> to vector<1x8x128xbf16>
    tpu.vector_store %arg6[%229, %c0_123, %c0_124], %232 {strides = array<i32>} : memref<8x8x128xbf16, #tpu.memory_space<vmem>>, vector<1x8x128xbf16>,
    %c4_i32 = arith.constant 4 : i32
    %233 = arith.index_cast %c4_i32 : i32 to index
    %c0_125 = arith.constant 0 : index
    %c0_126 = arith.constant 0 : index
    %234 = vector.load %arg9[%233, %c0_125, %c0_126] : memref<8x8x512xf32, #tpu.memory_space<vmem>>, vector<1x8x512xf32>
    %235 = vector.shape_cast %234 : vector<1x8x512xf32> to vector<8x512xf32>
    %236 = arith.truncf %227 : vector<8x128xf32> to vector<8x128xbf16>
    %c0_127 = arith.constant 0 : index
    %c0_128 = arith.constant 0 : index
    %237 = vector.load %arg4[%c0_127, %c0_128] : memref<128x512xbf16, #tpu.memory_space<vmem>>, vector<128x512xbf16>
    %cst_129 = arith.constant dense<0.000000e+00> : vector<8x512xf32>
    %238 = tpu.matmul %236, %237, %cst_129 {dimension_numbers = #tpu.dot_dimension_numbers<[1], [0], [0], [1], [0, 0, 1, 1], [], []>} : vector<8x128xbf16>, vector<128x512xbf16>, vector<8x512xf32> -> vector<8x512xf32>
    %239 = arith.addf %235, %238 : vector<8x512xf32>
    %240 = vector.extract_strided_slice %239 {offsets = [0, 0], sizes = [8, 128], strides = [1, 1]} : vector<8x512xf32> to vector<8x128xf32>
    %241 = arith.negf %240 : vector<8x128xf32>
    %242 = math.exp %241 : vector<8x128xf32>
    %cst_130 = arith.constant 1.000000e+00 : f32
    %243 = vector.broadcast %cst_130 : f32 to vector<8x128xf32>
    %244 = arith.addf %243, %242 : vector<8x128xf32>
    %245 = arith.divf %243, %244 : vector<8x128xf32>
    %246 = vector.extract_strided_slice %239 {offsets = [0, 128], sizes = [8, 128], strides = [1, 1]} : vector<8x512xf32> to vector<8x128xf32>
    %247 = arith.negf %246 : vector<8x128xf32>
    %248 = math.exp %247 : vector<8x128xf32>
    %cst_131 = arith.constant 1.000000e+00 : f32
    %249 = vector.broadcast %cst_131 : f32 to vector<8x128xf32>
    %250 = arith.addf %249, %248 : vector<8x128xf32>
    %251 = arith.divf %249, %250 : vector<8x128xf32>
    %252 = vector.extract_strided_slice %239 {offsets = [0, 256], sizes = [8, 128], strides = [1, 1]} : vector<8x512xf32> to vector<8x128xf32>
    %253 = math.tanh %252 : vector<8x128xf32>
    %254 = vector.extract_strided_slice %239 {offsets = [0, 384], sizes = [8, 128], strides = [1, 1]} : vector<8x512xf32> to vector<8x128xf32>
    %255 = arith.negf %254 : vector<8x128xf32>
    %256 = math.exp %255 : vector<8x128xf32>
    %cst_132 = arith.constant 1.000000e+00 : f32
    %257 = vector.broadcast %cst_132 : f32 to vector<8x128xf32>
    %258 = arith.addf %257, %256 : vector<8x128xf32>
    %259 = arith.divf %257, %258 : vector<8x128xf32>
    %260 = arith.mulf %251, %225 : vector<8x128xf32>
    %261 = arith.mulf %245, %253 : vector<8x128xf32>
    %262 = arith.addf %260, %261 : vector<8x128xf32>
    %263 = math.tanh %262 : vector<8x128xf32>
    %264 = arith.mulf %259, %263 : vector<8x128xf32>
    %265 = arith.truncf %264 : vector<8x128xf32> to vector<8x128xbf16>
    %266 = arith.index_cast %c4_i32 : i32 to index
    %c0_133 = arith.constant 0 : index
    %c0_134 = arith.constant 0 : index
    %267 = vector.load %arg6[%266, %c0_133, %c0_134] : memref<8x8x128xbf16, #tpu.memory_space<vmem>>, vector<1x8x128xbf16>
    %268 = vector.shape_cast %267 : vector<1x8x128xbf16> to vector<8x128xbf16>
    %269 = vector.shape_cast %265 : vector<8x128xbf16> to vector<1x8x128xbf16>
    tpu.vector_store %arg6[%266, %c0_133, %c0_134], %269 {strides = array<i32>} : memref<8x8x128xbf16, #tpu.memory_space<vmem>>, vector<1x8x128xbf16>,
    %c5_i32 = arith.constant 5 : i32
    %270 = arith.index_cast %c5_i32 : i32 to index
    %c0_135 = arith.constant 0 : index
    %c0_136 = arith.constant 0 : index
    %271 = vector.load %arg9[%270, %c0_135, %c0_136] : memref<8x8x512xf32, #tpu.memory_space<vmem>>, vector<1x8x512xf32>
    %272 = vector.shape_cast %271 : vector<1x8x512xf32> to vector<8x512xf32>
    %273 = arith.truncf %264 : vector<8x128xf32> to vector<8x128xbf16>
    %c0_137 = arith.constant 0 : index
    %c0_138 = arith.constant 0 : index
    %274 = vector.load %arg4[%c0_137, %c0_138] : memref<128x512xbf16, #tpu.memory_space<vmem>>, vector<128x512xbf16>
    %cst_139 = arith.constant dense<0.000000e+00> : vector<8x512xf32>
    %275 = tpu.matmul %273, %274, %cst_139 {dimension_numbers = #tpu.dot_dimension_numbers<[1], [0], [0], [1], [0, 0, 1, 1], [], []>} : vector<8x128xbf16>, vector<128x512xbf16>, vector<8x512xf32> -> vector<8x512xf32>
    %276 = arith.addf %272, %275 : vector<8x512xf32>
    %277 = vector.extract_strided_slice %276 {offsets = [0, 0], sizes = [8, 128], strides = [1, 1]} : vector<8x512xf32> to vector<8x128xf32>
    %278 = arith.negf %277 : vector<8x128xf32>
    %279 = math.exp %278 : vector<8x128xf32>
    %cst_140 = arith.constant 1.000000e+00 : f32
    %280 = vector.broadcast %cst_140 : f32 to vector<8x128xf32>
    %281 = arith.addf %280, %279 : vector<8x128xf32>
    %282 = arith.divf %280, %281 : vector<8x128xf32>
    %283 = vector.extract_strided_slice %276 {offsets = [0, 128], sizes = [8, 128], strides = [1, 1]} : vector<8x512xf32> to vector<8x128xf32>
    %284 = arith.negf %283 : vector<8x128xf32>
    %285 = math.exp %284 : vector<8x128xf32>
    %cst_141 = arith.constant 1.000000e+00 : f32
    %286 = vector.broadcast %cst_141 : f32 to vector<8x128xf32>
    %287 = arith.addf %286, %285 : vector<8x128xf32>
    %288 = arith.divf %286, %287 : vector<8x128xf32>
    %289 = vector.extract_strided_slice %276 {offsets = [0, 256], sizes = [8, 128], strides = [1, 1]} : vector<8x512xf32> to vector<8x128xf32>
    %290 = math.tanh %289 : vector<8x128xf32>
    %291 = vector.extract_strided_slice %276 {offsets = [0, 384], sizes = [8, 128], strides = [1, 1]} : vector<8x512xf32> to vector<8x128xf32>
    %292 = arith.negf %291 : vector<8x128xf32>
    %293 = math.exp %292 : vector<8x128xf32>
    %cst_142 = arith.constant 1.000000e+00 : f32
    %294 = vector.broadcast %cst_142 : f32 to vector<8x128xf32>
    %295 = arith.addf %294, %293 : vector<8x128xf32>
    %296 = arith.divf %294, %295 : vector<8x128xf32>
    %297 = arith.mulf %288, %262 : vector<8x128xf32>
    %298 = arith.mulf %282, %290 : vector<8x128xf32>
    %299 = arith.addf %297, %298 : vector<8x128xf32>
    %300 = math.tanh %299 : vector<8x128xf32>
    %301 = arith.mulf %296, %300 : vector<8x128xf32>
    %302 = arith.truncf %301 : vector<8x128xf32> to vector<8x128xbf16>
    %303 = arith.index_cast %c5_i32 : i32 to index
    %c0_143 = arith.constant 0 : index
    %c0_144 = arith.constant 0 : index
    %304 = vector.load %arg6[%303, %c0_143, %c0_144] : memref<8x8x128xbf16, #tpu.memory_space<vmem>>, vector<1x8x128xbf16>
    %305 = vector.shape_cast %304 : vector<1x8x128xbf16> to vector<8x128xbf16>
    %306 = vector.shape_cast %302 : vector<8x128xbf16> to vector<1x8x128xbf16>
    tpu.vector_store %arg6[%303, %c0_143, %c0_144], %306 {strides = array<i32>} : memref<8x8x128xbf16, #tpu.memory_space<vmem>>, vector<1x8x128xbf16>,
    %c6_i32 = arith.constant 6 : i32
    %307 = arith.index_cast %c6_i32 : i32 to index
    %c0_145 = arith.constant 0 : index
    %c0_146 = arith.constant 0 : index
    %308 = vector.load %arg9[%307, %c0_145, %c0_146] : memref<8x8x512xf32, #tpu.memory_space<vmem>>, vector<1x8x512xf32>
    %309 = vector.shape_cast %308 : vector<1x8x512xf32> to vector<8x512xf32>
    %310 = arith.truncf %301 : vector<8x128xf32> to vector<8x128xbf16>
    %c0_147 = arith.constant 0 : index
    %c0_148 = arith.constant 0 : index
    %311 = vector.load %arg4[%c0_147, %c0_148] : memref<128x512xbf16, #tpu.memory_space<vmem>>, vector<128x512xbf16>
    %cst_149 = arith.constant dense<0.000000e+00> : vector<8x512xf32>
    %312 = tpu.matmul %310, %311, %cst_149 {dimension_numbers = #tpu.dot_dimension_numbers<[1], [0], [0], [1], [0, 0, 1, 1], [], []>} : vector<8x128xbf16>, vector<128x512xbf16>, vector<8x512xf32> -> vector<8x512xf32>
    %313 = arith.addf %309, %312 : vector<8x512xf32>
    %314 = vector.extract_strided_slice %313 {offsets = [0, 0], sizes = [8, 128], strides = [1, 1]} : vector<8x512xf32> to vector<8x128xf32>
    %315 = arith.negf %314 : vector<8x128xf32>
    %316 = math.exp %315 : vector<8x128xf32>
    %cst_150 = arith.constant 1.000000e+00 : f32
    %317 = vector.broadcast %cst_150 : f32 to vector<8x128xf32>
    %318 = arith.addf %317, %316 : vector<8x128xf32>
    %319 = arith.divf %317, %318 : vector<8x128xf32>
    %320 = vector.extract_strided_slice %313 {offsets = [0, 128], sizes = [8, 128], strides = [1, 1]} : vector<8x512xf32> to vector<8x128xf32>
    %321 = arith.negf %320 : vector<8x128xf32>
    %322 = math.exp %321 : vector<8x128xf32>
    %cst_151 = arith.constant 1.000000e+00 : f32
    %323 = vector.broadcast %cst_151 : f32 to vector<8x128xf32>
    %324 = arith.addf %323, %322 : vector<8x128xf32>
    %325 = arith.divf %323, %324 : vector<8x128xf32>
    %326 = vector.extract_strided_slice %313 {offsets = [0, 256], sizes = [8, 128], strides = [1, 1]} : vector<8x512xf32> to vector<8x128xf32>
    %327 = math.tanh %326 : vector<8x128xf32>
    %328 = vector.extract_strided_slice %313 {offsets = [0, 384], sizes = [8, 128], strides = [1, 1]} : vector<8x512xf32> to vector<8x128xf32>
    %329 = arith.negf %328 : vector<8x128xf32>
    %330 = math.exp %329 : vector<8x128xf32>
    %cst_152 = arith.constant 1.000000e+00 : f32
    %331 = vector.broadcast %cst_152 : f32 to vector<8x128xf32>
    %332 = arith.addf %331, %330 : vector<8x128xf32>
    %333 = arith.divf %331, %332 : vector<8x128xf32>
    %334 = arith.mulf %325, %299 : vector<8x128xf32>
    %335 = arith.mulf %319, %327 : vector<8x128xf32>
    %336 = arith.addf %334, %335 : vector<8x128xf32>
    %337 = math.tanh %336 : vector<8x128xf32>
    %338 = arith.mulf %333, %337 : vector<8x128xf32>
    %339 = arith.truncf %338 : vector<8x128xf32> to vector<8x128xbf16>
    %340 = arith.index_cast %c6_i32 : i32 to index
    %c0_153 = arith.constant 0 : index
    %c0_154 = arith.constant 0 : index
    %341 = vector.load %arg6[%340, %c0_153, %c0_154] : memref<8x8x128xbf16, #tpu.memory_space<vmem>>, vector<1x8x128xbf16>
    %342 = vector.shape_cast %341 : vector<1x8x128xbf16> to vector<8x128xbf16>
    %343 = vector.shape_cast %339 : vector<8x128xbf16> to vector<1x8x128xbf16>
    tpu.vector_store %arg6[%340, %c0_153, %c0_154], %343 {strides = array<i32>} : memref<8x8x128xbf16, #tpu.memory_space<vmem>>, vector<1x8x128xbf16>,
    %c7_i32 = arith.constant 7 : i32
    %344 = arith.index_cast %c7_i32 : i32 to index
    %c0_155 = arith.constant 0 : index
    %c0_156 = arith.constant 0 : index
    %345 = vector.load %arg9[%344, %c0_155, %c0_156] : memref<8x8x512xf32, #tpu.memory_space<vmem>>, vector<1x8x512xf32>
    %346 = vector.shape_cast %345 : vector<1x8x512xf32> to vector<8x512xf32>
    %347 = arith.truncf %338 : vector<8x128xf32> to vector<8x128xbf16>
    %c0_157 = arith.constant 0 : index
    %c0_158 = arith.constant 0 : index
    %348 = vector.load %arg4[%c0_157, %c0_158] : memref<128x512xbf16, #tpu.memory_space<vmem>>, vector<128x512xbf16>
    %cst_159 = arith.constant dense<0.000000e+00> : vector<8x512xf32>
    %349 = tpu.matmul %347, %348, %cst_159 {dimension_numbers = #tpu.dot_dimension_numbers<[1], [0], [0], [1], [0, 0, 1, 1], [], []>} : vector<8x128xbf16>, vector<128x512xbf16>, vector<8x512xf32> -> vector<8x512xf32>
    %350 = arith.addf %346, %349 : vector<8x512xf32>
    %351 = vector.extract_strided_slice %350 {offsets = [0, 0], sizes = [8, 128], strides = [1, 1]} : vector<8x512xf32> to vector<8x128xf32>
    %352 = arith.negf %351 : vector<8x128xf32>
    %353 = math.exp %352 : vector<8x128xf32>
    %cst_160 = arith.constant 1.000000e+00 : f32
    %354 = vector.broadcast %cst_160 : f32 to vector<8x128xf32>
    %355 = arith.addf %354, %353 : vector<8x128xf32>
    %356 = arith.divf %354, %355 : vector<8x128xf32>
    %357 = vector.extract_strided_slice %350 {offsets = [0, 128], sizes = [8, 128], strides = [1, 1]} : vector<8x512xf32> to vector<8x128xf32>
    %358 = arith.negf %357 : vector<8x128xf32>
    %359 = math.exp %358 : vector<8x128xf32>
    %cst_161 = arith.constant 1.000000e+00 : f32
    %360 = vector.broadcast %cst_161 : f32 to vector<8x128xf32>
    %361 = arith.addf %360, %359 : vector<8x128xf32>
    %362 = arith.divf %360, %361 : vector<8x128xf32>
    %363 = vector.extract_strided_slice %350 {offsets = [0, 256], sizes = [8, 128], strides = [1, 1]} : vector<8x512xf32> to vector<8x128xf32>
    %364 = math.tanh %363 : vector<8x128xf32>
    %365 = vector.extract_strided_slice %350 {offsets = [0, 384], sizes = [8, 128], strides = [1, 1]} : vector<8x512xf32> to vector<8x128xf32>
    %366 = arith.negf %365 : vector<8x128xf32>
    %367 = math.exp %366 : vector<8x128xf32>
    %cst_162 = arith.constant 1.000000e+00 : f32
    %368 = vector.broadcast %cst_162 : f32 to vector<8x128xf32>
    %369 = arith.addf %368, %367 : vector<8x128xf32>
    %370 = arith.divf %368, %369 : vector<8x128xf32>
    %371 = arith.mulf %362, %336 : vector<8x128xf32>
    %372 = arith.mulf %356, %364 : vector<8x128xf32>
    %373 = arith.addf %371, %372 : vector<8x128xf32>
    %374 = math.tanh %373 : vector<8x128xf32>
    %375 = arith.mulf %370, %374 : vector<8x128xf32>
    %376 = arith.truncf %375 : vector<8x128xf32> to vector<8x128xbf16>
    %377 = arith.index_cast %c7_i32 : i32 to index
    %c0_163 = arith.constant 0 : index
    %c0_164 = arith.constant 0 : index
    %378 = vector.load %arg6[%377, %c0_163, %c0_164] : memref<8x8x128xbf16, #tpu.memory_space<vmem>>, vector<1x8x128xbf16>
    %379 = vector.shape_cast %378 : vector<1x8x128xbf16> to vector<8x128xbf16>
    %380 = vector.shape_cast %376 : vector<8x128xbf16> to vector<1x8x128xbf16>
    tpu.vector_store %arg6[%377, %c0_163, %c0_164], %380 {strides = array<i32>} : memref<8x8x128xbf16, #tpu.memory_space<vmem>>, vector<1x8x128xbf16>,
    %c8_i32 = arith.constant 8 : i32
    %c0_165 = arith.constant 0 : index
    %c0_166 = arith.constant 0 : index
    %381 = vector.load %arg7[%c0_165, %c0_166] : memref<8x128xf32, #tpu.memory_space<vmem>>, vector<8x128xf32>
    tpu.vector_store %arg7[%c0_165, %c0_166], %375 {strides = array<i32>} : memref<8x128xf32, #tpu.memory_space<vmem>>, vector<8x128xf32>,
    %c0_167 = arith.constant 0 : index
    %c0_168 = arith.constant 0 : index
    %382 = vector.load %arg8[%c0_167, %c0_168] : memref<8x128xf32, #tpu.memory_space<vmem>>, vector<8x128xf32>
    tpu.vector_store %arg8[%c0_167, %c0_168], %373 {strides = array<i32>} : memref<8x128xf32, #tpu.memory_space<vmem>>, vector<8x128xf32>,
    return
  }
  func.func @transform_0(%arg0: i32, %arg1: i32) -> (i32, i32, i32) {
    %c0_i32 = arith.constant 0 : i32
    %c0_i32_0 = arith.constant 0 : i32
    return %arg1, %arg0, %c0_i32 : i32, i32, i32
  }
  func.func @transform_1(%arg0: i32, %arg1: i32) -> (i32, i32) {
    %c0_i32 = arith.constant 0 : i32
    %c0_i32_0 = arith.constant 0 : i32
    %c0_i32_1 = arith.constant 0 : i32
    return %c0_i32, %c0_i32_0 : i32, i32
  }
  func.func @transform_2(%arg0: i32, %arg1: i32) -> (i32, i32) {
    %c0_i32 = arith.constant 0 : i32
    %c0_i32_0 = arith.constant 0 : i32
    %c0_i32_1 = arith.constant 0 : i32
    return %c0_i32, %c0_i32_0 : i32, i32
  }
  func.func @transform_3(%arg0: i32, %arg1: i32) -> (i32, i32) {
    %c0_i32 = arith.constant 0 : i32
    %c0_i32_0 = arith.constant 0 : i32
    %c0_i32_1 = arith.constant 0 : i32
    return %c0_i32, %c0_i32_0 : i32, i32
  }
  func.func @transform_4(%arg0: i32, %arg1: i32) -> (i32, i32, i32) {
    %c0_i32 = arith.constant 0 : i32
    %c0_i32_0 = arith.constant 0 : i32
    return %arg1, %arg0, %c0_i32 : i32, i32, i32
  }
}

module attributes {stable_mosaic.version = 11 : i64} {
  func.func @_lstm_final_kernel(%arg0: i32, %arg1: i32, %arg2: memref<8x8x128xbf16, #tpu.memory_space<vmem>>, %arg3: memref<128x512xbf16, #tpu.memory_space<vmem>>, %arg4: memref<128x512xbf16, #tpu.memory_space<vmem>>, %arg5: memref<1x512xf32, #tpu.memory_space<vmem>>, %arg6: memref<128x128xbf16, #tpu.memory_space<vmem>>, %arg7: memref<1x128xf32, #tpu.memory_space<vmem>>, %arg8: memref<8x128xf32, #tpu.memory_space<vmem>>, %arg9: memref<8x128xf32, #tpu.memory_space<vmem>>, %arg10: memref<8x128xf32, #tpu.memory_space<vmem>>, %arg11: memref<8x8x512xf32, #tpu.memory_space<vmem>>) attributes {dimension_semantics = [#tpu.dimension_semantics<parallel>, #tpu.dimension_semantics<arbitrary>], iteration_bounds = array<i64: 1, 1>, scalar_prefetch = 0 : i64, scratch_operands = 3 : i64, tpu.core_type = #tpu.core_type<tc>, window_params = [{transform_indices = @transform_0, window_bounds = array<i64: 8, 8, 128>}, {pipeline_mode = #tpu.pipeline_mode<synchronous>, transform_indices = @transform_1, window_bounds = array<i64: 128, 512>}, {pipeline_mode = #tpu.pipeline_mode<synchronous>, transform_indices = @transform_2, window_bounds = array<i64: 128, 512>}, {pipeline_mode = #tpu.pipeline_mode<synchronous>, transform_indices = @transform_3, window_bounds = array<i64: 1, 512>}, {pipeline_mode = #tpu.pipeline_mode<synchronous>, transform_indices = @transform_4, window_bounds = array<i64: 128, 128>}, {pipeline_mode = #tpu.pipeline_mode<synchronous>, transform_indices = @transform_5, window_bounds = array<i64: 1, 128>}, {transform_indices = @transform_6, window_bounds = array<i64: 8, 128>}]} {
    %c0_i32 = arith.constant 0 : i32
    %0 = arith.cmpi eq, %arg1, %c0_i32 : i32
    %1 = arith.extui %0 : i1 to i32
    %c0_i32_0 = arith.constant 0 : i32
    %2 = arith.cmpi ne, %1, %c0_i32_0 : i32
    scf.if %2 {
      %cst_155 = arith.constant 0.000000e+00 : f32
      %346 = vector.broadcast %cst_155 : f32 to vector<8x128xf32>
      %c0_156 = arith.constant 0 : index
      %c0_157 = arith.constant 0 : index
      %347 = vector.load %arg9[%c0_156, %c0_157] : memref<8x128xf32, #tpu.memory_space<vmem>>, vector<8x128xf32>
      tpu.vector_store %arg9[%c0_156, %c0_157], %346 {strides = array<i32>} : memref<8x128xf32, #tpu.memory_space<vmem>>, vector<8x128xf32>,
      %cst_158 = arith.constant 0.000000e+00 : f32
      %348 = vector.broadcast %cst_158 : f32 to vector<8x128xf32>
      %c0_159 = arith.constant 0 : index
      %c0_160 = arith.constant 0 : index
      %349 = vector.load %arg10[%c0_159, %c0_160] : memref<8x128xf32, #tpu.memory_space<vmem>>, vector<8x128xf32>
      tpu.vector_store %arg10[%c0_159, %c0_160], %348 {strides = array<i32>} : memref<8x128xf32, #tpu.memory_space<vmem>>, vector<8x128xf32>,
    } else {
    }
    %c0 = arith.constant 0 : index
    %c0_1 = arith.constant 0 : index
    %c0_2 = arith.constant 0 : index
    %3 = vector.load %arg2[%c0, %c0_1, %c0_2] : memref<8x8x128xbf16, #tpu.memory_space<vmem>>, vector<1x8x128xbf16>
    %4 = vector.shape_cast %3 : vector<1x8x128xbf16> to vector<8x128xbf16>
    %c0_3 = arith.constant 0 : index
    %c0_4 = arith.constant 0 : index
    %5 = vector.load %arg3[%c0_3, %c0_4] : memref<128x512xbf16, #tpu.memory_space<vmem>>, vector<128x512xbf16>
    %cst = arith.constant dense<0.000000e+00> : vector<8x512xf32>
    %6 = tpu.matmul %4, %5, %cst {dimension_numbers = #tpu.dot_dimension_numbers<[1], [0], [0], [1], [0, 0, 1, 1], [], []>} : vector<8x128xbf16>, vector<128x512xbf16>, vector<8x512xf32> -> vector<8x512xf32>
    %c0_5 = arith.constant 0 : index
    %c0_6 = arith.constant 0 : index
    %7 = vector.load %arg5[%c0_5, %c0_6] : memref<1x512xf32, #tpu.memory_space<vmem>>, vector<1x512xf32>
    %8 = vector.broadcast %7 : vector<1x512xf32> to vector<8x512xf32>
    %9 = arith.addf %6, %8 : vector<8x512xf32>
    %c0_7 = arith.constant 0 : index
    %c0_8 = arith.constant 0 : index
    %c0_9 = arith.constant 0 : index
    %10 = vector.load %arg11[%c0_7, %c0_8, %c0_9] : memref<8x8x512xf32, #tpu.memory_space<vmem>>, vector<1x8x512xf32>
    %11 = vector.shape_cast %10 : vector<1x8x512xf32> to vector<8x512xf32>
    %12 = vector.shape_cast %9 : vector<8x512xf32> to vector<1x8x512xf32>
    tpu.vector_store %arg11[%c0_7, %c0_8, %c0_9], %12 {strides = array<i32>} : memref<8x8x512xf32, #tpu.memory_space<vmem>>, vector<1x8x512xf32>,
    %c1 = arith.constant 1 : index
    %c0_10 = arith.constant 0 : index
    %c0_11 = arith.constant 0 : index
    %13 = vector.load %arg2[%c1, %c0_10, %c0_11] : memref<8x8x128xbf16, #tpu.memory_space<vmem>>, vector<1x8x128xbf16>
    %14 = vector.shape_cast %13 : vector<1x8x128xbf16> to vector<8x128xbf16>
    %c0_12 = arith.constant 0 : index
    %c0_13 = arith.constant 0 : index
    %15 = vector.load %arg3[%c0_12, %c0_13] : memref<128x512xbf16, #tpu.memory_space<vmem>>, vector<128x512xbf16>
    %cst_14 = arith.constant dense<0.000000e+00> : vector<8x512xf32>
    %16 = tpu.matmul %14, %15, %cst_14 {dimension_numbers = #tpu.dot_dimension_numbers<[1], [0], [0], [1], [0, 0, 1, 1], [], []>} : vector<8x128xbf16>, vector<128x512xbf16>, vector<8x512xf32> -> vector<8x512xf32>
    %c0_15 = arith.constant 0 : index
    %c0_16 = arith.constant 0 : index
    %17 = vector.load %arg5[%c0_15, %c0_16] : memref<1x512xf32, #tpu.memory_space<vmem>>, vector<1x512xf32>
    %18 = vector.broadcast %17 : vector<1x512xf32> to vector<8x512xf32>
    %19 = arith.addf %16, %18 : vector<8x512xf32>
    %c1_17 = arith.constant 1 : index
    %c0_18 = arith.constant 0 : index
    %c0_19 = arith.constant 0 : index
    %20 = vector.load %arg11[%c1_17, %c0_18, %c0_19] : memref<8x8x512xf32, #tpu.memory_space<vmem>>, vector<1x8x512xf32>
    %21 = vector.shape_cast %20 : vector<1x8x512xf32> to vector<8x512xf32>
    %22 = vector.shape_cast %19 : vector<8x512xf32> to vector<1x8x512xf32>
    tpu.vector_store %arg11[%c1_17, %c0_18, %c0_19], %22 {strides = array<i32>} : memref<8x8x512xf32, #tpu.memory_space<vmem>>, vector<1x8x512xf32>,
    %c2 = arith.constant 2 : index
    %c0_20 = arith.constant 0 : index
    %c0_21 = arith.constant 0 : index
    %23 = vector.load %arg2[%c2, %c0_20, %c0_21] : memref<8x8x128xbf16, #tpu.memory_space<vmem>>, vector<1x8x128xbf16>
    %24 = vector.shape_cast %23 : vector<1x8x128xbf16> to vector<8x128xbf16>
    %c0_22 = arith.constant 0 : index
    %c0_23 = arith.constant 0 : index
    %25 = vector.load %arg3[%c0_22, %c0_23] : memref<128x512xbf16, #tpu.memory_space<vmem>>, vector<128x512xbf16>
    %cst_24 = arith.constant dense<0.000000e+00> : vector<8x512xf32>
    %26 = tpu.matmul %24, %25, %cst_24 {dimension_numbers = #tpu.dot_dimension_numbers<[1], [0], [0], [1], [0, 0, 1, 1], [], []>} : vector<8x128xbf16>, vector<128x512xbf16>, vector<8x512xf32> -> vector<8x512xf32>
    %c0_25 = arith.constant 0 : index
    %c0_26 = arith.constant 0 : index
    %27 = vector.load %arg5[%c0_25, %c0_26] : memref<1x512xf32, #tpu.memory_space<vmem>>, vector<1x512xf32>
    %28 = vector.broadcast %27 : vector<1x512xf32> to vector<8x512xf32>
    %29 = arith.addf %26, %28 : vector<8x512xf32>
    %c2_27 = arith.constant 2 : index
    %c0_28 = arith.constant 0 : index
    %c0_29 = arith.constant 0 : index
    %30 = vector.load %arg11[%c2_27, %c0_28, %c0_29] : memref<8x8x512xf32, #tpu.memory_space<vmem>>, vector<1x8x512xf32>
    %31 = vector.shape_cast %30 : vector<1x8x512xf32> to vector<8x512xf32>
    %32 = vector.shape_cast %29 : vector<8x512xf32> to vector<1x8x512xf32>
    tpu.vector_store %arg11[%c2_27, %c0_28, %c0_29], %32 {strides = array<i32>} : memref<8x8x512xf32, #tpu.memory_space<vmem>>, vector<1x8x512xf32>,
    %c3 = arith.constant 3 : index
    %c0_30 = arith.constant 0 : index
    %c0_31 = arith.constant 0 : index
    %33 = vector.load %arg2[%c3, %c0_30, %c0_31] : memref<8x8x128xbf16, #tpu.memory_space<vmem>>, vector<1x8x128xbf16>
    %34 = vector.shape_cast %33 : vector<1x8x128xbf16> to vector<8x128xbf16>
    %c0_32 = arith.constant 0 : index
    %c0_33 = arith.constant 0 : index
    %35 = vector.load %arg3[%c0_32, %c0_33] : memref<128x512xbf16, #tpu.memory_space<vmem>>, vector<128x512xbf16>
    %cst_34 = arith.constant dense<0.000000e+00> : vector<8x512xf32>
    %36 = tpu.matmul %34, %35, %cst_34 {dimension_numbers = #tpu.dot_dimension_numbers<[1], [0], [0], [1], [0, 0, 1, 1], [], []>} : vector<8x128xbf16>, vector<128x512xbf16>, vector<8x512xf32> -> vector<8x512xf32>
    %c0_35 = arith.constant 0 : index
    %c0_36 = arith.constant 0 : index
    %37 = vector.load %arg5[%c0_35, %c0_36] : memref<1x512xf32, #tpu.memory_space<vmem>>, vector<1x512xf32>
    %38 = vector.broadcast %37 : vector<1x512xf32> to vector<8x512xf32>
    %39 = arith.addf %36, %38 : vector<8x512xf32>
    %c3_37 = arith.constant 3 : index
    %c0_38 = arith.constant 0 : index
    %c0_39 = arith.constant 0 : index
    %40 = vector.load %arg11[%c3_37, %c0_38, %c0_39] : memref<8x8x512xf32, #tpu.memory_space<vmem>>, vector<1x8x512xf32>
    %41 = vector.shape_cast %40 : vector<1x8x512xf32> to vector<8x512xf32>
    %42 = vector.shape_cast %39 : vector<8x512xf32> to vector<1x8x512xf32>
    tpu.vector_store %arg11[%c3_37, %c0_38, %c0_39], %42 {strides = array<i32>} : memref<8x8x512xf32, #tpu.memory_space<vmem>>, vector<1x8x512xf32>,
    %c4 = arith.constant 4 : index
    %c0_40 = arith.constant 0 : index
    %c0_41 = arith.constant 0 : index
    %43 = vector.load %arg2[%c4, %c0_40, %c0_41] : memref<8x8x128xbf16, #tpu.memory_space<vmem>>, vector<1x8x128xbf16>
    %44 = vector.shape_cast %43 : vector<1x8x128xbf16> to vector<8x128xbf16>
    %c0_42 = arith.constant 0 : index
    %c0_43 = arith.constant 0 : index
    %45 = vector.load %arg3[%c0_42, %c0_43] : memref<128x512xbf16, #tpu.memory_space<vmem>>, vector<128x512xbf16>
    %cst_44 = arith.constant dense<0.000000e+00> : vector<8x512xf32>
    %46 = tpu.matmul %44, %45, %cst_44 {dimension_numbers = #tpu.dot_dimension_numbers<[1], [0], [0], [1], [0, 0, 1, 1], [], []>} : vector<8x128xbf16>, vector<128x512xbf16>, vector<8x512xf32> -> vector<8x512xf32>
    %c0_45 = arith.constant 0 : index
    %c0_46 = arith.constant 0 : index
    %47 = vector.load %arg5[%c0_45, %c0_46] : memref<1x512xf32, #tpu.memory_space<vmem>>, vector<1x512xf32>
    %48 = vector.broadcast %47 : vector<1x512xf32> to vector<8x512xf32>
    %49 = arith.addf %46, %48 : vector<8x512xf32>
    %c4_47 = arith.constant 4 : index
    %c0_48 = arith.constant 0 : index
    %c0_49 = arith.constant 0 : index
    %50 = vector.load %arg11[%c4_47, %c0_48, %c0_49] : memref<8x8x512xf32, #tpu.memory_space<vmem>>, vector<1x8x512xf32>
    %51 = vector.shape_cast %50 : vector<1x8x512xf32> to vector<8x512xf32>
    %52 = vector.shape_cast %49 : vector<8x512xf32> to vector<1x8x512xf32>
    tpu.vector_store %arg11[%c4_47, %c0_48, %c0_49], %52 {strides = array<i32>} : memref<8x8x512xf32, #tpu.memory_space<vmem>>, vector<1x8x512xf32>,
    %c5 = arith.constant 5 : index
    %c0_50 = arith.constant 0 : index
    %c0_51 = arith.constant 0 : index
    %53 = vector.load %arg2[%c5, %c0_50, %c0_51] : memref<8x8x128xbf16, #tpu.memory_space<vmem>>, vector<1x8x128xbf16>
    %54 = vector.shape_cast %53 : vector<1x8x128xbf16> to vector<8x128xbf16>
    %c0_52 = arith.constant 0 : index
    %c0_53 = arith.constant 0 : index
    %55 = vector.load %arg3[%c0_52, %c0_53] : memref<128x512xbf16, #tpu.memory_space<vmem>>, vector<128x512xbf16>
    %cst_54 = arith.constant dense<0.000000e+00> : vector<8x512xf32>
    %56 = tpu.matmul %54, %55, %cst_54 {dimension_numbers = #tpu.dot_dimension_numbers<[1], [0], [0], [1], [0, 0, 1, 1], [], []>} : vector<8x128xbf16>, vector<128x512xbf16>, vector<8x512xf32> -> vector<8x512xf32>
    %c0_55 = arith.constant 0 : index
    %c0_56 = arith.constant 0 : index
    %57 = vector.load %arg5[%c0_55, %c0_56] : memref<1x512xf32, #tpu.memory_space<vmem>>, vector<1x512xf32>
    %58 = vector.broadcast %57 : vector<1x512xf32> to vector<8x512xf32>
    %59 = arith.addf %56, %58 : vector<8x512xf32>
    %c5_57 = arith.constant 5 : index
    %c0_58 = arith.constant 0 : index
    %c0_59 = arith.constant 0 : index
    %60 = vector.load %arg11[%c5_57, %c0_58, %c0_59] : memref<8x8x512xf32, #tpu.memory_space<vmem>>, vector<1x8x512xf32>
    %61 = vector.shape_cast %60 : vector<1x8x512xf32> to vector<8x512xf32>
    %62 = vector.shape_cast %59 : vector<8x512xf32> to vector<1x8x512xf32>
    tpu.vector_store %arg11[%c5_57, %c0_58, %c0_59], %62 {strides = array<i32>} : memref<8x8x512xf32, #tpu.memory_space<vmem>>, vector<1x8x512xf32>,
    %c6 = arith.constant 6 : index
    %c0_60 = arith.constant 0 : index
    %c0_61 = arith.constant 0 : index
    %63 = vector.load %arg2[%c6, %c0_60, %c0_61] : memref<8x8x128xbf16, #tpu.memory_space<vmem>>, vector<1x8x128xbf16>
    %64 = vector.shape_cast %63 : vector<1x8x128xbf16> to vector<8x128xbf16>
    %c0_62 = arith.constant 0 : index
    %c0_63 = arith.constant 0 : index
    %65 = vector.load %arg3[%c0_62, %c0_63] : memref<128x512xbf16, #tpu.memory_space<vmem>>, vector<128x512xbf16>
    %cst_64 = arith.constant dense<0.000000e+00> : vector<8x512xf32>
    %66 = tpu.matmul %64, %65, %cst_64 {dimension_numbers = #tpu.dot_dimension_numbers<[1], [0], [0], [1], [0, 0, 1, 1], [], []>} : vector<8x128xbf16>, vector<128x512xbf16>, vector<8x512xf32> -> vector<8x512xf32>
    %c0_65 = arith.constant 0 : index
    %c0_66 = arith.constant 0 : index
    %67 = vector.load %arg5[%c0_65, %c0_66] : memref<1x512xf32, #tpu.memory_space<vmem>>, vector<1x512xf32>
    %68 = vector.broadcast %67 : vector<1x512xf32> to vector<8x512xf32>
    %69 = arith.addf %66, %68 : vector<8x512xf32>
    %c6_67 = arith.constant 6 : index
    %c0_68 = arith.constant 0 : index
    %c0_69 = arith.constant 0 : index
    %70 = vector.load %arg11[%c6_67, %c0_68, %c0_69] : memref<8x8x512xf32, #tpu.memory_space<vmem>>, vector<1x8x512xf32>
    %71 = vector.shape_cast %70 : vector<1x8x512xf32> to vector<8x512xf32>
    %72 = vector.shape_cast %69 : vector<8x512xf32> to vector<1x8x512xf32>
    tpu.vector_store %arg11[%c6_67, %c0_68, %c0_69], %72 {strides = array<i32>} : memref<8x8x512xf32, #tpu.memory_space<vmem>>, vector<1x8x512xf32>,
    %c7 = arith.constant 7 : index
    %c0_70 = arith.constant 0 : index
    %c0_71 = arith.constant 0 : index
    %73 = vector.load %arg2[%c7, %c0_70, %c0_71] : memref<8x8x128xbf16, #tpu.memory_space<vmem>>, vector<1x8x128xbf16>
    %74 = vector.shape_cast %73 : vector<1x8x128xbf16> to vector<8x128xbf16>
    %c0_72 = arith.constant 0 : index
    %c0_73 = arith.constant 0 : index
    %75 = vector.load %arg3[%c0_72, %c0_73] : memref<128x512xbf16, #tpu.memory_space<vmem>>, vector<128x512xbf16>
    %cst_74 = arith.constant dense<0.000000e+00> : vector<8x512xf32>
    %76 = tpu.matmul %74, %75, %cst_74 {dimension_numbers = #tpu.dot_dimension_numbers<[1], [0], [0], [1], [0, 0, 1, 1], [], []>} : vector<8x128xbf16>, vector<128x512xbf16>, vector<8x512xf32> -> vector<8x512xf32>
    %c0_75 = arith.constant 0 : index
    %c0_76 = arith.constant 0 : index
    %77 = vector.load %arg5[%c0_75, %c0_76] : memref<1x512xf32, #tpu.memory_space<vmem>>, vector<1x512xf32>
    %78 = vector.broadcast %77 : vector<1x512xf32> to vector<8x512xf32>
    %79 = arith.addf %76, %78 : vector<8x512xf32>
    %c7_77 = arith.constant 7 : index
    %c0_78 = arith.constant 0 : index
    %c0_79 = arith.constant 0 : index
    %80 = vector.load %arg11[%c7_77, %c0_78, %c0_79] : memref<8x8x512xf32, #tpu.memory_space<vmem>>, vector<1x8x512xf32>
    %81 = vector.shape_cast %80 : vector<1x8x512xf32> to vector<8x512xf32>
    %82 = vector.shape_cast %79 : vector<8x512xf32> to vector<1x8x512xf32>
    tpu.vector_store %arg11[%c7_77, %c0_78, %c0_79], %82 {strides = array<i32>} : memref<8x8x512xf32, #tpu.memory_space<vmem>>, vector<1x8x512xf32>,
    %c0_80 = arith.constant 0 : index
    %c0_81 = arith.constant 0 : index
    %83 = vector.load %arg9[%c0_80, %c0_81] : memref<8x128xf32, #tpu.memory_space<vmem>>, vector<8x128xf32>
    %c0_82 = arith.constant 0 : index
    %c0_83 = arith.constant 0 : index
    %84 = vector.load %arg10[%c0_82, %c0_83] : memref<8x128xf32, #tpu.memory_space<vmem>>, vector<8x128xf32>
    %c0_i32_84 = arith.constant 0 : i32
    %85 = arith.index_cast %c0_i32_84 : i32 to index
    %c0_85 = arith.constant 0 : index
    %c0_86 = arith.constant 0 : index
    %86 = vector.load %arg11[%85, %c0_85, %c0_86] : memref<8x8x512xf32, #tpu.memory_space<vmem>>, vector<1x8x512xf32>
    %87 = vector.shape_cast %86 : vector<1x8x512xf32> to vector<8x512xf32>
    %88 = arith.truncf %83 : vector<8x128xf32> to vector<8x128xbf16>
    %c0_87 = arith.constant 0 : index
    %c0_88 = arith.constant 0 : index
    %89 = vector.load %arg4[%c0_87, %c0_88] : memref<128x512xbf16, #tpu.memory_space<vmem>>, vector<128x512xbf16>
    %cst_89 = arith.constant dense<0.000000e+00> : vector<8x512xf32>
    %90 = tpu.matmul %88, %89, %cst_89 {dimension_numbers = #tpu.dot_dimension_numbers<[1], [0], [0], [1], [0, 0, 1, 1], [], []>} : vector<8x128xbf16>, vector<128x512xbf16>, vector<8x512xf32> -> vector<8x512xf32>
    %91 = arith.addf %87, %90 : vector<8x512xf32>
    %92 = vector.extract_strided_slice %91 {offsets = [0, 0], sizes = [8, 128], strides = [1, 1]} : vector<8x512xf32> to vector<8x128xf32>
    %93 = arith.negf %92 : vector<8x128xf32>
    %94 = math.exp %93 : vector<8x128xf32>
    %cst_90 = arith.constant 1.000000e+00 : f32
    %95 = vector.broadcast %cst_90 : f32 to vector<8x128xf32>
    %96 = arith.addf %95, %94 : vector<8x128xf32>
    %97 = arith.divf %95, %96 : vector<8x128xf32>
    %98 = vector.extract_strided_slice %91 {offsets = [0, 128], sizes = [8, 128], strides = [1, 1]} : vector<8x512xf32> to vector<8x128xf32>
    %99 = arith.negf %98 : vector<8x128xf32>
    %100 = math.exp %99 : vector<8x128xf32>
    %cst_91 = arith.constant 1.000000e+00 : f32
    %101 = vector.broadcast %cst_91 : f32 to vector<8x128xf32>
    %102 = arith.addf %101, %100 : vector<8x128xf32>
    %103 = arith.divf %101, %102 : vector<8x128xf32>
    %104 = vector.extract_strided_slice %91 {offsets = [0, 256], sizes = [8, 128], strides = [1, 1]} : vector<8x512xf32> to vector<8x128xf32>
    %105 = math.tanh %104 : vector<8x128xf32>
    %106 = vector.extract_strided_slice %91 {offsets = [0, 384], sizes = [8, 128], strides = [1, 1]} : vector<8x512xf32> to vector<8x128xf32>
    %107 = arith.negf %106 : vector<8x128xf32>
    %108 = math.exp %107 : vector<8x128xf32>
    %cst_92 = arith.constant 1.000000e+00 : f32
    %109 = vector.broadcast %cst_92 : f32 to vector<8x128xf32>
    %110 = arith.addf %109, %108 : vector<8x128xf32>
    %111 = arith.divf %109, %110 : vector<8x128xf32>
    %112 = arith.mulf %103, %84 : vector<8x128xf32>
    %113 = arith.mulf %97, %105 : vector<8x128xf32>
    %114 = arith.addf %112, %113 : vector<8x128xf32>
    %115 = math.tanh %114 : vector<8x128xf32>
    %116 = arith.mulf %111, %115 : vector<8x128xf32>
    %c1_i32 = arith.constant 1 : i32
    %117 = arith.index_cast %c1_i32 : i32 to index
    %c0_93 = arith.constant 0 : index
    %c0_94 = arith.constant 0 : index
    %118 = vector.load %arg11[%117, %c0_93, %c0_94] : memref<8x8x512xf32, #tpu.memory_space<vmem>>, vector<1x8x512xf32>
    %119 = vector.shape_cast %118 : vector<1x8x512xf32> to vector<8x512xf32>
    %120 = arith.truncf %116 : vector<8x128xf32> to vector<8x128xbf16>
    %c0_95 = arith.constant 0 : index
    %c0_96 = arith.constant 0 : index
    %121 = vector.load %arg4[%c0_95, %c0_96] : memref<128x512xbf16, #tpu.memory_space<vmem>>, vector<128x512xbf16>
    %cst_97 = arith.constant dense<0.000000e+00> : vector<8x512xf32>
    %122 = tpu.matmul %120, %121, %cst_97 {dimension_numbers = #tpu.dot_dimension_numbers<[1], [0], [0], [1], [0, 0, 1, 1], [], []>} : vector<8x128xbf16>, vector<128x512xbf16>, vector<8x512xf32> -> vector<8x512xf32>
    %123 = arith.addf %119, %122 : vector<8x512xf32>
    %124 = vector.extract_strided_slice %123 {offsets = [0, 0], sizes = [8, 128], strides = [1, 1]} : vector<8x512xf32> to vector<8x128xf32>
    %125 = arith.negf %124 : vector<8x128xf32>
    %126 = math.exp %125 : vector<8x128xf32>
    %cst_98 = arith.constant 1.000000e+00 : f32
    %127 = vector.broadcast %cst_98 : f32 to vector<8x128xf32>
    %128 = arith.addf %127, %126 : vector<8x128xf32>
    %129 = arith.divf %127, %128 : vector<8x128xf32>
    %130 = vector.extract_strided_slice %123 {offsets = [0, 128], sizes = [8, 128], strides = [1, 1]} : vector<8x512xf32> to vector<8x128xf32>
    %131 = arith.negf %130 : vector<8x128xf32>
    %132 = math.exp %131 : vector<8x128xf32>
    %cst_99 = arith.constant 1.000000e+00 : f32
    %133 = vector.broadcast %cst_99 : f32 to vector<8x128xf32>
    %134 = arith.addf %133, %132 : vector<8x128xf32>
    %135 = arith.divf %133, %134 : vector<8x128xf32>
    %136 = vector.extract_strided_slice %123 {offsets = [0, 256], sizes = [8, 128], strides = [1, 1]} : vector<8x512xf32> to vector<8x128xf32>
    %137 = math.tanh %136 : vector<8x128xf32>
    %138 = vector.extract_strided_slice %123 {offsets = [0, 384], sizes = [8, 128], strides = [1, 1]} : vector<8x512xf32> to vector<8x128xf32>
    %139 = arith.negf %138 : vector<8x128xf32>
    %140 = math.exp %139 : vector<8x128xf32>
    %cst_100 = arith.constant 1.000000e+00 : f32
    %141 = vector.broadcast %cst_100 : f32 to vector<8x128xf32>
    %142 = arith.addf %141, %140 : vector<8x128xf32>
    %143 = arith.divf %141, %142 : vector<8x128xf32>
    %144 = arith.mulf %135, %114 : vector<8x128xf32>
    %145 = arith.mulf %129, %137 : vector<8x128xf32>
    %146 = arith.addf %144, %145 : vector<8x128xf32>
    %147 = math.tanh %146 : vector<8x128xf32>
    %148 = arith.mulf %143, %147 : vector<8x128xf32>
    %c2_i32 = arith.constant 2 : i32
    %149 = arith.index_cast %c2_i32 : i32 to index
    %c0_101 = arith.constant 0 : index
    %c0_102 = arith.constant 0 : index
    %150 = vector.load %arg11[%149, %c0_101, %c0_102] : memref<8x8x512xf32, #tpu.memory_space<vmem>>, vector<1x8x512xf32>
    %151 = vector.shape_cast %150 : vector<1x8x512xf32> to vector<8x512xf32>
    %152 = arith.truncf %148 : vector<8x128xf32> to vector<8x128xbf16>
    %c0_103 = arith.constant 0 : index
    %c0_104 = arith.constant 0 : index
    %153 = vector.load %arg4[%c0_103, %c0_104] : memref<128x512xbf16, #tpu.memory_space<vmem>>, vector<128x512xbf16>
    %cst_105 = arith.constant dense<0.000000e+00> : vector<8x512xf32>
    %154 = tpu.matmul %152, %153, %cst_105 {dimension_numbers = #tpu.dot_dimension_numbers<[1], [0], [0], [1], [0, 0, 1, 1], [], []>} : vector<8x128xbf16>, vector<128x512xbf16>, vector<8x512xf32> -> vector<8x512xf32>
    %155 = arith.addf %151, %154 : vector<8x512xf32>
    %156 = vector.extract_strided_slice %155 {offsets = [0, 0], sizes = [8, 128], strides = [1, 1]} : vector<8x512xf32> to vector<8x128xf32>
    %157 = arith.negf %156 : vector<8x128xf32>
    %158 = math.exp %157 : vector<8x128xf32>
    %cst_106 = arith.constant 1.000000e+00 : f32
    %159 = vector.broadcast %cst_106 : f32 to vector<8x128xf32>
    %160 = arith.addf %159, %158 : vector<8x128xf32>
    %161 = arith.divf %159, %160 : vector<8x128xf32>
    %162 = vector.extract_strided_slice %155 {offsets = [0, 128], sizes = [8, 128], strides = [1, 1]} : vector<8x512xf32> to vector<8x128xf32>
    %163 = arith.negf %162 : vector<8x128xf32>
    %164 = math.exp %163 : vector<8x128xf32>
    %cst_107 = arith.constant 1.000000e+00 : f32
    %165 = vector.broadcast %cst_107 : f32 to vector<8x128xf32>
    %166 = arith.addf %165, %164 : vector<8x128xf32>
    %167 = arith.divf %165, %166 : vector<8x128xf32>
    %168 = vector.extract_strided_slice %155 {offsets = [0, 256], sizes = [8, 128], strides = [1, 1]} : vector<8x512xf32> to vector<8x128xf32>
    %169 = math.tanh %168 : vector<8x128xf32>
    %170 = vector.extract_strided_slice %155 {offsets = [0, 384], sizes = [8, 128], strides = [1, 1]} : vector<8x512xf32> to vector<8x128xf32>
    %171 = arith.negf %170 : vector<8x128xf32>
    %172 = math.exp %171 : vector<8x128xf32>
    %cst_108 = arith.constant 1.000000e+00 : f32
    %173 = vector.broadcast %cst_108 : f32 to vector<8x128xf32>
    %174 = arith.addf %173, %172 : vector<8x128xf32>
    %175 = arith.divf %173, %174 : vector<8x128xf32>
    %176 = arith.mulf %167, %146 : vector<8x128xf32>
    %177 = arith.mulf %161, %169 : vector<8x128xf32>
    %178 = arith.addf %176, %177 : vector<8x128xf32>
    %179 = math.tanh %178 : vector<8x128xf32>
    %180 = arith.mulf %175, %179 : vector<8x128xf32>
    %c3_i32 = arith.constant 3 : i32
    %181 = arith.index_cast %c3_i32 : i32 to index
    %c0_109 = arith.constant 0 : index
    %c0_110 = arith.constant 0 : index
    %182 = vector.load %arg11[%181, %c0_109, %c0_110] : memref<8x8x512xf32, #tpu.memory_space<vmem>>, vector<1x8x512xf32>
    %183 = vector.shape_cast %182 : vector<1x8x512xf32> to vector<8x512xf32>
    %184 = arith.truncf %180 : vector<8x128xf32> to vector<8x128xbf16>
    %c0_111 = arith.constant 0 : index
    %c0_112 = arith.constant 0 : index
    %185 = vector.load %arg4[%c0_111, %c0_112] : memref<128x512xbf16, #tpu.memory_space<vmem>>, vector<128x512xbf16>
    %cst_113 = arith.constant dense<0.000000e+00> : vector<8x512xf32>
    %186 = tpu.matmul %184, %185, %cst_113 {dimension_numbers = #tpu.dot_dimension_numbers<[1], [0], [0], [1], [0, 0, 1, 1], [], []>} : vector<8x128xbf16>, vector<128x512xbf16>, vector<8x512xf32> -> vector<8x512xf32>
    %187 = arith.addf %183, %186 : vector<8x512xf32>
    %188 = vector.extract_strided_slice %187 {offsets = [0, 0], sizes = [8, 128], strides = [1, 1]} : vector<8x512xf32> to vector<8x128xf32>
    %189 = arith.negf %188 : vector<8x128xf32>
    %190 = math.exp %189 : vector<8x128xf32>
    %cst_114 = arith.constant 1.000000e+00 : f32
    %191 = vector.broadcast %cst_114 : f32 to vector<8x128xf32>
    %192 = arith.addf %191, %190 : vector<8x128xf32>
    %193 = arith.divf %191, %192 : vector<8x128xf32>
    %194 = vector.extract_strided_slice %187 {offsets = [0, 128], sizes = [8, 128], strides = [1, 1]} : vector<8x512xf32> to vector<8x128xf32>
    %195 = arith.negf %194 : vector<8x128xf32>
    %196 = math.exp %195 : vector<8x128xf32>
    %cst_115 = arith.constant 1.000000e+00 : f32
    %197 = vector.broadcast %cst_115 : f32 to vector<8x128xf32>
    %198 = arith.addf %197, %196 : vector<8x128xf32>
    %199 = arith.divf %197, %198 : vector<8x128xf32>
    %200 = vector.extract_strided_slice %187 {offsets = [0, 256], sizes = [8, 128], strides = [1, 1]} : vector<8x512xf32> to vector<8x128xf32>
    %201 = math.tanh %200 : vector<8x128xf32>
    %202 = vector.extract_strided_slice %187 {offsets = [0, 384], sizes = [8, 128], strides = [1, 1]} : vector<8x512xf32> to vector<8x128xf32>
    %203 = arith.negf %202 : vector<8x128xf32>
    %204 = math.exp %203 : vector<8x128xf32>
    %cst_116 = arith.constant 1.000000e+00 : f32
    %205 = vector.broadcast %cst_116 : f32 to vector<8x128xf32>
    %206 = arith.addf %205, %204 : vector<8x128xf32>
    %207 = arith.divf %205, %206 : vector<8x128xf32>
    %208 = arith.mulf %199, %178 : vector<8x128xf32>
    %209 = arith.mulf %193, %201 : vector<8x128xf32>
    %210 = arith.addf %208, %209 : vector<8x128xf32>
    %211 = math.tanh %210 : vector<8x128xf32>
    %212 = arith.mulf %207, %211 : vector<8x128xf32>
    %c4_i32 = arith.constant 4 : i32
    %213 = arith.index_cast %c4_i32 : i32 to index
    %c0_117 = arith.constant 0 : index
    %c0_118 = arith.constant 0 : index
    %214 = vector.load %arg11[%213, %c0_117, %c0_118] : memref<8x8x512xf32, #tpu.memory_space<vmem>>, vector<1x8x512xf32>
    %215 = vector.shape_cast %214 : vector<1x8x512xf32> to vector<8x512xf32>
    %216 = arith.truncf %212 : vector<8x128xf32> to vector<8x128xbf16>
    %c0_119 = arith.constant 0 : index
    %c0_120 = arith.constant 0 : index
    %217 = vector.load %arg4[%c0_119, %c0_120] : memref<128x512xbf16, #tpu.memory_space<vmem>>, vector<128x512xbf16>
    %cst_121 = arith.constant dense<0.000000e+00> : vector<8x512xf32>
    %218 = tpu.matmul %216, %217, %cst_121 {dimension_numbers = #tpu.dot_dimension_numbers<[1], [0], [0], [1], [0, 0, 1, 1], [], []>} : vector<8x128xbf16>, vector<128x512xbf16>, vector<8x512xf32> -> vector<8x512xf32>
    %219 = arith.addf %215, %218 : vector<8x512xf32>
    %220 = vector.extract_strided_slice %219 {offsets = [0, 0], sizes = [8, 128], strides = [1, 1]} : vector<8x512xf32> to vector<8x128xf32>
    %221 = arith.negf %220 : vector<8x128xf32>
    %222 = math.exp %221 : vector<8x128xf32>
    %cst_122 = arith.constant 1.000000e+00 : f32
    %223 = vector.broadcast %cst_122 : f32 to vector<8x128xf32>
    %224 = arith.addf %223, %222 : vector<8x128xf32>
    %225 = arith.divf %223, %224 : vector<8x128xf32>
    %226 = vector.extract_strided_slice %219 {offsets = [0, 128], sizes = [8, 128], strides = [1, 1]} : vector<8x512xf32> to vector<8x128xf32>
    %227 = arith.negf %226 : vector<8x128xf32>
    %228 = math.exp %227 : vector<8x128xf32>
    %cst_123 = arith.constant 1.000000e+00 : f32
    %229 = vector.broadcast %cst_123 : f32 to vector<8x128xf32>
    %230 = arith.addf %229, %228 : vector<8x128xf32>
    %231 = arith.divf %229, %230 : vector<8x128xf32>
    %232 = vector.extract_strided_slice %219 {offsets = [0, 256], sizes = [8, 128], strides = [1, 1]} : vector<8x512xf32> to vector<8x128xf32>
    %233 = math.tanh %232 : vector<8x128xf32>
    %234 = vector.extract_strided_slice %219 {offsets = [0, 384], sizes = [8, 128], strides = [1, 1]} : vector<8x512xf32> to vector<8x128xf32>
    %235 = arith.negf %234 : vector<8x128xf32>
    %236 = math.exp %235 : vector<8x128xf32>
    %cst_124 = arith.constant 1.000000e+00 : f32
    %237 = vector.broadcast %cst_124 : f32 to vector<8x128xf32>
    %238 = arith.addf %237, %236 : vector<8x128xf32>
    %239 = arith.divf %237, %238 : vector<8x128xf32>
    %240 = arith.mulf %231, %210 : vector<8x128xf32>
    %241 = arith.mulf %225, %233 : vector<8x128xf32>
    %242 = arith.addf %240, %241 : vector<8x128xf32>
    %243 = math.tanh %242 : vector<8x128xf32>
    %244 = arith.mulf %239, %243 : vector<8x128xf32>
    %c5_i32 = arith.constant 5 : i32
    %245 = arith.index_cast %c5_i32 : i32 to index
    %c0_125 = arith.constant 0 : index
    %c0_126 = arith.constant 0 : index
    %246 = vector.load %arg11[%245, %c0_125, %c0_126] : memref<8x8x512xf32, #tpu.memory_space<vmem>>, vector<1x8x512xf32>
    %247 = vector.shape_cast %246 : vector<1x8x512xf32> to vector<8x512xf32>
    %248 = arith.truncf %244 : vector<8x128xf32> to vector<8x128xbf16>
    %c0_127 = arith.constant 0 : index
    %c0_128 = arith.constant 0 : index
    %249 = vector.load %arg4[%c0_127, %c0_128] : memref<128x512xbf16, #tpu.memory_space<vmem>>, vector<128x512xbf16>
    %cst_129 = arith.constant dense<0.000000e+00> : vector<8x512xf32>
    %250 = tpu.matmul %248, %249, %cst_129 {dimension_numbers = #tpu.dot_dimension_numbers<[1], [0], [0], [1], [0, 0, 1, 1], [], []>} : vector<8x128xbf16>, vector<128x512xbf16>, vector<8x512xf32> -> vector<8x512xf32>
    %251 = arith.addf %247, %250 : vector<8x512xf32>
    %252 = vector.extract_strided_slice %251 {offsets = [0, 0], sizes = [8, 128], strides = [1, 1]} : vector<8x512xf32> to vector<8x128xf32>
    %253 = arith.negf %252 : vector<8x128xf32>
    %254 = math.exp %253 : vector<8x128xf32>
    %cst_130 = arith.constant 1.000000e+00 : f32
    %255 = vector.broadcast %cst_130 : f32 to vector<8x128xf32>
    %256 = arith.addf %255, %254 : vector<8x128xf32>
    %257 = arith.divf %255, %256 : vector<8x128xf32>
    %258 = vector.extract_strided_slice %251 {offsets = [0, 128], sizes = [8, 128], strides = [1, 1]} : vector<8x512xf32> to vector<8x128xf32>
    %259 = arith.negf %258 : vector<8x128xf32>
    %260 = math.exp %259 : vector<8x128xf32>
    %cst_131 = arith.constant 1.000000e+00 : f32
    %261 = vector.broadcast %cst_131 : f32 to vector<8x128xf32>
    %262 = arith.addf %261, %260 : vector<8x128xf32>
    %263 = arith.divf %261, %262 : vector<8x128xf32>
    %264 = vector.extract_strided_slice %251 {offsets = [0, 256], sizes = [8, 128], strides = [1, 1]} : vector<8x512xf32> to vector<8x128xf32>
    %265 = math.tanh %264 : vector<8x128xf32>
    %266 = vector.extract_strided_slice %251 {offsets = [0, 384], sizes = [8, 128], strides = [1, 1]} : vector<8x512xf32> to vector<8x128xf32>
    %267 = arith.negf %266 : vector<8x128xf32>
    %268 = math.exp %267 : vector<8x128xf32>
    %cst_132 = arith.constant 1.000000e+00 : f32
    %269 = vector.broadcast %cst_132 : f32 to vector<8x128xf32>
    %270 = arith.addf %269, %268 : vector<8x128xf32>
    %271 = arith.divf %269, %270 : vector<8x128xf32>
    %272 = arith.mulf %263, %242 : vector<8x128xf32>
    %273 = arith.mulf %257, %265 : vector<8x128xf32>
    %274 = arith.addf %272, %273 : vector<8x128xf32>
    %275 = math.tanh %274 : vector<8x128xf32>
    %276 = arith.mulf %271, %275 : vector<8x128xf32>
    %c6_i32 = arith.constant 6 : i32
    %277 = arith.index_cast %c6_i32 : i32 to index
    %c0_133 = arith.constant 0 : index
    %c0_134 = arith.constant 0 : index
    %278 = vector.load %arg11[%277, %c0_133, %c0_134] : memref<8x8x512xf32, #tpu.memory_space<vmem>>, vector<1x8x512xf32>
    %279 = vector.shape_cast %278 : vector<1x8x512xf32> to vector<8x512xf32>
    %280 = arith.truncf %276 : vector<8x128xf32> to vector<8x128xbf16>
    %c0_135 = arith.constant 0 : index
    %c0_136 = arith.constant 0 : index
    %281 = vector.load %arg4[%c0_135, %c0_136] : memref<128x512xbf16, #tpu.memory_space<vmem>>, vector<128x512xbf16>
    %cst_137 = arith.constant dense<0.000000e+00> : vector<8x512xf32>
    %282 = tpu.matmul %280, %281, %cst_137 {dimension_numbers = #tpu.dot_dimension_numbers<[1], [0], [0], [1], [0, 0, 1, 1], [], []>} : vector<8x128xbf16>, vector<128x512xbf16>, vector<8x512xf32> -> vector<8x512xf32>
    %283 = arith.addf %279, %282 : vector<8x512xf32>
    %284 = vector.extract_strided_slice %283 {offsets = [0, 0], sizes = [8, 128], strides = [1, 1]} : vector<8x512xf32> to vector<8x128xf32>
    %285 = arith.negf %284 : vector<8x128xf32>
    %286 = math.exp %285 : vector<8x128xf32>
    %cst_138 = arith.constant 1.000000e+00 : f32
    %287 = vector.broadcast %cst_138 : f32 to vector<8x128xf32>
    %288 = arith.addf %287, %286 : vector<8x128xf32>
    %289 = arith.divf %287, %288 : vector<8x128xf32>
    %290 = vector.extract_strided_slice %283 {offsets = [0, 128], sizes = [8, 128], strides = [1, 1]} : vector<8x512xf32> to vector<8x128xf32>
    %291 = arith.negf %290 : vector<8x128xf32>
    %292 = math.exp %291 : vector<8x128xf32>
    %cst_139 = arith.constant 1.000000e+00 : f32
    %293 = vector.broadcast %cst_139 : f32 to vector<8x128xf32>
    %294 = arith.addf %293, %292 : vector<8x128xf32>
    %295 = arith.divf %293, %294 : vector<8x128xf32>
    %296 = vector.extract_strided_slice %283 {offsets = [0, 256], sizes = [8, 128], strides = [1, 1]} : vector<8x512xf32> to vector<8x128xf32>
    %297 = math.tanh %296 : vector<8x128xf32>
    %298 = vector.extract_strided_slice %283 {offsets = [0, 384], sizes = [8, 128], strides = [1, 1]} : vector<8x512xf32> to vector<8x128xf32>
    %299 = arith.negf %298 : vector<8x128xf32>
    %300 = math.exp %299 : vector<8x128xf32>
    %cst_140 = arith.constant 1.000000e+00 : f32
    %301 = vector.broadcast %cst_140 : f32 to vector<8x128xf32>
    %302 = arith.addf %301, %300 : vector<8x128xf32>
    %303 = arith.divf %301, %302 : vector<8x128xf32>
    %304 = arith.mulf %295, %274 : vector<8x128xf32>
    %305 = arith.mulf %289, %297 : vector<8x128xf32>
    %306 = arith.addf %304, %305 : vector<8x128xf32>
    %307 = math.tanh %306 : vector<8x128xf32>
    %308 = arith.mulf %303, %307 : vector<8x128xf32>
    %c7_i32 = arith.constant 7 : i32
    %309 = arith.index_cast %c7_i32 : i32 to index
    %c0_141 = arith.constant 0 : index
    %c0_142 = arith.constant 0 : index
    %310 = vector.load %arg11[%309, %c0_141, %c0_142] : memref<8x8x512xf32, #tpu.memory_space<vmem>>, vector<1x8x512xf32>
    %311 = vector.shape_cast %310 : vector<1x8x512xf32> to vector<8x512xf32>
    %312 = arith.truncf %308 : vector<8x128xf32> to vector<8x128xbf16>
    %c0_143 = arith.constant 0 : index
    %c0_144 = arith.constant 0 : index
    %313 = vector.load %arg4[%c0_143, %c0_144] : memref<128x512xbf16, #tpu.memory_space<vmem>>, vector<128x512xbf16>
    %cst_145 = arith.constant dense<0.000000e+00> : vector<8x512xf32>
    %314 = tpu.matmul %312, %313, %cst_145 {dimension_numbers = #tpu.dot_dimension_numbers<[1], [0], [0], [1], [0, 0, 1, 1], [], []>} : vector<8x128xbf16>, vector<128x512xbf16>, vector<8x512xf32> -> vector<8x512xf32>
    %315 = arith.addf %311, %314 : vector<8x512xf32>
    %316 = vector.extract_strided_slice %315 {offsets = [0, 0], sizes = [8, 128], strides = [1, 1]} : vector<8x512xf32> to vector<8x128xf32>
    %317 = arith.negf %316 : vector<8x128xf32>
    %318 = math.exp %317 : vector<8x128xf32>
    %cst_146 = arith.constant 1.000000e+00 : f32
    %319 = vector.broadcast %cst_146 : f32 to vector<8x128xf32>
    %320 = arith.addf %319, %318 : vector<8x128xf32>
    %321 = arith.divf %319, %320 : vector<8x128xf32>
    %322 = vector.extract_strided_slice %315 {offsets = [0, 128], sizes = [8, 128], strides = [1, 1]} : vector<8x512xf32> to vector<8x128xf32>
    %323 = arith.negf %322 : vector<8x128xf32>
    %324 = math.exp %323 : vector<8x128xf32>
    %cst_147 = arith.constant 1.000000e+00 : f32
    %325 = vector.broadcast %cst_147 : f32 to vector<8x128xf32>
    %326 = arith.addf %325, %324 : vector<8x128xf32>
    %327 = arith.divf %325, %326 : vector<8x128xf32>
    %328 = vector.extract_strided_slice %315 {offsets = [0, 256], sizes = [8, 128], strides = [1, 1]} : vector<8x512xf32> to vector<8x128xf32>
    %329 = math.tanh %328 : vector<8x128xf32>
    %330 = vector.extract_strided_slice %315 {offsets = [0, 384], sizes = [8, 128], strides = [1, 1]} : vector<8x512xf32> to vector<8x128xf32>
    %331 = arith.negf %330 : vector<8x128xf32>
    %332 = math.exp %331 : vector<8x128xf32>
    %cst_148 = arith.constant 1.000000e+00 : f32
    %333 = vector.broadcast %cst_148 : f32 to vector<8x128xf32>
    %334 = arith.addf %333, %332 : vector<8x128xf32>
    %335 = arith.divf %333, %334 : vector<8x128xf32>
    %336 = arith.mulf %327, %306 : vector<8x128xf32>
    %337 = arith.mulf %321, %329 : vector<8x128xf32>
    %338 = arith.addf %336, %337 : vector<8x128xf32>
    %339 = math.tanh %338 : vector<8x128xf32>
    %340 = arith.mulf %335, %339 : vector<8x128xf32>
    %c8_i32 = arith.constant 8 : i32
    %c0_149 = arith.constant 0 : index
    %c0_150 = arith.constant 0 : index
    %341 = vector.load %arg9[%c0_149, %c0_150] : memref<8x128xf32, #tpu.memory_space<vmem>>, vector<8x128xf32>
    tpu.vector_store %arg9[%c0_149, %c0_150], %340 {strides = array<i32>} : memref<8x128xf32, #tpu.memory_space<vmem>>, vector<8x128xf32>,
    %c0_151 = arith.constant 0 : index
    %c0_152 = arith.constant 0 : index
    %342 = vector.load %arg10[%c0_151, %c0_152] : memref<8x128xf32, #tpu.memory_space<vmem>>, vector<8x128xf32>
    tpu.vector_store %arg10[%c0_151, %c0_152], %338 {strides = array<i32>} : memref<8x128xf32, #tpu.memory_space<vmem>>, vector<8x128xf32>,
    %c0_i32_153 = arith.constant 0 : i32
    %343 = arith.cmpi eq, %arg1, %c0_i32_153 : i32
    %344 = arith.extui %343 : i1 to i32
    %c0_i32_154 = arith.constant 0 : i32
    %345 = arith.cmpi ne, %344, %c0_i32_154 : i32
    scf.if %345 {
      %346 = arith.truncf %340 : vector<8x128xf32> to vector<8x128xbf16>
      %c0_155 = arith.constant 0 : index
      %c0_156 = arith.constant 0 : index
      %347 = vector.load %arg6[%c0_155, %c0_156] : memref<128x128xbf16, #tpu.memory_space<vmem>>, vector<128x128xbf16>
      %cst_157 = arith.constant dense<0.000000e+00> : vector<8x128xf32>
      %348 = tpu.matmul %346, %347, %cst_157 {dimension_numbers = #tpu.dot_dimension_numbers<[1], [0], [0], [1], [0, 0, 1, 1], [], []>} : vector<8x128xbf16>, vector<128x128xbf16>, vector<8x128xf32> -> vector<8x128xf32>
      %c0_158 = arith.constant 0 : index
      %c0_159 = arith.constant 0 : index
      %349 = vector.load %arg7[%c0_158, %c0_159] : memref<1x128xf32, #tpu.memory_space<vmem>>, vector<1x128xf32>
      %350 = vector.broadcast %349 : vector<1x128xf32> to vector<8x128xf32>
      %351 = arith.addf %348, %350 : vector<8x128xf32>
      %352 = arith.mulf %351, %351 : vector<8x128xf32>
      %cst_160 = arith.constant dense<0.000000e+00> : vector<8xf32>
      %353 = vector.multi_reduction <add>, %352, %cst_160 [1] : vector<8x128xf32> to vector<8xf32>
      %354 = vector.shape_cast %353 : vector<8xf32> to vector<8x1xf32>
      %355 = math.rsqrt %354 : vector<8x1xf32>
      %356 = vector.broadcast %355 : vector<8x1xf32> to vector<8x128xf32>
      %357 = arith.mulf %351, %356 : vector<8x128xf32>
      %c0_161 = arith.constant 0 : index
      %c0_162 = arith.constant 0 : index
      %358 = vector.load %arg8[%c0_161, %c0_162] : memref<8x128xf32, #tpu.memory_space<vmem>>, vector<8x128xf32>
      tpu.vector_store %arg8[%c0_161, %c0_162], %357 {strides = array<i32>} : memref<8x128xf32, #tpu.memory_space<vmem>>, vector<8x128xf32>,
    } else {
    }
    return
  }
  func.func @transform_0(%arg0: i32, %arg1: i32) -> (i32, i32, i32) {
    %c0_i32 = arith.constant 0 : i32
    %c0_i32_0 = arith.constant 0 : i32
    return %arg1, %arg0, %c0_i32 : i32, i32, i32
  }
  func.func @transform_1(%arg0: i32, %arg1: i32) -> (i32, i32) {
    %c0_i32 = arith.constant 0 : i32
    %c0_i32_0 = arith.constant 0 : i32
    %c0_i32_1 = arith.constant 0 : i32
    return %c0_i32, %c0_i32_0 : i32, i32
  }
  func.func @transform_2(%arg0: i32, %arg1: i32) -> (i32, i32) {
    %c0_i32 = arith.constant 0 : i32
    %c0_i32_0 = arith.constant 0 : i32
    %c0_i32_1 = arith.constant 0 : i32
    return %c0_i32, %c0_i32_0 : i32, i32
  }
  func.func @transform_3(%arg0: i32, %arg1: i32) -> (i32, i32) {
    %c0_i32 = arith.constant 0 : i32
    %c0_i32_0 = arith.constant 0 : i32
    %c0_i32_1 = arith.constant 0 : i32
    return %c0_i32, %c0_i32_0 : i32, i32
  }
  func.func @transform_4(%arg0: i32, %arg1: i32) -> (i32, i32) {
    %c0_i32 = arith.constant 0 : i32
    %c0_i32_0 = arith.constant 0 : i32
    %c0_i32_1 = arith.constant 0 : i32
    return %c0_i32, %c0_i32_0 : i32, i32
  }
  func.func @transform_5(%arg0: i32, %arg1: i32) -> (i32, i32) {
    %c0_i32 = arith.constant 0 : i32
    %c0_i32_0 = arith.constant 0 : i32
    %c0_i32_1 = arith.constant 0 : i32
    return %c0_i32, %c0_i32_0 : i32, i32
  }
  func.func @transform_6(%arg0: i32, %arg1: i32) -> (i32, i32) {
    %c0_i32 = arith.constant 0 : i32
    %c0_i32_0 = arith.constant 0 : i32
    return %arg0, %c0_i32 : i32, i32
  }
}

</mosaic_0001>

<bundles_post_ra>
// kernel: speech_embedder_forward.5
= control target key start
LH: loop header
LB: loop body
LE: loop exit
PB: predicated region body
PF: predicated region fallthrough
CT: control target
= control target key end

     0   :  { %11 = vsyncpa [#allocation6], 0  ;;  %s5708_s0 = inlined_call_operand.vmem [shape: bf16[8,8,128], index: 0, kind: input, shape index: {}]   ;;  %s5709_s1 = inlined_call_operand.hbm [shape: bf16[128,512], index: 1, kind: input, shape index: {}]   ;;  %s5710_s2 = inlined_call_operand.hbm [shape: bf16[128,512], index: 2, kind: input, shape index: {}]   ;;  %s5711_s3 = inlined_call_operand.vmem [shape: f32[1,512], index: 3, kind: input, shape index: {}]   ;;  %s5712_s4 = inlined_call_operand.vmem [shape: bf16[128,128], index: 4, kind: input, shape index: {}]   ;;  %s5713_s5 = inlined_call_operand.vmem [shape: f32[1,128], index: 5, kind: input, shape index: {}]   ;;  %s5714_s6 = inlined_call_operand.vmem [shape: f32[8,128], index: 6, kind: output, shape index: {}]  }
   0x1   :  { %s19_s23 = sshll.u32 %s5709_s1, 4  ;;  %s20_s23 = int_to_ptr.hbm [resolvable:$true] %s19_s23 }
   0x2   :  { %12 = vsyncpa [#allocation8], 0  ;;  %s5140_s24 = smov [#allocation5]   ;;  %s32_s28 = sshll.u32 %s5710_s2, 4  ;;  %s33_s28 = int_to_ptr.hbm [resolvable:$true] %s32_s28 }
   0x3   :  { %s21_s25 = sshll.u32 %s5140_s24, 4  ;;  %s5141_s29 = smov 256   ;;  %s22_s25 = int_to_ptr.vmem [resolvable:$true] %s21_s25 }
   0x4   :  { %s5142_s30 = smov 16   ;;  %s5143_s7 = smov [#allocation7]  }
   0x5   :  { %27 = dma.hbm_to_vmem [thread:$0]  %s20_s23, 4096, %s22_s25, [#allocation6], %s5141_s29, %s5141_s29, %s5142_s30  }
   0x6   :  { %s34_s8 = sshll.u32 %s5143_s7, 4  ;;  %s35_s8 = int_to_ptr.vmem [resolvable:$true] %s34_s8 }
   0x7   :  { %40 = dma.hbm_to_vmem [thread:$0]  %s33_s28, 4096, %s35_s8, [#allocation8], %s5141_s29, %s5141_s29, %s5142_s30  }
   0x8   :  { %5136 = dma.done.wait [#allocation6], 4096  }
   0x9   :  { %5137 = vsyncadd [#allocation6], 4294963200 }
   0xa   :  { %5138 = dma.done.wait [#allocation8], 4096  }
   0xb   :  { %5139 = vsyncadd [#allocation8], 4294963200  ;;  %v3555_v0 = vld [vmem:[#allocation5 + $0xe0] sm:$0xf]  ;;  %v4686_v1 = vld [vmem:[#allocation5 + $0xec] sm:$0xf0] }
   0xc   :  { %v4684_v2 = vld [vmem:[#allocation5 + $0xe4] sm:$0xf]  ;;  %v3556_v3 = vor.u32 %v4686_v1, %v3555_v0  ;;  %v3557_v4 = vld [vmem:[#allocation5 + $0xf0] sm:$0xf0]  ;;  %v3563_v5 = vld [vmem:[#allocation5 + $0xe8] sm:$0xf] }
   0xd   :  { %v4687_v6 = vld [vmem:[#allocation5 + $0xf4] sm:$0xf0]  ;;  %v3560_v7 = vor.u32 %v4684_v2, %v3557_v4  ;;  %v4685_v9 = vld [vmem:[#allocation5 + $0xec] sm:$0xf]  ;;  %v3565_v10 = vld [vmem:[#allocation5 + $0xf8] sm:$0xf0] }
   0xe   :  { %v3564_v8 = vor.u32 %v4687_v6, %v3563_v5  ;;  %v3539_v11 = vld [vmem:[#allocation5 + $0xc0] sm:$0xf]  ;;  %264 = vmatpush.bf16.msra.mxu0 %v3556_v3  ;;  %v3568_v12 = vor.u32 %v4685_v9, %v3565_v10  ;;  %v4682_v13 = vld [vmem:[#allocation5 + $0xcc] sm:$0xf0]  ;;  %v4680_v14 = vld [vmem:[#allocation5 + $0xc4] sm:$0xf] }
   0xf   :  { %v3541_v15 = vld [vmem:[#allocation5 + $0xd0] sm:$0xf0]  ;;  %277 = vmatpush.bf16.msra.mxu1 %v3560_v7  ;;  %v3540_v16 = vor.u32 %v4682_v13, %v3539_v11  ;;  %v3547_v18 = vld [vmem:[#allocation5 + $0xc8] sm:$0xf]  ;;  %v4683_v19 = vld [vmem:[#allocation5 + $0xd4] sm:$0xf0] }
  0x10   :  { %290 = vmatpush.bf16.msra.mxu2 %v3564_v8  ;;  %v3544_v17 = vor.u32 %v4680_v14, %v3541_v15  ;;  %v4681_v20 = vld [vmem:[#allocation5 + $0xcc] sm:$0xf]  ;;  %303 = vmatpush.bf16.msra.mxu3 %v3568_v12  ;;  %v3548_v21 = vor.u32 %v4683_v19, %v3547_v18  ;;  %v3549_v22 = vld [vmem:[#allocation5 + $0xd8] sm:$0xf0]  ;;  %v3523_v23 = vld [vmem:[#allocation5 + $0xa0] sm:$0xf] }
  0x11   :  { %v4678_v24 = vld [vmem:[#allocation5 + $0xac] sm:$0xf0]  ;;  %v3552_v25 = vor.u32 %v4681_v20, %v3549_v22  ;;  %v4676_v26 = vld [vmem:[#allocation5 + $0xa4] sm:$0xf]  ;;  %v3525_v27 = vld [vmem:[#allocation5 + $0xb0] sm:$0xf0] }
  0x12   :  { %v3531_v28 = vld [vmem:[#allocation5 + $0xa8] sm:$0xf]  ;;  %265 = vmatpush.bf16.msra.mxu0 %v3540_v16  ;;  %v3524_v29 = vor.u32 %v4678_v24, %v3523_v23  ;;  %v4679_v30 = vld [vmem:[#allocation5 + $0xb4] sm:$0xf0]  ;;  %v4677_v31 = vld [vmem:[#allocation5 + $0xac] sm:$0xf]  ;;  %v3528_v33 = vor.u32 %v4676_v26, %v3525_v27 }
  0x13   :  { %v3533_v32 = vld [vmem:[#allocation5 + $0xb8] sm:$0xf0]  ;;  %278 = vmatpush.bf16.msra.mxu1 %v3544_v17  ;;  %v3532_v34 = vor.u32 %v4679_v30, %v3531_v28  ;;  %v3507_v35 = vld [vmem:[#allocation5 + $0x80] sm:$0xf]  ;;  %v4674_v36 = vld [vmem:[#allocation5 + $0x8c] sm:$0xf0] }
  0x14   :  { %291 = vmatpush.bf16.msra.mxu2 %v3548_v21  ;;  %v4672_v37 = vld [vmem:[#allocation5 + $0x84] sm:$0xf]  ;;  %304 = vmatpush.bf16.msra.mxu3 %v3552_v25  ;;  %v3536_v38 = vor.u32 %v4677_v31, %v3533_v32  ;;  %v3509_v39 = vld [vmem:[#allocation5 + $0x90] sm:$0xf0]  ;;  %v3515_v40 = vld [vmem:[#allocation5 + $0x88] sm:$0xf]  ;;  %v3508_v44 = vor.u32 %v4674_v36, %v3507_v35 }
  0x15   :  { %v4675_v41 = vld [vmem:[#allocation5 + $0x94] sm:$0xf0]  ;;  %v4673_v42 = vld [vmem:[#allocation5 + $0x8c] sm:$0xf]  ;;  %v3517_v43 = vld [vmem:[#allocation5 + $0x98] sm:$0xf0]  ;;  %v3512_v45 = vor.u32 %v4672_v37, %v3509_v39 }
  0x16   :  { %266 = vmatpush.bf16.msra.mxu0 %v3524_v29  ;;  %v3516_v46 = vor.u32 %v4675_v41, %v3515_v40  ;;  %v3491_v47 = vld [vmem:[#allocation5 + $0x60] sm:$0xf]  ;;  %v4670_v48 = vld [vmem:[#allocation5 + $0x6c] sm:$0xf0]  ;;  %v4668_v49 = vld [vmem:[#allocation5 + $0x64] sm:$0xf]  ;;  %v3520_v50 = vor.u32 %v4673_v42, %v3517_v43 }
  0x17   :  { %279 = vmatpush.bf16.msra.mxu1 %v3528_v33  ;;  %v3493_v51 = vld [vmem:[#allocation5 + $0x70] sm:$0xf0]  ;;  %v3499_v52 = vld [vmem:[#allocation5 + $0x68] sm:$0xf]  ;;  %v4671_v53 = vld [vmem:[#allocation5 + $0x74] sm:$0xf0]  ;;  %v3492_v56 = vor.u32 %v4670_v48, %v3491_v47 }
  0x18   :  { %292 = vmatpush.bf16.msra.mxu2 %v3532_v34  ;;  %305 = vmatpush.bf16.msra.mxu3 %v3536_v38  ;;  %v4669_v54 = vld [vmem:[#allocation5 + $0x6c] sm:$0xf]  ;;  %v3501_v55 = vld [vmem:[#allocation5 + $0x78] sm:$0xf0]  ;;  %v3496_v57 = vor.u32 %v4668_v49, %v3493_v51  ;;  %v3500_v58 = vor.u32 %v4671_v53, %v3499_v52  ;;  %v3475_v59 = vld [vmem:[#allocation5 + $0x40] sm:$0xf] }
  0x19   :  { %v4666_v60 = vld [vmem:[#allocation5 + $0x4c] sm:$0xf0]  ;;  %v4664_v61 = vld [vmem:[#allocation5 + $0x44] sm:$0xf]  ;;  %v3504_v62 = vor.u32 %v4669_v54, %v3501_v55  ;;  %v3477_v63 = vld [vmem:[#allocation5 + $0x50] sm:$0xf0] }
  0x1a   :  { %267 = vmatpush.bf16.msra.mxu0 %v3508_v44  ;;  %v3483_v0 = vld [vmem:[#allocation5 + $0x48] sm:$0xf]  ;;  %v4667_v1 = vld [vmem:[#allocation5 + $0x54] sm:$0xf0]  ;;  %v4665_v2 = vld [vmem:[#allocation5 + $0x4c] sm:$0xf]  ;;  %v3476_v4 = vor.u32 %v4666_v60, %v3475_v59  ;;  %v3480_v5 = vor.u32 %v4664_v61, %v3477_v63 }
  0x1b   :  { %280 = vmatpush.bf16.msra.mxu1 %v3512_v45  ;;  %v3485_v3 = vld [vmem:[#allocation5 + $0x58] sm:$0xf0]  ;;  %v3484_v6 = vor.u32 %v4667_v1, %v3483_v0  ;;  %v3459_v7 = vld [vmem:[#allocation5 + $0x20] sm:$0xf]  ;;  %v4662_v8 = vld [vmem:[#allocation5 + $0x2c] sm:$0xf0] }
  0x1c   :  { %293 = vmatpush.bf16.msra.mxu2 %v3516_v46  ;;  %306 = vmatpush.bf16.msra.mxu3 %v3520_v50  ;;  %v4660_v9 = vld [vmem:[#allocation5 + $0x24] sm:$0xf]  ;;  %v3488_v10 = vor.u32 %v4665_v2, %v3485_v3  ;;  %v3461_v11 = vld [vmem:[#allocation5 + $0x30] sm:$0xf0]  ;;  %v3467_v12 = vld [vmem:[#allocation5 + $0x28] sm:$0xf]  ;;  %v3460_v16 = vor.u32 %v4662_v8, %v3459_v7 }
  0x1d   :  { %v4663_v13 = vld [vmem:[#allocation5 + $0x34] sm:$0xf0]  ;;  %v4661_v14 = vld [vmem:[#allocation5 + $0x2c] sm:$0xf]  ;;  %v3469_v15 = vld [vmem:[#allocation5 + $0x38] sm:$0xf0]  ;;  %v3464_v19 = vor.u32 %v4660_v9, %v3461_v11 }
  0x1e   :  { %268 = vmatpush.bf16.msra.mxu0 %v3492_v56  ;;  %v3443_v17 = vld [vmem:[#allocation5] sm:$0xf]  ;;  %v4658_v18 = vld [vmem:[#allocation5 + $0xc] sm:$0xf0]  ;;  %v3468_v20 = vor.u32 %v4663_v13, %v3467_v12  ;;  %v4656_v21 = vld [vmem:[#allocation5 + $0x4] sm:$0xf]  ;;  %v3472_v24 = vor.u32 %v4661_v14, %v3469_v15 }
  0x1f   :  { %281 = vmatpush.bf16.msra.mxu1 %v3496_v57  ;;  %v3445_v22 = vld [vmem:[#allocation5 + $0x10] sm:$0xf0]  ;;  %v3451_v23 = vld [vmem:[#allocation5 + $0x8] sm:$0xf]  ;;  %v4659_v25 = vld [vmem:[#allocation5 + $0x14] sm:$0xf0]  ;;  %v3444_v31 = vor.u32 %v4658_v18, %v3443_v17 }
  0x20   :  { %294 = vmatpush.bf16.msra.mxu2 %v3500_v58  ;;  %307 = vmatpush.bf16.msra.mxu3 %v3504_v62  ;;  %v4657_v26 = vld [vmem:[#allocation5 + $0xc] sm:$0xf]  ;;  %v3453_v27 = vld [vmem:[#allocation5 + $0x18] sm:$0xf0]  ;;  %v3684_v28 = vld [vmem:[#allocation5 + $0xe0] sm:$0xf]  ;;  %v3448_v35 = vor.u32 %v4656_v21, %v3445_v22  ;;  %v3452_v36 = vor.u32 %v4659_v25, %v3451_v23 }
  0x21   :  { %v4718_v29 = vld [vmem:[#allocation5 + $0xec] sm:$0xf0]  ;;  %v4716_v30 = vld [vmem:[#allocation5 + $0xe4] sm:$0xf]  ;;  %v3686_v32 = vld [vmem:[#allocation5 + $0xf0] sm:$0xf0]  ;;  %v3456_v39 = vor.u32 %v4657_v26, %v3453_v27 }
  0x22   :  { %269 = vmatpush.bf16.msra.mxu0 %v3476_v4  ;;  %v3692_v33 = vld [vmem:[#allocation5 + $0xe8] sm:$0xf]  ;;  %v4719_v34 = vld [vmem:[#allocation5 + $0xf4] sm:$0xf0]  ;;  %v4717_v37 = vld [vmem:[#allocation5 + $0xec] sm:$0xf]  ;;  %v3685_v40 = vor.u32 %v4718_v29, %v3684_v28  ;;  %v3689_v41 = vor.u32 %v4716_v30, %v3686_v32 }
  0x23   :  { %282 = vmatpush.bf16.msra.mxu1 %v3480_v5  ;;  %v3694_v38 = vld [vmem:[#allocation5 + $0xf8] sm:$0xf0]  ;;  %v3693_v42 = vor.u32 %v4719_v34, %v3692_v33  ;;  %v3668_v43 = vld [vmem:[#allocation5 + $0xc0] sm:$0xf]  ;;  %v4714_v44 = vld [vmem:[#allocation5 + $0xcc] sm:$0xf0] }
  0x24   :  { %295 = vmatpush.bf16.msra.mxu2 %v3484_v6  ;;  %308 = vmatpush.bf16.msra.mxu3 %v3488_v10  ;;  %v4712_v45 = vld [vmem:[#allocation5 + $0xc4] sm:$0xf]  ;;  %v3697_v46 = vor.u32 %v4717_v37, %v3694_v38  ;;  %v3670_v47 = vld [vmem:[#allocation5 + $0xd0] sm:$0xf0]  ;;  %v3676_v48 = vld [vmem:[#allocation5 + $0xc8] sm:$0xf]  ;;  %v3669_v52 = vor.u32 %v4714_v44, %v3668_v43 }
  0x25   :  { %v4715_v49 = vld [vmem:[#allocation5 + $0xd4] sm:$0xf0]  ;;  %v4713_v50 = vld [vmem:[#allocation5 + $0xcc] sm:$0xf]  ;;  %v3678_v51 = vld [vmem:[#allocation5 + $0xd8] sm:$0xf0]  ;;  %v3673_v53 = vor.u32 %v4712_v45, %v3670_v47 }
  0x26   :  { %270 = vmatpush.bf16.msra.mxu0 %v3460_v16  ;;  %v3677_v54 = vor.u32 %v4715_v49, %v3676_v48  ;;  %v3652_v55 = vld [vmem:[#allocation5 + $0xa0] sm:$0xf]  ;;  %v4710_v56 = vld [vmem:[#allocation5 + $0xac] sm:$0xf0]  ;;  %v4708_v57 = vld [vmem:[#allocation5 + $0xa4] sm:$0xf]  ;;  %v3681_v58 = vor.u32 %v4713_v50, %v3678_v51 }
  0x27   :  { %283 = vmatpush.bf16.msra.mxu1 %v3464_v19  ;;  %v3654_v59 = vld [vmem:[#allocation5 + $0xb0] sm:$0xf0]  ;;  %v3660_v60 = vld [vmem:[#allocation5 + $0xa8] sm:$0xf]  ;;  %v4711_v61 = vld [vmem:[#allocation5 + $0xb4] sm:$0xf0]  ;;  %v3653_v0 = vor.u32 %v4710_v56, %v3652_v55 }
  0x28   :  { %296 = vmatpush.bf16.msra.mxu2 %v3468_v20  ;;  %309 = vmatpush.bf16.msra.mxu3 %v3472_v24  ;;  %v4709_v62 = vld [vmem:[#allocation5 + $0xac] sm:$0xf]  ;;  %v3662_v63 = vld [vmem:[#allocation5 + $0xb8] sm:$0xf0]  ;;  %v61_v1 = vld [vmem:[%s5708_s0] sm:$0xf]  ;;  %v3657_v2 = vor.u32 %v4708_v57, %v3654_v59  ;;  %v3661_v3 = vor.u32 %v4711_v61, %v3660_v60 }
  0x29   :  { %v3636_v4 = vld [vmem:[#allocation5 + $0x80] sm:$0xf]  ;;  %v4706_v5 = vld [vmem:[#allocation5 + $0x8c] sm:$0xf0]  ;;  %v4704_v6 = vld [vmem:[#allocation5 + $0x84] sm:$0xf]  ;;  %v3665_v7 = vor.u32 %v4709_v62, %v3662_v63 }
  0x2a   :  { %271 = vmatpush.bf16.msra.mxu0 %v3444_v31  ;;  %v3638_v8 = vld [vmem:[#allocation5 + $0x90] sm:$0xf0]  ;;  %v3644_v9 = vld [vmem:[#allocation5 + $0x88] sm:$0xf]  ;;  %v4707_v10 = vld [vmem:[#allocation5 + $0x94] sm:$0xf0]  ;;  %v3637_v13 = vor.u32 %v4706_v5, %v3636_v4 }
  0x2b   :  { %284 = vmatpush.bf16.msra.mxu1 %v3448_v35  ;;  %v4705_v11 = vld [vmem:[#allocation5 + $0x8c] sm:$0xf]  ;;  %v3646_v12 = vld [vmem:[#allocation5 + $0x98] sm:$0xf0]  ;;  %v3641_v14 = vor.u32 %v4704_v6, %v3638_v8  ;;  %v3645_v15 = vor.u32 %v4707_v10, %v3644_v9  ;;  %v3620_v16 = vld [vmem:[#allocation5 + $0x60] sm:$0xf] }
  0x2c   :  { %297 = vmatpush.bf16.msra.mxu2 %v3452_v36  ;;  %310 = vmatpush.bf16.msra.mxu3 %v3456_v39  ;;  %v4702_v17 = vld [vmem:[#allocation5 + $0x6c] sm:$0xf0]  ;;  %v4700_v18 = vld [vmem:[#allocation5 + $0x64] sm:$0xf]  ;;  %v3649_v19 = vor.u32 %v4705_v11, %v3646_v12  ;;  %v3622_v20 = vld [vmem:[#allocation5 + $0x70] sm:$0xf0] }
  0x2d   :  { %272 = vmatmul.bf16.vlgmr.msra.gmra.mxu0 %v61_v1  ;;  %v3628_v21 = vld [vmem:[#allocation5 + $0x68] sm:$0xf]  ;;  %v4703_v22 = vld [vmem:[#allocation5 + $0x74] sm:$0xf0]  ;;  %v4701_v23 = vld [vmem:[#allocation5 + $0x6c] sm:$0xf]  ;;  %v3621_v25 = vor.u32 %v4702_v17, %v3620_v16  ;;  %v3625_v26 = vor.u32 %v4700_v18, %v3622_v20 }
  0x2e   :  { %524 = vmatpush.bf16.msrb.mxu0 %v3685_v40  ;;  %285 = vmatmul.bf16.vlgmr.msra.gmra.mxu1 %v61_v1  ;;  %v3630_v24 = vld [vmem:[#allocation5 + $0x78] sm:$0xf0]  ;;  %v3629_v27 = vor.u32 %v4703_v22, %v3628_v21  ;;  %v3604_v28 = vld [vmem:[#allocation5 + $0x40] sm:$0xf]  ;;  %v4698_v29 = vld [vmem:[#allocation5 + $0x4c] sm:$0xf0] }
  0x2f   :  { %537 = vmatpush.bf16.msrb.mxu1 %v3689_v41  ;;  %311 = vmatmul.bf16.vlgmr.msra.gmra.mxu3 %v61_v1  ;;  %v4696_v30 = vld [vmem:[#allocation5 + $0x44] sm:$0xf]  ;;  %v3633_v31 = vor.u32 %v4701_v23, %v3630_v24  ;;  %v3606_v32 = vld [vmem:[#allocation5 + $0x50] sm:$0xf0]  ;;  %v3612_v33 = vld [vmem:[#allocation5 + $0x48] sm:$0xf]  ;;  %v3605_v37 = vor.u32 %v4698_v29, %v3604_v28 }
  0x30   :  { %550 = vmatpush.bf16.msrb.mxu2 %v3693_v42  ;;  %563 = vmatpush.bf16.msrb.mxu3 %v3697_v46  ;;  %v4699_v34 = vld [vmem:[#allocation5 + $0x54] sm:$0xf0]  ;;  %v4697_v35 = vld [vmem:[#allocation5 + $0x4c] sm:$0xf]  ;;  %v3614_v36 = vld [vmem:[#allocation5 + $0x58] sm:$0xf0]  ;;  %v3609_v38 = vor.u32 %v4696_v30, %v3606_v32 }
  0x31   :  { %298 = vmatmul.bf16.vlgmr.msra.gmra.mxu2 %v61_v1  ;;  %v3613_v39 = vor.u32 %v4699_v34, %v3612_v33  ;;  %v3588_v40 = vld [vmem:[#allocation5 + $0x20] sm:$0xf]  ;;  %v4694_v41 = vld [vmem:[#allocation5 + $0x2c] sm:$0xf0]  ;;  %v4692_v42 = vld [vmem:[#allocation5 + $0x24] sm:$0xf]  ;;  %v3617_v43 = vor.u32 %v4697_v35, %v3614_v36 }
  0x32   :  { %525 = vmatpush.bf16.msrb.mxu0 %v3669_v52  ;;  %v3590_v44 = vld [vmem:[#allocation5 + $0x30] sm:$0xf0]  ;;  %v3596_v45 = vld [vmem:[#allocation5 + $0x28] sm:$0xf]  ;;  %v4695_v46 = vld [vmem:[#allocation5 + $0x34] sm:$0xf0]  ;;  %v3589_v49 = vor.u32 %v4694_v41, %v3588_v40 }
  0x33   :  { %538 = vmatpush.bf16.msrb.mxu1 %v3673_v53  ;;  %v4693_v47 = vld [vmem:[#allocation5 + $0x2c] sm:$0xf]  ;;  %v3598_v48 = vld [vmem:[#allocation5 + $0x38] sm:$0xf0]  ;;  %v3572_v50 = vld [vmem:[#allocation5] sm:$0xf]  ;;  %v3593_v52 = vor.u32 %v4692_v42, %v3590_v44  ;;  %v3597_v53 = vor.u32 %v4695_v46, %v3596_v45 }
  0x34   :  { %551 = vmatpush.bf16.msrb.mxu2 %v3677_v54  ;;  %564 = vmatpush.bf16.msrb.mxu3 %v3681_v58  ;;  %v4690_v51 = vld [vmem:[#allocation5 + $0xc] sm:$0xf0]  ;;  %v4688_v54 = vld [vmem:[#allocation5 + $0x4] sm:$0xf]  ;;  %v3574_v55 = vld [vmem:[#allocation5 + $0x10] sm:$0xf0]  ;;  %v3601_v57 = vor.u32 %v4693_v47, %v3598_v48 }
  0x35   :  { %v3580_v56 = vld [vmem:[#allocation5 + $0x8] sm:$0xf]  ;;  %v4691_v58 = vld [vmem:[#allocation5 + $0x14] sm:$0xf0]  ;;  %v4689_v59 = vld [vmem:[#allocation5 + $0xc] sm:$0xf]  ;;  %v3577_v4 = vor.u32 %v4688_v54, %v3574_v55 }
  0x36   :  { %526 = vmatpush.bf16.msrb.mxu0 %v3653_v0  ;;  %v3582_v60 = vld [vmem:[#allocation5 + $0x18] sm:$0xf0]  ;;  %v3813_v61 = vld [vmem:[#allocation5 + $0xe0] sm:$0xf]  ;;  %v4750_v62 = vld [vmem:[#allocation5 + $0xec] sm:$0xf0]  ;;  %v3573_v0 = vor.u32 %v4690_v51, %v3572_v50  ;;  %v3581_v5 = vor.u32 %v4691_v58, %v3580_v56 }
  0x37   :  { %539 = vmatpush.bf16.msrb.mxu1 %v3657_v2  ;;  %v4748_v63 = vld [vmem:[#allocation5 + $0xe4] sm:$0xf]  ;;  %v3815_v1 = vld [vmem:[#allocation5 + $0xf0] sm:$0xf0]  ;;  %v3821_v2 = vld [vmem:[#allocation5 + $0xe8] sm:$0xf]  ;;  %v3585_v8 = vor.u32 %v4689_v59, %v3582_v60  ;;  %v3814_v9 = vor.u32 %v4750_v62, %v3813_v61 }
  0x38   :  { %552 = vmatpush.bf16.msrb.mxu2 %v3661_v3  ;;  %565 = vmatpush.bf16.msrb.mxu3 %v3665_v7  ;;  %v4751_v3 = vld [vmem:[#allocation5 + $0xf4] sm:$0xf0]  ;;  %v4749_v6 = vld [vmem:[#allocation5 + $0xec] sm:$0xf]  ;;  %v3823_v7 = vld [vmem:[#allocation5 + $0xf8] sm:$0xf0]  ;;  %v3818_v10 = vor.u32 %v4748_v63, %v3815_v1 }
  0x39   :  { %v3822_v11 = vor.u32 %v4751_v3, %v3821_v2  ;;  %v3797_v12 = vld [vmem:[#allocation5 + $0xc0] sm:$0xf]  ;;  %v3799_v16 = vld [vmem:[#allocation5 + $0xd0] sm:$0xf0]  ;;  %v3805_v17 = vld [vmem:[#allocation5 + $0xc8] sm:$0xf] }
  0x3a   :  { %527 = vmatpush.bf16.msrb.mxu0 %v3637_v13  ;;  %v4746_v13 = vld [vmem:[#allocation5 + $0xcc] sm:$0xf0]  ;;  %v4747_v18 = vld [vmem:[#allocation5 + $0xd4] sm:$0xf0]  ;;  %v3807_v20 = vld [vmem:[#allocation5 + $0xd8] sm:$0xf0] }
  0x3b   :  { %540 = vmatpush.bf16.msrb.mxu1 %v3641_v14  ;;  %v4744_v14 = vld [vmem:[#allocation5 + $0xc4] sm:$0xf]  ;;  %v3798_v22 = vor.u32 %v4746_v13, %v3797_v12  ;;  %v3806_v24 = vor.u32 %v4747_v18, %v3805_v17  ;;  %v3783_v29 = vld [vmem:[#allocation5 + $0xb0] sm:$0xf0]  ;;  %v3789_v30 = vld [vmem:[#allocation5 + $0xa8] sm:$0xf] }
  0x3c   :  { %553 = vmatpush.bf16.msrb.mxu2 %v3645_v15  ;;  %566 = vmatpush.bf16.msrb.mxu3 %v3649_v19  ;;  %v3826_v15 = vor.u32 %v4749_v6, %v3823_v7  ;;  %v4745_v19 = vld [vmem:[#allocation5 + $0xcc] sm:$0xf]  ;;  %v3569_v21 = vld [vmem:[%s5708_s0 + $0x4] sm:$0xf]  ;;  %v3802_v23 = vor.u32 %v4744_v14, %v3799_v16  ;;  %v3791_v33 = vld [vmem:[#allocation5 + $0xb8] sm:$0xf0] }
  0x3d   :  { %v3810_v28 = vor.u32 %v4745_v19, %v3807_v20  ;;  %v4741_v32 = vld [vmem:[#allocation5 + $0xac] sm:$0xf]  ;;  %v3767_v41 = vld [vmem:[#allocation5 + $0x90] sm:$0xf0]  ;;  %v3773_v42 = vld [vmem:[#allocation5 + $0x88] sm:$0xf] }
  0x3e   :  { %528 = vmatpush.bf16.msrb.mxu0 %v3621_v25  ;;  %v3781_v25 = vld [vmem:[#allocation5 + $0xa0] sm:$0xf]  ;;  %v3794_v40 = vor.u32 %v4741_v32, %v3791_v33  ;;  %v4737_v44 = vld [vmem:[#allocation5 + $0x8c] sm:$0xf]  ;;  %v3775_v45 = vld [vmem:[#allocation5 + $0x98] sm:$0xf0] }
  0x3f   :  { %541 = vmatpush.bf16.msrb.mxu1 %v3625_v26  ;;  %v4742_v26 = vld [vmem:[#allocation5 + $0xac] sm:$0xf0]  ;;  %v4732_v51 = vld [vmem:[#allocation5 + $0x64] sm:$0xf]  ;;  %v3757_v54 = vld [vmem:[#allocation5 + $0x68] sm:$0xf] }
  0x40   :  { %554 = vmatpush.bf16.msrb.mxu2 %v3629_v27  ;;  %567 = vmatpush.bf16.msrb.mxu3 %v3633_v31  ;;  %v4740_v27 = vld [vmem:[#allocation5 + $0xa4] sm:$0xf]  ;;  %v4743_v31 = vld [vmem:[#allocation5 + $0xb4] sm:$0xf0]  ;;  %v3782_v34 = vor.u32 %v4742_v26, %v3781_v25  ;;  %v4734_v50 = vld [vmem:[#allocation5 + $0x6c] sm:$0xf0] }
  0x41   :  { %v3786_v35 = vor.u32 %v4740_v27, %v3783_v29  ;;  %v3790_v36 = vor.u32 %v4743_v31, %v3789_v30  ;;  %v4735_v55 = vld [vmem:[#allocation5 + $0x74] sm:$0xf0]  ;;  %v4733_v56 = vld [vmem:[#allocation5 + $0x6c] sm:$0xf]  ;;  %v3733_v61 = vld [vmem:[#allocation5 + $0x40] sm:$0xf] }
  0x42   :  { %529 = vmatpush.bf16.msrb.mxu0 %v3605_v37  ;;  %v3765_v37 = vld [vmem:[#allocation5 + $0x80] sm:$0xf]  ;;  %v3758_v60 = vor.u32 %v4735_v55, %v3757_v54  ;;  %v4730_v62 = vld [vmem:[#allocation5 + $0x4c] sm:$0xf0]  ;;  %v4728_v63 = vld [vmem:[#allocation5 + $0x44] sm:$0xf] }
  0x43   :  { %542 = vmatpush.bf16.msrb.mxu1 %v3609_v38  ;;  %v4738_v38 = vld [vmem:[#allocation5 + $0x8c] sm:$0xf0]  ;;  %v3735_v1 = vld [vmem:[#allocation5 + $0x50] sm:$0xf0]  ;;  %v3741_v2 = vld [vmem:[#allocation5 + $0x48] sm:$0xf]  ;;  %v3734_v6 = vor.u32 %v4730_v62, %v3733_v61 }
  0x44   :  { %555 = vmatpush.bf16.msrb.mxu2 %v3613_v39  ;;  %568 = vmatpush.bf16.msrb.mxu3 %v3617_v43  ;;  %v4736_v39 = vld [vmem:[#allocation5 + $0x84] sm:$0xf]  ;;  %v4739_v43 = vld [vmem:[#allocation5 + $0x94] sm:$0xf0]  ;;  %v3766_v46 = vor.u32 %v4738_v38, %v3765_v37  ;;  %v3738_v7 = vor.u32 %v4728_v63, %v3735_v1  ;;  %v3719_v13 = vld [vmem:[#allocation5 + $0x30] sm:$0xf0] }
  0x45   :  { %v3770_v47 = vor.u32 %v4736_v39, %v3767_v41  ;;  %v3774_v48 = vor.u32 %v4739_v43, %v3773_v42  ;;  %v4731_v3 = vld [vmem:[#allocation5 + $0x54] sm:$0xf0]  ;;  %v3725_v14 = vld [vmem:[#allocation5 + $0x28] sm:$0xf]  ;;  %v4725_v16 = vld [vmem:[#allocation5 + $0x2c] sm:$0xf] }
  0x46   :  { %530 = vmatpush.bf16.msrb.mxu0 %v3589_v49  ;;  %v3749_v49 = vld [vmem:[#allocation5 + $0x60] sm:$0xf]  ;;  %v3727_v17 = vld [vmem:[#allocation5 + $0x38] sm:$0xf0]  ;;  %v4722_v20 = vld [vmem:[#allocation5 + $0xc] sm:$0xf0] }
  0x47   :  { %543 = vmatpush.bf16.msrb.mxu1 %v3593_v52  ;;  %v3778_v52 = vor.u32 %v4737_v44, %v3775_v45  ;;  %v3750_v58 = vor.u32 %v4734_v50, %v3749_v49  ;;  %v3701_v19 = vld [vmem:[#allocation5] sm:$0xf]  ;;  %v3709_v25 = vld [vmem:[#allocation5 + $0x8] sm:$0xf]  ;;  %v3730_v26 = vor.u32 %v4725_v16, %v3727_v17  ;;  %v4723_v27 = vld [vmem:[#allocation5 + $0x14] sm:$0xf0] }
  0x48   :  { %556 = vmatpush.bf16.msrb.mxu2 %v3597_v53  ;;  %569 = vmatpush.bf16.msrb.mxu3 %v3601_v57  ;;  %v3751_v53 = vld [vmem:[#allocation5 + $0x70] sm:$0xf0]  ;;  %v3759_v57 = vld [vmem:[#allocation5 + $0x78] sm:$0xf0]  ;;  %v3942_v30 = vld [vmem:[#allocation5 + $0xe0] sm:$0xf]  ;;  %v3702_v33 = vor.u32 %v4722_v20, %v3701_v19  ;;  %v3710_v38 = vor.u32 %v4723_v27, %v3709_v25 }
  0x49   :  { %v3754_v59 = vor.u32 %v4732_v51, %v3751_v53  ;;  %v3711_v29 = vld [vmem:[#allocation5 + $0x18] sm:$0xf0]  ;;  %v4782_v31 = vld [vmem:[#allocation5 + $0xec] sm:$0xf0]  ;;  %v4780_v32 = vld [vmem:[#allocation5 + $0xe4] sm:$0xf] }
  0x4a   :  { %531 = vmatpush.bf16.msrb.mxu0 %v3573_v0  ;;  %v3762_v0 = vor.u32 %v4733_v56, %v3759_v57  ;;  %v4781_v39 = vld [vmem:[#allocation5 + $0xec] sm:$0xf]  ;;  %v3943_v42 = vor.u32 %v4782_v31, %v3942_v30  ;;  %v3926_v45 = vld [vmem:[#allocation5 + $0xc0] sm:$0xf]  ;;  %v3928_v49 = vld [vmem:[#allocation5 + $0xd0] sm:$0xf0] }
  0x4b   :  { %544 = vmatpush.bf16.msrb.mxu1 %v3577_v4  ;;  %v4729_v4 = vld [vmem:[#allocation5 + $0x4c] sm:$0xf]  ;;  %v3934_v50 = vld [vmem:[#allocation5 + $0xc8] sm:$0xf]  ;;  %v4779_v51 = vld [vmem:[#allocation5 + $0xd4] sm:$0xf0] }
  0x4c   :  { %557 = vmatpush.bf16.msrb.mxu2 %v3581_v5  ;;  %570 = vmatpush.bf16.msrb.mxu3 %v3585_v8  ;;  %v3743_v5 = vld [vmem:[#allocation5 + $0x58] sm:$0xf0]  ;;  %v3742_v8 = vor.u32 %v4731_v3, %v3741_v2  ;;  %v3698_v54 = vld [vmem:[%s5708_s0 + $0x8] sm:$0xf]  ;;  %v3935_v57 = vor.u32 %v4779_v51, %v3934_v50  ;;  %v3912_v62 = vld [vmem:[#allocation5 + $0xb0] sm:$0xf0] }
  0x4d   :  { %532 = vmatmul.bf16.vlgmr.msrb.gmra.mxu0 %v3569_v21  ;;  %v3746_v12 = vor.u32 %v4729_v4, %v3743_v5  ;;  %v3936_v53 = vld [vmem:[#allocation5 + $0xd8] sm:$0xf0]  ;;  %v3918_v63 = vld [vmem:[#allocation5 + $0xa8] sm:$0xf]  ;;  %v4773_v1 = vld [vmem:[#allocation5 + $0xac] sm:$0xf] }
  0x4e   :  { %785 = vmatpush.bf16.msra.mxu0 %v3814_v9  ;;  %545 = vmatmul.bf16.vlgmr.msrb.gmra.mxu1 %v3569_v21  ;;  %v3717_v9 = vld [vmem:[#allocation5 + $0x20] sm:$0xf]  ;;  %v3920_v2 = vld [vmem:[#allocation5 + $0xb8] sm:$0xf0]  ;;  %v4766_v19 = vld [vmem:[#allocation5 + $0x6c] sm:$0xf0] }
  0x4f   :  { %798 = vmatpush.bf16.msra.mxu1 %v3818_v10  ;;  %571 = vmatmul.bf16.vlgmr.msrb.gmra.mxu3 %v3569_v21  ;;  %v4726_v10 = vld [vmem:[#allocation5 + $0x2c] sm:$0xf0]  ;;  %v4764_v20 = vld [vmem:[#allocation5 + $0x64] sm:$0xf]  ;;  %v4765_v25 = vld [vmem:[#allocation5 + $0x6c] sm:$0xf] }
  0x50   :  { %811 = vmatpush.bf16.msra.mxu2 %v3822_v11  ;;  %824 = vmatpush.bf16.msra.mxu3 %v3826_v15  ;;  %v4724_v11 = vld [vmem:[#allocation5 + $0x24] sm:$0xf]  ;;  %v4727_v15 = vld [vmem:[#allocation5 + $0x34] sm:$0xf0]  ;;  %v3718_v18 = vor.u32 %v4726_v10, %v3717_v9  ;;  %v3923_v9 = vor.u32 %v4773_v1, %v3920_v2  ;;  %v3896_v10 = vld [vmem:[#allocation5 + $0x90] sm:$0xf0] }
  0x51   :  { %558 = vmatmul.bf16.vlgmr.msrb.gmra.mxu2 %v3569_v21  ;;  %v3722_v21 = vor.u32 %v4724_v11, %v3719_v13  ;;  %v3902_v11 = vld [vmem:[#allocation5 + $0x88] sm:$0xf]  ;;  %v4769_v13 = vld [vmem:[#allocation5 + $0x8c] sm:$0xf]  ;;  %v3862_v30 = vld [vmem:[#allocation5 + $0x40] sm:$0xf] }
  0x52   :  { %786 = vmatpush.bf16.msra.mxu0 %v3798_v22  ;;  %v3726_v22 = vor.u32 %v4727_v15, %v3725_v14  ;;  %v3904_v14 = vld [vmem:[#allocation5 + $0x98] sm:$0xf0]  ;;  %v4762_v31 = vld [vmem:[#allocation5 + $0x4c] sm:$0xf0]  ;;  %v4812_v1 = vld [vmem:[#allocation5 + $0xe4] sm:$0xf] }
  0x53   :  { %799 = vmatpush.bf16.msra.mxu1 %v3802_v23  ;;  %v4720_v23 = vld [vmem:[#allocation5 + $0x4] sm:$0xf]  ;;  %v3856_v50 = vld [vmem:[#allocation5 + $0x38] sm:$0xf0] }
  0x54   :  { %812 = vmatpush.bf16.msra.mxu2 %v3806_v24  ;;  %825 = vmatpush.bf16.msra.mxu3 %v3810_v28  ;;  %v3703_v24 = vld [vmem:[#allocation5 + $0x10] sm:$0xf0]  ;;  %v4721_v28 = vld [vmem:[#allocation5 + $0xc] sm:$0xf] }
  0x55   :  { %v3706_v37 = vor.u32 %v4720_v23, %v3703_v24  ;;  %v3714_v41 = vor.u32 %v4721_v28, %v3711_v29  ;;  %v3886_v23 = vld [vmem:[#allocation5 + $0x68] sm:$0xf]  ;;  %v4767_v24 = vld [vmem:[#allocation5 + $0x74] sm:$0xf0] }
  0x56   :  { %787 = vmatpush.bf16.msra.mxu0 %v3782_v34  ;;  %v3944_v34 = vld [vmem:[#allocation5 + $0xf0] sm:$0xf0]  ;;  %v3887_v29 = vor.u32 %v4767_v24, %v3886_v23  ;;  %v3827_v23 = vld [vmem:[%s5708_s0 + $0xc] sm:$0xf] }
  0x57   :  { %800 = vmatpush.bf16.msra.mxu1 %v3786_v35  ;;  %v3950_v35 = vld [vmem:[#allocation5 + $0xe8] sm:$0xf]  ;;  %v3947_v43 = vor.u32 %v4780_v32, %v3944_v34  ;;  %v4760_v32 = vld [vmem:[#allocation5 + $0x44] sm:$0xf]  ;;  %v3864_v34 = vld [vmem:[#allocation5 + $0x50] sm:$0xf0] }
  0x58   :  { %813 = vmatpush.bf16.msra.mxu2 %v3790_v36  ;;  %826 = vmatpush.bf16.msra.mxu3 %v3794_v40  ;;  %v4783_v36 = vld [vmem:[#allocation5 + $0xf4] sm:$0xf0]  ;;  %v3952_v40 = vld [vmem:[#allocation5 + $0xf8] sm:$0xf0] }
  0x59   :  { %v3951_v44 = vor.u32 %v4783_v36, %v3950_v35  ;;  %v3870_v35 = vld [vmem:[#allocation5 + $0x48] sm:$0xf]  ;;  %v4763_v36 = vld [vmem:[#allocation5 + $0x54] sm:$0xf0] }
  0x5a   :  { %788 = vmatpush.bf16.msra.mxu0 %v3766_v46  ;;  %v4778_v46 = vld [vmem:[#allocation5 + $0xcc] sm:$0xf0] }
  0x5b   :  { %801 = vmatpush.bf16.msra.mxu1 %v3770_v47  ;;  %v4776_v47 = vld [vmem:[#allocation5 + $0xc4] sm:$0xf]  ;;  %v3927_v55 = vor.u32 %v4778_v46, %v3926_v45  ;;  %v3848_v46 = vld [vmem:[#allocation5 + $0x30] sm:$0xf0] }
  0x5c   :  { %814 = vmatpush.bf16.msra.mxu2 %v3774_v48  ;;  %827 = vmatpush.bf16.msra.mxu3 %v3778_v52  ;;  %v3955_v48 = vor.u32 %v4781_v39, %v3952_v40  ;;  %v4777_v52 = vld [vmem:[#allocation5 + $0xcc] sm:$0xf]  ;;  %v3931_v56 = vor.u32 %v4776_v47, %v3928_v49  ;;  %v3863_v39 = vor.u32 %v4762_v31, %v3862_v30  ;;  %v3854_v47 = vld [vmem:[#allocation5 + $0x28] sm:$0xf]  ;;  %v4041_v31 = vld [vmem:[#allocation5 + $0xb0] sm:$0xf0] }
  0x5d   :  { %v3939_v61 = vor.u32 %v4777_v52, %v3936_v53  ;;  %v3867_v40 = vor.u32 %v4760_v32, %v3864_v34  ;;  %v4757_v49 = vld [vmem:[#allocation5 + $0x2c] sm:$0xf]  ;;  %v3830_v52 = vld [vmem:[#allocation5] sm:$0xf]  ;;  %v4754_v53 = vld [vmem:[#allocation5 + $0xc] sm:$0xf0] }
  0x5e   :  { %789 = vmatpush.bf16.msra.mxu0 %v3750_v58  ;;  %v3910_v58 = vld [vmem:[#allocation5 + $0xa0] sm:$0xf]  ;;  %v3831_v2 = vor.u32 %v4754_v53, %v3830_v52  ;;  %v4047_v32 = vld [vmem:[#allocation5 + $0xa8] sm:$0xf]  ;;  %v4805_v34 = vld [vmem:[#allocation5 + $0xac] sm:$0xf] }
  0x5f   :  { %802 = vmatpush.bf16.msra.mxu1 %v3754_v59  ;;  %v4774_v59 = vld [vmem:[#allocation5 + $0xac] sm:$0xf0]  ;;  %v4796_v53 = vld [vmem:[#allocation5 + $0x64] sm:$0xf] }
  0x60   :  { %815 = vmatpush.bf16.msra.mxu2 %v3758_v60  ;;  %828 = vmatpush.bf16.msra.mxu3 %v3762_v0  ;;  %v4772_v60 = vld [vmem:[#allocation5 + $0xa4] sm:$0xf]  ;;  %v4775_v0 = vld [vmem:[#allocation5 + $0xb4] sm:$0xf0]  ;;  %v3911_v3 = vor.u32 %v4774_v59, %v3910_v58  ;;  %v3838_v58 = vld [vmem:[#allocation5 + $0x8] sm:$0xf]  ;;  %v3859_v59 = vor.u32 %v4757_v49, %v3856_v50 }
  0x61   :  { %v3915_v4 = vor.u32 %v4772_v60, %v3912_v62  ;;  %v3919_v5 = vor.u32 %v4775_v0, %v3918_v63  ;;  %v4755_v60 = vld [vmem:[#allocation5 + $0x14] sm:$0xf0]  ;;  %v3840_v62 = vld [vmem:[#allocation5 + $0x18] sm:$0xf0]  ;;  %v4071_v63 = vld [vmem:[#allocation5 + $0xe0] sm:$0xf] }
  0x62   :  { %790 = vmatpush.bf16.msra.mxu0 %v3734_v6  ;;  %v3894_v6 = vld [vmem:[#allocation5 + $0x80] sm:$0xf]  ;;  %v4814_v0 = vld [vmem:[#allocation5 + $0xec] sm:$0xf0] }
  0x63   :  { %803 = vmatpush.bf16.msra.mxu1 %v3738_v7  ;;  %v4770_v7 = vld [vmem:[#allocation5 + $0x8c] sm:$0xf0] }
  0x64   :  { %816 = vmatpush.bf16.msra.mxu2 %v3742_v8  ;;  %829 = vmatpush.bf16.msra.mxu3 %v3746_v12  ;;  %v4768_v8 = vld [vmem:[#allocation5 + $0x84] sm:$0xf]  ;;  %v4771_v12 = vld [vmem:[#allocation5 + $0x94] sm:$0xf0]  ;;  %v3895_v15 = vor.u32 %v4770_v7, %v3894_v6  ;;  %v3839_v7 = vor.u32 %v4755_v60, %v3838_v58  ;;  %v4798_v52 = vld [vmem:[#allocation5 + $0x6c] sm:$0xf0] }
  0x65   :  { %v3899_v16 = vor.u32 %v4768_v8, %v3896_v10  ;;  %v3903_v17 = vor.u32 %v4771_v12, %v3902_v11  ;;  %v4813_v8 = vld [vmem:[#allocation5 + $0xec] sm:$0xf]  ;;  %v4072_v11 = vor.u32 %v4814_v0, %v4071_v63  ;;  %v3991_v63 = vld [vmem:[#allocation5 + $0x40] sm:$0xf]  ;;  %v4794_v0 = vld [vmem:[#allocation5 + $0x4c] sm:$0xf0] }
  0x66   :  { %791 = vmatpush.bf16.msra.mxu0 %v3718_v18  ;;  %v3878_v18 = vld [vmem:[#allocation5 + $0x60] sm:$0xf]  ;;  %v4797_v58 = vld [vmem:[#allocation5 + $0x6c] sm:$0xf] }
  0x67   :  { %804 = vmatpush.bf16.msra.mxu1 %v3722_v21  ;;  %v3907_v21 = vor.u32 %v4769_v13, %v3904_v14  ;;  %v3879_v27 = vor.u32 %v4766_v19, %v3878_v18  ;;  %v4055_v14 = vld [vmem:[#allocation5 + $0xc0] sm:$0xf]  ;;  %v4057_v18 = vld [vmem:[#allocation5 + $0xd0] sm:$0xf0]  ;;  %v4063_v19 = vld [vmem:[#allocation5 + $0xc8] sm:$0xf] }
  0x68   :  { %817 = vmatpush.bf16.msra.mxu2 %v3726_v22  ;;  %830 = vmatpush.bf16.msra.mxu3 %v3730_v26  ;;  %v3880_v22 = vld [vmem:[#allocation5 + $0x70] sm:$0xf0]  ;;  %v3888_v26 = vld [vmem:[#allocation5 + $0x78] sm:$0xf0] }
  0x69   :  { %v3883_v28 = vor.u32 %v4764_v20, %v3880_v22  ;;  %v4811_v20 = vld [vmem:[#allocation5 + $0xd4] sm:$0xf0]  ;;  %v4065_v22 = vld [vmem:[#allocation5 + $0xd8] sm:$0xf0] }
  0x6a   :  { %792 = vmatpush.bf16.msra.mxu0 %v3702_v33  ;;  %v3891_v33 = vor.u32 %v4765_v25, %v3888_v26  ;;  %v4064_v26 = vor.u32 %v4811_v20, %v4063_v19  ;;  %v3985_v19 = vld [vmem:[#allocation5 + $0x38] sm:$0xf0] }
  0x6b   :  { %805 = vmatpush.bf16.msra.mxu1 %v3706_v37  ;;  %v4761_v37 = vld [vmem:[#allocation5 + $0x4c] sm:$0xf] }
  0x6c   :  { %818 = vmatpush.bf16.msra.mxu2 %v3710_v38  ;;  %831 = vmatpush.bf16.msra.mxu3 %v3714_v41  ;;  %v3872_v38 = vld [vmem:[#allocation5 + $0x58] sm:$0xf0]  ;;  %v3871_v41 = vor.u32 %v4763_v36, %v3870_v35 }
  0x6d   :  { %793 = vmatmul.bf16.vlgmr.msra.gmra.mxu0 %v3698_v54  ;;  %v3875_v45 = vor.u32 %v4761_v37, %v3872_v38  ;;  %v4049_v35 = vld [vmem:[#allocation5 + $0xb8] sm:$0xf0] }
  0x6e   :  { %1046 = vmatpush.bf16.msrb.mxu0 %v3943_v42  ;;  %806 = vmatmul.bf16.vlgmr.msra.gmra.mxu1 %v3698_v54  ;;  %v3846_v42 = vld [vmem:[#allocation5 + $0x20] sm:$0xf] }
  0x6f   :  { %1059 = vmatpush.bf16.msrb.mxu1 %v3947_v43  ;;  %832 = vmatmul.bf16.vlgmr.msra.gmra.mxu3 %v3698_v54  ;;  %v4758_v43 = vld [vmem:[#allocation5 + $0x2c] sm:$0xf0] }
  0x70   :  { %1072 = vmatpush.bf16.msrb.mxu2 %v3951_v44  ;;  %1085 = vmatpush.bf16.msrb.mxu3 %v3955_v48  ;;  %v4756_v44 = vld [vmem:[#allocation5 + $0x24] sm:$0xf]  ;;  %v4759_v48 = vld [vmem:[#allocation5 + $0x34] sm:$0xf0]  ;;  %v3847_v51 = vor.u32 %v4758_v43, %v3846_v42  ;;  %v4052_v42 = vor.u32 %v4805_v34, %v4049_v35  ;;  %v4025_v43 = vld [vmem:[#allocation5 + $0x90] sm:$0xf0] }
  0x71   :  { %819 = vmatmul.bf16.vlgmr.msra.gmra.mxu2 %v3698_v54  ;;  %v3851_v54 = vor.u32 %v4756_v44, %v3848_v46  ;;  %v4031_v44 = vld [vmem:[#allocation5 + $0x88] sm:$0xf]  ;;  %v4801_v46 = vld [vmem:[#allocation5 + $0x8c] sm:$0xf]  ;;  %v4844_v34 = vld [vmem:[#allocation5 + $0xe4] sm:$0xf] }
  0x72   :  { %1047 = vmatpush.bf16.msrb.mxu0 %v3927_v55  ;;  %v3855_v55 = vor.u32 %v4759_v48, %v3854_v47  ;;  %v4033_v47 = vld [vmem:[#allocation5 + $0x98] sm:$0xf0] }
  0x73   :  { %1060 = vmatpush.bf16.msrb.mxu1 %v3931_v56  ;;  %v4752_v56 = vld [vmem:[#allocation5 + $0x4] sm:$0xf] }
  0x74   :  { %1073 = vmatpush.bf16.msrb.mxu2 %v3935_v57  ;;  %1086 = vmatpush.bf16.msrb.mxu3 %v3939_v61  ;;  %v3832_v57 = vld [vmem:[#allocation5 + $0x10] sm:$0xf0]  ;;  %v4753_v61 = vld [vmem:[#allocation5 + $0xc] sm:$0xf] }
  0x75   :  { %v3835_v6 = vor.u32 %v4752_v56, %v3832_v57  ;;  %v3843_v10 = vor.u32 %v4753_v61, %v3840_v62  ;;  %v4015_v56 = vld [vmem:[#allocation5 + $0x68] sm:$0xf]  ;;  %v4799_v57 = vld [vmem:[#allocation5 + $0x74] sm:$0xf0] }
  0x76   :  { %1048 = vmatpush.bf16.msrb.mxu0 %v3911_v3  ;;  %v4073_v3 = vld [vmem:[#allocation5 + $0xf0] sm:$0xf0]  ;;  %v4016_v62 = vor.u32 %v4799_v57, %v4015_v56  ;;  %v3956_v56 = vld [vmem:[%s5708_s0 + $0x10] sm:$0xf] }
  0x77   :  { %1061 = vmatpush.bf16.msrb.mxu1 %v3915_v4  ;;  %v4079_v4 = vld [vmem:[#allocation5 + $0xe8] sm:$0xf]  ;;  %v4076_v12 = vor.u32 %v4812_v1, %v4073_v3  ;;  %v4792_v1 = vld [vmem:[#allocation5 + $0x44] sm:$0xf]  ;;  %v3993_v3 = vld [vmem:[#allocation5 + $0x50] sm:$0xf0] }
  0x78   :  { %1074 = vmatpush.bf16.msrb.mxu2 %v3919_v5  ;;  %1087 = vmatpush.bf16.msrb.mxu3 %v3923_v9  ;;  %v4815_v5 = vld [vmem:[#allocation5 + $0xf4] sm:$0xf0]  ;;  %v4081_v9 = vld [vmem:[#allocation5 + $0xf8] sm:$0xf0] }
  0x79   :  { %v4080_v13 = vor.u32 %v4815_v5, %v4079_v4  ;;  %v3999_v4 = vld [vmem:[#allocation5 + $0x48] sm:$0xf]  ;;  %v4795_v5 = vld [vmem:[#allocation5 + $0x54] sm:$0xf0] }
  0x7a   :  { %1049 = vmatpush.bf16.msrb.mxu0 %v3895_v15  ;;  %v4810_v15 = vld [vmem:[#allocation5 + $0xcc] sm:$0xf0] }
  0x7b   :  { %1062 = vmatpush.bf16.msrb.mxu1 %v3899_v16  ;;  %v4808_v16 = vld [vmem:[#allocation5 + $0xc4] sm:$0xf]  ;;  %v4056_v24 = vor.u32 %v4810_v15, %v4055_v14  ;;  %v3977_v15 = vld [vmem:[#allocation5 + $0x30] sm:$0xf0] }
  0x7c   :  { %1075 = vmatpush.bf16.msrb.mxu2 %v3903_v17  ;;  %1088 = vmatpush.bf16.msrb.mxu3 %v3907_v21  ;;  %v4084_v17 = vor.u32 %v4813_v8, %v4081_v9  ;;  %v4809_v21 = vld [vmem:[#allocation5 + $0xcc] sm:$0xf]  ;;  %v4060_v25 = vor.u32 %v4808_v16, %v4057_v18  ;;  %v3992_v8 = vor.u32 %v4794_v0, %v3991_v63  ;;  %v3983_v16 = vld [vmem:[#allocation5 + $0x28] sm:$0xf]  ;;  %v4170_v0 = vld [vmem:[#allocation5 + $0xb0] sm:$0xf0] }
  0x7d   :  { %v4068_v30 = vor.u32 %v4809_v21, %v4065_v22  ;;  %v3996_v9 = vor.u32 %v4792_v1, %v3993_v3  ;;  %v4789_v18 = vld [vmem:[#allocation5 + $0x2c] sm:$0xf]  ;;  %v3959_v21 = vld [vmem:[#allocation5] sm:$0xf]  ;;  %v4786_v22 = vld [vmem:[#allocation5 + $0xc] sm:$0xf0] }
  0x7e   :  { %1050 = vmatpush.bf16.msrb.mxu0 %v3879_v27  ;;  %v4039_v27 = vld [vmem:[#allocation5 + $0xa0] sm:$0xf]  ;;  %v3960_v35 = vor.u32 %v4786_v22, %v3959_v21  ;;  %v4176_v1 = vld [vmem:[#allocation5 + $0xa8] sm:$0xf]  ;;  %v4837_v3 = vld [vmem:[#allocation5 + $0xac] sm:$0xf] }
  0x7f   :  { %1063 = vmatpush.bf16.msrb.mxu1 %v3883_v28  ;;  %v4806_v28 = vld [vmem:[#allocation5 + $0xac] sm:$0xf0]  ;;  %v4828_v22 = vld [vmem:[#allocation5 + $0x64] sm:$0xf] }
  0x80   :  { %1076 = vmatpush.bf16.msrb.mxu2 %v3887_v29  ;;  %1089 = vmatpush.bf16.msrb.mxu3 %v3891_v33  ;;  %v4804_v29 = vld [vmem:[#allocation5 + $0xa4] sm:$0xf]  ;;  %v4807_v33 = vld [vmem:[#allocation5 + $0xb4] sm:$0xf0]  ;;  %v4040_v36 = vor.u32 %v4806_v28, %v4039_v27  ;;  %v3967_v27 = vld [vmem:[#allocation5 + $0x8] sm:$0xf]  ;;  %v3988_v28 = vor.u32 %v4789_v18, %v3985_v19 }
  0x81   :  { %v4044_v37 = vor.u32 %v4804_v29, %v4041_v31  ;;  %v4048_v38 = vor.u32 %v4807_v33, %v4047_v32  ;;  %v4787_v29 = vld [vmem:[#allocation5 + $0x14] sm:$0xf0]  ;;  %v3969_v31 = vld [vmem:[#allocation5 + $0x18] sm:$0xf0]  ;;  %v4200_v32 = vld [vmem:[#allocation5 + $0xe0] sm:$0xf] }
  0x82   :  { %1051 = vmatpush.bf16.msrb.mxu0 %v3863_v39  ;;  %v4023_v39 = vld [vmem:[#allocation5 + $0x80] sm:$0xf]  ;;  %v4846_v33 = vld [vmem:[#allocation5 + $0xec] sm:$0xf0] }
  0x83   :  { %1064 = vmatpush.bf16.msrb.mxu1 %v3867_v40  ;;  %v4802_v40 = vld [vmem:[#allocation5 + $0x8c] sm:$0xf0] }
  0x84   :  { %1077 = vmatpush.bf16.msrb.mxu2 %v3871_v41  ;;  %1090 = vmatpush.bf16.msrb.mxu3 %v3875_v45  ;;  %v4800_v41 = vld [vmem:[#allocation5 + $0x84] sm:$0xf]  ;;  %v4803_v45 = vld [vmem:[#allocation5 + $0x94] sm:$0xf0]  ;;  %v4024_v48 = vor.u32 %v4802_v40, %v4023_v39  ;;  %v3968_v40 = vor.u32 %v4787_v29, %v3967_v27  ;;  %v4830_v21 = vld [vmem:[#allocation5 + $0x6c] sm:$0xf0] }
  0x85   :  { %v4028_v49 = vor.u32 %v4800_v41, %v4025_v43  ;;  %v4032_v50 = vor.u32 %v4803_v45, %v4031_v44  ;;  %v4845_v41 = vld [vmem:[#allocation5 + $0xec] sm:$0xf]  ;;  %v4201_v44 = vor.u32 %v4846_v33, %v4200_v32 }
  0x86   :  { %1052 = vmatpush.bf16.msrb.mxu0 %v3847_v51  ;;  %v4007_v51 = vld [vmem:[#allocation5 + $0x60] sm:$0xf]  ;;  %v4829_v27 = vld [vmem:[#allocation5 + $0x6c] sm:$0xf] }
  0x87   :  { %1065 = vmatpush.bf16.msrb.mxu1 %v3851_v54  ;;  %v4036_v54 = vor.u32 %v4801_v46, %v4033_v47  ;;  %v4008_v60 = vor.u32 %v4798_v52, %v4007_v51  ;;  %v4184_v47 = vld [vmem:[#allocation5 + $0xc0] sm:$0xf]  ;;  %v4186_v51 = vld [vmem:[#allocation5 + $0xd0] sm:$0xf0]  ;;  %v4192_v52 = vld [vmem:[#allocation5 + $0xc8] sm:$0xf] }
  0x88   :  { %1078 = vmatpush.bf16.msrb.mxu2 %v3855_v55  ;;  %1091 = vmatpush.bf16.msrb.mxu3 %v3859_v59  ;;  %v4009_v55 = vld [vmem:[#allocation5 + $0x70] sm:$0xf0]  ;;  %v4017_v59 = vld [vmem:[#allocation5 + $0x78] sm:$0xf0] }
  0x89   :  { %v4012_v61 = vor.u32 %v4796_v53, %v4009_v55  ;;  %v4843_v53 = vld [vmem:[#allocation5 + $0xd4] sm:$0xf0]  ;;  %v4194_v55 = vld [vmem:[#allocation5 + $0xd8] sm:$0xf0] }
  0x8a   :  { %1053 = vmatpush.bf16.msrb.mxu0 %v3831_v2  ;;  %v4020_v2 = vor.u32 %v4797_v58, %v4017_v59  ;;  %v4193_v59 = vor.u32 %v4843_v53, %v4192_v52  ;;  %v4823_v52 = vld [vmem:[#allocation5 + $0x34] sm:$0xf0] }
  0x8b   :  { %1066 = vmatpush.bf16.msrb.mxu1 %v3835_v6  ;;  %v4793_v6 = vld [vmem:[#allocation5 + $0x4c] sm:$0xf] }
  0x8c   :  { %1079 = vmatpush.bf16.msrb.mxu2 %v3839_v7  ;;  %1092 = vmatpush.bf16.msrb.mxu3 %v3843_v10  ;;  %v4001_v7 = vld [vmem:[#allocation5 + $0x58] sm:$0xf0]  ;;  %v4000_v10 = vor.u32 %v4795_v5, %v3999_v4 }
  0x8d   :  { %1054 = vmatmul.bf16.vlgmr.msrb.gmra.mxu0 %v3827_v23  ;;  %v4004_v14 = vor.u32 %v4793_v6, %v4001_v7  ;;  %v4178_v4 = vld [vmem:[#allocation5 + $0xb8] sm:$0xf0] }
  0x8e   :  { %1307 = vmatpush.bf16.msra.mxu0 %v4072_v11  ;;  %1067 = vmatmul.bf16.vlgmr.msrb.gmra.mxu1 %v3827_v23  ;;  %v3975_v11 = vld [vmem:[#allocation5 + $0x20] sm:$0xf] }
  0x8f   :  { %1320 = vmatpush.bf16.msra.mxu1 %v4076_v12  ;;  %1093 = vmatmul.bf16.vlgmr.msrb.gmra.mxu3 %v3827_v23  ;;  %v4790_v12 = vld [vmem:[#allocation5 + $0x2c] sm:$0xf0] }
  0x90   :  { %1333 = vmatpush.bf16.msra.mxu2 %v4080_v13  ;;  %1346 = vmatpush.bf16.msra.mxu3 %v4084_v17  ;;  %v4788_v13 = vld [vmem:[#allocation5 + $0x24] sm:$0xf]  ;;  %v4791_v17 = vld [vmem:[#allocation5 + $0x34] sm:$0xf0]  ;;  %v3976_v20 = vor.u32 %v4790_v12, %v3975_v11  ;;  %v4181_v11 = vor.u32 %v4837_v3, %v4178_v4  ;;  %v4154_v12 = vld [vmem:[#allocation5 + $0x90] sm:$0xf0] }
  0x91   :  { %1080 = vmatmul.bf16.vlgmr.msrb.gmra.mxu2 %v3827_v23  ;;  %v3980_v23 = vor.u32 %v4788_v13, %v3977_v15  ;;  %v4160_v13 = vld [vmem:[#allocation5 + $0x88] sm:$0xf]  ;;  %v4833_v15 = vld [vmem:[#allocation5 + $0x8c] sm:$0xf]  ;;  %v4819_v4 = vld [vmem:[#allocation5 + $0x14] sm:$0xf0] }
  0x92   :  { %1308 = vmatpush.bf16.msra.mxu0 %v4056_v24  ;;  %v3984_v24 = vor.u32 %v4791_v17, %v3983_v16  ;;  %v4162_v16 = vld [vmem:[#allocation5 + $0x98] sm:$0xf0] }
  0x93   :  { %1321 = vmatpush.bf16.msra.mxu1 %v4060_v25  ;;  %v4784_v25 = vld [vmem:[#allocation5 + $0x4] sm:$0xf] }
  0x94   :  { %1334 = vmatpush.bf16.msra.mxu2 %v4064_v26  ;;  %1347 = vmatpush.bf16.msra.mxu3 %v4068_v30  ;;  %v3961_v26 = vld [vmem:[#allocation5 + $0x10] sm:$0xf0]  ;;  %v4785_v30 = vld [vmem:[#allocation5 + $0xc] sm:$0xf] }
  0x95   :  { %v3964_v39 = vor.u32 %v4784_v25, %v3961_v26  ;;  %v3972_v43 = vor.u32 %v4785_v30, %v3969_v31  ;;  %v4144_v25 = vld [vmem:[#allocation5 + $0x68] sm:$0xf]  ;;  %v4831_v26 = vld [vmem:[#allocation5 + $0x74] sm:$0xf0] }
  0x96   :  { %1309 = vmatpush.bf16.msra.mxu0 %v4040_v36  ;;  %v4202_v36 = vld [vmem:[#allocation5 + $0xf0] sm:$0xf0]  ;;  %v4145_v33 = vor.u32 %v4831_v26, %v4144_v25  ;;  %v4872_v25 = vld [vmem:[#allocation5 + $0xc4] sm:$0xf] }
  0x97   :  { %1322 = vmatpush.bf16.msra.mxu1 %v4044_v37  ;;  %v4208_v37 = vld [vmem:[#allocation5 + $0xe8] sm:$0xf]  ;;  %v4205_v45 = vor.u32 %v4844_v34, %v4202_v36  ;;  %v4120_v34 = vld [vmem:[#allocation5 + $0x40] sm:$0xf]  ;;  %v4824_v36 = vld [vmem:[#allocation5 + $0x44] sm:$0xf] }
  0x98   :  { %1335 = vmatpush.bf16.msra.mxu2 %v4048_v38  ;;  %1348 = vmatpush.bf16.msra.mxu3 %v4052_v42  ;;  %v4847_v38 = vld [vmem:[#allocation5 + $0xf4] sm:$0xf0]  ;;  %v4210_v42 = vld [vmem:[#allocation5 + $0xf8] sm:$0xf0] }
  0x99   :  { %v4209_v46 = vor.u32 %v4847_v38, %v4208_v37  ;;  %v4122_v38 = vld [vmem:[#allocation5 + $0x50] sm:$0xf0] }
  0x9a   :  { %1310 = vmatpush.bf16.msra.mxu0 %v4024_v48  ;;  %v4842_v48 = vld [vmem:[#allocation5 + $0xcc] sm:$0xf0] }
  0x9b   :  { %1323 = vmatpush.bf16.msra.mxu1 %v4028_v49  ;;  %v4840_v49 = vld [vmem:[#allocation5 + $0xc4] sm:$0xf]  ;;  %v4185_v57 = vor.u32 %v4842_v48, %v4184_v47  ;;  %v4822_v47 = vld [vmem:[#allocation5 + $0x2c] sm:$0xf0] }
  0x9c   :  { %1336 = vmatpush.bf16.msra.mxu2 %v4032_v50  ;;  %1349 = vmatpush.bf16.msra.mxu3 %v4036_v54  ;;  %v4213_v50 = vor.u32 %v4845_v41, %v4210_v42  ;;  %v4841_v54 = vld [vmem:[#allocation5 + $0xcc] sm:$0xf]  ;;  %v4189_v58 = vor.u32 %v4840_v49, %v4186_v51  ;;  %v4130_v42 = vld [vmem:[#allocation5 + $0x58] sm:$0xf0]  ;;  %v4820_v48 = vld [vmem:[#allocation5 + $0x24] sm:$0xf] }
  0x9d   :  { %v4197_v63 = vor.u32 %v4841_v54, %v4194_v55  ;;  %v4825_v41 = vld [vmem:[#allocation5 + $0x4c] sm:$0xf]  ;;  %v4112_v51 = vld [vmem:[#allocation5 + $0x28] sm:$0xf]  ;;  %v4114_v55 = vld [vmem:[#allocation5 + $0x38] sm:$0xf0] }
  0x9e   :  { %1311 = vmatpush.bf16.msra.mxu0 %v4008_v60  ;;  %v4168_v60 = vld [vmem:[#allocation5 + $0xa0] sm:$0xf]  ;;  %v4133_v49 = vor.u32 %v4825_v41, %v4130_v42  ;;  %v4821_v54 = vld [vmem:[#allocation5 + $0x2c] sm:$0xf]  ;;  %v4868_v41 = vld [vmem:[#allocation5 + $0xa4] sm:$0xf] }
  0x9f   :  { %1324 = vmatpush.bf16.msra.mxu1 %v4012_v61  ;;  %v4838_v61 = vld [vmem:[#allocation5 + $0xac] sm:$0xf0]  ;;  %v4117_v3 = vor.u32 %v4821_v54, %v4114_v55  ;;  %v4864_v54 = vld [vmem:[#allocation5 + $0x84] sm:$0xf] }
  0xa0   :  { %1337 = vmatpush.bf16.msra.mxu2 %v4016_v62  ;;  %1350 = vmatpush.bf16.msra.mxu3 %v4020_v2  ;;  %v4836_v62 = vld [vmem:[#allocation5 + $0xa4] sm:$0xf]  ;;  %v4839_v2 = vld [vmem:[#allocation5 + $0xb4] sm:$0xf0]  ;;  %v4169_v5 = vor.u32 %v4838_v61, %v4168_v60 }
  0xa1   :  { %v4173_v6 = vor.u32 %v4836_v62, %v4170_v0  ;;  %v4177_v7 = vor.u32 %v4839_v2, %v4176_v1  ;;  %v4816_v0 = vld [vmem:[#allocation5 + $0x4] sm:$0xf]  ;;  %v4090_v1 = vld [vmem:[#allocation5 + $0x10] sm:$0xf0]  ;;  %v4096_v2 = vld [vmem:[#allocation5 + $0x8] sm:$0xf] }
  0xa2   :  { %1312 = vmatpush.bf16.msra.mxu0 %v3992_v8  ;;  %v4152_v8 = vld [vmem:[#allocation5 + $0x80] sm:$0xf] }
  0xa3   :  { %1325 = vmatpush.bf16.msra.mxu1 %v3996_v9  ;;  %v4834_v9 = vld [vmem:[#allocation5 + $0x8c] sm:$0xf0] }
  0xa4   :  { %1338 = vmatpush.bf16.msra.mxu2 %v4000_v10  ;;  %1351 = vmatpush.bf16.msra.mxu3 %v4004_v14  ;;  %v4832_v10 = vld [vmem:[#allocation5 + $0x84] sm:$0xf]  ;;  %v4835_v14 = vld [vmem:[#allocation5 + $0x94] sm:$0xf0]  ;;  %v4153_v17 = vor.u32 %v4834_v9, %v4152_v8  ;;  %v4878_v8 = vld [vmem:[#allocation5 + $0xec] sm:$0xf0] }
  0xa5   :  { %v4157_v18 = vor.u32 %v4832_v10, %v4154_v12  ;;  %v4161_v19 = vor.u32 %v4835_v14, %v4160_v13  ;;  %v4876_v9 = vld [vmem:[#allocation5 + $0xe4] sm:$0xf]  ;;  %v4337_v12 = vld [vmem:[#allocation5 + $0xe8] sm:$0xf]  ;;  %v4879_v13 = vld [vmem:[#allocation5 + $0xf4] sm:$0xf0]  ;;  %v4093_v14 = vor.u32 %v4816_v0, %v4090_v1 }
  0xa6   :  { %1313 = vmatpush.bf16.msra.mxu0 %v3976_v20  ;;  %v4136_v20 = vld [vmem:[#allocation5 + $0x60] sm:$0xf] }
  0xa7   :  { %1326 = vmatpush.bf16.msra.mxu1 %v3980_v23  ;;  %v4165_v23 = vor.u32 %v4833_v15, %v4162_v16  ;;  %v4137_v30 = vor.u32 %v4830_v21, %v4136_v20  ;;  %v4097_v15 = vor.u32 %v4819_v4, %v4096_v2  ;;  %v4877_v16 = vld [vmem:[#allocation5 + $0xec] sm:$0xf]  ;;  %v4862_v4 = vld [vmem:[#allocation5 + $0x6c] sm:$0xf0] }
  0xa8   :  { %1339 = vmatpush.bf16.msra.mxu2 %v3984_v24  ;;  %1352 = vmatpush.bf16.msra.mxu3 %v3988_v28  ;;  %v4138_v24 = vld [vmem:[#allocation5 + $0x70] sm:$0xf0]  ;;  %v4146_v28 = vld [vmem:[#allocation5 + $0x78] sm:$0xf0] }
  0xa9   :  { %v4141_v32 = vor.u32 %v4828_v22, %v4138_v24  ;;  %v4149_v37 = vor.u32 %v4829_v27, %v4146_v28  ;;  %v4338_v22 = vor.u32 %v4879_v13, %v4337_v12  ;;  %v4874_v24 = vld [vmem:[#allocation5 + $0xcc] sm:$0xf0]  ;;  %v4315_v27 = vld [vmem:[#allocation5 + $0xd0] sm:$0xf0]  ;;  %v4321_v28 = vld [vmem:[#allocation5 + $0xc8] sm:$0xf] }
  0xaa   :  { %1314 = vmatpush.bf16.msra.mxu0 %v3960_v35  ;;  %v5201_v29 = vpop.f32.mrf.mxu0  ;;  %v4826_v35 = vld [vmem:[#allocation5 + $0x4c] sm:$0xf0] }
  0xab   :  { %1327 = vmatpush.bf16.msra.mxu1 %v3964_v39  ;;  %v5203_v31 = vpop.f32.mrf.mxu1  ;;  %v4128_v39 = vld [vmem:[#allocation5 + $0x48] sm:$0xf] }
  0xac   :  { %1340 = vmatpush.bf16.msra.mxu2 %v3968_v40  ;;  %1353 = vmatpush.bf16.msra.mxu3 %v3972_v43  ;;  %v4827_v40 = vld [vmem:[#allocation5 + $0x54] sm:$0xf0]  ;;  %v4121_v43 = vor.u32 %v4826_v35, %v4120_v34  ;;  %v4323_v34 = vld [vmem:[#allocation5 + $0xd8] sm:$0xf0]  ;;  %v4085_v35 = vld [vmem:[%s5708_s0 + $0x14] sm:$0xf] }
  0xad   :  { %1315 = vmatmul.bf16.vlgmr.msra.gmra.mxu0 %v3956_v56 }
  0xae   :  { %1568 = vmatpush.bf16.msrb.mxu0 %v4201_v44  ;;  %1328 = vmatmul.bf16.vlgmr.msra.gmra.mxu1 %v3956_v56  ;;  %v4125_v44 = vor.u32 %v4824_v36, %v4122_v38 }
  0xaf   :  { %1581 = vmatpush.bf16.msrb.mxu1 %v4205_v45  ;;  %1354 = vmatmul.bf16.vlgmr.msra.gmra.mxu3 %v3956_v56  ;;  %v4129_v45 = vor.u32 %v4827_v40, %v4128_v39  ;;  %v4297_v39 = vld [vmem:[#allocation5 + $0xa0] sm:$0xf]  ;;  %v4870_v40 = vld [vmem:[#allocation5 + $0xac] sm:$0xf0] }
  0xb0   :  { %1594 = vmatpush.bf16.msrb.mxu2 %v4209_v46  ;;  %1607 = vmatpush.bf16.msrb.mxu3 %v4213_v50  ;;  %v4104_v46 = vld [vmem:[#allocation5 + $0x20] sm:$0xf]  ;;  %v4106_v50 = vld [vmem:[#allocation5 + $0x30] sm:$0xf0] }
  0xb1   :  { %1341 = vmatmul.bf16.vlgmr.msra.gmra.mxu2 %v3956_v56  ;;  %v4109_v62 = vor.u32 %v4820_v48, %v4106_v50  ;;  %v4298_v48 = vor.u32 %v4870_v40, %v4297_v39  ;;  %v4853_v39 = vld [vmem:[#allocation5 + $0x2c] sm:$0xf]  ;;  %v4243_v40 = vld [vmem:[#allocation5 + $0x38] sm:$0xf0] }
  0xb2   :  { %1569 = vmatpush.bf16.msrb.mxu0 %v4185_v57  ;;  %v5205_v53 = vpop.f32.mrf.mxu3  ;;  %v275_v56 = vpop.f32.mrf.mxu0  ;;  %v4105_v57 = vor.u32 %v4822_v47, %v4104_v46  ;;  %v4869_v46 = vld [vmem:[#allocation5 + $0xac] sm:$0xf]  ;;  %v4307_v47 = vld [vmem:[#allocation5 + $0xb8] sm:$0xf0] }
  0xb3   :  { %1582 = vmatpush.bf16.msrb.mxu1 %v4189_v58  ;;  %v4088_v58 = vld [vmem:[#allocation5] sm:$0xf]  ;;  %v288_v60 = vpop.f32.mrf.mxu1  ;;  %v4310_v55 = vor.u32 %v4869_v46, %v4307_v47  ;;  %v4283_v56 = vld [vmem:[#allocation5 + $0x90] sm:$0xf0]  ;;  %v4848_v47 = vld [vmem:[#allocation5 + $0x4] sm:$0xf] }
  0xb4   :  { %1595 = vmatpush.bf16.msrb.mxu2 %v4193_v59  ;;  %1608 = vmatpush.bf16.msrb.mxu3 %v4197_v63  ;;  %v4818_v59 = vld [vmem:[#allocation5 + $0xc] sm:$0xf0]  ;;  %v5207_v61 = vpop.f32.mrf.mxu2  ;;  %v4113_v63 = vor.u32 %v4823_v52, %v4112_v51  ;;  %v4281_v51 = vld [vmem:[#allocation5 + $0x80] sm:$0xf]  ;;  %v4291_v60 = vld [vmem:[#allocation5 + $0x98] sm:$0xf0]  ;;  %v4286_v1 = vor.u32 %v4864_v54, %v4283_v56 }
  0xb5   :  { %v4089_v10 = vor.u32 %v4818_v59, %v4088_v58  ;;  %v4866_v52 = vld [vmem:[#allocation5 + $0x8c] sm:$0xf0]  ;;  %v4867_v58 = vld [vmem:[#allocation5 + $0x94] sm:$0xf0]  ;;  %v4865_v59 = vld [vmem:[#allocation5 + $0x8c] sm:$0xf] }
  0xb6   :  { %1570 = vmatpush.bf16.msrb.mxu0 %v4169_v5  ;;  %v4817_v5 = vld [vmem:[#allocation5 + $0xc] sm:$0xf]  ;;  %v4227_v54 = vld [vmem:[#allocation5 + $0x18] sm:$0xf0]  ;;  %v4458_v56 = vld [vmem:[#allocation5 + $0xe0] sm:$0xf] }
  0xb7   :  { %1583 = vmatpush.bf16.msrb.mxu1 %v4173_v6  ;;  %v4098_v6 = vld [vmem:[#allocation5 + $0x18] sm:$0xf0] }
  0xb8   :  { %1596 = vmatpush.bf16.msrb.mxu2 %v4177_v7  ;;  %1609 = vmatpush.bf16.msrb.mxu3 %v4181_v11  ;;  %v4329_v7 = vld [vmem:[#allocation5 + $0xe0] sm:$0xf]  ;;  %v4331_v11 = vld [vmem:[#allocation5 + $0xf0] sm:$0xf0] }
  0xb9   :  { %v4334_v21 = vor.u32 %v4876_v9, %v4331_v11  ;;  %v4863_v9 = vld [vmem:[#allocation5 + $0x74] sm:$0xf0]  ;;  %v4275_v11 = vld [vmem:[#allocation5 + $0x78] sm:$0xf0] }
  0xba   :  { %1571 = vmatpush.bf16.msrb.mxu0 %v4153_v17  ;;  %v4339_v17 = vld [vmem:[#allocation5 + $0xf8] sm:$0xf0]  ;;  %v314_v20 = vpop.f32.mrf.mxu3 }
  0xbb   :  { %1584 = vmatpush.bf16.msrb.mxu1 %v4157_v18  ;;  %v4101_v18 = vor.u32 %v4817_v5, %v4098_v6  ;;  %v4342_v26 = vor.u32 %v4877_v16, %v4339_v17  ;;  %v4860_v5 = vld [vmem:[#allocation5 + $0x64] sm:$0xf]  ;;  %v4294_v6 = vor.u32 %v4865_v59, %v4291_v60  ;;  %v4858_v16 = vld [vmem:[#allocation5 + $0x4c] sm:$0xf0]  ;;  %v4257_v20 = vld [vmem:[#allocation5 + $0x48] sm:$0xf] }
  0xbc   :  { %1597 = vmatpush.bf16.msrb.mxu2 %v4161_v19  ;;  %1610 = vmatpush.bf16.msrb.mxu3 %v4165_v23  ;;  %v4330_v19 = vor.u32 %v4878_v8, %v4329_v7  ;;  %v4313_v23 = vld [vmem:[#allocation5 + $0xc0] sm:$0xf]  ;;  %v4267_v7 = vld [vmem:[#allocation5 + $0x70] sm:$0xf0]  ;;  %v4273_v8 = vld [vmem:[#allocation5 + $0x68] sm:$0xf] }
  0xbd   :  { %v4314_v36 = vor.u32 %v4874_v24, %v4313_v23  ;;  %v4270_v13 = vor.u32 %v4860_v5, %v4267_v7  ;;  %v4856_v17 = vld [vmem:[#allocation5 + $0x44] sm:$0xf]  ;;  %v4857_v23 = vld [vmem:[#allocation5 + $0x4c] sm:$0xf]  ;;  %v4259_v24 = vld [vmem:[#allocation5 + $0x58] sm:$0xf0] }
  0xbe   :  { %1572 = vmatpush.bf16.msrb.mxu0 %v4137_v30  ;;  %v4875_v30 = vld [vmem:[#allocation5 + $0xd4] sm:$0xf0]  ;;  %v4460_v60 = vld [vmem:[#allocation5 + $0xf0] sm:$0xf0]  ;;  %v4468_v5 = vld [vmem:[#allocation5 + $0xf8] sm:$0xf0] }
  0xbf   :  { %1585 = vmatpush.bf16.msrb.mxu1 %v4141_v32  ;;  %v301_v32 = vpop.f32.mrf.mxu2  ;;  %v4322_v38 = vor.u32 %v4875_v30, %v4321_v28 }
  0xc0   :  { %1598 = vmatpush.bf16.msrb.mxu2 %v4145_v33  ;;  %1611 = vmatpush.bf16.msrb.mxu3 %v4149_v37  ;;  %v4873_v33 = vld [vmem:[#allocation5 + $0xcc] sm:$0xf]  ;;  %v4318_v37 = vor.u32 %v4872_v25, %v4315_v27  ;;  %v4233_v32 = vld [vmem:[#allocation5 + $0x20] sm:$0xf] }
  0xc1   :  { %v4326_v42 = vor.u32 %v4873_v33, %v4323_v34  ;;  %v4854_v33 = vld [vmem:[#allocation5 + $0x2c] sm:$0xf0]  ;;  %v4852_v34 = vld [vmem:[#allocation5 + $0x24] sm:$0xf] }
  0xc2   :  { %1573 = vmatpush.bf16.msrb.mxu0 %v4121_v43  ;;  %v4299_v43 = vld [vmem:[#allocation5 + $0xb0] sm:$0xf0] }
  0xc3   :  { %1586 = vmatpush.bf16.msrb.mxu1 %v4125_v44  ;;  %v4305_v44 = vld [vmem:[#allocation5 + $0xa8] sm:$0xf] }
  0xc4   :  { %1599 = vmatpush.bf16.msrb.mxu2 %v4129_v45  ;;  %1612 = vmatpush.bf16.msrb.mxu3 %v4133_v49  ;;  %v4871_v45 = vld [vmem:[#allocation5 + $0xb4] sm:$0xf0]  ;;  %v4302_v49 = vor.u32 %v4868_v41, %v4299_v43  ;;  %v4234_v41 = vor.u32 %v4854_v33, %v4233_v32  ;;  %v4850_v43 = vld [vmem:[#allocation5 + $0xc] sm:$0xf0]  ;;  %v4434_v32 = vld [vmem:[#allocation5 + $0xa8] sm:$0xf] }
  0xc5   :  { %v4306_v50 = vor.u32 %v4871_v45, %v4305_v44  ;;  %v4903_v33 = vld [vmem:[#allocation5 + $0xb4] sm:$0xf0] }
  0xc6   :  { %1574 = vmatpush.bf16.msrb.mxu0 %v4105_v57  ;;  %v4289_v57 = vld [vmem:[#allocation5 + $0x88] sm:$0xf] }
  0xc7   :  { %1587 = vmatpush.bf16.msrb.mxu1 %v4109_v62  ;;  %v4290_v2 = vor.u32 %v4867_v58, %v4289_v57  ;;  %v4910_v57 = vld [vmem:[#allocation5 + $0xec] sm:$0xf0]  ;;  %v4908_v58 = vld [vmem:[#allocation5 + $0xe4] sm:$0xf] }
  0xc8   :  { %1600 = vmatpush.bf16.msrb.mxu2 %v4113_v63  ;;  %1613 = vmatpush.bf16.msrb.mxu3 %v4117_v3  ;;  %v4282_v63 = vor.u32 %v4866_v52, %v4281_v51  ;;  %v4265_v3 = vld [vmem:[#allocation5 + $0x60] sm:$0xf]  ;;  %v4851_v51 = vld [vmem:[#allocation5 + $0x14] sm:$0xf0]  ;;  %v4849_v52 = vld [vmem:[#allocation5 + $0xc] sm:$0xf]  ;;  %v4459_v7 = vor.u32 %v4910_v57, %v4458_v56 }
  0xc9   :  { %v4266_v12 = vor.u32 %v4862_v4, %v4265_v3  ;;  %v4909_v4 = vld [vmem:[#allocation5 + $0xec] sm:$0xf]  ;;  %v4894_v56 = vld [vmem:[#allocation5 + $0x6c] sm:$0xf0]  ;;  %v4892_v57 = vld [vmem:[#allocation5 + $0x64] sm:$0xf] }
  0xca   :  { %1575 = vmatpush.bf16.msrb.mxu0 %v4089_v10  ;;  %v5212_v62 = vpop.f32.mrf.mxu0  ;;  %v4861_v10 = vld [vmem:[#allocation5 + $0x6c] sm:$0xf] }
  0xcb   :  { %1588 = vmatpush.bf16.msrb.mxu1 %v4093_v14  ;;  %v5214_v0 = vpop.f32.mrf.mxu1  ;;  %v4274_v14 = vor.u32 %v4863_v9, %v4273_v8  ;;  %v4463_v8 = vor.u32 %v4908_v58, %v4460_v60  ;;  %v4402_v60 = vld [vmem:[#allocation5 + $0x68] sm:$0xf] }
  0xcc   :  { %1601 = vmatpush.bf16.msrb.mxu2 %v4097_v15  ;;  %1614 = vmatpush.bf16.msrb.mxu3 %v4101_v18  ;;  %v4249_v15 = vld [vmem:[#allocation5 + $0x40] sm:$0xf]  ;;  %v4278_v18 = vor.u32 %v4861_v10, %v4275_v11  ;;  %v4906_v11 = vld [vmem:[#allocation5 + $0xcc] sm:$0xf0] }
  0xcd   :  { %1576 = vmatmul.bf16.vlgmr.msrb.gmra.mxu0 %v4085_v35  ;;  %v4442_v10 = vld [vmem:[#allocation5 + $0xc0] sm:$0xf] }
  0xce   :  { %1829 = vmatpush.bf16.msra.mxu0 %v4330_v19  ;;  %1589 = vmatmul.bf16.vlgmr.msrb.gmra.mxu1 %v4085_v35  ;;  %v4251_v19 = vld [vmem:[#allocation5 + $0x50] sm:$0xf0] }
  0xcf   :  { %1842 = vmatpush.bf16.msra.mxu1 %v4334_v21  ;;  %1615 = vmatmul.bf16.vlgmr.msrb.gmra.mxu3 %v4085_v35  ;;  %v4859_v21 = vld [vmem:[#allocation5 + $0x54] sm:$0xf0]  ;;  %v4254_v28 = vor.u32 %v4856_v17, %v4251_v19  ;;  %v4452_v19 = vld [vmem:[#allocation5 + $0xd8] sm:$0xf0] }
  0xd0   :  { %1855 = vmatpush.bf16.msra.mxu2 %v4338_v22  ;;  %1868 = vmatpush.bf16.msra.mxu3 %v4342_v26  ;;  %v4250_v26 = vor.u32 %v4858_v16, %v4249_v15  ;;  %v4258_v30 = vor.u32 %v4859_v21, %v4257_v20  ;;  %v4450_v15 = vld [vmem:[#allocation5 + $0xc8] sm:$0xf]  ;;  %v4907_v16 = vld [vmem:[#allocation5 + $0xd4] sm:$0xf0]  ;;  %v4443_v21 = vor.u32 %v4906_v11, %v4442_v10  ;;  %v4380_v10 = vld [vmem:[#allocation5 + $0x50] sm:$0xf0] }
  0xd1   :  { %1602 = vmatmul.bf16.vlgmr.msrb.gmra.mxu2 %v4085_v35  ;;  %v4262_v35 = vor.u32 %v4857_v23, %v4259_v24  ;;  %v4214_v20 = vld [vmem:[%s5708_s0 + $0x18] sm:$0xf]  ;;  %v4451_v24 = vor.u32 %v4907_v16, %v4450_v15  ;;  %v4386_v11 = vld [vmem:[#allocation5 + $0x48] sm:$0xf]  ;;  %v4388_v15 = vld [vmem:[#allocation5 + $0x58] sm:$0xf0] }
  0xd2   :  { %1830 = vmatpush.bf16.msra.mxu0 %v4314_v36  ;;  %v5216_v22 = vpop.f32.mrf.mxu3  ;;  %v535_v25 = vpop.f32.mrf.mxu0  ;;  %v4235_v36 = vld [vmem:[#allocation5 + $0x30] sm:$0xf0] }
  0xd3   :  { %1843 = vmatpush.bf16.msra.mxu1 %v4318_v37  ;;  %v548_v27 = vpop.f32.mrf.mxu1  ;;  %v4241_v37 = vld [vmem:[#allocation5 + $0x28] sm:$0xf]  ;;  %v4238_v45 = vor.u32 %v4852_v34, %v4235_v36  ;;  %v4426_v25 = vld [vmem:[#allocation5 + $0xa0] sm:$0xf]  ;;  %v4901_v34 = vld [vmem:[#allocation5 + $0xac] sm:$0xf] }
  0xd4   :  { %1856 = vmatpush.bf16.msra.mxu2 %v4322_v38  ;;  %1869 = vmatpush.bf16.msra.mxu3 %v4326_v42  ;;  %v4855_v38 = vld [vmem:[#allocation5 + $0x34] sm:$0xf0]  ;;  %v4217_v42 = vld [vmem:[#allocation5] sm:$0xf]  ;;  %v5218_v44 = vpop.f32.mrf.mxu2  ;;  %v4900_v27 = vld [vmem:[#allocation5 + $0xa4] sm:$0xf] }
  0xd5   :  { %v4242_v46 = vor.u32 %v4855_v38, %v4241_v37  ;;  %v4218_v59 = vor.u32 %v4850_v43, %v4217_v42  ;;  %v4435_v38 = vor.u32 %v4903_v33, %v4434_v32  ;;  %v4412_v43 = vld [vmem:[#allocation5 + $0x90] sm:$0xf0]  ;;  %v4372_v32 = vld [vmem:[#allocation5 + $0x38] sm:$0xf0] }
  0xd6   :  { %1831 = vmatpush.bf16.msra.mxu0 %v4298_v48  ;;  %v4219_v48 = vld [vmem:[#allocation5 + $0x10] sm:$0xf0] }
  0xd7   :  { %1844 = vmatpush.bf16.msra.mxu1 %v4302_v49  ;;  %v4225_v49 = vld [vmem:[#allocation5 + $0x8] sm:$0xf] }
  0xd8   :  { %1857 = vmatpush.bf16.msra.mxu2 %v4306_v50  ;;  %1870 = vmatpush.bf16.msra.mxu3 %v4310_v55  ;;  %v4246_v50 = vor.u32 %v4853_v39, %v4243_v40  ;;  %v4226_v3 = vor.u32 %v4851_v51, %v4225_v49  ;;  %v4410_v39 = vld [vmem:[#allocation5 + $0x80] sm:$0xf]  ;;  %v4898_v40 = vld [vmem:[#allocation5 + $0x8c] sm:$0xf0] }
  0xda   :  { %1832 = vmatpush.bf16.msra.mxu0 %v4282_v63  ;;  %v574_v55 = vpop.f32.mrf.mxu3  ;;  %v4466_v63 = vld [vmem:[#allocation5 + $0xe8] sm:$0xf] }
  0xdb   :  { %1845 = vmatpush.bf16.msra.mxu1 %v4286_v1  ;;  %v4911_v1 = vld [vmem:[#allocation5 + $0xf4] sm:$0xf0]  ;;  %v4394_v55 = vld [vmem:[#allocation5 + $0x60] sm:$0xf] }
  0xdc   :  { %1858 = vmatpush.bf16.msra.mxu2 %v4290_v2  ;;  %1871 = vmatpush.bf16.msra.mxu3 %v4294_v6  ;;  %v4222_v2 = vor.u32 %v4848_v47, %v4219_v48  ;;  %v4230_v6 = vor.u32 %v4849_v52, %v4227_v54  ;;  %v4467_v9 = vor.u32 %v4911_v1, %v4466_v63  ;;  %v561_v17 = vpop.f32.mrf.mxu2  ;;  %v4897_v47 = vld [vmem:[#allocation5 + $0x8c] sm:$0xf]  ;;  %v4420_v48 = vld [vmem:[#allocation5 + $0x98] sm:$0xf0]  ;;  %v4895_v63 = vld [vmem:[#allocation5 + $0x74] sm:$0xf0] }
  0xdd   :  { %v4423_v58 = vor.u32 %v4897_v47, %v4420_v48  ;;  %v4893_v1 = vld [vmem:[#allocation5 + $0x6c] sm:$0xf]  ;;  %v4586_v48 = vld [vmem:[#allocation7 + $0xe0] sm:$0xf] }
  0xde   :  { %1833 = vmatpush.bf16.msra.mxu0 %v4266_v12  ;;  %v4904_v12 = vld [vmem:[#allocation5 + $0xc4] sm:$0xf] }
  0xdf   :  { %1846 = vmatpush.bf16.msra.mxu1 %v4270_v13  ;;  %v4471_v13 = vor.u32 %v4909_v4, %v4468_v5  ;;  %v4403_v5 = vor.u32 %v4895_v63, %v4402_v60  ;;  %v4941_v60 = vld [vmem:[#allocation7 + $0xec] sm:$0xf]  ;;  %v4596_v63 = vld [vmem:[#allocation7 + $0xf8] sm:$0xf0] }
  0xe0   :  { %1859 = vmatpush.bf16.msra.mxu2 %v4274_v14  ;;  %1872 = vmatpush.bf16.msra.mxu3 %v4278_v18  ;;  %v4444_v14 = vld [vmem:[#allocation5 + $0xd0] sm:$0xf0]  ;;  %v4905_v18 = vld [vmem:[#allocation5 + $0xcc] sm:$0xf] }
  0xe1   :  { %v4447_v23 = vor.u32 %v4904_v12, %v4444_v14  ;;  %v4891_v12 = vld [vmem:[#allocation5 + $0x54] sm:$0xf0]  ;;  %v4889_v14 = vld [vmem:[#allocation5 + $0x4c] sm:$0xf] }
  0xe2   :  { %1834 = vmatpush.bf16.msra.mxu0 %v4250_v26  ;;  %v4902_v26 = vld [vmem:[#allocation5 + $0xac] sm:$0xf0] }
  0xe3   :  { %1847 = vmatpush.bf16.msra.mxu1 %v4254_v28  ;;  %v4455_v28 = vor.u32 %v4905_v18, %v4452_v19  ;;  %v4427_v36 = vor.u32 %v4902_v26, %v4426_v25  ;;  %v4391_v25 = vor.u32 %v4889_v14, %v4388_v15  ;;  %v4364_v26 = vld [vmem:[#allocation5 + $0x30] sm:$0xf0]  ;;  %v4937_v14 = vld [vmem:[#allocation7 + $0xcc] sm:$0xf]  ;;  %v4580_v15 = vld [vmem:[#allocation7 + $0xd8] sm:$0xf0] }
  0xe4   :  { %1860 = vmatpush.bf16.msra.mxu2 %v4258_v30  ;;  %1873 = vmatpush.bf16.msra.mxu3 %v4262_v35  ;;  %v4428_v30 = vld [vmem:[#allocation5 + $0xb0] sm:$0xf0]  ;;  %v4436_v35 = vld [vmem:[#allocation5 + $0xb8] sm:$0xf0] }
  0xe5   :  { %v4431_v37 = vor.u32 %v4900_v27, %v4428_v30  ;;  %v4439_v42 = vor.u32 %v4901_v34, %v4436_v35  ;;  %v4370_v27 = vld [vmem:[#allocation5 + $0x28] sm:$0xf]  ;;  %v4885_v30 = vld [vmem:[#allocation5 + $0x2c] sm:$0xf]  ;;  %v4346_v34 = vld [vmem:[#allocation5] sm:$0xf] }
  0xe6   :  { %1835 = vmatpush.bf16.msra.mxu0 %v4234_v41  ;;  %v4896_v41 = vld [vmem:[#allocation5 + $0x84] sm:$0xf]  ;;  %v4882_v35 = vld [vmem:[#allocation5 + $0xc] sm:$0xf0] }
  0xe7   :  { %1848 = vmatpush.bf16.msra.mxu1 %v4238_v45  ;;  %v4418_v45 = vld [vmem:[#allocation5 + $0x88] sm:$0xf]  ;;  %v4415_v52 = vor.u32 %v4896_v41, %v4412_v43  ;;  %v4883_v43 = vld [vmem:[#allocation5 + $0x14] sm:$0xf0] }
  0xe8   :  { %1861 = vmatpush.bf16.msra.mxu2 %v4242_v46  ;;  %1874 = vmatpush.bf16.msra.mxu3 %v4246_v50  ;;  %v4899_v46 = vld [vmem:[#allocation5 + $0x94] sm:$0xf0]  ;;  %v4411_v50 = vor.u32 %v4898_v40, %v4410_v39  ;;  %v4880_v39 = vld [vmem:[#allocation5 + $0x4] sm:$0xf]  ;;  %v4348_v40 = vld [vmem:[#allocation5 + $0x10] sm:$0xf0] }
  0xe9   :  { %v4419_v54 = vor.u32 %v4899_v46, %v4418_v45  ;;  %v4354_v41 = vld [vmem:[#allocation5 + $0x8] sm:$0xf]  ;;  %v4881_v45 = vld [vmem:[#allocation5 + $0xc] sm:$0xf]  ;;  %v4356_v46 = vld [vmem:[#allocation5 + $0x18] sm:$0xf0] }
  0xea   :  { %1836 = vmatpush.bf16.msra.mxu0 %v4218_v59  ;;  %v5223_v49 = vpop.f32.mrf.mxu0  ;;  %v4396_v59 = vld [vmem:[#allocation5 + $0x70] sm:$0xf0] }
  0xeb   :  { %1849 = vmatpush.bf16.msra.mxu1 %v4222_v2  ;;  %v5225_v51 = vpop.f32.mrf.mxu1  ;;  %v4404_v2 = vld [vmem:[#allocation5 + $0x78] sm:$0xf0]  ;;  %v4399_v4 = vor.u32 %v4892_v57, %v4396_v59  ;;  %v4943_v57 = vld [vmem:[#allocation7 + $0xf4] sm:$0xf0]  ;;  %v4355_v59 = vor.u32 %v4883_v43, %v4354_v41  ;;  %v4546_v41 = vld [vmem:[#allocation7 + $0x88] sm:$0xf] }
  0xec   :  { %1862 = vmatpush.bf16.msra.mxu2 %v4226_v3  ;;  %1875 = vmatpush.bf16.msra.mxu3 %v4230_v6  ;;  %v4395_v3 = vor.u32 %v4894_v56, %v4394_v55  ;;  %v4378_v6 = vld [vmem:[#allocation5 + $0x40] sm:$0xf]  ;;  %v4588_v55 = vld [vmem:[#allocation7 + $0xf0] sm:$0xf0]  ;;  %v4594_v56 = vld [vmem:[#allocation7 + $0xe8] sm:$0xf] }
  0xed   :  { %1837 = vmatmul.bf16.vlgmr.msra.gmra.mxu0 %v4214_v20  ;;  %v4929_v43 = vld [vmem:[#allocation7 + $0x8c] sm:$0xf] }
  0xee   :  { %2090 = vmatpush.bf16.msrb.mxu0 %v4459_v7  ;;  %1850 = vmatmul.bf16.vlgmr.msra.gmra.mxu1 %v4214_v20  ;;  %v4890_v7 = vld [vmem:[#allocation5 + $0x4c] sm:$0xf0] }
  0xef   :  { %2103 = vmatpush.bf16.msrb.mxu1 %v4463_v8  ;;  %1876 = vmatmul.bf16.vlgmr.msra.gmra.mxu3 %v4214_v20  ;;  %v4888_v8 = vld [vmem:[#allocation5 + $0x44] sm:$0xf]  ;;  %v4379_v17 = vor.u32 %v4890_v7, %v4378_v6  ;;  %v4938_v6 = vld [vmem:[#allocation7 + $0xcc] sm:$0xf0] }
  0xf0   :  { %2116 = vmatpush.bf16.msrb.mxu2 %v4467_v9  ;;  %2129 = vmatpush.bf16.msrb.mxu3 %v4471_v13  ;;  %v4407_v9 = vor.u32 %v4893_v1, %v4404_v2  ;;  %v4383_v19 = vor.u32 %v4888_v8, %v4380_v10  ;;  %v4359_v1 = vor.u32 %v4881_v45, %v4356_v46  ;;  %v4936_v7 = vld [vmem:[#allocation7 + $0xc4] sm:$0xf]  ;;  %v4578_v10 = vld [vmem:[#allocation7 + $0xc8] sm:$0xf]  ;;  %v4548_v45 = vld [vmem:[#allocation7 + $0x98] sm:$0xf0] }
  0xf1   :  { %1863 = vmatmul.bf16.vlgmr.msra.gmra.mxu2 %v4214_v20  ;;  %v4387_v20 = vor.u32 %v4891_v12, %v4386_v11  ;;  %v5237_v8 = vor.u32 %v4941_v60, %v4596_v63  ;;  %v4939_v11 = vld [vmem:[#allocation7 + $0xd4] sm:$0xf0]  ;;  %v4925_v63 = vld [vmem:[#allocation7 + $0x6c] sm:$0xf] }
  0xf2   :  { %2091 = vmatpush.bf16.msrb.mxu0 %v4443_v21  ;;  %v5227_v13 = vpop.f32.mrf.mxu3  ;;  %v796_v16 = vpop.f32.mrf.mxu0  ;;  %v4362_v21 = vld [vmem:[#allocation5 + $0x20] sm:$0xf]  ;;  %v4927_v60 = vld [vmem:[#allocation7 + $0x74] sm:$0xf0] }
  0xf3   :  { %2104 = vmatpush.bf16.msrb.mxu1 %v4447_v23  ;;  %v809_v18 = vpop.f32.mrf.mxu1  ;;  %v4886_v23 = vld [vmem:[#allocation5 + $0x2c] sm:$0xf0]  ;;  %v4343_v16 = vld [vmem:[%s5708_s0 + $0x1c] sm:$0xf] }
  0xf4   :  { %2117 = vmatpush.bf16.msrb.mxu2 %v4451_v24  ;;  %2130 = vmatpush.bf16.msrb.mxu3 %v4455_v28  ;;  %v4884_v24 = vld [vmem:[#allocation5 + $0x24] sm:$0xf]  ;;  %v4887_v28 = vld [vmem:[#allocation5 + $0x34] sm:$0xf0]  ;;  %v4363_v33 = vor.u32 %v4886_v23, %v4362_v21  ;;  %v4934_v21 = vld [vmem:[#allocation7 + $0xac] sm:$0xf0] }
  0xf5   :  { %v4932_v23 = vld [vmem:[#allocation7 + $0xa4] sm:$0xf] }
  0xf6   :  { %2092 = vmatpush.bf16.msrb.mxu0 %v4427_v36  ;;  %v5229_v36 = vpop.f32.mrf.mxu2 }
  0xf7   :  { %2105 = vmatpush.bf16.msrb.mxu1 %v4431_v37  ;;  %5715 = vst [vmem:[#allocation11_spill] sm:$0xff] %v5229_v36  ;;  %v4367_v37 = vor.u32 %v4884_v24, %v4364_v26  ;;  %v5252_v24 = vor.u32 %v4937_v14, %v4580_v15  ;;  %v4562_v26 = vld [vmem:[#allocation7 + $0xa8] sm:$0xf]  ;;  %v4508_v14 = vld [vmem:[#allocation7 + $0x50] sm:$0xf0] }
  0xf8   :  { %2118 = vmatpush.bf16.msrb.mxu2 %v4435_v38  ;;  %2131 = vmatpush.bf16.msrb.mxu3 %v4439_v42  ;;  %v4371_v38 = vor.u32 %v4887_v28, %v4370_v27  ;;  %v4375_v42 = vor.u32 %v4885_v30, %v4372_v32  ;;  %v4935_v27 = vld [vmem:[#allocation7 + $0xb4] sm:$0xf0]  ;;  %v4933_v28 = vld [vmem:[#allocation7 + $0xac] sm:$0xf]  ;;  %v4564_v30 = vld [vmem:[#allocation7 + $0xb8] sm:$0xf0] }
  0xf9   :  { %v4514_v15 = vld [vmem:[#allocation7 + $0x48] sm:$0xf] }
  0xfa   :  { %2093 = vmatpush.bf16.msrb.mxu0 %v4411_v50  ;;  %v835_v47 = vpop.f32.mrf.mxu3  ;;  %v4942_v50 = vld [vmem:[#allocation7 + $0xec] sm:$0xf0] }
  0xfb   :  { %2106 = vmatpush.bf16.msrb.mxu1 %v4415_v52  ;;  %v4940_v52 = vld [vmem:[#allocation7 + $0xe4] sm:$0xf]  ;;  %v5231_v2 = vor.u32 %v4942_v50, %v4586_v48 }
  0xfc   :  { %2119 = vmatpush.bf16.msrb.mxu2 %v4419_v54  ;;  %2132 = vmatpush.bf16.msrb.mxu3 %v4423_v58  ;;  %v4347_v54 = vor.u32 %v4882_v35, %v4346_v34  ;;  %v4351_v58 = vor.u32 %v4880_v39, %v4348_v40  ;;  %v5261_v34 = vor.u32 %v4935_v27, %v4562_v26  ;;  %v4538_v35 = vld [vmem:[#allocation7 + $0x80] sm:$0xf]  ;;  %v4540_v40 = vld [vmem:[#allocation7 + $0x90] sm:$0xf0] }
  0xfd   :  { %v5264_v39 = vor.u32 %v4933_v28, %v4564_v30 }
  0xfe   :  { %2094 = vmatpush.bf16.msrb.mxu0 %v4395_v3  ;;  %v5233_v3 = vor.u32 %v4940_v52, %v4588_v55  ;;  %v822_v12 = vpop.f32.mrf.mxu2  ;;  %v4926_v55 = vld [vmem:[#allocation7 + $0x6c] sm:$0xf0] }
  0xff   :  { %2107 = vmatpush.bf16.msrb.mxu1 %v4399_v4  ;;  %v5235_v4 = vor.u32 %v4943_v57, %v4594_v56  ;;  %v4924_v56 = vld [vmem:[#allocation7 + $0x64] sm:$0xf]  ;;  %v5280_v57 = vor.u32 %v4929_v43, %v4548_v45  ;;  %v4498_v43 = vld [vmem:[#allocation7 + $0x28] sm:$0xf]  ;;  %v4919_v45 = vld [vmem:[#allocation7 + $0x34] sm:$0xf0] }
 0x100   :  { %2120 = vmatpush.bf16.msrb.mxu2 %v4403_v5  ;;  %2133 = vmatpush.bf16.msrb.mxu3 %v4407_v9  ;;  %v4570_v5 = vld [vmem:[#allocation7 + $0xc0] sm:$0xf]  ;;  %v4572_v9 = vld [vmem:[#allocation7 + $0xd0] sm:$0xf0] }
 0x101   :  { %v5247_v18 = vor.u32 %v4936_v7, %v4572_v9  ;;  %v4506_v9 = vld [vmem:[#allocation7 + $0x40] sm:$0xf] }
 0x102   :  { %2095 = vmatpush.bf16.msrb.mxu0 %v4379_v17  ;;  %v5243_v17 = vor.u32 %v4938_v6, %v4570_v5 }
 0x103   :  { %2108 = vmatpush.bf16.msrb.mxu1 %v4383_v19  ;;  %v5249_v19 = vor.u32 %v4939_v11, %v4578_v10  ;;  %v4922_v10 = vld [vmem:[#allocation7 + $0x4c] sm:$0xf0]  ;;  %v4920_v11 = vld [vmem:[#allocation7 + $0x44] sm:$0xf] }
 0x104   :  { %2121 = vmatpush.bf16.msrb.mxu2 %v4387_v20  ;;  %2134 = vmatpush.bf16.msrb.mxu3 %v4391_v25  ;;  %v4554_v20 = vld [vmem:[#allocation7 + $0xa0] sm:$0xf]  ;;  %v4556_v25 = vld [vmem:[#allocation7 + $0xb0] sm:$0xf0]  ;;  %v5299_v27 = vor.u32 %v4922_v10, %v4506_v9  ;;  %v5303_v30 = vor.u32 %v4920_v11, %v4508_v14  ;;  %v4482_v11 = vld [vmem:[#allocation7 + $0x8] sm:$0xf] }
 0x105   :  { %v5255_v32 = vor.u32 %v4934_v21, %v4554_v20  ;;  %v4921_v21 = vld [vmem:[#allocation7 + $0x4c] sm:$0xf]  ;;  %v4476_v10 = vld [vmem:[#allocation7 + $0x10] sm:$0xf0]  ;;  %v4915_v14 = vld [vmem:[#allocation7 + $0x14] sm:$0xf0] }
 0x106   :  { %2096 = vmatpush.bf16.msrb.mxu0 %v4363_v33  ;;  %v5259_v33 = vor.u32 %v4932_v23, %v4556_v25  ;;  %v4516_v23 = vld [vmem:[#allocation7 + $0x58] sm:$0xf0] }
 0x107   :  { %2109 = vmatpush.bf16.msrb.mxu1 %v4367_v37  ;;  %v4930_v37 = vld [vmem:[#allocation7 + $0x8c] sm:$0xf0] }
 0x108   :  { %2122 = vmatpush.bf16.msrb.mxu2 %v4371_v38  ;;  %2135 = vmatpush.bf16.msrb.mxu3 %v4375_v42  ;;  %v4928_v38 = vld [vmem:[#allocation7 + $0x84] sm:$0xf]  ;;  %v4931_v42 = vld [vmem:[#allocation7 + $0x94] sm:$0xf0]  ;;  %v5269_v47 = vor.u32 %v4930_v37, %v4538_v35  ;;  %v4490_v37 = vld [vmem:[#allocation7 + $0x20] sm:$0xf] }
 0x109   :  { %v5275_v50 = vor.u32 %v4928_v38, %v4540_v40  ;;  %v5277_v52 = vor.u32 %v4931_v42, %v4546_v41  ;;  %v4918_v38 = vld [vmem:[#allocation7 + $0x2c] sm:$0xf0]  ;;  %v4916_v40 = vld [vmem:[#allocation7 + $0x24] sm:$0xf]  ;;  %v5308_v41 = vor.u32 %v4921_v21, %v4516_v23  ;;  %v4492_v42 = vld [vmem:[#allocation7 + $0x30] sm:$0xf0] }
 0x10a   :  { %2097 = vmatpush.bf16.msrb.mxu0 %v4347_v54  ;;  %v5266_v46 = vpop.f32.mrf.mxu0  ;;  %v4522_v54 = vld [vmem:[#allocation7 + $0x60] sm:$0xf]  ;;  %v4484_v21 = vld [vmem:[#allocation7 + $0x18] sm:$0xf0] }
 0x10b   :  { %2110 = vmatpush.bf16.msrb.mxu1 %v4351_v58  ;;  %5716 = vst [vmem:[#allocation12_spill] sm:$0xff] %v5266_v46  ;;  %v5271_v48 = vpop.f32.mrf.mxu1  ;;  %v4524_v58 = vld [vmem:[#allocation7 + $0x70] sm:$0xf0]  ;;  %v5283_v5 = vor.u32 %v4926_v55, %v4522_v54  ;;  %v4917_v54 = vld [vmem:[#allocation7 + $0x2c] sm:$0xf] }
 0x10c   :  { %2123 = vmatpush.bf16.msrb.mxu2 %v4355_v59  ;;  %2136 = vmatpush.bf16.msrb.mxu3 %v4359_v1  ;;  %5717 = vst [vmem:[#allocation13_spill] sm:$0xff] %v5271_v48  ;;  %v4530_v59 = vld [vmem:[#allocation7 + $0x68] sm:$0xf]  ;;  %v4532_v1 = vld [vmem:[#allocation7 + $0x78] sm:$0xf0]  ;;  %v5287_v6 = vor.u32 %v4924_v56, %v4524_v58  ;;  %v5311_v56 = vor.u32 %v4918_v38, %v4490_v37 }
 0x10d   :  { %2098 = vmatmul.bf16.vlgmr.msrb.gmra.mxu0 %v4343_v16  ;;  %v5289_v7 = vor.u32 %v4927_v60, %v4530_v59  ;;  %v5292_v12 = vor.u32 %v4925_v63, %v4532_v1  ;;  %v4500_v55 = vld [vmem:[#allocation7 + $0x38] sm:$0xf0]  ;;  %v5315_v58 = vor.u32 %v4916_v40, %v4492_v42  ;;  %v5317_v59 = vor.u32 %v4919_v45, %v4498_v43  ;;  %v4474_v60 = vld [vmem:[#allocation7] sm:$0xf]  ;;  %v4914_v63 = vld [vmem:[#allocation7 + $0xc] sm:$0xf0] }
 0x10e   :  { %2346 = vmatpush.bf16.msra.mxu0 %v5231_v2  ;;  %2111 = vmatmul.bf16.vlgmr.msrb.gmra.mxu1 %v4343_v16  ;;  %v4912_v1 = vld [vmem:[#allocation7 + $0x4] sm:$0xf]  ;;  %v5320_v9 = vor.u32 %v4917_v54, %v4500_v55  ;;  %v5329_v37 = vor.u32 %v4915_v14, %v4482_v11  ;;  %v5144_v40 = vmov 0.0|0.0  }
 0x10f   :  { %2359 = vmatpush.bf16.msra.mxu1 %v5233_v3  ;;  %2137 = vmatmul.bf16.vlgmr.msrb.gmra.mxu3 %v4343_v16 }
 0x110   :  { %2372 = vmatpush.bf16.msra.mxu2 %v5235_v4  ;;  %2385 = vmatpush.bf16.msra.mxu3 %v5237_v8 }
 0x111   :  { %2124 = vmatmul.bf16.vlgmr.msrb.gmra.mxu2 %v4343_v16  ;;  %v4923_v16 = vld [vmem:[#allocation7 + $0x54] sm:$0xf0] }
 0x112   :  { %2347 = vmatpush.bf16.msra.mxu0 %v5243_v17  ;;  %v5294_v20 = vpop.f32.mrf.mxu3  ;;  %v1057_v25 = vpop.f32.mrf.mxu0  ;;  %v5305_v35 = vor.u32 %v4923_v16, %v4514_v15  ;;  %v4913_v16 = vld [vmem:[#allocation7 + $0xc] sm:$0xf] }
 0x113   :  { %2360 = vmatpush.bf16.msra.mxu1 %v5247_v18  ;;  %5718 = vst [vmem:[#allocation14_spill] sm:$0xff] %v5294_v20  ;;  %v1070_v28 = vpop.f32.mrf.mxu1  ;;  %v5323_v25 = vor.u32 %v4914_v63, %v4474_v60  ;;  %v5332_v38 = vor.u32 %v4913_v16, %v4484_v21 }
 0x114   :  { %2373 = vmatpush.bf16.msra.mxu2 %v5249_v19  ;;  %2386 = vmatpush.bf16.msra.mxu3 %v5252_v24  ;;  %v5296_v26 = vpop.f32.mrf.mxu2  ;;  %v5327_v28 = vor.u32 %v4912_v1, %v4476_v10 }
 0x115   :  { %5719 = vst [vmem:[#allocation15_spill] sm:$0xff] %v5296_v26 }
 0x116   :  { %2348 = vmatpush.bf16.msra.mxu0 %v5255_v32 }
 0x117   :  { %2361 = vmatpush.bf16.msra.mxu1 %v5259_v33 }
 0x118   :  { %2374 = vmatpush.bf16.msra.mxu2 %v5261_v34  ;;  %2387 = vmatpush.bf16.msra.mxu3 %v5264_v39 }
 0x11a   :  { %2349 = vmatpush.bf16.msra.mxu0 %v5269_v47  ;;  %v1096_v15 = vpop.f32.mrf.mxu3 }
 0x11b   :  { %2362 = vmatpush.bf16.msra.mxu1 %v5275_v50 }
 0x11c   :  { %2375 = vmatpush.bf16.msra.mxu2 %v5277_v52  ;;  %2388 = vmatpush.bf16.msra.mxu3 %v5280_v57  ;;  %v1083_v23 = vpop.f32.mrf.mxu2 }
 0x11e   :  { %2350 = vmatpush.bf16.msra.mxu0 %v5283_v5 }
 0x11f   :  { %2363 = vmatpush.bf16.msra.mxu1 %v5287_v6 }
 0x120   :  { %2376 = vmatpush.bf16.msra.mxu2 %v5289_v7  ;;  %2389 = vmatpush.bf16.msra.mxu3 %v5292_v12 }
 0x122   :  { %2351 = vmatpush.bf16.msra.mxu0 %v5299_v27 }
 0x123   :  { %2364 = vmatpush.bf16.msra.mxu1 %v5303_v30 }
 0x124   :  { %2377 = vmatpush.bf16.msra.mxu2 %v5305_v35  ;;  %2390 = vmatpush.bf16.msra.mxu3 %v5308_v41 }
 0x126   :  { %2352 = vmatpush.bf16.msra.mxu0 %v5311_v56 }
 0x127   :  { %2365 = vmatpush.bf16.msra.mxu1 %v5315_v58 }
 0x128   :  { %2378 = vmatpush.bf16.msra.mxu2 %v5317_v59  ;;  %2391 = vmatpush.bf16.msra.mxu3 %v5320_v9 }
 0x12a   :  { %2353 = vmatpush.bf16.msra.mxu0 %v5323_v25  ;;  %v5344_v42 = vpop.f32.mrf.mxu0 }
 0x12b   :  { %2366 = vmatpush.bf16.msra.mxu1 %v5327_v28  ;;  %5720 = vst [vmem:[#allocation16_spill] sm:$0xff] %v5344_v42  ;;  %v5347_v43 = vpop.f32.mrf.mxu1 }
 0x12c   :  { %2379 = vmatpush.bf16.msra.mxu2 %v5329_v37  ;;  %2392 = vmatpush.bf16.msra.mxu3 %v5332_v38  ;;  %5721 = vst [vmem:[#allocation17_spill] sm:$0xff] %v5347_v43 }
 0x12d   :  { %2354 = vmatmul.bf16.vlgmr.msra.gmra.mxu0 %v5144_v40 }
 0x12e   :  { %2470 = vmatpush.bf16.msrb.mxu0 %v5231_v2  ;;  %2367 = vmatmul.bf16.vlgmr.msra.gmra.mxu1 %v5144_v40 }
 0x12f   :  { %2483 = vmatpush.bf16.msrb.mxu1 %v5233_v3  ;;  %2380 = vmatmul.bf16.vlgmr.msra.gmra.mxu2 %v5144_v40 }
 0x130   :  { %2393 = vmatmul.bf16.vlgmr.msra.gmra.mxu3 %v5144_v40  ;;  %2496 = vmatpush.bf16.msrb.mxu2 %v5235_v4 }
 0x131   :  { %2509 = vmatpush.bf16.msrb.mxu3 %v5237_v8 }
 0x132   :  { %2471 = vmatpush.bf16.msrb.mxu0 %v5243_v17  ;;  %v5356_v45 = vpop.f32.mrf.mxu3  ;;  %v1318_v54 = vpop.f32.mrf.mxu0 }
 0x133   :  { %2484 = vmatpush.bf16.msrb.mxu1 %v5247_v18  ;;  %5722 = vst [vmem:[#allocation18_spill] sm:$0xff] %v5356_v45  ;;  %v1331_v60 = vpop.f32.mrf.mxu1 }
 0x134   :  { %2497 = vmatpush.bf16.msrb.mxu2 %v5249_v19  ;;  %v5358_v55 = vpop.f32.mrf.mxu2 }
 0x135   :  { %2510 = vmatpush.bf16.msrb.mxu3 %v5252_v24  ;;  %5723 = vst [vmem:[#allocation19_spill] sm:$0xff] %v5358_v55 }
 0x136   :  { %2472 = vmatpush.bf16.msrb.mxu0 %v5255_v32 }
 0x137   :  { %2485 = vmatpush.bf16.msrb.mxu1 %v5259_v33 }
 0x138   :  { %2498 = vmatpush.bf16.msrb.mxu2 %v5261_v34 }
 0x139   :  { %2511 = vmatpush.bf16.msrb.mxu3 %v5264_v39 }
 0x13a   :  { %2473 = vmatpush.bf16.msrb.mxu0 %v5269_v47  ;;  %v1357_v63 = vpop.f32.mrf.mxu3 }
 0x13b   :  { %2486 = vmatpush.bf16.msrb.mxu1 %v5275_v50 }
 0x13c   :  { %2499 = vmatpush.bf16.msrb.mxu2 %v5277_v52  ;;  %v1344_v1 = vpop.f32.mrf.mxu2 }
 0x13d   :  { %2512 = vmatpush.bf16.msrb.mxu3 %v5280_v57 }
 0x13e   :  { %2474 = vmatpush.bf16.msrb.mxu0 %v5283_v5 }
 0x13f   :  { %2487 = vmatpush.bf16.msrb.mxu1 %v5287_v6 }
 0x140   :  { %2500 = vmatpush.bf16.msrb.mxu2 %v5289_v7 }
 0x141   :  { %2513 = vmatpush.bf16.msrb.mxu3 %v5292_v12 }
 0x142   :  { %2475 = vmatpush.bf16.msrb.mxu0 %v5299_v27 }
 0x143   :  { %2488 = vmatpush.bf16.msrb.mxu1 %v5303_v30 }
 0x144   :  { %2501 = vmatpush.bf16.msrb.mxu2 %v5305_v35 }
 0x145   :  { %2514 = vmatpush.bf16.msrb.mxu3 %v5308_v41 }
 0x146   :  { %2476 = vmatpush.bf16.msrb.mxu0 %v5311_v56 }
 0x147   :  { %2489 = vmatpush.bf16.msrb.mxu1 %v5315_v58 }
 0x148   :  { %2502 = vmatpush.bf16.msrb.mxu2 %v5317_v59 }
 0x149   :  { %2515 = vmatpush.bf16.msrb.mxu3 %v5320_v9 }
 0x14a   :  { %2477 = vmatpush.bf16.msrb.mxu0 %v5323_v25  ;;  %v5385_v10 = vpop.f32.mrf.mxu0 }
 0x14b   :  { %2490 = vmatpush.bf16.msrb.mxu1 %v5327_v28  ;;  %5724 = vst [vmem:[#allocation20_spill] sm:$0xff] %v5385_v10  ;;  %v5389_v11 = vpop.f32.mrf.mxu1 }
 0x14c   :  { %2503 = vmatpush.bf16.msrb.mxu2 %v5329_v37  ;;  %5725 = vst [vmem:[#allocation21_spill] sm:$0xff] %v5389_v11 }
 0x14d   :  { %2516 = vmatpush.bf16.msrb.mxu3 %v5332_v38 }
 0x14e   :  { %2594 = vmatpush.bf16.msra.mxu0 %v5231_v2 }
 0x14f   :  { %2607 = vmatpush.bf16.msra.mxu1 %v5233_v3 }
 0x150   :  { %2620 = vmatpush.bf16.msra.mxu2 %v5235_v4 }
 0x151   :  { %2633 = vmatpush.bf16.msra.mxu3 %v5237_v8 }
 0x152   :  { %2595 = vmatpush.bf16.msra.mxu0 %v5243_v17  ;;  %v5396_v14 = vpop.f32.mrf.mxu3  ;;  %v1579_v15 = vpop.f32.mrf.mxu0 }
 0x153   :  { %2608 = vmatpush.bf16.msra.mxu1 %v5247_v18  ;;  %5726 = vst [vmem:[#allocation22_spill] sm:$0xff] %v5396_v14  ;;  %v1592_v21 = vpop.f32.mrf.mxu1 }
 0x154   :  { %2621 = vmatpush.bf16.msra.mxu2 %v5249_v19  ;;  %v5399_v16 = vpop.f32.mrf.mxu2 }
 0x155   :  { %2634 = vmatpush.bf16.msra.mxu3 %v5252_v24  ;;  %5727 = vst [vmem:[#allocation23_spill] sm:$0xff] %v5399_v16 }
 0x156   :  { %2596 = vmatpush.bf16.msra.mxu0 %v5255_v32 }
 0x157   :  { %2609 = vmatpush.bf16.msra.mxu1 %v5259_v33 }
 0x158   :  { %2622 = vmatpush.bf16.msra.mxu2 %v5261_v34 }
 0x159   :  { %2635 = vmatpush.bf16.msra.mxu3 %v5264_v39 }
 0x15a   :  { %2597 = vmatpush.bf16.msra.mxu0 %v5269_v47  ;;  %v1618_v23 = vpop.f32.mrf.mxu3 }
 0x15b   :  { %2610 = vmatpush.bf16.msra.mxu1 %v5275_v50 }
 0x15c   :  { %2623 = vmatpush.bf16.msra.mxu2 %v5277_v52  ;;  %v1605_v40 = vpop.f32.mrf.mxu2 }
 0x15d   :  { %2636 = vmatpush.bf16.msra.mxu3 %v5280_v57 }
 0x15e   :  { %2598 = vmatpush.bf16.msra.mxu0 %v5283_v5 }
 0x15f   :  { %2611 = vmatpush.bf16.msra.mxu1 %v5287_v6 }
 0x160   :  { %2624 = vmatpush.bf16.msra.mxu2 %v5289_v7 }
 0x161   :  { %2637 = vmatpush.bf16.msra.mxu3 %v5292_v12 }
 0x162   :  { %2599 = vmatpush.bf16.msra.mxu0 %v5299_v27 }
 0x163   :  { %2612 = vmatpush.bf16.msra.mxu1 %v5303_v30 }
 0x164   :  { %2625 = vmatpush.bf16.msra.mxu2 %v5305_v35 }
 0x165   :  { %2638 = vmatpush.bf16.msra.mxu3 %v5308_v41 }
 0x166   :  { %2600 = vmatpush.bf16.msra.mxu0 %v5311_v56 }
 0x167   :  { %2613 = vmatpush.bf16.msra.mxu1 %v5315_v58 }
 0x168   :  { %2626 = vmatpush.bf16.msra.mxu2 %v5317_v59 }
 0x169   :  { %2639 = vmatpush.bf16.msra.mxu3 %v5320_v9 }
 0x16a   :  { %2601 = vmatpush.bf16.msra.mxu0 %v5323_v25  ;;  %v5418_v54 = vpop.f32.mrf.mxu0 }
 0x16b   :  { %2614 = vmatpush.bf16.msra.mxu1 %v5327_v28  ;;  %5728 = vst [vmem:[#allocation24_spill] sm:$0xff] %v5418_v54  ;;  %v5420_v60 = vpop.f32.mrf.mxu1 }
 0x16c   :  { %2627 = vmatpush.bf16.msra.mxu2 %v5329_v37  ;;  %5729 = vst [vmem:[#allocation25_spill] sm:$0xff] %v5420_v60 }
 0x16d   :  { %2640 = vmatpush.bf16.msra.mxu3 %v5332_v38 }
 0x172   :  { %v5422_v63 = vpop.f32.mrf.mxu3  ;;  %v1840_v1 = vpop.f32.mrf.mxu0 }
 0x173   :  { %5730 = vst [vmem:[#allocation26_spill] sm:$0xff] %v5422_v63  ;;  %v1853_v21 = vpop.f32.mrf.mxu1  ;;  %v94_v1 = vld [vmem:[%s5711_s3] sm:$0xf] }
 0x174   :  { %v5424_v15 = vpop.f32.mrf.mxu2  ;;  %v97_v21 = vperm.slane %v94_v1, 1 }
 0x175   :  { %5731 = vst [vmem:[#allocation27_spill] sm:$0xff] %v5424_v15  ;;  %v96_v15 = vperm.slane %v94_v1, 0 }
 0x17a   :  { %v1879_v23 = vpop.f32.mrf.mxu3 }
 0x17b   :  { %v274_v23 = vadd.f32 %v5201_v29, %v96_v15 }
 0x17c   :  { %v1866_v40 = vpop.f32.mrf.mxu2 }
 0x17d   :  { %v287_v40 = vadd.f32 %v5203_v31, %v97_v21 }
 0x18a   :  { %v5426_v16 = vpop.f32.mrf.mxu0 }
 0x18b   :  { %5732 = vst [vmem:[#allocation28_spill] sm:$0xff] %v5426_v16  ;;  %v5428_v14 = vpop.f32.mrf.mxu1 }
 0x18c   :  { %5733 = vst [vmem:[#allocation29_spill] sm:$0xff] %v5428_v14 }
 0x192   :  { %v5430_v11 = vpop.f32.mrf.mxu3  ;;  %v2101_v10 = vpop.f32.mrf.mxu0 }
 0x193   :  { %5734 = vst [vmem:[#allocation30_spill] sm:$0xff] %v5430_v11  ;;  %v2114_v54 = vpop.f32.mrf.mxu1  ;;  %v99_v10 = vperm.slane %v94_v1, 3 }
 0x194   :  { %v5432_v55 = vpop.f32.mrf.mxu2 }
 0x195   :  { %5735 = vst [vmem:[#allocation31_spill] sm:$0xff] %v5432_v55 }
 0x19a   :  { %v2140_v45 = vpop.f32.mrf.mxu3 }
 0x19b   :  { %v313_v45 = vadd.f32 %v5205_v53, %v99_v10 }
 0x19c   :  { %v2127_v60 = vpop.f32.mrf.mxu2 }
 0x1aa   :  { %v2355_v16 = vpop.f32.mrf.mxu0 }
 0x1ab   :  { %v2398_v14 = vadd.f32 %v2355_v16, %v274_v23  ;;  %v2368_v63 = vpop.f32.mrf.mxu1  ;;  %v98_v16 = vperm.slane %v94_v1, 2 }
 0x1ac   :  { %v2399_v11 = vadd.f32 %v2368_v63, %v287_v40 }
 0x1ad   :  { %v4600_v43 = vmul.f32 -1.442695, %v2398_v14 }
 0x1ae   :  { %v4601_v55 = vmul.f32 -1.442695, %v2399_v11 }
 0x1af   :  { %4958 = vpow2.f32 %v4600_v43  ;;  %v300_v43 = vadd.f32 %v5207_v61, %v98_v16 }
 0x1b0   :  { %4960 = vpow2.f32 %v4601_v55 }
 0x1b2   :  { %v2381_v54 = vpop.f32.mrf.mxu2  ;;  %v2357_v42 = vpop.f32.mrf.mxu0 }
 0x1b3   :  { %v2394_v60 = vpop.f32.mrf.mxu3  ;;  %v2370_v20 = vpop.f32.mrf.mxu1  ;;  %v2400_v63 = vadd.f32 %v2381_v54, %v300_v43 }
 0x1b4   :  { %v2401_v26 = vadd.f32 %v2394_v60, %v313_v45 }
 0x1b5   :  { %v4959_v48 = vpop.eup %4958 }
 0x1b6   :  { %v4602_v29 = vmul.f32 -1.442695, %v2401_v26  ;;  %v4961_v15 = vpop.eup %4960  ;;  %v2405_v31 = vadd.f32 1.0, %v4959_v48 }
 0x1b7   :  { %v2424_v21 = vadd.f32 1.0, %v4961_v15 }
 0x1b8   :  { %4962 = vpow2.f32 %v4602_v29  ;;  %v2417_v48 = vand.u32 2147483648, %v2405_v31  ;;  %v2415_v60 = vand.u32 2147483647, %v2405_v31  ;;  %vm2411_vm2 = vweird.f32 %v2405_v31 }
 0x1b9   :  { %4964 = vrcp.f32 %v2405_v31  ;;  %v2436_v45 = vand.u32 2147483648, %v2424_v21  ;;  %v2434_v15 = vand.u32 2147483647, %v2424_v21  ;;  %vm2430_vm3 = vweird.f32 %v2424_v21 }
 0x1ba   :  { %4966 = vrcp.f32 %v2424_v21  ;;  %v2383_v14 = vpop.f32.mrf.mxu2  ;;  %v2418_v54 = vor.u32 1.1754944e-38, %v2417_v48  ;;  %vm2416_vm5 = vcmp.eq.f32.partialorder %v2415_v60, 8.507059e+37 }
 0x1bb   :  { %v2396_v11 = vpop.f32.mrf.mxu3  ;;  %vm2435_vm7 = vcmp.eq.f32.partialorder %v2434_v15, 8.507059e+37 }
 0x1bc   :  { %v2437_v11 = vor.u32 1.1754944e-38, %v2436_v45 }
 0x1be   :  { %v4963_v55 = vpop.eup %4962 }
 0x1bf   :  { %v4965_v53 = vpop.eup %4964  ;;  %v2444_v23 = vadd.f32 1.0, %v4963_v55 }
 0x1c0   :  { %v4967_v42 = vpop.eup %4966  ;;  %v2407_v40 = vmul.f32 %v4965_v53, %v2405_v31  ;;  %vm2412_vm0 = vweird.f32 %v4965_v53 }
 0x1c1   :  { %v2426_v20 = vmul.f32 %v4967_v42, %v2424_v21  ;;  %4968 = vrcp.f32 %v2444_v23  ;;  %vm2431_vm1 = vweird.f32 %v4967_v42  ;;  %vm2413_vm4 = vmor %vm2411_vm2, %vm2412_vm0  ;;  %v2456_v48 = vand.u32 2147483648, %v2444_v23 }
 0x1c2   :  { %v2408_v26 = vsub.f32 1.0, %v2407_v40  ;;  %4970 = vtanh.f32 %v2400_v63  ;;  %vm2432_vm6 = vmor %vm2430_vm3, %vm2431_vm1  ;;  %vm2450_vm9 = vweird.f32 %v2444_v23 }
 0x1c3   :  { %v2427_v10 = vsub.f32 1.0, %v2426_v20  ;;  %v2457_v60 = vor.u32 1.1754944e-38, %v2456_v48 }
 0x1c4   :  { %v2409_v1 = vmul.f32 %v4965_v53, %v2408_v26 }
 0x1c5   :  { %v2428_v29 = vmul.f32 %v4967_v42, %v2427_v10 }
 0x1c6   :  { %v2410_v61 = vadd.f32 %v4965_v53, %v2409_v1 }
 0x1c7   :  { %v4969_v16 = vpop.eup %4968  ;;  %v2429_v14 = vadd.f32 %v4967_v42, %v2428_v29 }
 0x1c8   :  { %v2414_v43 = vsel %vm2413_vm4, %v4965_v53, %v2410_v61  ;;  %v2446_v55 = vmul.f32 %v4969_v16, %v2444_v23  ;;  %v4971_v63 = vpop.eup %4970  ;;  %vm2451_vm8 = vweird.f32 %v4969_v16  ;;  %v2454_v53 = vand.u32 2147483647, %v2444_v23 }
 0x1c9   :  { %v2419_v40 = vsel %vm2416_vm5, %v2418_v54, %v2414_v43  ;;  %v2433_v20 = vsel %vm2432_vm6, %v4967_v42, %v2429_v14  ;;  %vm2452_vm10 = vmor %vm2450_vm9, %vm2451_vm8 }
 0x1ca   :  { %v2438_v26 = vsel %vm2435_vm7, %v2437_v11, %v2433_v20  ;;  %v2461_v10 = vmul.f32 %v4971_v63, %v2419_v40  ;;  %v2447_v46 = vsub.f32 1.0, %v2446_v55  ;;  %vm2455_vm11 = vcmp.eq.f32.partialorder %v2454_v53, 8.507059e+37 }
 0x1cb   :  { %v2460_v36 = vmul.f32 0.0, %v2438_v26 }
 0x1cc   :  { %v2448_v1 = vmul.f32 %v4969_v16, %v2447_v46 }
 0x1cd   :  { %v5441_v31 = vadd.f32 %v2461_v10, %v2460_v36  ;;  %v354_v36 = vld [vmem:[%s5711_s3] sm:$0xf] }
 0x1ce   :  { %v2449_v21 = vadd.f32 %v4969_v16, %v2448_v1  ;;  %v356_v46 = vperm.slane %v354_v36, 0  ;;  %v357_v23 = vperm.slane %v354_v36, 1  ;;  %v359_v63 = vperm.slane %v354_v36, 3 }
 0x1cf   :  { %4972 = vtanh.f32 %v5441_v31 }
 0x1d0   :  { %v2453_v45 = vsel %vm2452_vm10, %v4969_v16, %v2449_v21  ;;  %v534_v16 = vadd.f32 %v5212_v62, %v356_v46  ;;  %v547_v54 = vadd.f32 %v5214_v0, %v357_v23  ;;  %v573_v26 = vadd.f32 %v5216_v22, %v359_v63 }
 0x1d1   :  { %v2458_v29 = vsel %vm2455_vm11, %v2457_v60, %v2453_v45 }
 0x1d5   :  { %v4973_v42 = vpop.eup %4972 }
 0x1d6   :  { %v2464_v15 = vmul.f32 %v4973_v42, %v2458_v29  ;;  %v358_v29 = vperm.slane %v354_v36, 2 }
 0x1d8   :  { %v2469_v61 = vpack.c.bf16 %v2464_v15, %v2464_v15  ;;  %v560_v22 = vadd.f32 %v5218_v44, %v358_v29 }
 0x1da   :  { %2478 = vmatmul.bf16.vlgmr.msrb.gmra.mxu0 %v2469_v61  ;;  %2491 = vmatmul.bf16.vlgmr.msrb.gmra.mxu1 %v2469_v61 }
 0x1db   :  { %2504 = vmatmul.bf16.vlgmr.msrb.gmra.mxu2 %v2469_v61  ;;  %2517 = vmatmul.bf16.vlgmr.msrb.gmra.mxu3 %v2469_v61 }
 0x1dc   :  { %2718 = vmatpush.bf16.msrb.mxu0 %v5231_v2  ;;  %2731 = vmatpush.bf16.msrb.mxu1 %v5233_v3 }
 0x1dd   :  { %2744 = vmatpush.bf16.msrb.mxu2 %v5235_v4  ;;  %2757 = vmatpush.bf16.msrb.mxu3 %v5237_v8 }
 0x1e0   :  { %2719 = vmatpush.bf16.msrb.mxu0 %v5243_v17  ;;  %2732 = vmatpush.bf16.msrb.mxu1 %v5247_v18 }
 0x1e1   :  { %2745 = vmatpush.bf16.msrb.mxu2 %v5249_v19  ;;  %2758 = vmatpush.bf16.msrb.mxu3 %v5252_v24 }
 0x1e4   :  { %2720 = vmatpush.bf16.msrb.mxu0 %v5255_v32  ;;  %2733 = vmatpush.bf16.msrb.mxu1 %v5259_v33 }
 0x1e5   :  { %2746 = vmatpush.bf16.msrb.mxu2 %v5261_v34  ;;  %2759 = vmatpush.bf16.msrb.mxu3 %v5264_v39 }
 0x1e8   :  { %2721 = vmatpush.bf16.msrb.mxu0 %v5269_v47  ;;  %2734 = vmatpush.bf16.msrb.mxu1 %v5275_v50 }
 0x1e9   :  { %2747 = vmatpush.bf16.msrb.mxu2 %v5277_v52  ;;  %2760 = vmatpush.bf16.msrb.mxu3 %v5280_v57 }
 0x1ec   :  { %2722 = vmatpush.bf16.msrb.mxu0 %v5283_v5  ;;  %2735 = vmatpush.bf16.msrb.mxu1 %v5287_v6 }
 0x1ed   :  { %2748 = vmatpush.bf16.msrb.mxu2 %v5289_v7  ;;  %2761 = vmatpush.bf16.msrb.mxu3 %v5292_v12 }
 0x1f0   :  { %2723 = vmatpush.bf16.msrb.mxu0 %v5299_v27  ;;  %2736 = vmatpush.bf16.msrb.mxu1 %v5303_v30 }
 0x1f1   :  { %2749 = vmatpush.bf16.msrb.mxu2 %v5305_v35  ;;  %2762 = vmatpush.bf16.msrb.mxu3 %v5308_v41 }
 0x1f4   :  { %2724 = vmatpush.bf16.msrb.mxu0 %v5311_v56  ;;  %2737 = vmatpush.bf16.msrb.mxu1 %v5315_v58 }
 0x1f5   :  { %2750 = vmatpush.bf16.msrb.mxu2 %v5317_v59  ;;  %2763 = vmatpush.bf16.msrb.mxu3 %v5320_v9 }
 0x1f8   :  { %2725 = vmatpush.bf16.msrb.mxu0 %v5323_v25  ;;  %2738 = vmatpush.bf16.msrb.mxu1 %v5327_v28 }
 0x1f9   :  { %2751 = vmatpush.bf16.msrb.mxu2 %v5329_v37  ;;  %2764 = vmatpush.bf16.msrb.mxu3 %v5332_v38 }
 0x257   :  { %v2479_v14 = vpop.f32.mrf.mxu0  ;;  %v2492_v11 = vpop.f32.mrf.mxu1 }
 0x258   :  { %v2522_v43 = vadd.f32 %v2479_v14, %v534_v16  ;;  %v2523_v55 = vadd.f32 %v2492_v11, %v547_v54 }
 0x25a   :  { %v4603_v40 = vmul.f32 -1.442695, %v2522_v43  ;;  %v4604_v20 = vmul.f32 -1.442695, %v2523_v55 }
 0x25c   :  { %4974 = vpow2.f32 %v4603_v40 }
 0x25d   :  { %4976 = vpow2.f32 %v4604_v20 }
 0x25e   :  { %v2505_v10 = vpop.f32.mrf.mxu2  ;;  %v2518_v1 = vpop.f32.mrf.mxu3 }
 0x25f   :  { %v2525_v21 = vadd.f32 %v2518_v1, %v573_v26  ;;  %v2481_v48 = vpop.f32.mrf.mxu0  ;;  %v2494_v53 = vpop.f32.mrf.mxu1  ;;  %v2524_v54 = vadd.f32 %v2505_v10, %v560_v22 }
 0x261   :  { %v4605_v45 = vmul.f32 -1.442695, %v2525_v21 }
 0x262   :  { %v4975_v62 = vpop.eup %4974 }
 0x263   :  { %v4977_v60 = vpop.eup %4976  ;;  %v2529_v0 = vadd.f32 1.0, %v4975_v62  ;;  %4978 = vpow2.f32 %v4605_v45 }
 0x264   :  { %v2548_v42 = vadd.f32 1.0, %v4977_v60 }
 0x265   :  { %4980 = vrcp.f32 %v2529_v0  ;;  %v2541_v40 = vand.u32 2147483648, %v2529_v0  ;;  %v2539_v26 = vand.u32 2147483647, %v2529_v0  ;;  %vm2535_vm14 = vweird.f32 %v2529_v0 }
 0x266   :  { %4982 = vrcp.f32 %v2548_v42  ;;  %v2507_v15 = vpop.f32.mrf.mxu2  ;;  %v2520_v61 = vpop.f32.mrf.mxu3  ;;  %v2560_v20 = vand.u32 2147483648, %v2548_v42  ;;  %v2558_v21 = vand.u32 2147483647, %v2548_v42  ;;  %vm2554_vm15 = vweird.f32 %v2548_v42 }
 0x267   :  { %v2542_v10 = vor.u32 1.1754944e-38, %v2541_v40  ;;  %vm2540_vm2 = vcmp.eq.f32.partialorder %v2539_v26, 8.507059e+37 }
 0x268   :  { %v2561_v62 = vor.u32 1.1754944e-38, %v2560_v20  ;;  %vm2559_vm3 = vcmp.eq.f32.partialorder %v2558_v21, 8.507059e+37 }
 0x269   :  { %v4979_v46 = vpop.eup %4978 }
 0x26a   :  { %v2568_v23 = vadd.f32 1.0, %v4979_v46 }
 0x26b   :  { %v4981_v16 = vpop.eup %4980 }
 0x26c   :  { %v4983_v14 = vpop.eup %4982  ;;  %v2531_v11 = vmul.f32 %v4981_v16, %v2529_v0  ;;  %4984 = vrcp.f32 %v2568_v23  ;;  %vm2536_vm12 = vweird.f32 %v4981_v16  ;;  %vm2574_vm5 = vweird.f32 %v2568_v23 }
 0x26d   :  { %v2550_v43 = vmul.f32 %v4983_v14, %v2548_v42  ;;  %4986 = vtanh.f32 %v2524_v54  ;;  %vm2555_vm13 = vweird.f32 %v4983_v14  ;;  %vm2537_vm0 = vmor %vm2535_vm14, %vm2536_vm12 }
 0x26e   :  { %v2532_v55 = vsub.f32 1.0, %v2531_v11  ;;  %vm2556_vm1 = vmor %vm2554_vm15, %vm2555_vm13 }
 0x26f   :  { %v2551_v63 = vsub.f32 1.0, %v2550_v43 }
 0x270   :  { %v2533_v36 = vmul.f32 %v4981_v16, %v2532_v55  ;;  %v2580_v55 = vand.u32 2147483648, %v2568_v23 }
 0x271   :  { %v2552_v1 = vmul.f32 %v4983_v14, %v2551_v63 }
 0x272   :  { %v4985_v48 = vpop.eup %4984  ;;  %v2534_v44 = vadd.f32 %v4981_v16, %v2533_v36  ;;  %v2581_v40 = vor.u32 1.1754944e-38, %v2580_v55 }
 0x273   :  { %v2553_v53 = vadd.f32 %v4983_v14, %v2552_v1  ;;  %v2570_v45 = vmul.f32 %v4985_v48, %v2568_v23  ;;  %v4987_v29 = vpop.eup %4986  ;;  %vm2575_vm4 = vweird.f32 %v4985_v48 }
 0x274   :  { %v2538_v60 = vsel %vm2537_vm0, %v4981_v16, %v2534_v44  ;;  %v2578_v16 = vand.u32 2147483647, %v2568_v23  ;;  %vm2576_vm6 = vmor %vm2574_vm5, %vm2575_vm4 }
 0x275   :  { %v2543_v15 = vsel %vm2540_vm2, %v2542_v10, %v2538_v60  ;;  %v2557_v61 = vsel %vm2556_vm1, %v4983_v14, %v2553_v53  ;;  %v2571_v46 = vsub.f32 1.0, %v2570_v45 }
 0x276   :  { %v2562_v22 = vsel %vm2559_vm3, %v2561_v62, %v2557_v61  ;;  %v2585_v54 = vmul.f32 %v4987_v29, %v2543_v15  ;;  %vm2579_vm7 = vcmp.eq.f32.partialorder %v2578_v16, 8.507059e+37 }
 0x277   :  { %v2584_v11 = vmul.f32 %v2562_v22, %v5441_v31  ;;  %v2572_v43 = vmul.f32 %v4985_v48, %v2571_v46  ;;  %v615_v31 = vld [vmem:[%s5711_s3] sm:$0xf] }
 0x278   :  { %v617_v23 = vperm.slane %v615_v31, 0  ;;  %v618_v1 = vperm.slane %v615_v31, 1  ;;  %v620_v62 = vperm.slane %v615_v31, 3  ;;  %v619_v16 = vperm.slane %v615_v31, 2 }
 0x279   :  { %v5484_v0 = vadd.f32 %v2585_v54, %v2584_v11  ;;  %v2573_v42 = vadd.f32 %v4985_v48, %v2572_v43 }
 0x27a   :  { %v795_v21 = vadd.f32 %v5223_v49, %v617_v23  ;;  %v834_v15 = vadd.f32 %v5227_v13, %v620_v62 }
 0x27b   :  { %4988 = vtanh.f32 %v5484_v0  ;;  %v2577_v63 = vsel %vm2576_vm6, %v4985_v48, %v2573_v42  ;;  %v808_v48 = vadd.f32 %v5225_v51, %v618_v1 }
 0x27c   :  { %v2582_v20 = vsel %vm2579_vm7, %v2581_v40, %v2577_v63 }
 0x281   :  { %v4989_v14 = vpop.eup %4988 }
 0x282   :  { %v2588_v36 = vmul.f32 %v4989_v14, %v2582_v20  ;;  %v5736_v20 = vld [vmem:[#allocation11_spill] sm:$0xff] }
 0x283   :  { %v821_v13 = vadd.f32 %v5736_v20, %v619_v16 }
 0x284   :  { %v2593_v26 = vpack.c.bf16 %v2588_v36, %v2588_v36 }
 0x286   :  { %2602 = vmatmul.bf16.vlgmr.msra.gmra.mxu0 %v2593_v26  ;;  %2615 = vmatmul.bf16.vlgmr.msra.gmra.mxu1 %v2593_v26 }
 0x287   :  { %2628 = vmatmul.bf16.vlgmr.msra.gmra.mxu2 %v2593_v26  ;;  %2641 = vmatmul.bf16.vlgmr.msra.gmra.mxu3 %v2593_v26 }
 0x288   :  { %2842 = vmatpush.bf16.msra.mxu0 %v5231_v2  ;;  %2855 = vmatpush.bf16.msra.mxu1 %v5233_v3 }
 0x289   :  { %2868 = vmatpush.bf16.msra.mxu2 %v5235_v4  ;;  %2881 = vmatpush.bf16.msra.mxu3 %v5237_v8 }
 0x28c   :  { %2843 = vmatpush.bf16.msra.mxu0 %v5243_v17  ;;  %2856 = vmatpush.bf16.msra.mxu1 %v5247_v18 }
 0x28d   :  { %2869 = vmatpush.bf16.msra.mxu2 %v5249_v19  ;;  %2882 = vmatpush.bf16.msra.mxu3 %v5252_v24 }
 0x290   :  { %2844 = vmatpush.bf16.msra.mxu0 %v5255_v32  ;;  %2857 = vmatpush.bf16.msra.mxu1 %v5259_v33 }
 0x291   :  { %2870 = vmatpush.bf16.msra.mxu2 %v5261_v34  ;;  %2883 = vmatpush.bf16.msra.mxu3 %v5264_v39 }
 0x294   :  { %2845 = vmatpush.bf16.msra.mxu0 %v5269_v47  ;;  %2858 = vmatpush.bf16.msra.mxu1 %v5275_v50 }
 0x295   :  { %2871 = vmatpush.bf16.msra.mxu2 %v5277_v52  ;;  %2884 = vmatpush.bf16.msra.mxu3 %v5280_v57 }
 0x298   :  { %2846 = vmatpush.bf16.msra.mxu0 %v5283_v5  ;;  %2859 = vmatpush.bf16.msra.mxu1 %v5287_v6 }
 0x299   :  { %2872 = vmatpush.bf16.msra.mxu2 %v5289_v7  ;;  %2885 = vmatpush.bf16.msra.mxu3 %v5292_v12 }
 0x29c   :  { %2847 = vmatpush.bf16.msra.mxu0 %v5299_v27  ;;  %2860 = vmatpush.bf16.msra.mxu1 %v5303_v30 }
 0x29d   :  { %2873 = vmatpush.bf16.msra.mxu2 %v5305_v35  ;;  %2886 = vmatpush.bf16.msra.mxu3 %v5308_v41 }
 0x2a0   :  { %2848 = vmatpush.bf16.msra.mxu0 %v5311_v56  ;;  %2861 = vmatpush.bf16.msra.mxu1 %v5315_v58 }
 0x2a1   :  { %2874 = vmatpush.bf16.msra.mxu2 %v5317_v59  ;;  %2887 = vmatpush.bf16.msra.mxu3 %v5320_v9 }
 0x2a4   :  { %2849 = vmatpush.bf16.msra.mxu0 %v5323_v25  ;;  %2862 = vmatpush.bf16.msra.mxu1 %v5327_v28 }
 0x2a5   :  { %2875 = vmatpush.bf16.msra.mxu2 %v5329_v37  ;;  %2888 = vmatpush.bf16.msra.mxu3 %v5332_v38 }
 0x303   :  { %v2603_v44 = vpop.f32.mrf.mxu0  ;;  %v2616_v10 = vpop.f32.mrf.mxu1 }
 0x304   :  { %v2646_v53 = vadd.f32 %v2603_v44, %v795_v21  ;;  %v2647_v45 = vadd.f32 %v2616_v10, %v808_v48 }
 0x306   :  { %v4606_v60 = vmul.f32 -1.442695, %v2646_v53  ;;  %v4607_v29 = vmul.f32 -1.442695, %v2647_v45 }
 0x308   :  { %4990 = vpow2.f32 %v4606_v60 }
 0x309   :  { %4992 = vpow2.f32 %v4607_v29 }
 0x30a   :  { %v2629_v61 = vpop.f32.mrf.mxu2  ;;  %v2642_v46 = vpop.f32.mrf.mxu3 }
 0x30b   :  { %v2649_v22 = vadd.f32 %v2642_v46, %v834_v15  ;;  %v2605_v54 = vpop.f32.mrf.mxu0  ;;  %v2618_v11 = vpop.f32.mrf.mxu1  ;;  %v2648_v23 = vadd.f32 %v2629_v61, %v821_v13 }
 0x30d   :  { %v4608_v43 = vmul.f32 -1.442695, %v2649_v22 }
 0x30e   :  { %v4991_v49 = vpop.eup %4990 }
 0x30f   :  { %v4993_v42 = vpop.eup %4992  ;;  %v2653_v51 = vadd.f32 1.0, %v4991_v49  ;;  %4994 = vpow2.f32 %v4608_v43 }
 0x310   :  { %v2672_v55 = vadd.f32 1.0, %v4993_v42 }
 0x311   :  { %4996 = vrcp.f32 %v2653_v51  ;;  %v2665_v53 = vand.u32 2147483648, %v2653_v51  ;;  %v2663_v62 = vand.u32 2147483647, %v2653_v51  ;;  %vm2659_vm10 = vweird.f32 %v2653_v51 }
 0x312   :  { %4998 = vrcp.f32 %v2672_v55  ;;  %v2631_v63 = vpop.f32.mrf.mxu2  ;;  %v2644_v40 = vpop.f32.mrf.mxu3  ;;  %v2684_v45 = vand.u32 2147483648, %v2672_v55  ;;  %v2682_v29 = vand.u32 2147483647, %v2672_v55  ;;  %vm2678_vm11 = vweird.f32 %v2672_v55 }
 0x313   :  { %v2666_v61 = vor.u32 1.1754944e-38, %v2665_v53  ;;  %vm2664_vm14 = vcmp.eq.f32.partialorder %v2663_v62, 8.507059e+37 }
 0x314   :  { %v2685_v11 = vor.u32 1.1754944e-38, %v2684_v45  ;;  %vm2683_vm15 = vcmp.eq.f32.partialorder %v2682_v29, 8.507059e+37 }
 0x315   :  { %v4995_v14 = vpop.eup %4994 }
 0x316   :  { %v2692_v36 = vadd.f32 1.0, %v4995_v14 }
 0x317   :  { %v4997_v26 = vpop.eup %4996 }
 0x318   :  { %v4999_v1 = vpop.eup %4998  ;;  %v2655_v21 = vmul.f32 %v4997_v26, %v2653_v51  ;;  %5000 = vrcp.f32 %v2692_v36  ;;  %vm2660_vm8 = vweird.f32 %v4997_v26  ;;  %vm2698_vm1 = vweird.f32 %v2692_v36 }
 0x319   :  { %v2674_v48 = vmul.f32 %v4999_v1, %v2672_v55  ;;  %5002 = vtanh.f32 %v2648_v23  ;;  %vm2679_vm9 = vweird.f32 %v4999_v1  ;;  %vm2661_vm12 = vmor %vm2659_vm10, %vm2660_vm8  ;;  %v2704_v23 = vand.u32 2147483648, %v2692_v36 }
 0x31a   :  { %v2656_v44 = vsub.f32 1.0, %v2655_v21  ;;  %vm2680_vm13 = vmor %vm2678_vm11, %vm2679_vm9 }
 0x31b   :  { %v2675_v10 = vsub.f32 1.0, %v2674_v48  ;;  %v2705_v48 = vor.u32 1.1754944e-38, %v2704_v23 }
 0x31c   :  { %v2657_v31 = vmul.f32 %v4997_v26, %v2656_v44 }
 0x31d   :  { %v2676_v60 = vmul.f32 %v4999_v1, %v2675_v10 }
 0x31e   :  { %v5001_v15 = vpop.eup %5000  ;;  %v2658_v46 = vadd.f32 %v4997_v26, %v2657_v31  ;;  %v5737_v31 = vld [vmem:[#allocation12_spill] sm:$0xff] }
 0x31f   :  { %v2677_v22 = vadd.f32 %v4999_v1, %v2676_v60  ;;  %v2694_v54 = vmul.f32 %v5001_v15, %v2692_v36  ;;  %v5003_v49 = vpop.eup %5002  ;;  %vm2699_vm0 = vweird.f32 %v5001_v15  ;;  %v5738_v60 = vld [vmem:[#allocation13_spill] sm:$0xff] }
 0x320   :  { %v2662_v43 = vsel %vm2661_vm12, %v4997_v26, %v2658_v46  ;;  %v2702_v26 = vand.u32 2147483647, %v2692_v36  ;;  %vm2700_vm2 = vmor %vm2698_vm1, %vm2699_vm0 }
 0x321   :  { %v2667_v42 = vsel %vm2664_vm14, %v2666_v61, %v2662_v43  ;;  %v2681_v16 = vsel %vm2680_vm13, %v4999_v1, %v2677_v22  ;;  %v2695_v63 = vsub.f32 1.0, %v2694_v54 }
 0x322   :  { %v2686_v40 = vsel %vm2683_vm15, %v2685_v11, %v2681_v16  ;;  %v2709_v14 = vmul.f32 %v5003_v49, %v2667_v42  ;;  %vm2703_vm3 = vcmp.eq.f32.partialorder %v2702_v26, 8.507059e+37  ;;  %v5739_v49 = vld [vmem:[#allocation14_spill] sm:$0xff] }
 0x323   :  { %v2708_v20 = vmul.f32 %v2686_v40, %v5484_v0  ;;  %v2696_v13 = vmul.f32 %v5001_v15, %v2695_v63  ;;  %v876_v0 = vld [vmem:[%s5711_s3] sm:$0xf] }
 0x324   :  { %v878_v36 = vperm.slane %v876_v0, 0  ;;  %v879_v45 = vperm.slane %v876_v0, 1  ;;  %v881_v54 = vperm.slane %v876_v0, 3 }
 0x325   :  { %v5527_v51 = vadd.f32 %v2709_v14, %v2708_v20  ;;  %v2697_v55 = vadd.f32 %v5001_v15, %v2696_v13 }
 0x326   :  { %v1056_v62 = vadd.f32 %v5737_v31, %v878_v36  ;;  %v1069_v29 = vadd.f32 %v5738_v60, %v879_v45  ;;  %v1095_v42 = vadd.f32 %v5739_v49, %v881_v54 }
 0x327   :  { %5004 = vtanh.f32 %v5527_v51  ;;  %v2701_v21 = vsel %vm2700_vm2, %v5001_v15, %v2697_v55 }
 0x328   :  { %v2706_v44 = vsel %vm2703_vm3, %v2705_v48, %v2701_v21  ;;  %v880_v48 = vperm.slane %v876_v0, 2 }
 0x32d   :  { %v5005_v1 = vpop.eup %5004 }
 0x32e   :  { %v2712_v10 = vmul.f32 %v5005_v1, %v2706_v44 }
 0x330   :  { %v2717_v53 = vpack.c.bf16 %v2712_v10, %v2712_v10 }
 0x332   :  { %2726 = vmatmul.bf16.vlgmr.msrb.gmra.mxu0 %v2717_v53  ;;  %2739 = vmatmul.bf16.vlgmr.msrb.gmra.mxu1 %v2717_v53 }
 0x333   :  { %2752 = vmatmul.bf16.vlgmr.msrb.gmra.mxu2 %v2717_v53  ;;  %2765 = vmatmul.bf16.vlgmr.msrb.gmra.mxu3 %v2717_v53  ;;  %v5740_v53 = vld [vmem:[#allocation15_spill] sm:$0xff] }
 0x334   :  { %2966 = vmatpush.bf16.msrb.mxu0 %v5231_v2  ;;  %2979 = vmatpush.bf16.msrb.mxu1 %v5233_v3  ;;  %v1082_v36 = vadd.f32 %v5740_v53, %v880_v48 }
 0x335   :  { %2992 = vmatpush.bf16.msrb.mxu2 %v5235_v4  ;;  %3005 = vmatpush.bf16.msrb.mxu3 %v5237_v8 }
 0x338   :  { %2967 = vmatpush.bf16.msrb.mxu0 %v5243_v17  ;;  %2980 = vmatpush.bf16.msrb.mxu1 %v5247_v18 }
 0x339   :  { %2993 = vmatpush.bf16.msrb.mxu2 %v5249_v19  ;;  %3006 = vmatpush.bf16.msrb.mxu3 %v5252_v24 }
 0x33c   :  { %2968 = vmatpush.bf16.msrb.mxu0 %v5255_v32  ;;  %2981 = vmatpush.bf16.msrb.mxu1 %v5259_v33 }
 0x33d   :  { %2994 = vmatpush.bf16.msrb.mxu2 %v5261_v34  ;;  %3007 = vmatpush.bf16.msrb.mxu3 %v5264_v39 }
 0x340   :  { %2969 = vmatpush.bf16.msrb.mxu0 %v5269_v47  ;;  %2982 = vmatpush.bf16.msrb.mxu1 %v5275_v50 }
 0x341   :  { %2995 = vmatpush.bf16.msrb.mxu2 %v5277_v52  ;;  %3008 = vmatpush.bf16.msrb.mxu3 %v5280_v57 }
 0x344   :  { %2970 = vmatpush.bf16.msrb.mxu0 %v5283_v5  ;;  %2983 = vmatpush.bf16.msrb.mxu1 %v5287_v6 }
 0x345   :  { %2996 = vmatpush.bf16.msrb.mxu2 %v5289_v7  ;;  %3009 = vmatpush.bf16.msrb.mxu3 %v5292_v12 }
 0x348   :  { %2971 = vmatpush.bf16.msrb.mxu0 %v5299_v27  ;;  %2984 = vmatpush.bf16.msrb.mxu1 %v5303_v30 }
 0x349   :  { %2997 = vmatpush.bf16.msrb.mxu2 %v5305_v35  ;;  %3010 = vmatpush.bf16.msrb.mxu3 %v5308_v41 }
 0x34c   :  { %2972 = vmatpush.bf16.msrb.mxu0 %v5311_v56  ;;  %2985 = vmatpush.bf16.msrb.mxu1 %v5315_v58 }
 0x34d   :  { %2998 = vmatpush.bf16.msrb.mxu2 %v5317_v59  ;;  %3011 = vmatpush.bf16.msrb.mxu3 %v5320_v9 }
 0x350   :  { %2973 = vmatpush.bf16.msrb.mxu0 %v5323_v25  ;;  %2986 = vmatpush.bf16.msrb.mxu1 %v5327_v28 }
 0x351   :  { %2999 = vmatpush.bf16.msrb.mxu2 %v5329_v37  ;;  %3012 = vmatpush.bf16.msrb.mxu3 %v5332_v38 }
 0x3af   :  { %v2727_v15 = vpop.f32.mrf.mxu0  ;;  %v2740_v46 = vpop.f32.mrf.mxu1 }
 0x3b0   :  { %v2770_v61 = vadd.f32 %v2727_v15, %v1056_v62  ;;  %v2771_v22 = vadd.f32 %v2740_v46, %v1069_v29 }
 0x3b2   :  { %v4609_v11 = vmul.f32 -1.442695, %v2770_v61  ;;  %v4610_v43 = vmul.f32 -1.442695, %v2771_v22 }
 0x3b4   :  { %5006 = vpow2.f32 %v4609_v11 }
 0x3b5   :  { %5008 = vpow2.f32 %v4610_v43 }
 0x3b6   :  { %v2753_v16 = vpop.f32.mrf.mxu2  ;;  %v2766_v63 = vpop.f32.mrf.mxu3 }
 0x3b7   :  { %v2773_v40 = vadd.f32 %v2766_v63, %v1095_v42  ;;  %v2729_v14 = vpop.f32.mrf.mxu0  ;;  %v2742_v20 = vpop.f32.mrf.mxu1  ;;  %v2772_v62 = vadd.f32 %v2753_v16, %v1082_v36 }
 0x3b9   :  { %v4611_v13 = vmul.f32 -1.442695, %v2773_v40 }
 0x3ba   :  { %v5007_v55 = vpop.eup %5006 }
 0x3bb   :  { %v5009_v23 = vpop.eup %5008  ;;  %v2777_v26 = vadd.f32 1.0, %v5007_v55  ;;  %5010 = vpow2.f32 %v4611_v13 }
 0x3bc   :  { %v2796_v21 = vadd.f32 1.0, %v5009_v23 }
 0x3bd   :  { %5012 = vrcp.f32 %v2777_v26  ;;  %v2789_v22 = vand.u32 2147483648, %v2777_v26  ;;  %v2787_v11 = vand.u32 2147483647, %v2777_v26  ;;  %vm2783_vm6 = vweird.f32 %v2777_v26 }
 0x3be   :  { %5014 = vrcp.f32 %v2796_v21  ;;  %v2755_v1 = vpop.f32.mrf.mxu2  ;;  %v2768_v44 = vpop.f32.mrf.mxu3  ;;  %v2808_v54 = vand.u32 2147483648, %v2796_v21  ;;  %v2806_v49 = vand.u32 2147483647, %v2796_v21  ;;  %vm2802_vm7 = vweird.f32 %v2796_v21 }
 0x3bf   :  { %v2790_v16 = vor.u32 1.1754944e-38, %v2789_v22  ;;  %vm2788_vm10 = vcmp.eq.f32.partialorder %v2787_v11, 8.507059e+37 }
 0x3c0   :  { %v2809_v20 = vor.u32 1.1754944e-38, %v2808_v54  ;;  %vm2807_vm11 = vcmp.eq.f32.partialorder %v2806_v49, 8.507059e+37 }
 0x3c1   :  { %v5011_v10 = vpop.eup %5010 }
 0x3c2   :  { %v2816_v45 = vadd.f32 1.0, %v5011_v10 }
 0x3c3   :  { %v5013_v31 = vpop.eup %5012 }
 0x3c4   :  { %v5015_v60 = vpop.eup %5014  ;;  %v2779_v29 = vmul.f32 %v5013_v31, %v2777_v26  ;;  %5016 = vrcp.f32 %v2816_v45  ;;  %vm2784_vm4 = vweird.f32 %v5013_v31  ;;  %vm2822_vm13 = vweird.f32 %v2816_v45 }
 0x3c5   :  { %v2798_v15 = vmul.f32 %v5015_v60, %v2796_v21  ;;  %5018 = vtanh.f32 %v2772_v62  ;;  %vm2803_vm5 = vweird.f32 %v5015_v60  ;;  %vm2785_vm8 = vmor %vm2783_vm6, %vm2784_vm4  ;;  %v2828_v62 = vand.u32 2147483648, %v2816_v45 }
 0x3c6   :  { %v2780_v46 = vsub.f32 1.0, %v2779_v29  ;;  %vm2804_vm9 = vmor %vm2802_vm7, %vm2803_vm5 }
 0x3c7   :  { %v2799_v61 = vsub.f32 1.0, %v2798_v15  ;;  %v2829_v15 = vor.u32 1.1754944e-38, %v2828_v62 }
 0x3c8   :  { %v2781_v0 = vmul.f32 %v5013_v31, %v2780_v46 }
 0x3c9   :  { %v2800_v43 = vmul.f32 %v5015_v60, %v2799_v61 }
 0x3ca   :  { %v5017_v42 = vpop.eup %5016  ;;  %v2782_v63 = vadd.f32 %v5013_v31, %v2781_v0  ;;  %v5741_v0 = vld [vmem:[#allocation16_spill] sm:$0xff] }
 0x3cb   :  { %v2801_v40 = vadd.f32 %v5015_v60, %v2800_v43  ;;  %v2818_v14 = vmul.f32 %v5017_v42, %v2816_v45  ;;  %v5019_v55 = vpop.eup %5018  ;;  %vm2823_vm12 = vweird.f32 %v5017_v42  ;;  %v5742_v43 = vld [vmem:[#allocation17_spill] sm:$0xff] }
 0x3cc   :  { %v2786_v13 = vsel %vm2785_vm8, %v5013_v31, %v2782_v63  ;;  %v2826_v31 = vand.u32 2147483647, %v2816_v45  ;;  %vm2824_vm14 = vmor %vm2822_vm13, %vm2823_vm12 }
 0x3cd   :  { %v2791_v23 = vsel %vm2788_vm10, %v2790_v16, %v2786_v13  ;;  %v2805_v48 = vsel %vm2804_vm9, %v5015_v60, %v2801_v40  ;;  %v2819_v1 = vsub.f32 1.0, %v2818_v14 }
 0x3ce   :  { %v2810_v44 = vsel %vm2807_vm11, %v2809_v20, %v2805_v48  ;;  %v2833_v10 = vmul.f32 %v5019_v55, %v2791_v23  ;;  %vm2827_vm15 = vcmp.eq.f32.partialorder %v2826_v31, 8.507059e+37  ;;  %v5743_v55 = vld [vmem:[#allocation18_spill] sm:$0xff] }
 0x3cf   :  { %v2832_v53 = vmul.f32 %v2810_v44, %v5527_v51  ;;  %v2820_v36 = vmul.f32 %v5017_v42, %v2819_v1  ;;  %v1137_v51 = vld [vmem:[%s5711_s3] sm:$0xf] }
 0x3d0   :  { %v1139_v45 = vperm.slane %v1137_v51, 0  ;;  %v1140_v54 = vperm.slane %v1137_v51, 1  ;;  %v1142_v14 = vperm.slane %v1137_v51, 3 }
 0x3d1   :  { %v5570_v26 = vadd.f32 %v2833_v10, %v2832_v53  ;;  %v2821_v21 = vadd.f32 %v5017_v42, %v2820_v36 }
 0x3d2   :  { %v1317_v11 = vadd.f32 %v5741_v0, %v1139_v45  ;;  %v1330_v49 = vadd.f32 %v5742_v43, %v1140_v54  ;;  %v1356_v23 = vadd.f32 %v5743_v55, %v1142_v14 }
 0x3d3   :  { %5020 = vtanh.f32 %v5570_v26  ;;  %v2825_v29 = vsel %vm2824_vm14, %v5017_v42, %v2821_v21 }
 0x3d4   :  { %v2830_v46 = vsel %vm2827_vm15, %v2829_v15, %v2825_v29  ;;  %v1141_v15 = vperm.slane %v1137_v51, 2 }
 0x3d9   :  { %v5021_v60 = vpop.eup %5020 }
 0x3da   :  { %v2836_v61 = vmul.f32 %v5021_v60, %v2830_v46 }
 0x3dc   :  { %v2841_v22 = vpack.c.bf16 %v2836_v61, %v2836_v61 }
 0x3de   :  { %2850 = vmatmul.bf16.vlgmr.msra.gmra.mxu0 %v2841_v22  ;;  %2863 = vmatmul.bf16.vlgmr.msra.gmra.mxu1 %v2841_v22 }
 0x3df   :  { %2876 = vmatmul.bf16.vlgmr.msra.gmra.mxu2 %v2841_v22  ;;  %2889 = vmatmul.bf16.vlgmr.msra.gmra.mxu3 %v2841_v22  ;;  %v5744_v22 = vld [vmem:[#allocation19_spill] sm:$0xff] }
 0x3e0   :  { %3090 = vmatpush.bf16.msra.mxu0 %v5231_v2  ;;  %3103 = vmatpush.bf16.msra.mxu1 %v5233_v3  ;;  %v1343_v45 = vadd.f32 %v5744_v22, %v1141_v15 }
 0x3e1   :  { %3116 = vmatpush.bf16.msra.mxu2 %v5235_v4  ;;  %3129 = vmatpush.bf16.msra.mxu3 %v5237_v8 }
 0x3e4   :  { %3091 = vmatpush.bf16.msra.mxu0 %v5243_v17  ;;  %3104 = vmatpush.bf16.msra.mxu1 %v5247_v18 }
 0x3e5   :  { %3117 = vmatpush.bf16.msra.mxu2 %v5249_v19  ;;  %3130 = vmatpush.bf16.msra.mxu3 %v5252_v24 }
 0x3e8   :  { %3092 = vmatpush.bf16.msra.mxu0 %v5255_v32  ;;  %3105 = vmatpush.bf16.msra.mxu1 %v5259_v33 }
 0x3e9   :  { %3118 = vmatpush.bf16.msra.mxu2 %v5261_v34  ;;  %3131 = vmatpush.bf16.msra.mxu3 %v5264_v39 }
 0x3ec   :  { %3093 = vmatpush.bf16.msra.mxu0 %v5269_v47  ;;  %3106 = vmatpush.bf16.msra.mxu1 %v5275_v50 }
 0x3ed   :  { %3119 = vmatpush.bf16.msra.mxu2 %v5277_v52  ;;  %3132 = vmatpush.bf16.msra.mxu3 %v5280_v57 }
 0x3f0   :  { %3094 = vmatpush.bf16.msra.mxu0 %v5283_v5  ;;  %3107 = vmatpush.bf16.msra.mxu1 %v5287_v6 }
 0x3f1   :  { %3120 = vmatpush.bf16.msra.mxu2 %v5289_v7  ;;  %3133 = vmatpush.bf16.msra.mxu3 %v5292_v12 }
 0x3f4   :  { %3095 = vmatpush.bf16.msra.mxu0 %v5299_v27  ;;  %3108 = vmatpush.bf16.msra.mxu1 %v5303_v30 }
 0x3f5   :  { %3121 = vmatpush.bf16.msra.mxu2 %v5305_v35  ;;  %3134 = vmatpush.bf16.msra.mxu3 %v5308_v41 }
 0x3f8   :  { %3096 = vmatpush.bf16.msra.mxu0 %v5311_v56  ;;  %3109 = vmatpush.bf16.msra.mxu1 %v5315_v58 }
 0x3f9   :  { %3122 = vmatpush.bf16.msra.mxu2 %v5317_v59  ;;  %3135 = vmatpush.bf16.msra.mxu3 %v5320_v9 }
 0x3fc   :  { %3097 = vmatpush.bf16.msra.mxu0 %v5323_v25  ;;  %3110 = vmatpush.bf16.msra.mxu1 %v5327_v28 }
 0x3fd   :  { %3123 = vmatpush.bf16.msra.mxu2 %v5329_v37  ;;  %3136 = vmatpush.bf16.msra.mxu3 %v5332_v38 }
 0x45b   :  { %v2851_v42 = vpop.f32.mrf.mxu0  ;;  %v2864_v63 = vpop.f32.mrf.mxu1 }
 0x45c   :  { %v2894_v16 = vadd.f32 %v2851_v42, %v1317_v11  ;;  %v2895_v40 = vadd.f32 %v2864_v63, %v1330_v49 }
 0x45e   :  { %v4612_v20 = vmul.f32 -1.442695, %v2894_v16  ;;  %v4613_v13 = vmul.f32 -1.442695, %v2895_v40 }
 0x460   :  { %5022 = vpow2.f32 %v4612_v20 }
 0x461   :  { %5024 = vpow2.f32 %v4613_v13 }
 0x462   :  { %v2877_v48 = vpop.f32.mrf.mxu2  ;;  %v2890_v1 = vpop.f32.mrf.mxu3 }
 0x463   :  { %v2897_v44 = vadd.f32 %v2890_v1, %v1356_v23  ;;  %v2853_v10 = vpop.f32.mrf.mxu0  ;;  %v2866_v53 = vpop.f32.mrf.mxu1  ;;  %v2896_v11 = vadd.f32 %v2877_v48, %v1343_v45 }
 0x465   :  { %v4614_v36 = vmul.f32 -1.442695, %v2897_v44 }
 0x466   :  { %v5023_v21 = vpop.eup %5022 }
 0x467   :  { %v5025_v62 = vpop.eup %5024  ;;  %v2901_v31 = vadd.f32 1.0, %v5023_v21  ;;  %5026 = vpow2.f32 %v4614_v36 }
 0x468   :  { %v2920_v29 = vadd.f32 1.0, %v5025_v62 }
 0x469   :  { %5028 = vrcp.f32 %v2901_v31  ;;  %v2913_v40 = vand.u32 2147483648, %v2901_v31  ;;  %v2911_v20 = vand.u32 2147483647, %v2901_v31  ;;  %vm2907_vm2 = vweird.f32 %v2901_v31 }
 0x46a   :  { %5030 = vrcp.f32 %v2920_v29  ;;  %v2879_v60 = vpop.f32.mrf.mxu2  ;;  %v2892_v46 = vpop.f32.mrf.mxu3  ;;  %v2932_v14 = vand.u32 2147483648, %v2920_v29  ;;  %v2930_v55 = vand.u32 2147483647, %v2920_v29  ;;  %vm2926_vm3 = vweird.f32 %v2920_v29 }
 0x46b   :  { %v2914_v48 = vor.u32 1.1754944e-38, %v2913_v40  ;;  %vm2912_vm6 = vcmp.eq.f32.partialorder %v2911_v20, 8.507059e+37 }
 0x46c   :  { %v2933_v53 = vor.u32 1.1754944e-38, %v2932_v14  ;;  %vm2931_vm7 = vcmp.eq.f32.partialorder %v2930_v55, 8.507059e+37 }
 0x46d   :  { %v5027_v61 = vpop.eup %5026 }
 0x46e   :  { %v2940_v54 = vadd.f32 1.0, %v5027_v61 }
 0x46f   :  { %v5029_v0 = vpop.eup %5028 }
 0x470   :  { %v5031_v43 = vpop.eup %5030  ;;  %v2903_v49 = vmul.f32 %v5029_v0, %v2901_v31  ;;  %5032 = vrcp.f32 %v2940_v54  ;;  %vm2908_vm0 = vweird.f32 %v5029_v0  ;;  %vm2946_vm9 = vweird.f32 %v2940_v54 }
 0x471   :  { %v2922_v42 = vmul.f32 %v5031_v43, %v2920_v29  ;;  %5034 = vtanh.f32 %v2896_v11  ;;  %vm2927_vm1 = vweird.f32 %v5031_v43  ;;  %vm2909_vm4 = vmor %vm2907_vm2, %vm2908_vm0  ;;  %v2952_v11 = vand.u32 2147483648, %v2940_v54 }
 0x472   :  { %v2904_v63 = vsub.f32 1.0, %v2903_v49  ;;  %vm2928_vm5 = vmor %vm2926_vm3, %vm2927_vm1 }
 0x473   :  { %v2923_v16 = vsub.f32 1.0, %v2922_v42  ;;  %v2953_v42 = vor.u32 1.1754944e-38, %v2952_v11 }
 0x474   :  { %v2905_v51 = vmul.f32 %v5029_v0, %v2904_v63 }
 0x475   :  { %v2924_v13 = vmul.f32 %v5031_v43, %v2923_v16 }
 0x476   :  { %v5033_v23 = vpop.eup %5032  ;;  %v2906_v1 = vadd.f32 %v5029_v0, %v2905_v51 }
 0x477   :  { %v2925_v44 = vadd.f32 %v5031_v43, %v2924_v13  ;;  %v2942_v10 = vmul.f32 %v5033_v23, %v2940_v54  ;;  %v5035_v21 = vpop.eup %5034  ;;  %vm2947_vm8 = vweird.f32 %v5033_v23 }
 0x478   :  { %v2910_v36 = vsel %vm2909_vm4, %v5029_v0, %v2906_v1  ;;  %v2950_v0 = vand.u32 2147483647, %v2940_v54  ;;  %vm2948_vm10 = vmor %vm2946_vm9, %vm2947_vm8 }
 0x479   :  { %v2915_v62 = vsel %vm2912_vm6, %v2914_v48, %v2910_v36  ;;  %v2929_v15 = vsel %vm2928_vm5, %v5031_v43, %v2925_v44  ;;  %v2943_v60 = vsub.f32 1.0, %v2942_v10 }
 0x47a   :  { %v2934_v46 = vsel %vm2931_vm7, %v2933_v53, %v2929_v15  ;;  %v2957_v61 = vmul.f32 %v5035_v21, %v2915_v62  ;;  %vm2951_vm11 = vcmp.eq.f32.partialorder %v2950_v0, 8.507059e+37 }
 0x47b   :  { %v2956_v22 = vmul.f32 %v2934_v46, %v5570_v26  ;;  %v2944_v45 = vmul.f32 %v5033_v23, %v2943_v60 }
 0x47d   :  { %v5613_v31 = vadd.f32 %v2957_v61, %v2956_v22  ;;  %v2945_v29 = vadd.f32 %v5033_v23, %v2944_v45 }
 0x47f   :  { %5036 = vtanh.f32 %v5613_v31  ;;  %v2949_v49 = vsel %vm2948_vm10, %v5033_v23, %v2945_v29 }
 0x480   :  { %v2954_v63 = vsel %vm2951_vm11, %v2953_v42, %v2949_v49 }
 0x485   :  { %v5037_v43 = vpop.eup %5036 }
 0x486   :  { %v2960_v16 = vmul.f32 %v5037_v43, %v2954_v63 }
 0x488   :  { %v2965_v40 = vpack.c.bf16 %v2960_v16, %v2960_v16 }
 0x48a   :  { %2974 = vmatmul.bf16.vlgmr.msrb.gmra.mxu0 %v2965_v40  ;;  %2987 = vmatmul.bf16.vlgmr.msrb.gmra.mxu1 %v2965_v40 }
 0x48b   :  { %3000 = vmatmul.bf16.vlgmr.msrb.gmra.mxu2 %v2965_v40  ;;  %3013 = vmatmul.bf16.vlgmr.msrb.gmra.mxu3 %v2965_v40 }
 0x48c   :  { %3214 = vmatpush.bf16.msrb.mxu0 %v5231_v2  ;;  %3227 = vmatpush.bf16.msrb.mxu1 %v5233_v3  ;;  %v1398_v2 = vld [vmem:[%s5711_s3] sm:$0xf] }
 0x48d   :  { %3240 = vmatpush.bf16.msrb.mxu2 %v5235_v4  ;;  %3253 = vmatpush.bf16.msrb.mxu3 %v5237_v8  ;;  %v1400_v3 = vperm.slane %v1398_v2, 0  ;;  %v1401_v4 = vperm.slane %v1398_v2, 1  ;;  %v5745_v8 = vld [vmem:[#allocation20_spill] sm:$0xff] }
 0x490   :  { %3215 = vmatpush.bf16.msrb.mxu0 %v5243_v17  ;;  %3228 = vmatpush.bf16.msrb.mxu1 %v5247_v18  ;;  %v1578_v17 = vadd.f32 %v5745_v8, %v1400_v3  ;;  %v5746_v18 = vld [vmem:[#allocation21_spill] sm:$0xff] }
 0x491   :  { %3241 = vmatpush.bf16.msrb.mxu2 %v5249_v19  ;;  %3254 = vmatpush.bf16.msrb.mxu3 %v5252_v24  ;;  %v1591_v19 = vadd.f32 %v5746_v18, %v1401_v4 }
 0x494   :  { %3216 = vmatpush.bf16.msrb.mxu0 %v5255_v32  ;;  %3229 = vmatpush.bf16.msrb.mxu1 %v5259_v33 }
 0x495   :  { %3242 = vmatpush.bf16.msrb.mxu2 %v5261_v34  ;;  %3255 = vmatpush.bf16.msrb.mxu3 %v5264_v39  ;;  %v1403_v39 = vperm.slane %v1398_v2, 3 }
 0x498   :  { %3217 = vmatpush.bf16.msrb.mxu0 %v5269_v47  ;;  %3230 = vmatpush.bf16.msrb.mxu1 %v5275_v50 }
 0x499   :  { %3243 = vmatpush.bf16.msrb.mxu2 %v5277_v52  ;;  %3256 = vmatpush.bf16.msrb.mxu3 %v5280_v57  ;;  %v5747_v52 = vld [vmem:[#allocation22_spill] sm:$0xff] }
 0x49a   :  { %v1617_v57 = vadd.f32 %v5747_v52, %v1403_v39 }
 0x49c   :  { %3218 = vmatpush.bf16.msrb.mxu0 %v5283_v5  ;;  %3231 = vmatpush.bf16.msrb.mxu1 %v5287_v6 }
 0x49d   :  { %3244 = vmatpush.bf16.msrb.mxu2 %v5289_v7  ;;  %3257 = vmatpush.bf16.msrb.mxu3 %v5292_v12 }
 0x4a0   :  { %3219 = vmatpush.bf16.msrb.mxu0 %v5299_v27  ;;  %3232 = vmatpush.bf16.msrb.mxu1 %v5303_v30 }
 0x4a1   :  { %3245 = vmatpush.bf16.msrb.mxu2 %v5305_v35  ;;  %3258 = vmatpush.bf16.msrb.mxu3 %v5308_v41 }
 0x4a4   :  { %3220 = vmatpush.bf16.msrb.mxu0 %v5311_v56  ;;  %3233 = vmatpush.bf16.msrb.mxu1 %v5315_v58 }
 0x4a5   :  { %3246 = vmatpush.bf16.msrb.mxu2 %v5317_v59  ;;  %3259 = vmatpush.bf16.msrb.mxu3 %v5320_v9  ;;  %v1402_v59 = vperm.slane %v1398_v2, 2 }
 0x4a8   :  { %3221 = vmatpush.bf16.msrb.mxu0 %v5323_v25  ;;  %3234 = vmatpush.bf16.msrb.mxu1 %v5327_v28 }
 0x4a9   :  { %3247 = vmatpush.bf16.msrb.mxu2 %v5329_v37  ;;  %3260 = vmatpush.bf16.msrb.mxu3 %v5332_v38  ;;  %v5748_v37 = vld [vmem:[#allocation23_spill] sm:$0xff] }
 0x4aa   :  { %v1604_v38 = vadd.f32 %v5748_v37, %v1402_v59 }
 0x507   :  { %v2975_v24 = vpop.f32.mrf.mxu0  ;;  %v2988_v32 = vpop.f32.mrf.mxu1 }
 0x508   :  { %v3018_v33 = vadd.f32 %v2975_v24, %v1578_v17  ;;  %v3019_v34 = vadd.f32 %v2988_v32, %v1591_v19 }
 0x50a   :  { %v4615_v47 = vmul.f32 -1.442695, %v3018_v33  ;;  %v4616_v50 = vmul.f32 -1.442695, %v3019_v34  ;;  %v5749_v34 = vld [vmem:[#allocation24_spill] sm:$0xff] }
 0x50c   :  { %5038 = vpow2.f32 %v4615_v47  ;;  %v5750_v47 = vld [vmem:[#allocation25_spill] sm:$0xff] }
 0x50d   :  { %5040 = vpow2.f32 %v4616_v50 }
 0x50e   :  { %v3001_v5 = vpop.f32.mrf.mxu2  ;;  %v3014_v6 = vpop.f32.mrf.mxu3 }
 0x50f   :  { %v3021_v7 = vadd.f32 %v3014_v6, %v1617_v57  ;;  %v2977_v12 = vpop.f32.mrf.mxu0  ;;  %v2990_v27 = vpop.f32.mrf.mxu1  ;;  %v3020_v14 = vadd.f32 %v3001_v5, %v1604_v38 }
 0x511   :  { %v4617_v30 = vmul.f32 -1.442695, %v3021_v7 }
 0x512   :  { %v5039_v35 = vpop.eup %5038 }
 0x513   :  { %v5041_v41 = vpop.eup %5040  ;;  %v3025_v56 = vadd.f32 1.0, %v5039_v35  ;;  %5042 = vpow2.f32 %v4617_v30  ;;  %v5751_v30 = vld [vmem:[#allocation26_spill] sm:$0xff] }
 0x514   :  { %v3044_v58 = vadd.f32 1.0, %v5041_v41 }
 0x515   :  { %5044 = vrcp.f32 %v3025_v56  ;;  %v3037_v1 = vand.u32 2147483648, %v3025_v56  ;;  %v3035_v10 = vand.u32 2147483647, %v3025_v56  ;;  %vm3031_vm14 = vweird.f32 %v3025_v56 }
 0x516   :  { %5046 = vrcp.f32 %v3044_v58  ;;  %v3003_v9 = vpop.f32.mrf.mxu2  ;;  %v3016_v25 = vpop.f32.mrf.mxu3  ;;  %v3056_v48 = vand.u32 2147483648, %v3044_v58  ;;  %v3054_v36 = vand.u32 2147483647, %v3044_v58  ;;  %vm3050_vm15 = vweird.f32 %v3044_v58 }
 0x517   :  { %v3038_v15 = vor.u32 1.1754944e-38, %v3037_v1  ;;  %vm3036_vm2 = vcmp.eq.f32.partialorder %v3035_v10, 8.507059e+37 }
 0x518   :  { %v3057_v61 = vor.u32 1.1754944e-38, %v3056_v48  ;;  %vm3055_vm3 = vcmp.eq.f32.partialorder %v3054_v36, 8.507059e+37 }
 0x519   :  { %v5043_v28 = vpop.eup %5042 }
 0x51a   :  { %v3064_v26 = vadd.f32 1.0, %v5043_v28 }
 0x51b   :  { %v5045_v54 = vpop.eup %5044 }
 0x51c   :  { %v5047_v51 = vpop.eup %5046  ;;  %v3027_v20 = vmul.f32 %v5045_v54, %v3025_v56  ;;  %5048 = vrcp.f32 %v3064_v26  ;;  %vm3032_vm12 = vweird.f32 %v5045_v54  ;;  %v3076_v2 = vand.u32 2147483648, %v3064_v26 }
 0x51d   :  { %v3046_v13 = vmul.f32 %v5047_v51, %v3044_v58  ;;  %5050 = vtanh.f32 %v3020_v14  ;;  %vm3051_vm13 = vweird.f32 %v5047_v51  ;;  %vm3033_vm0 = vmor %vm3031_vm14, %vm3032_vm12  ;;  %vm3070_vm5 = vweird.f32 %v3064_v26 }
 0x51e   :  { %v3028_v55 = vsub.f32 1.0, %v3027_v20  ;;  %vm3052_vm1 = vmor %vm3050_vm15, %vm3051_vm13  ;;  %v3074_v3 = vand.u32 2147483647, %v3064_v26  ;;  %v3077_v8 = vor.u32 1.1754944e-38, %v3076_v2 }
 0x51f   :  { %v3047_v23 = vsub.f32 1.0, %v3046_v13  ;;  %v5752_v13 = vld [vmem:[#allocation27_spill] sm:$0xff] }
 0x520   :  { %v3029_v44 = vmul.f32 %v5045_v54, %v3028_v55  ;;  %vm3075_vm7 = vcmp.eq.f32.partialorder %v3074_v3, 8.507059e+37 }
 0x521   :  { %v3048_v53 = vmul.f32 %v5047_v51, %v3047_v23 }
 0x522   :  { %v5049_v21 = vpop.eup %5048  ;;  %v3030_v62 = vadd.f32 %v5045_v54, %v3029_v44 }
 0x523   :  { %v3049_v60 = vadd.f32 %v5047_v51, %v3048_v53  ;;  %v3066_v46 = vmul.f32 %v5049_v21, %v3064_v26  ;;  %v5051_v45 = vpop.eup %5050  ;;  %vm3071_vm4 = vweird.f32 %v5049_v21 }
 0x524   :  { %v3034_v22 = vsel %vm3033_vm0, %v5045_v54, %v3030_v62  ;;  %vm3072_vm6 = vmor %vm3070_vm5, %vm3071_vm4 }
 0x525   :  { %v3039_v29 = vsel %vm3036_vm2, %v3038_v15, %v3034_v22  ;;  %v3053_v11 = vsel %vm3052_vm1, %v5047_v51, %v3049_v60  ;;  %v3067_v0 = vsub.f32 1.0, %v3066_v46 }
 0x526   :  { %v3058_v49 = vsel %vm3055_vm3, %v3057_v61, %v3053_v11  ;;  %v3081_v42 = vmul.f32 %v5051_v45, %v3039_v29 }
 0x527   :  { %v3080_v43 = vmul.f32 %v3058_v49, %v5613_v31  ;;  %v3068_v63 = vmul.f32 %v5049_v21, %v3067_v0  ;;  %v1659_v31 = vld [vmem:[%s5711_s3] sm:$0xf] }
 0x528   :  { %v1661_v32 = vperm.slane %v1659_v31, 0  ;;  %v1662_v33 = vperm.slane %v1659_v31, 1  ;;  %v1664_v7 = vperm.slane %v1659_v31, 3  ;;  %v1663_v54 = vperm.slane %v1659_v31, 2 }
 0x529   :  { %v5656_v16 = vadd.f32 %v3081_v42, %v3080_v43  ;;  %v3069_v40 = vadd.f32 %v5049_v21, %v3068_v63 }
 0x52a   :  { %v1839_v39 = vadd.f32 %v5749_v34, %v1661_v32  ;;  %v1852_v50 = vadd.f32 %v5750_v47, %v1662_v33  ;;  %v1878_v35 = vadd.f32 %v5751_v30, %v1664_v7  ;;  %v1865_v55 = vadd.f32 %v5752_v13, %v1663_v54  ;;  %v5753_v30 = vld [vmem:[#allocation28_spill] sm:$0xff]  ;;  %v4946_v54 = vld [vmem:[%s5712_s4 + $0x10] sm:$0xff] }
 0x52b   :  { %5052 = vtanh.f32 %v5656_v16  ;;  %v3073_v4 = vsel %vm3072_vm6, %v5049_v21, %v3069_v40 }
 0x52c   :  { %v3078_v18 = vsel %vm3075_vm7, %v3077_v8, %v3073_v4 }
 0x531   :  { %v5053_v17 = vpop.eup %5052 }
 0x532   :  { %v3084_v19 = vmul.f32 %v5053_v17, %v3078_v18 }
 0x534   :  { %v3089_v24 = vpack.c.bf16 %v3084_v19, %v3084_v19 }
 0x536   :  { %3098 = vmatmul.bf16.vlgmr.msra.gmra.mxu0 %v3089_v24  ;;  %3111 = vmatmul.bf16.vlgmr.msra.gmra.mxu1 %v3089_v24 }
 0x537   :  { %3124 = vmatmul.bf16.vlgmr.msra.gmra.mxu2 %v3089_v24  ;;  %3137 = vmatmul.bf16.vlgmr.msra.gmra.mxu3 %v3089_v24 }
 0x5b3   :  { %v3099_v52 = vpop.f32.mrf.mxu0  ;;  %v3112_v57 = vpop.f32.mrf.mxu1 }
 0x5b4   :  { %v3142_v5 = vadd.f32 %v3099_v52, %v1839_v39  ;;  %v3143_v6 = vadd.f32 %v3112_v57, %v1852_v50  ;;  %v4950_v57 = vld [vmem:[%s5712_s4 + $0x30] sm:$0xff] }
 0x5b6   :  { %v4618_v12 = vmul.f32 -1.442695, %v3142_v5  ;;  %v4619_v27 = vmul.f32 -1.442695, %v3143_v6  ;;  %v4949_v5 = vld [vmem:[%s5712_s4 + $0x28] sm:$0xff] }
 0x5b7   :  { %v1920_v6 = vld [vmem:[%s5711_s3] sm:$0xf] }
 0x5b8   :  { %5054 = vpow2.f32 %v4618_v12  ;;  %v1922_v7 = vperm.slane %v1920_v6, 0  ;;  %v1923_v12 = vperm.slane %v1920_v6, 1 }
 0x5b9   :  { %5056 = vpow2.f32 %v4619_v27  ;;  %v4948_v27 = vld [vmem:[%s5712_s4 + $0x20] sm:$0xff] }
 0x5ba   :  { %v3125_v41 = vpop.f32.mrf.mxu2  ;;  %v3138_v56 = vpop.f32.mrf.mxu3 }
 0x5bb   :  { %v3145_v58 = vadd.f32 %v3138_v56, %v1878_v35  ;;  %v3101_v59 = vpop.f32.mrf.mxu0  ;;  %v3114_v9 = vpop.f32.mrf.mxu1  ;;  %v3144_v48 = vadd.f32 %v3125_v41, %v1865_v55  ;;  %v2100_v35 = vadd.f32 %v5753_v30, %v1922_v7  ;;  %v5754_v41 = vld [vmem:[#allocation29_spill] sm:$0xff] }
 0x5bc   :  { %v2113_v56 = vadd.f32 %v5754_v41, %v1923_v12 }
 0x5bd   :  { %v4620_v25 = vmul.f32 -1.442695, %v3145_v58  ;;  %v4947_v58 = vld [vmem:[%s5712_s4 + $0x18] sm:$0xff] }
 0x5be   :  { %v5055_v28 = vpop.eup %5054 }
 0x5bf   :  { %v5057_v37 = vpop.eup %5056  ;;  %v3149_v38 = vadd.f32 1.0, %v5055_v28  ;;  %5058 = vpow2.f32 %v4620_v25 }
 0x5c0   :  { %v3168_v26 = vadd.f32 1.0, %v5057_v37  ;;  %v1925_v37 = vperm.slane %v1920_v6, 3 }
 0x5c1   :  { %5060 = vrcp.f32 %v3149_v38  ;;  %v3161_v62 = vand.u32 2147483648, %v3149_v38  ;;  %v3159_v46 = vand.u32 2147483647, %v3149_v38  ;;  %vm3155_vm10 = vweird.f32 %v3149_v38 }
 0x5c2   :  { %5062 = vrcp.f32 %v3168_v26  ;;  %v3127_v14 = vpop.f32.mrf.mxu2  ;;  %v3140_v51 = vpop.f32.mrf.mxu3  ;;  %v3180_v15 = vand.u32 2147483648, %v3168_v26  ;;  %v3178_v22 = vand.u32 2147483647, %v3168_v26  ;;  %vm3174_vm11 = vweird.f32 %v3168_v26 }
 0x5c3   :  { %v3162_v11 = vor.u32 1.1754944e-38, %v3161_v62  ;;  %vm3160_vm14 = vcmp.eq.f32.partialorder %v3159_v46, 8.507059e+37  ;;  %v4945_v14 = vld [vmem:[%s5712_s4 + $0x8] sm:$0xff]  ;;  %v5755_v51 = vld [vmem:[#allocation30_spill] sm:$0xff] }
 0x5c4   :  { %v3181_v42 = vor.u32 1.1754944e-38, %v3180_v15  ;;  %vm3179_vm15 = vcmp.eq.f32.partialorder %v3178_v22, 8.507059e+37  ;;  %v1924_v15 = vperm.slane %v1920_v6, 2  ;;  %v5756_v22 = vld [vmem:[#allocation31_spill] sm:$0xff] }
 0x5c5   :  { %v5059_v20 = vpop.eup %5058 }
 0x5c6   :  { %v3188_v23 = vadd.f32 1.0, %v5059_v20  ;;  %v2139_v20 = vadd.f32 %v5755_v51, %v1925_v37 }
 0x5c7   :  { %v5061_v1 = vpop.eup %5060 }
 0x5c8   :  { %v5063_v44 = vpop.eup %5062  ;;  %v3151_v10 = vmul.f32 %v5061_v1, %v3149_v38  ;;  %5064 = vrcp.f32 %v3188_v23  ;;  %vm3156_vm8 = vweird.f32 %v5061_v1  ;;  %v3200_v31 = vand.u32 2147483648, %v3188_v23 }
 0x5c9   :  { %v3170_v53 = vmul.f32 %v5063_v44, %v3168_v26  ;;  %5066 = vtanh.f32 %v3144_v48  ;;  %vm3175_vm9 = vweird.f32 %v5063_v44  ;;  %vm3157_vm12 = vmor %vm3155_vm10, %vm3156_vm8  ;;  %vm3194_vm1 = vweird.f32 %v3188_v23 }
 0x5ca   :  { %v3152_v36 = vsub.f32 1.0, %v3151_v10  ;;  %vm3176_vm13 = vmor %vm3174_vm11, %vm3175_vm9  ;;  %v3198_v32 = vand.u32 2147483647, %v3188_v23  ;;  %v3201_v34 = vor.u32 1.1754944e-38, %v3200_v31 }
 0x5cb   :  { %v3171_v21 = vsub.f32 1.0, %v3170_v53 }
 0x5cc   :  { %v3153_v60 = vmul.f32 %v5061_v1, %v3152_v36  ;;  %vm3199_vm3 = vcmp.eq.f32.partialorder %v3198_v32, 8.507059e+37 }
 0x5cd   :  { %v3172_v61 = vmul.f32 %v5063_v44, %v3171_v21 }
 0x5ce   :  { %v5065_v45 = vpop.eup %5064  ;;  %v3154_v29 = vadd.f32 %v5061_v1, %v3153_v60 }
 0x5cf   :  { %v3173_v0 = vadd.f32 %v5063_v44, %v3172_v61  ;;  %v3190_v49 = vmul.f32 %v5065_v45, %v3188_v23  ;;  %v5067_v63 = vpop.eup %5066  ;;  %vm3195_vm0 = vweird.f32 %v5065_v45 }
 0x5d0   :  { %v3158_v43 = vsel %vm3157_vm12, %v5061_v1, %v3154_v29  ;;  %vm3196_vm2 = vmor %vm3194_vm1, %vm3195_vm0 }
 0x5d1   :  { %v3163_v40 = vsel %vm3160_vm14, %v3162_v11, %v3158_v43  ;;  %v3177_v2 = vsel %vm3176_vm13, %v5063_v44, %v3173_v0  ;;  %v3191_v3 = vsub.f32 1.0, %v3190_v49  ;;  %v4944_v44 = vld [vmem:[%s5712_s4] sm:$0xff] }
 0x5d2   :  { %v3182_v4 = vsel %vm3179_vm15, %v3181_v42, %v3177_v2  ;;  %v3205_v8 = vmul.f32 %v5067_v63, %v3163_v40 }
 0x5d3   :  { %v3204_v17 = vmul.f32 %v3182_v4, %v5656_v16  ;;  %v3192_v18 = vmul.f32 %v5065_v45, %v3191_v3  ;;  %v4951_v16 = vld [vmem:[%s5712_s4 + $0x38] sm:$0xff] }
 0x5d4   :  { %3407 = vmatpush.bf16.msra.mxu0 %v4951_v16 }
 0x5d5   :  { %v5667_v19 = vadd.f32 %v3205_v8, %v3204_v17  ;;  %v3193_v24 = vadd.f32 %v5065_v45, %v3192_v18 }
 0x5d7   :  { %5068 = vtanh.f32 %v5667_v19  ;;  %v3197_v33 = vsel %vm3196_vm2, %v5065_v45, %v3193_v24  ;;  %v2126_v45 = vadd.f32 %v5756_v22, %v1924_v15 }
 0x5d8   :  { %v3202_v47 = vsel %vm3199_vm3, %v3201_v34, %v3197_v33  ;;  %3408 = vmatpush.bf16.msra.mxu0 %v4950_v57 }
 0x5dc   :  { %3409 = vmatpush.bf16.msra.mxu0 %v4949_v5 }
 0x5dd   :  { %v5069_v39 = vpop.eup %5068 }
 0x5de   :  { %v3208_v50 = vmul.f32 %v5069_v39, %v3202_v47 }
 0x5e0   :  { %v3213_v52 = vpack.c.bf16 %v3208_v50, %v3208_v50  ;;  %3410 = vmatpush.bf16.msra.mxu0 %v4948_v27 }
 0x5e2   :  { %3222 = vmatmul.bf16.vlgmr.msrb.gmra.mxu0 %v3213_v52  ;;  %3235 = vmatmul.bf16.vlgmr.msrb.gmra.mxu1 %v3213_v52 }
 0x5e3   :  { %3248 = vmatmul.bf16.vlgmr.msrb.gmra.mxu2 %v3213_v52  ;;  %3261 = vmatmul.bf16.vlgmr.msrb.gmra.mxu3 %v3213_v52 }
 0x5e4   :  { %3411 = vmatpush.bf16.msra.mxu0 %v4947_v58 }
 0x5e8   :  { %3412 = vmatpush.bf16.msra.mxu0 %v4946_v54 }
 0x5ec   :  { %3413 = vmatpush.bf16.msra.mxu0 %v4945_v14 }
 0x5f0   :  { %3414 = vmatpush.bf16.msra.mxu0 %v4944_v44 }
 0x65f   :  { %v3223_v59 = vpop.f32.mrf.mxu0  ;;  %v3236_v9 = vpop.f32.mrf.mxu1 }
 0x660   :  { %v3266_v25 = vadd.f32 %v3223_v59, %v2100_v35  ;;  %v3267_v28 = vadd.f32 %v3236_v9, %v2113_v56 }
 0x662   :  { %v4621_v38 = vmul.f32 -1.442695, %v3266_v25  ;;  %v4622_v26 = vmul.f32 -1.442695, %v3267_v28 }
 0x664   :  { %5070 = vpow2.f32 %v4621_v38 }
 0x665   :  { %5072 = vpow2.f32 %v4622_v26 }
 0x666   :  { %v3249_v13 = vpop.f32.mrf.mxu2  ;;  %v3262_v55 = vpop.f32.mrf.mxu3 }
 0x667   :  { %v3269_v23 = vadd.f32 %v3262_v55, %v2139_v20  ;;  %v3225_v1 = vpop.f32.mrf.mxu0  ;;  %v3238_v48 = vpop.f32.mrf.mxu1  ;;  %v3268_v0 = vadd.f32 %v3249_v13, %v2126_v45 }
 0x669   :  { %v4623_v10 = vmul.f32 -1.442695, %v3269_v23 }
 0x66a   :  { %v5071_v53 = vpop.eup %5070 }
 0x66b   :  { %v5073_v36 = vpop.eup %5072  ;;  %v3273_v21 = vadd.f32 1.0, %v5071_v53  ;;  %5074 = vpow2.f32 %v4623_v10 }
 0x66c   :  { %v3292_v62 = vadd.f32 1.0, %v5073_v36 }
 0x66d   :  { %5076 = vrcp.f32 %v3273_v21  ;;  %v3285_v2 = vand.u32 2147483648, %v3273_v21  ;;  %v3283_v8 = vand.u32 2147483647, %v3273_v21  ;;  %vm3279_vm6 = vweird.f32 %v3273_v21 }
 0x66e   :  { %5078 = vrcp.f32 %v3292_v62  ;;  %v3251_v60 = vpop.f32.mrf.mxu2  ;;  %v3264_v46 = vpop.f32.mrf.mxu3  ;;  %v3304_v3 = vand.u32 2147483648, %v3292_v62  ;;  %v3302_v18 = vand.u32 2147483647, %v3292_v62  ;;  %vm3298_vm7 = vweird.f32 %v3292_v62 }
 0x66f   :  { %v3286_v32 = vor.u32 1.1754944e-38, %v3285_v2  ;;  %vm3284_vm10 = vcmp.eq.f32.partialorder %v3283_v8, 8.507059e+37 }
 0x670   :  { %v3305_v39 = vor.u32 1.1754944e-38, %v3304_v3  ;;  %vm3303_vm11 = vcmp.eq.f32.partialorder %v3302_v18, 8.507059e+37 }
 0x671   :  { %v5075_v61 = vpop.eup %5074 }
 0x672   :  { %v3312_v29 = vadd.f32 1.0, %v5075_v61 }
 0x673   :  { %v5077_v11 = vpop.eup %5076 }
 0x674   :  { %v5079_v49 = vpop.eup %5078  ;;  %v3275_v42 = vmul.f32 %v5077_v11, %v3273_v21  ;;  %5080 = vrcp.f32 %v3312_v29  ;;  %vm3280_vm4 = vweird.f32 %v5077_v11  ;;  %v3324_v35 = vand.u32 2147483648, %v3312_v29 }
 0x675   :  { %v3294_v43 = vmul.f32 %v5079_v49, %v3292_v62  ;;  %5082 = vtanh.f32 %v3268_v0  ;;  %vm3299_vm5 = vweird.f32 %v5079_v49  ;;  %vm3281_vm8 = vmor %vm3279_vm6, %vm3280_vm4  ;;  %vm3318_vm13 = vweird.f32 %v3312_v29 }
 0x676   :  { %v3276_v63 = vsub.f32 1.0, %v3275_v42  ;;  %vm3300_vm9 = vmor %vm3298_vm7, %vm3299_vm5  ;;  %v3322_v41 = vand.u32 2147483647, %v3312_v29  ;;  %v3325_v58 = vor.u32 1.1754944e-38, %v3324_v35 }
 0x677   :  { %v3295_v40 = vsub.f32 1.0, %v3294_v43 }
 0x678   :  { %v3277_v4 = vmul.f32 %v5077_v11, %v3276_v63  ;;  %vm3323_vm15 = vcmp.eq.f32.partialorder %v3322_v41, 8.507059e+37 }
 0x679   :  { %v3296_v17 = vmul.f32 %v5079_v49, %v3295_v40 }
 0x67a   :  { %v5081_v24 = vpop.eup %5080  ;;  %v3278_v31 = vadd.f32 %v5077_v11, %v3277_v4 }
 0x67b   :  { %v3297_v33 = vadd.f32 %v5079_v49, %v3296_v17  ;;  %v3314_v34 = vmul.f32 %v5081_v24, %v3312_v29  ;;  %v5083_v50 = vpop.eup %5082  ;;  %vm3319_vm12 = vweird.f32 %v5081_v24 }
 0x67c   :  { %v3282_v47 = vsel %vm3281_vm8, %v5077_v11, %v3278_v31  ;;  %vm3320_vm14 = vmor %vm3318_vm13, %vm3319_vm12 }
 0x67d   :  { %v3287_v52 = vsel %vm3284_vm10, %v3286_v32, %v3282_v47  ;;  %v3301_v16 = vsel %vm3300_vm9, %v5079_v49, %v3297_v33  ;;  %v3315_v57 = vsub.f32 1.0, %v3314_v34 }
 0x67e   :  { %v3306_v5 = vsel %vm3303_vm11, %v3305_v39, %v3301_v16  ;;  %v3329_v6 = vmul.f32 %v5083_v50, %v3287_v52 }
 0x67f   :  { %v3328_v7 = vmul.f32 %v3306_v5, %v5667_v19  ;;  %v3316_v12 = vmul.f32 %v5081_v24, %v3315_v57  ;;  %v4957_v19 = vld [vmem:[%s5713_s5] ss:$0 sm:$0xff] }
 0x681   :  { %v3330_v27 = vadd.f32 %v3329_v6, %v3328_v7  ;;  %v3317_v30 = vadd.f32 %v5081_v24, %v3316_v12 }
 0x683   :  { %5084 = vtanh.f32 %v3330_v27  ;;  %v3321_v56 = vsel %vm3320_vm14, %v5081_v24, %v3317_v30 }
 0x684   :  { %v3326_v9 = vsel %vm3323_vm15, %v3325_v58, %v3321_v56 }
 0x689   :  { %v5085_v59 = vpop.eup %5084 }
 0x68a   :  { %v3332_v25 = vmul.f32 %v5085_v59, %v3326_v9 }
 0x68c   :  { %v3338_v28 = vpack.c.bf16 %v3332_v25, %v3332_v25 }
 0x68e   :  { %3415 = vmatmul.bf16.vlgmr.msra.gmra.mxu0 %v3338_v28 }
 0x70b   :  { %v3416_v37 = vpop.f32.mrf.mxu0 }
 0x70c   :  { %v3417_v38 = vadd.f32 %v4957_v19, %v3416_v37 }
 0x70e   :  { %v3420_v26 = vmul.f32 %v3417_v38, %v3417_v38 }
 0x710   :  { %3421 = vadd.xlane.f32.xlu0 %v3420_v26 }
 0x713   :  { %v3418_v54 = vpop.f32.mrf.mxu0 }
 0x783   :  { %v3422_v14 = vpop.xlane.xlu0 %3421 }
 0x784   :  { %5086 = vrsqrt.f32 %v3422_v14  ;;  %vm3429_vm1 = vweird.f32 %v3422_v14 }
 0x78a   :  { %v5087_v51 = vpop.eup %5086 }
 0x78b   :  { %v3424_v20 = vmul.f32 %v5087_v51, %v3422_v14  ;;  %vm3430_vm0 = vweird.f32 %v5087_v51 }
 0x78c   :  { %vm3431_vm2 = vmor %vm3429_vm1, %vm3430_vm0 }
 0x78d   :  { %v3425_v13 = vmul.f32 %v5087_v51, %v3424_v20 }
 0x78f   :  { %v3426_v55 = vmul.f32 0.5, %v3425_v13 }
 0x791   :  { %v3427_v23 = vsub.f32 1.5, %v3426_v55 }
 0x793   :  { %v3428_v1 = vmul.f32 %v5087_v51, %v3427_v23 }
 0x795   :  { %v3432_v48 = vsel %vm3431_vm2, %v5087_v51, %v3428_v1 }
 0x796   :  { %v3433_v44 = vmul.f32 %v3432_v48, %v3417_v38 }
 0x798   :  { %3434 = vst [vmem:[%s5714_s6] sm:$0xff] %v3433_v44 }
 0x799   :  { %3439 = vsyncpa [#allocation6], 1 }
 0x79a   :  { %3440 = vsyncpa [#allocation8], 1 }

// kernel: speech_embedder_forward.3
= control target key start
LH: loop header
LB: loop body
LE: loop exit
PB: predicated region body
PF: predicated region fallthrough
CT: control target
= control target key end

     0   :  { %9 = vsyncpa [#allocation6], 0  ;;  %s7752_s0 = inlined_call_operand.vmem [shape: bf16[8,8,128], index: 0, kind: input, shape index: {}]   ;;  %s7753_s1 = inlined_call_operand.hbm [shape: bf16[128,512], index: 1, kind: input, shape index: {}]   ;;  %s7754_s2 = inlined_call_operand.hbm [shape: bf16[128,512], index: 2, kind: input, shape index: {}]   ;;  %s7755_s3 = inlined_call_operand.vmem [shape: f32[1,512], index: 3, kind: input, shape index: {}]   ;;  %s7756_s4 = inlined_call_operand.vmem [shape: bf16[8,8,128], index: 4, kind: output, shape index: {}]  }
   0x1   :  { %s17_s17 = sshll.u32 %s7753_s1, 4  ;;  %s18_s17 = int_to_ptr.hbm [resolvable:$true] %s17_s17 }
   0x2   :  { %10 = vsyncpa [#allocation8], 0  ;;  %s7478_s18 = smov [#allocation5]   ;;  %s30_s22 = sshll.u32 %s7754_s2, 4  ;;  %s31_s22 = int_to_ptr.hbm [resolvable:$true] %s30_s22 }
   0x3   :  { %s19_s19 = sshll.u32 %s7478_s18, 4  ;;  %s7479_s23 = smov 256   ;;  %s20_s19 = int_to_ptr.vmem [resolvable:$true] %s19_s19 }
   0x4   :  { %s7480_s24 = smov 16   ;;  %s7481_s25 = smov [#allocation7]  }
   0x5   :  { %25 = dma.hbm_to_vmem [thread:$0]  %s18_s17, 4096, %s20_s19, [#allocation6], %s7479_s23, %s7479_s23, %s7480_s24  }
   0x6   :  { %s32_s26 = sshll.u32 %s7481_s25, 4  ;;  %s33_s26 = int_to_ptr.vmem [resolvable:$true] %s32_s26 }
   0x7   :  { %38 = dma.hbm_to_vmem [thread:$0]  %s31_s22, 4096, %s33_s26, [#allocation8], %s7479_s23, %s7479_s23, %s7480_s24  }
   0x8   :  { %7474 = dma.done.wait [#allocation6], 4096  }
   0x9   :  { %7475 = vsyncadd [#allocation6], 4294963200 }
   0xa   :  { %7476 = dma.done.wait [#allocation8], 4096  }
   0xb   :  { %7477 = vsyncadd [#allocation8], 4294963200  ;;  %v4809_v0 = vld [vmem:[#allocation5 + $0xe0] sm:$0xf]  ;;  %v6811_v1 = vld [vmem:[#allocation5 + $0xec] sm:$0xf0] }
   0xc   :  { %v6809_v2 = vld [vmem:[#allocation5 + $0xe4] sm:$0xf]  ;;  %v4810_v3 = vor.u32 %v6811_v1, %v4809_v0  ;;  %v4811_v4 = vld [vmem:[#allocation5 + $0xf0] sm:$0xf0]  ;;  %v4817_v5 = vld [vmem:[#allocation5 + $0xe8] sm:$0xf] }
   0xd   :  { %v6812_v6 = vld [vmem:[#allocation5 + $0xf4] sm:$0xf0]  ;;  %v4814_v7 = vor.u32 %v6809_v2, %v4811_v4  ;;  %v6810_v9 = vld [vmem:[#allocation5 + $0xec] sm:$0xf]  ;;  %v4819_v10 = vld [vmem:[#allocation5 + $0xf8] sm:$0xf0] }
   0xe   :  { %v4818_v8 = vor.u32 %v6812_v6, %v4817_v5  ;;  %v4793_v11 = vld [vmem:[#allocation5 + $0xc0] sm:$0xf]  ;;  %258 = vmatpush.bf16.msra.mxu0 %v4810_v3  ;;  %v4822_v12 = vor.u32 %v6810_v9, %v4819_v10  ;;  %v6807_v13 = vld [vmem:[#allocation5 + $0xcc] sm:$0xf0]  ;;  %v6805_v14 = vld [vmem:[#allocation5 + $0xc4] sm:$0xf] }
   0xf   :  { %v4795_v15 = vld [vmem:[#allocation5 + $0xd0] sm:$0xf0]  ;;  %271 = vmatpush.bf16.msra.mxu1 %v4814_v7  ;;  %v4794_v16 = vor.u32 %v6807_v13, %v4793_v11  ;;  %v4801_v18 = vld [vmem:[#allocation5 + $0xc8] sm:$0xf]  ;;  %v6808_v19 = vld [vmem:[#allocation5 + $0xd4] sm:$0xf0] }
  0x10   :  { %284 = vmatpush.bf16.msra.mxu2 %v4818_v8  ;;  %v4798_v17 = vor.u32 %v6805_v14, %v4795_v15  ;;  %v6806_v20 = vld [vmem:[#allocation5 + $0xcc] sm:$0xf]  ;;  %297 = vmatpush.bf16.msra.mxu3 %v4822_v12  ;;  %v4802_v21 = vor.u32 %v6808_v19, %v4801_v18  ;;  %v4803_v22 = vld [vmem:[#allocation5 + $0xd8] sm:$0xf0]  ;;  %v4777_v23 = vld [vmem:[#allocation5 + $0xa0] sm:$0xf] }
  0x11   :  { %v6803_v24 = vld [vmem:[#allocation5 + $0xac] sm:$0xf0]  ;;  %v4806_v25 = vor.u32 %v6806_v20, %v4803_v22  ;;  %v6801_v26 = vld [vmem:[#allocation5 + $0xa4] sm:$0xf]  ;;  %v4779_v27 = vld [vmem:[#allocation5 + $0xb0] sm:$0xf0] }
  0x12   :  { %v4785_v28 = vld [vmem:[#allocation5 + $0xa8] sm:$0xf]  ;;  %259 = vmatpush.bf16.msra.mxu0 %v4794_v16  ;;  %v4778_v29 = vor.u32 %v6803_v24, %v4777_v23  ;;  %v6804_v30 = vld [vmem:[#allocation5 + $0xb4] sm:$0xf0]  ;;  %v6802_v31 = vld [vmem:[#allocation5 + $0xac] sm:$0xf]  ;;  %v4782_v33 = vor.u32 %v6801_v26, %v4779_v27 }
  0x13   :  { %v4787_v32 = vld [vmem:[#allocation5 + $0xb8] sm:$0xf0]  ;;  %272 = vmatpush.bf16.msra.mxu1 %v4798_v17  ;;  %v4786_v34 = vor.u32 %v6804_v30, %v4785_v28  ;;  %v4761_v35 = vld [vmem:[#allocation5 + $0x80] sm:$0xf]  ;;  %v6799_v36 = vld [vmem:[#allocation5 + $0x8c] sm:$0xf0] }
  0x14   :  { %285 = vmatpush.bf16.msra.mxu2 %v4802_v21  ;;  %v6797_v37 = vld [vmem:[#allocation5 + $0x84] sm:$0xf]  ;;  %298 = vmatpush.bf16.msra.mxu3 %v4806_v25  ;;  %v4790_v38 = vor.u32 %v6802_v31, %v4787_v32  ;;  %v4763_v39 = vld [vmem:[#allocation5 + $0x90] sm:$0xf0]  ;;  %v4769_v40 = vld [vmem:[#allocation5 + $0x88] sm:$0xf]  ;;  %v4762_v44 = vor.u32 %v6799_v36, %v4761_v35 }
  0x15   :  { %v6800_v41 = vld [vmem:[#allocation5 + $0x94] sm:$0xf0]  ;;  %v6798_v42 = vld [vmem:[#allocation5 + $0x8c] sm:$0xf]  ;;  %v4771_v43 = vld [vmem:[#allocation5 + $0x98] sm:$0xf0]  ;;  %v4766_v45 = vor.u32 %v6797_v37, %v4763_v39 }
  0x16   :  { %260 = vmatpush.bf16.msra.mxu0 %v4778_v29  ;;  %v4770_v46 = vor.u32 %v6800_v41, %v4769_v40  ;;  %v4745_v47 = vld [vmem:[#allocation5 + $0x60] sm:$0xf]  ;;  %v6795_v48 = vld [vmem:[#allocation5 + $0x6c] sm:$0xf0]  ;;  %v6793_v49 = vld [vmem:[#allocation5 + $0x64] sm:$0xf]  ;;  %v4774_v50 = vor.u32 %v6798_v42, %v4771_v43 }
  0x17   :  { %273 = vmatpush.bf16.msra.mxu1 %v4782_v33  ;;  %v4747_v51 = vld [vmem:[#allocation5 + $0x70] sm:$0xf0]  ;;  %v4753_v52 = vld [vmem:[#allocation5 + $0x68] sm:$0xf]  ;;  %v6796_v53 = vld [vmem:[#allocation5 + $0x74] sm:$0xf0]  ;;  %v4746_v56 = vor.u32 %v6795_v48, %v4745_v47 }
  0x18   :  { %286 = vmatpush.bf16.msra.mxu2 %v4786_v34  ;;  %299 = vmatpush.bf16.msra.mxu3 %v4790_v38  ;;  %v6794_v54 = vld [vmem:[#allocation5 + $0x6c] sm:$0xf]  ;;  %v4755_v55 = vld [vmem:[#allocation5 + $0x78] sm:$0xf0]  ;;  %v4750_v57 = vor.u32 %v6793_v49, %v4747_v51  ;;  %v4754_v58 = vor.u32 %v6796_v53, %v4753_v52  ;;  %v4729_v59 = vld [vmem:[#allocation5 + $0x40] sm:$0xf] }
  0x19   :  { %v6791_v60 = vld [vmem:[#allocation5 + $0x4c] sm:$0xf0]  ;;  %v6789_v61 = vld [vmem:[#allocation5 + $0x44] sm:$0xf]  ;;  %v4758_v62 = vor.u32 %v6794_v54, %v4755_v55  ;;  %v4731_v63 = vld [vmem:[#allocation5 + $0x50] sm:$0xf0] }
  0x1a   :  { %261 = vmatpush.bf16.msra.mxu0 %v4762_v44  ;;  %v4737_v0 = vld [vmem:[#allocation5 + $0x48] sm:$0xf]  ;;  %v6792_v1 = vld [vmem:[#allocation5 + $0x54] sm:$0xf0]  ;;  %v6790_v2 = vld [vmem:[#allocation5 + $0x4c] sm:$0xf]  ;;  %v4730_v4 = vor.u32 %v6791_v60, %v4729_v59  ;;  %v4734_v5 = vor.u32 %v6789_v61, %v4731_v63 }
  0x1b   :  { %274 = vmatpush.bf16.msra.mxu1 %v4766_v45  ;;  %v4739_v3 = vld [vmem:[#allocation5 + $0x58] sm:$0xf0]  ;;  %v4738_v6 = vor.u32 %v6792_v1, %v4737_v0  ;;  %v4713_v7 = vld [vmem:[#allocation5 + $0x20] sm:$0xf]  ;;  %v6787_v8 = vld [vmem:[#allocation5 + $0x2c] sm:$0xf0] }
  0x1c   :  { %287 = vmatpush.bf16.msra.mxu2 %v4770_v46  ;;  %300 = vmatpush.bf16.msra.mxu3 %v4774_v50  ;;  %v6785_v9 = vld [vmem:[#allocation5 + $0x24] sm:$0xf]  ;;  %v4742_v10 = vor.u32 %v6790_v2, %v4739_v3  ;;  %v4715_v11 = vld [vmem:[#allocation5 + $0x30] sm:$0xf0]  ;;  %v4721_v12 = vld [vmem:[#allocation5 + $0x28] sm:$0xf]  ;;  %v4714_v16 = vor.u32 %v6787_v8, %v4713_v7 }
  0x1d   :  { %v6788_v13 = vld [vmem:[#allocation5 + $0x34] sm:$0xf0]  ;;  %v6786_v14 = vld [vmem:[#allocation5 + $0x2c] sm:$0xf]  ;;  %v4723_v15 = vld [vmem:[#allocation5 + $0x38] sm:$0xf0]  ;;  %v4718_v19 = vor.u32 %v6785_v9, %v4715_v11 }
  0x1e   :  { %262 = vmatpush.bf16.msra.mxu0 %v4746_v56  ;;  %v4697_v17 = vld [vmem:[#allocation5] sm:$0xf]  ;;  %v6783_v18 = vld [vmem:[#allocation5 + $0xc] sm:$0xf0]  ;;  %v4722_v20 = vor.u32 %v6788_v13, %v4721_v12  ;;  %v6781_v21 = vld [vmem:[#allocation5 + $0x4] sm:$0xf]  ;;  %v4726_v24 = vor.u32 %v6786_v14, %v4723_v15 }
  0x1f   :  { %275 = vmatpush.bf16.msra.mxu1 %v4750_v57  ;;  %v4699_v22 = vld [vmem:[#allocation5 + $0x10] sm:$0xf0]  ;;  %v4705_v23 = vld [vmem:[#allocation5 + $0x8] sm:$0xf]  ;;  %v6784_v25 = vld [vmem:[#allocation5 + $0x14] sm:$0xf0]  ;;  %v4698_v31 = vor.u32 %v6783_v18, %v4697_v17 }
  0x20   :  { %288 = vmatpush.bf16.msra.mxu2 %v4754_v58  ;;  %301 = vmatpush.bf16.msra.mxu3 %v4758_v62  ;;  %v6782_v26 = vld [vmem:[#allocation5 + $0xc] sm:$0xf]  ;;  %v4707_v27 = vld [vmem:[#allocation5 + $0x18] sm:$0xf0]  ;;  %v4938_v28 = vld [vmem:[#allocation5 + $0xe0] sm:$0xf]  ;;  %v4702_v35 = vor.u32 %v6781_v21, %v4699_v22  ;;  %v4706_v36 = vor.u32 %v6784_v25, %v4705_v23 }
  0x21   :  { %v6843_v29 = vld [vmem:[#allocation5 + $0xec] sm:$0xf0]  ;;  %v6841_v30 = vld [vmem:[#allocation5 + $0xe4] sm:$0xf]  ;;  %v4940_v32 = vld [vmem:[#allocation5 + $0xf0] sm:$0xf0]  ;;  %v4710_v39 = vor.u32 %v6782_v26, %v4707_v27 }
  0x22   :  { %263 = vmatpush.bf16.msra.mxu0 %v4730_v4  ;;  %v4946_v33 = vld [vmem:[#allocation5 + $0xe8] sm:$0xf]  ;;  %v6844_v34 = vld [vmem:[#allocation5 + $0xf4] sm:$0xf0]  ;;  %v6842_v37 = vld [vmem:[#allocation5 + $0xec] sm:$0xf]  ;;  %v4939_v40 = vor.u32 %v6843_v29, %v4938_v28  ;;  %v4943_v41 = vor.u32 %v6841_v30, %v4940_v32 }
  0x23   :  { %276 = vmatpush.bf16.msra.mxu1 %v4734_v5  ;;  %v4948_v38 = vld [vmem:[#allocation5 + $0xf8] sm:$0xf0]  ;;  %v4947_v42 = vor.u32 %v6844_v34, %v4946_v33  ;;  %v4922_v43 = vld [vmem:[#allocation5 + $0xc0] sm:$0xf]  ;;  %v6839_v44 = vld [vmem:[#allocation5 + $0xcc] sm:$0xf0] }
  0x24   :  { %289 = vmatpush.bf16.msra.mxu2 %v4738_v6  ;;  %302 = vmatpush.bf16.msra.mxu3 %v4742_v10  ;;  %v6837_v45 = vld [vmem:[#allocation5 + $0xc4] sm:$0xf]  ;;  %v4951_v46 = vor.u32 %v6842_v37, %v4948_v38  ;;  %v4924_v47 = vld [vmem:[#allocation5 + $0xd0] sm:$0xf0]  ;;  %v4930_v48 = vld [vmem:[#allocation5 + $0xc8] sm:$0xf]  ;;  %v4923_v52 = vor.u32 %v6839_v44, %v4922_v43 }
  0x25   :  { %v6840_v49 = vld [vmem:[#allocation5 + $0xd4] sm:$0xf0]  ;;  %v6838_v50 = vld [vmem:[#allocation5 + $0xcc] sm:$0xf]  ;;  %v4932_v51 = vld [vmem:[#allocation5 + $0xd8] sm:$0xf0]  ;;  %v4927_v53 = vor.u32 %v6837_v45, %v4924_v47 }
  0x26   :  { %264 = vmatpush.bf16.msra.mxu0 %v4714_v16  ;;  %v4931_v54 = vor.u32 %v6840_v49, %v4930_v48  ;;  %v4906_v55 = vld [vmem:[#allocation5 + $0xa0] sm:$0xf]  ;;  %v6835_v56 = vld [vmem:[#allocation5 + $0xac] sm:$0xf0]  ;;  %v6833_v57 = vld [vmem:[#allocation5 + $0xa4] sm:$0xf]  ;;  %v4935_v58 = vor.u32 %v6838_v50, %v4932_v51 }
  0x27   :  { %277 = vmatpush.bf16.msra.mxu1 %v4718_v19  ;;  %v4908_v59 = vld [vmem:[#allocation5 + $0xb0] sm:$0xf0]  ;;  %v4914_v60 = vld [vmem:[#allocation5 + $0xa8] sm:$0xf]  ;;  %v6836_v61 = vld [vmem:[#allocation5 + $0xb4] sm:$0xf0]  ;;  %v4907_v0 = vor.u32 %v6835_v56, %v4906_v55 }
  0x28   :  { %290 = vmatpush.bf16.msra.mxu2 %v4722_v20  ;;  %303 = vmatpush.bf16.msra.mxu3 %v4726_v24  ;;  %v6834_v62 = vld [vmem:[#allocation5 + $0xac] sm:$0xf]  ;;  %v4916_v63 = vld [vmem:[#allocation5 + $0xb8] sm:$0xf0]  ;;  %v55_v1 = vld [vmem:[%s7752_s0] sm:$0xf]  ;;  %v4911_v2 = vor.u32 %v6833_v57, %v4908_v59  ;;  %v4915_v3 = vor.u32 %v6836_v61, %v4914_v60 }
  0x29   :  { %v4890_v4 = vld [vmem:[#allocation5 + $0x80] sm:$0xf]  ;;  %v6831_v5 = vld [vmem:[#allocation5 + $0x8c] sm:$0xf0]  ;;  %v6829_v6 = vld [vmem:[#allocation5 + $0x84] sm:$0xf]  ;;  %v4919_v7 = vor.u32 %v6834_v62, %v4916_v63 }
  0x2a   :  { %265 = vmatpush.bf16.msra.mxu0 %v4698_v31  ;;  %v4892_v8 = vld [vmem:[#allocation5 + $0x90] sm:$0xf0]  ;;  %v4898_v9 = vld [vmem:[#allocation5 + $0x88] sm:$0xf]  ;;  %v6832_v10 = vld [vmem:[#allocation5 + $0x94] sm:$0xf0]  ;;  %v4891_v13 = vor.u32 %v6831_v5, %v4890_v4 }
  0x2b   :  { %278 = vmatpush.bf16.msra.mxu1 %v4702_v35  ;;  %v6830_v11 = vld [vmem:[#allocation5 + $0x8c] sm:$0xf]  ;;  %v4900_v12 = vld [vmem:[#allocation5 + $0x98] sm:$0xf0]  ;;  %v4895_v14 = vor.u32 %v6829_v6, %v4892_v8  ;;  %v4899_v15 = vor.u32 %v6832_v10, %v4898_v9  ;;  %v4874_v16 = vld [vmem:[#allocation5 + $0x60] sm:$0xf] }
  0x2c   :  { %291 = vmatpush.bf16.msra.mxu2 %v4706_v36  ;;  %304 = vmatpush.bf16.msra.mxu3 %v4710_v39  ;;  %v6827_v17 = vld [vmem:[#allocation5 + $0x6c] sm:$0xf0]  ;;  %v6825_v18 = vld [vmem:[#allocation5 + $0x64] sm:$0xf]  ;;  %v4903_v19 = vor.u32 %v6830_v11, %v4900_v12  ;;  %v4876_v20 = vld [vmem:[#allocation5 + $0x70] sm:$0xf0] }
  0x2d   :  { %266 = vmatmul.bf16.vlgmr.msra.gmra.mxu0 %v55_v1  ;;  %v4882_v21 = vld [vmem:[#allocation5 + $0x68] sm:$0xf]  ;;  %v6828_v22 = vld [vmem:[#allocation5 + $0x74] sm:$0xf0]  ;;  %v6826_v23 = vld [vmem:[#allocation5 + $0x6c] sm:$0xf]  ;;  %v4875_v25 = vor.u32 %v6827_v17, %v4874_v16  ;;  %v4879_v26 = vor.u32 %v6825_v18, %v4876_v20 }
  0x2e   :  { %518 = vmatpush.bf16.msrb.mxu0 %v4939_v40  ;;  %279 = vmatmul.bf16.vlgmr.msra.gmra.mxu1 %v55_v1  ;;  %v4884_v24 = vld [vmem:[#allocation5 + $0x78] sm:$0xf0]  ;;  %v4883_v27 = vor.u32 %v6828_v22, %v4882_v21  ;;  %v4858_v28 = vld [vmem:[#allocation5 + $0x40] sm:$0xf]  ;;  %v6823_v29 = vld [vmem:[#allocation5 + $0x4c] sm:$0xf0] }
  0x2f   :  { %531 = vmatpush.bf16.msrb.mxu1 %v4943_v41  ;;  %305 = vmatmul.bf16.vlgmr.msra.gmra.mxu3 %v55_v1  ;;  %v6821_v30 = vld [vmem:[#allocation5 + $0x44] sm:$0xf]  ;;  %v4887_v31 = vor.u32 %v6826_v23, %v4884_v24  ;;  %v4860_v32 = vld [vmem:[#allocation5 + $0x50] sm:$0xf0]  ;;  %v4866_v33 = vld [vmem:[#allocation5 + $0x48] sm:$0xf]  ;;  %v4859_v37 = vor.u32 %v6823_v29, %v4858_v28 }
  0x30   :  { %544 = vmatpush.bf16.msrb.mxu2 %v4947_v42  ;;  %557 = vmatpush.bf16.msrb.mxu3 %v4951_v46  ;;  %v6824_v34 = vld [vmem:[#allocation5 + $0x54] sm:$0xf0]  ;;  %v6822_v35 = vld [vmem:[#allocation5 + $0x4c] sm:$0xf]  ;;  %v4868_v36 = vld [vmem:[#allocation5 + $0x58] sm:$0xf0]  ;;  %v4863_v38 = vor.u32 %v6821_v30, %v4860_v32 }
  0x31   :  { %292 = vmatmul.bf16.vlgmr.msra.gmra.mxu2 %v55_v1  ;;  %v4867_v39 = vor.u32 %v6824_v34, %v4866_v33  ;;  %v4842_v40 = vld [vmem:[#allocation5 + $0x20] sm:$0xf]  ;;  %v6819_v41 = vld [vmem:[#allocation5 + $0x2c] sm:$0xf0]  ;;  %v6817_v42 = vld [vmem:[#allocation5 + $0x24] sm:$0xf]  ;;  %v4871_v43 = vor.u32 %v6822_v35, %v4868_v36 }
  0x32   :  { %519 = vmatpush.bf16.msrb.mxu0 %v4923_v52  ;;  %v4844_v44 = vld [vmem:[#allocation5 + $0x30] sm:$0xf0]  ;;  %v4850_v45 = vld [vmem:[#allocation5 + $0x28] sm:$0xf]  ;;  %v6820_v46 = vld [vmem:[#allocation5 + $0x34] sm:$0xf0]  ;;  %v4843_v49 = vor.u32 %v6819_v41, %v4842_v40 }
  0x33   :  { %532 = vmatpush.bf16.msrb.mxu1 %v4927_v53  ;;  %v6818_v47 = vld [vmem:[#allocation5 + $0x2c] sm:$0xf]  ;;  %v4852_v48 = vld [vmem:[#allocation5 + $0x38] sm:$0xf0]  ;;  %v4826_v50 = vld [vmem:[#allocation5] sm:$0xf]  ;;  %v4847_v52 = vor.u32 %v6817_v42, %v4844_v44  ;;  %v4851_v53 = vor.u32 %v6820_v46, %v4850_v45 }
  0x34   :  { %545 = vmatpush.bf16.msrb.mxu2 %v4931_v54  ;;  %558 = vmatpush.bf16.msrb.mxu3 %v4935_v58  ;;  %v6815_v51 = vld [vmem:[#allocation5 + $0xc] sm:$0xf0]  ;;  %v6813_v54 = vld [vmem:[#allocation5 + $0x4] sm:$0xf]  ;;  %v4828_v55 = vld [vmem:[#allocation5 + $0x10] sm:$0xf0]  ;;  %v4855_v57 = vor.u32 %v6818_v47, %v4852_v48 }
  0x35   :  { %v4834_v56 = vld [vmem:[#allocation5 + $0x8] sm:$0xf]  ;;  %v6816_v58 = vld [vmem:[#allocation5 + $0x14] sm:$0xf0]  ;;  %v6814_v59 = vld [vmem:[#allocation5 + $0xc] sm:$0xf]  ;;  %v4831_v4 = vor.u32 %v6813_v54, %v4828_v55 }
  0x36   :  { %520 = vmatpush.bf16.msrb.mxu0 %v4907_v0  ;;  %v4836_v60 = vld [vmem:[#allocation5 + $0x18] sm:$0xf0]  ;;  %v5067_v61 = vld [vmem:[#allocation5 + $0xe0] sm:$0xf]  ;;  %v6875_v62 = vld [vmem:[#allocation5 + $0xec] sm:$0xf0]  ;;  %v4827_v0 = vor.u32 %v6815_v51, %v4826_v50  ;;  %v4835_v5 = vor.u32 %v6816_v58, %v4834_v56 }
  0x37   :  { %533 = vmatpush.bf16.msrb.mxu1 %v4911_v2  ;;  %v6873_v63 = vld [vmem:[#allocation5 + $0xe4] sm:$0xf]  ;;  %v5069_v1 = vld [vmem:[#allocation5 + $0xf0] sm:$0xf0]  ;;  %v5075_v2 = vld [vmem:[#allocation5 + $0xe8] sm:$0xf]  ;;  %v4839_v8 = vor.u32 %v6814_v59, %v4836_v60  ;;  %v5068_v9 = vor.u32 %v6875_v62, %v5067_v61 }
  0x38   :  { %546 = vmatpush.bf16.msrb.mxu2 %v4915_v3  ;;  %559 = vmatpush.bf16.msrb.mxu3 %v4919_v7  ;;  %v6876_v3 = vld [vmem:[#allocation5 + $0xf4] sm:$0xf0]  ;;  %v6874_v6 = vld [vmem:[#allocation5 + $0xec] sm:$0xf]  ;;  %v5077_v7 = vld [vmem:[#allocation5 + $0xf8] sm:$0xf0]  ;;  %v5072_v10 = vor.u32 %v6873_v63, %v5069_v1 }
  0x39   :  { %v5076_v11 = vor.u32 %v6876_v3, %v5075_v2  ;;  %v5051_v12 = vld [vmem:[#allocation5 + $0xc0] sm:$0xf]  ;;  %v5053_v16 = vld [vmem:[#allocation5 + $0xd0] sm:$0xf0]  ;;  %v5059_v17 = vld [vmem:[#allocation5 + $0xc8] sm:$0xf] }
  0x3a   :  { %521 = vmatpush.bf16.msrb.mxu0 %v4891_v13  ;;  %v6871_v13 = vld [vmem:[#allocation5 + $0xcc] sm:$0xf0]  ;;  %v6872_v18 = vld [vmem:[#allocation5 + $0xd4] sm:$0xf0]  ;;  %v5061_v20 = vld [vmem:[#allocation5 + $0xd8] sm:$0xf0] }
  0x3b   :  { %534 = vmatpush.bf16.msrb.mxu1 %v4895_v14  ;;  %v6869_v14 = vld [vmem:[#allocation5 + $0xc4] sm:$0xf]  ;;  %v5052_v22 = vor.u32 %v6871_v13, %v5051_v12  ;;  %v5060_v24 = vor.u32 %v6872_v18, %v5059_v17  ;;  %v5037_v29 = vld [vmem:[#allocation5 + $0xb0] sm:$0xf0]  ;;  %v5043_v30 = vld [vmem:[#allocation5 + $0xa8] sm:$0xf] }
  0x3c   :  { %547 = vmatpush.bf16.msrb.mxu2 %v4899_v15  ;;  %560 = vmatpush.bf16.msrb.mxu3 %v4903_v19  ;;  %v5080_v15 = vor.u32 %v6874_v6, %v5077_v7  ;;  %v6870_v19 = vld [vmem:[#allocation5 + $0xcc] sm:$0xf]  ;;  %v4823_v21 = vld [vmem:[%s7752_s0 + $0x4] sm:$0xf]  ;;  %v5056_v23 = vor.u32 %v6869_v14, %v5053_v16  ;;  %v5045_v33 = vld [vmem:[#allocation5 + $0xb8] sm:$0xf0] }
  0x3d   :  { %v5064_v28 = vor.u32 %v6870_v19, %v5061_v20  ;;  %v6866_v32 = vld [vmem:[#allocation5 + $0xac] sm:$0xf]  ;;  %v5021_v41 = vld [vmem:[#allocation5 + $0x90] sm:$0xf0]  ;;  %v5027_v42 = vld [vmem:[#allocation5 + $0x88] sm:$0xf] }
  0x3e   :  { %522 = vmatpush.bf16.msrb.mxu0 %v4875_v25  ;;  %v5035_v25 = vld [vmem:[#allocation5 + $0xa0] sm:$0xf]  ;;  %v5048_v40 = vor.u32 %v6866_v32, %v5045_v33  ;;  %v6862_v44 = vld [vmem:[#allocation5 + $0x8c] sm:$0xf]  ;;  %v5029_v45 = vld [vmem:[#allocation5 + $0x98] sm:$0xf0] }
  0x3f   :  { %535 = vmatpush.bf16.msrb.mxu1 %v4879_v26  ;;  %v6867_v26 = vld [vmem:[#allocation5 + $0xac] sm:$0xf0]  ;;  %v6857_v51 = vld [vmem:[#allocation5 + $0x64] sm:$0xf]  ;;  %v5011_v54 = vld [vmem:[#allocation5 + $0x68] sm:$0xf] }
  0x40   :  { %548 = vmatpush.bf16.msrb.mxu2 %v4883_v27  ;;  %561 = vmatpush.bf16.msrb.mxu3 %v4887_v31  ;;  %v6865_v27 = vld [vmem:[#allocation5 + $0xa4] sm:$0xf]  ;;  %v6868_v31 = vld [vmem:[#allocation5 + $0xb4] sm:$0xf0]  ;;  %v5036_v34 = vor.u32 %v6867_v26, %v5035_v25  ;;  %v6859_v50 = vld [vmem:[#allocation5 + $0x6c] sm:$0xf0] }
  0x41   :  { %v5040_v35 = vor.u32 %v6865_v27, %v5037_v29  ;;  %v5044_v36 = vor.u32 %v6868_v31, %v5043_v30  ;;  %v6860_v55 = vld [vmem:[#allocation5 + $0x74] sm:$0xf0]  ;;  %v6858_v56 = vld [vmem:[#allocation5 + $0x6c] sm:$0xf]  ;;  %v4987_v61 = vld [vmem:[#allocation5 + $0x40] sm:$0xf] }
  0x42   :  { %523 = vmatpush.bf16.msrb.mxu0 %v4859_v37  ;;  %v5019_v37 = vld [vmem:[#allocation5 + $0x80] sm:$0xf]  ;;  %v5012_v60 = vor.u32 %v6860_v55, %v5011_v54  ;;  %v6855_v62 = vld [vmem:[#allocation5 + $0x4c] sm:$0xf0]  ;;  %v6853_v63 = vld [vmem:[#allocation5 + $0x44] sm:$0xf] }
  0x43   :  { %536 = vmatpush.bf16.msrb.mxu1 %v4863_v38  ;;  %v6863_v38 = vld [vmem:[#allocation5 + $0x8c] sm:$0xf0]  ;;  %v4989_v1 = vld [vmem:[#allocation5 + $0x50] sm:$0xf0]  ;;  %v4995_v2 = vld [vmem:[#allocation5 + $0x48] sm:$0xf]  ;;  %v4988_v6 = vor.u32 %v6855_v62, %v4987_v61 }
  0x44   :  { %549 = vmatpush.bf16.msrb.mxu2 %v4867_v39  ;;  %562 = vmatpush.bf16.msrb.mxu3 %v4871_v43  ;;  %v6861_v39 = vld [vmem:[#allocation5 + $0x84] sm:$0xf]  ;;  %v6864_v43 = vld [vmem:[#allocation5 + $0x94] sm:$0xf0]  ;;  %v5020_v46 = vor.u32 %v6863_v38, %v5019_v37  ;;  %v4992_v7 = vor.u32 %v6853_v63, %v4989_v1  ;;  %v4973_v13 = vld [vmem:[#allocation5 + $0x30] sm:$0xf0] }
  0x45   :  { %v5024_v47 = vor.u32 %v6861_v39, %v5021_v41  ;;  %v5028_v48 = vor.u32 %v6864_v43, %v5027_v42  ;;  %v6856_v3 = vld [vmem:[#allocation5 + $0x54] sm:$0xf0]  ;;  %v4979_v14 = vld [vmem:[#allocation5 + $0x28] sm:$0xf]  ;;  %v6850_v16 = vld [vmem:[#allocation5 + $0x2c] sm:$0xf] }
  0x46   :  { %524 = vmatpush.bf16.msrb.mxu0 %v4843_v49  ;;  %v5003_v49 = vld [vmem:[#allocation5 + $0x60] sm:$0xf]  ;;  %v4981_v17 = vld [vmem:[#allocation5 + $0x38] sm:$0xf0]  ;;  %v6847_v20 = vld [vmem:[#allocation5 + $0xc] sm:$0xf0] }
  0x47   :  { %537 = vmatpush.bf16.msrb.mxu1 %v4847_v52  ;;  %v5032_v52 = vor.u32 %v6862_v44, %v5029_v45  ;;  %v5004_v58 = vor.u32 %v6859_v50, %v5003_v49  ;;  %v4955_v19 = vld [vmem:[#allocation5] sm:$0xf]  ;;  %v4963_v25 = vld [vmem:[#allocation5 + $0x8] sm:$0xf]  ;;  %v4984_v26 = vor.u32 %v6850_v16, %v4981_v17  ;;  %v6848_v27 = vld [vmem:[#allocation5 + $0x14] sm:$0xf0] }
  0x48   :  { %550 = vmatpush.bf16.msrb.mxu2 %v4851_v53  ;;  %563 = vmatpush.bf16.msrb.mxu3 %v4855_v57  ;;  %v5005_v53 = vld [vmem:[#allocation5 + $0x70] sm:$0xf0]  ;;  %v5013_v57 = vld [vmem:[#allocation5 + $0x78] sm:$0xf0]  ;;  %v5196_v30 = vld [vmem:[#allocation5 + $0xe0] sm:$0xf]  ;;  %v4956_v33 = vor.u32 %v6847_v20, %v4955_v19  ;;  %v4964_v38 = vor.u32 %v6848_v27, %v4963_v25 }
  0x49   :  { %v5008_v59 = vor.u32 %v6857_v51, %v5005_v53  ;;  %v4965_v29 = vld [vmem:[#allocation5 + $0x18] sm:$0xf0]  ;;  %v6907_v31 = vld [vmem:[#allocation5 + $0xec] sm:$0xf0]  ;;  %v6905_v32 = vld [vmem:[#allocation5 + $0xe4] sm:$0xf] }
  0x4a   :  { %525 = vmatpush.bf16.msrb.mxu0 %v4827_v0  ;;  %v5016_v0 = vor.u32 %v6858_v56, %v5013_v57  ;;  %v6906_v39 = vld [vmem:[#allocation5 + $0xec] sm:$0xf]  ;;  %v5197_v42 = vor.u32 %v6907_v31, %v5196_v30  ;;  %v5180_v45 = vld [vmem:[#allocation5 + $0xc0] sm:$0xf]  ;;  %v5182_v49 = vld [vmem:[#allocation5 + $0xd0] sm:$0xf0] }
  0x4b   :  { %538 = vmatpush.bf16.msrb.mxu1 %v4831_v4  ;;  %v6854_v4 = vld [vmem:[#allocation5 + $0x4c] sm:$0xf]  ;;  %v5188_v50 = vld [vmem:[#allocation5 + $0xc8] sm:$0xf]  ;;  %v6904_v51 = vld [vmem:[#allocation5 + $0xd4] sm:$0xf0] }
  0x4c   :  { %551 = vmatpush.bf16.msrb.mxu2 %v4835_v5  ;;  %564 = vmatpush.bf16.msrb.mxu3 %v4839_v8  ;;  %v4997_v5 = vld [vmem:[#allocation5 + $0x58] sm:$0xf0]  ;;  %v4996_v8 = vor.u32 %v6856_v3, %v4995_v2  ;;  %v4952_v54 = vld [vmem:[%s7752_s0 + $0x8] sm:$0xf]  ;;  %v5189_v57 = vor.u32 %v6904_v51, %v5188_v50  ;;  %v5166_v62 = vld [vmem:[#allocation5 + $0xb0] sm:$0xf0] }
  0x4d   :  { %526 = vmatmul.bf16.vlgmr.msrb.gmra.mxu0 %v4823_v21  ;;  %v5000_v12 = vor.u32 %v6854_v4, %v4997_v5  ;;  %v5190_v53 = vld [vmem:[#allocation5 + $0xd8] sm:$0xf0]  ;;  %v5172_v63 = vld [vmem:[#allocation5 + $0xa8] sm:$0xf]  ;;  %v6898_v1 = vld [vmem:[#allocation5 + $0xac] sm:$0xf] }
  0x4e   :  { %779 = vmatpush.bf16.msra.mxu0 %v5068_v9  ;;  %539 = vmatmul.bf16.vlgmr.msrb.gmra.mxu1 %v4823_v21  ;;  %v4971_v9 = vld [vmem:[#allocation5 + $0x20] sm:$0xf]  ;;  %v5174_v2 = vld [vmem:[#allocation5 + $0xb8] sm:$0xf0]  ;;  %v6891_v19 = vld [vmem:[#allocation5 + $0x6c] sm:$0xf0] }
  0x4f   :  { %792 = vmatpush.bf16.msra.mxu1 %v5072_v10  ;;  %565 = vmatmul.bf16.vlgmr.msrb.gmra.mxu3 %v4823_v21  ;;  %v6851_v10 = vld [vmem:[#allocation5 + $0x2c] sm:$0xf0]  ;;  %v6889_v20 = vld [vmem:[#allocation5 + $0x64] sm:$0xf]  ;;  %v6890_v25 = vld [vmem:[#allocation5 + $0x6c] sm:$0xf] }
  0x50   :  { %805 = vmatpush.bf16.msra.mxu2 %v5076_v11  ;;  %818 = vmatpush.bf16.msra.mxu3 %v5080_v15  ;;  %v6849_v11 = vld [vmem:[#allocation5 + $0x24] sm:$0xf]  ;;  %v6852_v15 = vld [vmem:[#allocation5 + $0x34] sm:$0xf0]  ;;  %v4972_v18 = vor.u32 %v6851_v10, %v4971_v9  ;;  %v5177_v9 = vor.u32 %v6898_v1, %v5174_v2  ;;  %v5150_v10 = vld [vmem:[#allocation5 + $0x90] sm:$0xf0] }
  0x51   :  { %552 = vmatmul.bf16.vlgmr.msrb.gmra.mxu2 %v4823_v21  ;;  %v4976_v21 = vor.u32 %v6849_v11, %v4973_v13  ;;  %v5156_v11 = vld [vmem:[#allocation5 + $0x88] sm:$0xf]  ;;  %v6894_v13 = vld [vmem:[#allocation5 + $0x8c] sm:$0xf]  ;;  %v5116_v30 = vld [vmem:[#allocation5 + $0x40] sm:$0xf] }
  0x52   :  { %780 = vmatpush.bf16.msra.mxu0 %v5052_v22  ;;  %v4980_v22 = vor.u32 %v6852_v15, %v4979_v14  ;;  %v5158_v14 = vld [vmem:[#allocation5 + $0x98] sm:$0xf0]  ;;  %v6887_v31 = vld [vmem:[#allocation5 + $0x4c] sm:$0xf0]  ;;  %v6937_v1 = vld [vmem:[#allocation5 + $0xe4] sm:$0xf] }
  0x53   :  { %793 = vmatpush.bf16.msra.mxu1 %v5056_v23  ;;  %v6845_v23 = vld [vmem:[#allocation5 + $0x4] sm:$0xf]  ;;  %v5110_v50 = vld [vmem:[#allocation5 + $0x38] sm:$0xf0] }
  0x54   :  { %806 = vmatpush.bf16.msra.mxu2 %v5060_v24  ;;  %819 = vmatpush.bf16.msra.mxu3 %v5064_v28  ;;  %v4957_v24 = vld [vmem:[#allocation5 + $0x10] sm:$0xf0]  ;;  %v6846_v28 = vld [vmem:[#allocation5 + $0xc] sm:$0xf] }
  0x55   :  { %v4960_v37 = vor.u32 %v6845_v23, %v4957_v24  ;;  %v4968_v41 = vor.u32 %v6846_v28, %v4965_v29  ;;  %v5140_v23 = vld [vmem:[#allocation5 + $0x68] sm:$0xf]  ;;  %v6892_v24 = vld [vmem:[#allocation5 + $0x74] sm:$0xf0] }
  0x56   :  { %781 = vmatpush.bf16.msra.mxu0 %v5036_v34  ;;  %v5198_v34 = vld [vmem:[#allocation5 + $0xf0] sm:$0xf0]  ;;  %v5141_v29 = vor.u32 %v6892_v24, %v5140_v23  ;;  %v5081_v23 = vld [vmem:[%s7752_s0 + $0xc] sm:$0xf] }
  0x57   :  { %794 = vmatpush.bf16.msra.mxu1 %v5040_v35  ;;  %v5204_v35 = vld [vmem:[#allocation5 + $0xe8] sm:$0xf]  ;;  %v5201_v43 = vor.u32 %v6905_v32, %v5198_v34  ;;  %v6885_v32 = vld [vmem:[#allocation5 + $0x44] sm:$0xf]  ;;  %v5118_v34 = vld [vmem:[#allocation5 + $0x50] sm:$0xf0] }
  0x58   :  { %807 = vmatpush.bf16.msra.mxu2 %v5044_v36  ;;  %820 = vmatpush.bf16.msra.mxu3 %v5048_v40  ;;  %v6908_v36 = vld [vmem:[#allocation5 + $0xf4] sm:$0xf0]  ;;  %v5206_v40 = vld [vmem:[#allocation5 + $0xf8] sm:$0xf0] }
  0x59   :  { %v5205_v44 = vor.u32 %v6908_v36, %v5204_v35  ;;  %v5124_v35 = vld [vmem:[#allocation5 + $0x48] sm:$0xf]  ;;  %v6888_v36 = vld [vmem:[#allocation5 + $0x54] sm:$0xf0] }
  0x5a   :  { %782 = vmatpush.bf16.msra.mxu0 %v5020_v46  ;;  %v6903_v46 = vld [vmem:[#allocation5 + $0xcc] sm:$0xf0] }
  0x5b   :  { %795 = vmatpush.bf16.msra.mxu1 %v5024_v47  ;;  %v6901_v47 = vld [vmem:[#allocation5 + $0xc4] sm:$0xf]  ;;  %v5181_v55 = vor.u32 %v6903_v46, %v5180_v45  ;;  %v5102_v46 = vld [vmem:[#allocation5 + $0x30] sm:$0xf0] }
  0x5c   :  { %808 = vmatpush.bf16.msra.mxu2 %v5028_v48  ;;  %821 = vmatpush.bf16.msra.mxu3 %v5032_v52  ;;  %v5209_v48 = vor.u32 %v6906_v39, %v5206_v40  ;;  %v6902_v52 = vld [vmem:[#allocation5 + $0xcc] sm:$0xf]  ;;  %v5185_v56 = vor.u32 %v6901_v47, %v5182_v49  ;;  %v5117_v39 = vor.u32 %v6887_v31, %v5116_v30  ;;  %v5108_v47 = vld [vmem:[#allocation5 + $0x28] sm:$0xf]  ;;  %v5295_v31 = vld [vmem:[#allocation5 + $0xb0] sm:$0xf0] }
  0x5d   :  { %v5193_v61 = vor.u32 %v6902_v52, %v5190_v53  ;;  %v5121_v40 = vor.u32 %v6885_v32, %v5118_v34  ;;  %v6882_v49 = vld [vmem:[#allocation5 + $0x2c] sm:$0xf]  ;;  %v5084_v52 = vld [vmem:[#allocation5] sm:$0xf]  ;;  %v6879_v53 = vld [vmem:[#allocation5 + $0xc] sm:$0xf0] }
  0x5e   :  { %783 = vmatpush.bf16.msra.mxu0 %v5004_v58  ;;  %v5164_v58 = vld [vmem:[#allocation5 + $0xa0] sm:$0xf]  ;;  %v5085_v2 = vor.u32 %v6879_v53, %v5084_v52  ;;  %v5301_v32 = vld [vmem:[#allocation5 + $0xa8] sm:$0xf]  ;;  %v6930_v34 = vld [vmem:[#allocation5 + $0xac] sm:$0xf] }
  0x5f   :  { %796 = vmatpush.bf16.msra.mxu1 %v5008_v59  ;;  %v6899_v59 = vld [vmem:[#allocation5 + $0xac] sm:$0xf0]  ;;  %v6921_v53 = vld [vmem:[#allocation5 + $0x64] sm:$0xf] }
  0x60   :  { %809 = vmatpush.bf16.msra.mxu2 %v5012_v60  ;;  %822 = vmatpush.bf16.msra.mxu3 %v5016_v0  ;;  %v6897_v60 = vld [vmem:[#allocation5 + $0xa4] sm:$0xf]  ;;  %v6900_v0 = vld [vmem:[#allocation5 + $0xb4] sm:$0xf0]  ;;  %v5165_v3 = vor.u32 %v6899_v59, %v5164_v58  ;;  %v5092_v58 = vld [vmem:[#allocation5 + $0x8] sm:$0xf]  ;;  %v5113_v59 = vor.u32 %v6882_v49, %v5110_v50 }
  0x61   :  { %v5169_v4 = vor.u32 %v6897_v60, %v5166_v62  ;;  %v5173_v5 = vor.u32 %v6900_v0, %v5172_v63  ;;  %v6880_v60 = vld [vmem:[#allocation5 + $0x14] sm:$0xf0]  ;;  %v5094_v62 = vld [vmem:[#allocation5 + $0x18] sm:$0xf0]  ;;  %v5325_v63 = vld [vmem:[#allocation5 + $0xe0] sm:$0xf] }
  0x62   :  { %784 = vmatpush.bf16.msra.mxu0 %v4988_v6  ;;  %v5148_v6 = vld [vmem:[#allocation5 + $0x80] sm:$0xf]  ;;  %v6939_v0 = vld [vmem:[#allocation5 + $0xec] sm:$0xf0] }
  0x63   :  { %797 = vmatpush.bf16.msra.mxu1 %v4992_v7  ;;  %v6895_v7 = vld [vmem:[#allocation5 + $0x8c] sm:$0xf0] }
  0x64   :  { %810 = vmatpush.bf16.msra.mxu2 %v4996_v8  ;;  %823 = vmatpush.bf16.msra.mxu3 %v5000_v12  ;;  %v6893_v8 = vld [vmem:[#allocation5 + $0x84] sm:$0xf]  ;;  %v6896_v12 = vld [vmem:[#allocation5 + $0x94] sm:$0xf0]  ;;  %v5149_v15 = vor.u32 %v6895_v7, %v5148_v6  ;;  %v5093_v7 = vor.u32 %v6880_v60, %v5092_v58  ;;  %v6923_v52 = vld [vmem:[#allocation5 + $0x6c] sm:$0xf0] }
  0x65   :  { %v5153_v16 = vor.u32 %v6893_v8, %v5150_v10  ;;  %v5157_v17 = vor.u32 %v6896_v12, %v5156_v11  ;;  %v6938_v8 = vld [vmem:[#allocation5 + $0xec] sm:$0xf]  ;;  %v5326_v11 = vor.u32 %v6939_v0, %v5325_v63  ;;  %v5245_v63 = vld [vmem:[#allocation5 + $0x40] sm:$0xf]  ;;  %v6919_v0 = vld [vmem:[#allocation5 + $0x4c] sm:$0xf0] }
  0x66   :  { %785 = vmatpush.bf16.msra.mxu0 %v4972_v18  ;;  %v5132_v18 = vld [vmem:[#allocation5 + $0x60] sm:$0xf]  ;;  %v6922_v58 = vld [vmem:[#allocation5 + $0x6c] sm:$0xf] }
  0x67   :  { %798 = vmatpush.bf16.msra.mxu1 %v4976_v21  ;;  %v5161_v21 = vor.u32 %v6894_v13, %v5158_v14  ;;  %v5133_v27 = vor.u32 %v6891_v19, %v5132_v18  ;;  %v5309_v14 = vld [vmem:[#allocation5 + $0xc0] sm:$0xf]  ;;  %v5311_v18 = vld [vmem:[#allocation5 + $0xd0] sm:$0xf0]  ;;  %v5317_v19 = vld [vmem:[#allocation5 + $0xc8] sm:$0xf] }
  0x68   :  { %811 = vmatpush.bf16.msra.mxu2 %v4980_v22  ;;  %824 = vmatpush.bf16.msra.mxu3 %v4984_v26  ;;  %v5134_v22 = vld [vmem:[#allocation5 + $0x70] sm:$0xf0]  ;;  %v5142_v26 = vld [vmem:[#allocation5 + $0x78] sm:$0xf0] }
  0x69   :  { %v5137_v28 = vor.u32 %v6889_v20, %v5134_v22  ;;  %v6936_v20 = vld [vmem:[#allocation5 + $0xd4] sm:$0xf0]  ;;  %v5319_v22 = vld [vmem:[#allocation5 + $0xd8] sm:$0xf0] }
  0x6a   :  { %786 = vmatpush.bf16.msra.mxu0 %v4956_v33  ;;  %v5145_v33 = vor.u32 %v6890_v25, %v5142_v26  ;;  %v5318_v26 = vor.u32 %v6936_v20, %v5317_v19  ;;  %v5239_v19 = vld [vmem:[#allocation5 + $0x38] sm:$0xf0] }
  0x6b   :  { %799 = vmatpush.bf16.msra.mxu1 %v4960_v37  ;;  %v6886_v37 = vld [vmem:[#allocation5 + $0x4c] sm:$0xf] }
  0x6c   :  { %812 = vmatpush.bf16.msra.mxu2 %v4964_v38  ;;  %825 = vmatpush.bf16.msra.mxu3 %v4968_v41  ;;  %v5126_v38 = vld [vmem:[#allocation5 + $0x58] sm:$0xf0]  ;;  %v5125_v41 = vor.u32 %v6888_v36, %v5124_v35 }
  0x6d   :  { %787 = vmatmul.bf16.vlgmr.msra.gmra.mxu0 %v4952_v54  ;;  %v5129_v45 = vor.u32 %v6886_v37, %v5126_v38  ;;  %v5303_v35 = vld [vmem:[#allocation5 + $0xb8] sm:$0xf0] }
  0x6e   :  { %1040 = vmatpush.bf16.msrb.mxu0 %v5197_v42  ;;  %800 = vmatmul.bf16.vlgmr.msra.gmra.mxu1 %v4952_v54  ;;  %v5100_v42 = vld [vmem:[#allocation5 + $0x20] sm:$0xf] }
  0x6f   :  { %1053 = vmatpush.bf16.msrb.mxu1 %v5201_v43  ;;  %826 = vmatmul.bf16.vlgmr.msra.gmra.mxu3 %v4952_v54  ;;  %v6883_v43 = vld [vmem:[#allocation5 + $0x2c] sm:$0xf0] }
  0x70   :  { %1066 = vmatpush.bf16.msrb.mxu2 %v5205_v44  ;;  %1079 = vmatpush.bf16.msrb.mxu3 %v5209_v48  ;;  %v6881_v44 = vld [vmem:[#allocation5 + $0x24] sm:$0xf]  ;;  %v6884_v48 = vld [vmem:[#allocation5 + $0x34] sm:$0xf0]  ;;  %v5101_v51 = vor.u32 %v6883_v43, %v5100_v42  ;;  %v5306_v42 = vor.u32 %v6930_v34, %v5303_v35  ;;  %v5279_v43 = vld [vmem:[#allocation5 + $0x90] sm:$0xf0] }
  0x71   :  { %813 = vmatmul.bf16.vlgmr.msra.gmra.mxu2 %v4952_v54  ;;  %v5105_v54 = vor.u32 %v6881_v44, %v5102_v46  ;;  %v5285_v44 = vld [vmem:[#allocation5 + $0x88] sm:$0xf]  ;;  %v6926_v46 = vld [vmem:[#allocation5 + $0x8c] sm:$0xf]  ;;  %v6969_v34 = vld [vmem:[#allocation5 + $0xe4] sm:$0xf] }
  0x72   :  { %1041 = vmatpush.bf16.msrb.mxu0 %v5181_v55  ;;  %v5109_v55 = vor.u32 %v6884_v48, %v5108_v47  ;;  %v5287_v47 = vld [vmem:[#allocation5 + $0x98] sm:$0xf0] }
  0x73   :  { %1054 = vmatpush.bf16.msrb.mxu1 %v5185_v56  ;;  %v6877_v56 = vld [vmem:[#allocation5 + $0x4] sm:$0xf] }
  0x74   :  { %1067 = vmatpush.bf16.msrb.mxu2 %v5189_v57  ;;  %1080 = vmatpush.bf16.msrb.mxu3 %v5193_v61  ;;  %v5086_v57 = vld [vmem:[#allocation5 + $0x10] sm:$0xf0]  ;;  %v6878_v61 = vld [vmem:[#allocation5 + $0xc] sm:$0xf] }
  0x75   :  { %v5089_v6 = vor.u32 %v6877_v56, %v5086_v57  ;;  %v5097_v10 = vor.u32 %v6878_v61, %v5094_v62  ;;  %v5269_v56 = vld [vmem:[#allocation5 + $0x68] sm:$0xf]  ;;  %v6924_v57 = vld [vmem:[#allocation5 + $0x74] sm:$0xf0] }
  0x76   :  { %1042 = vmatpush.bf16.msrb.mxu0 %v5165_v3  ;;  %v5327_v3 = vld [vmem:[#allocation5 + $0xf0] sm:$0xf0]  ;;  %v5270_v62 = vor.u32 %v6924_v57, %v5269_v56  ;;  %v5210_v56 = vld [vmem:[%s7752_s0 + $0x10] sm:$0xf] }
  0x77   :  { %1055 = vmatpush.bf16.msrb.mxu1 %v5169_v4  ;;  %v5333_v4 = vld [vmem:[#allocation5 + $0xe8] sm:$0xf]  ;;  %v5330_v12 = vor.u32 %v6937_v1, %v5327_v3  ;;  %v6917_v1 = vld [vmem:[#allocation5 + $0x44] sm:$0xf]  ;;  %v5247_v3 = vld [vmem:[#allocation5 + $0x50] sm:$0xf0] }
  0x78   :  { %1068 = vmatpush.bf16.msrb.mxu2 %v5173_v5  ;;  %1081 = vmatpush.bf16.msrb.mxu3 %v5177_v9  ;;  %v6940_v5 = vld [vmem:[#allocation5 + $0xf4] sm:$0xf0]  ;;  %v5335_v9 = vld [vmem:[#allocation5 + $0xf8] sm:$0xf0] }
  0x79   :  { %v5334_v13 = vor.u32 %v6940_v5, %v5333_v4  ;;  %v5253_v4 = vld [vmem:[#allocation5 + $0x48] sm:$0xf]  ;;  %v6920_v5 = vld [vmem:[#allocation5 + $0x54] sm:$0xf0] }
  0x7a   :  { %1043 = vmatpush.bf16.msrb.mxu0 %v5149_v15  ;;  %v6935_v15 = vld [vmem:[#allocation5 + $0xcc] sm:$0xf0] }
  0x7b   :  { %1056 = vmatpush.bf16.msrb.mxu1 %v5153_v16  ;;  %v6933_v16 = vld [vmem:[#allocation5 + $0xc4] sm:$0xf]  ;;  %v5310_v24 = vor.u32 %v6935_v15, %v5309_v14  ;;  %v5231_v15 = vld [vmem:[#allocation5 + $0x30] sm:$0xf0] }
  0x7c   :  { %1069 = vmatpush.bf16.msrb.mxu2 %v5157_v17  ;;  %1082 = vmatpush.bf16.msrb.mxu3 %v5161_v21  ;;  %v5338_v17 = vor.u32 %v6938_v8, %v5335_v9  ;;  %v6934_v21 = vld [vmem:[#allocation5 + $0xcc] sm:$0xf]  ;;  %v5314_v25 = vor.u32 %v6933_v16, %v5311_v18  ;;  %v5246_v8 = vor.u32 %v6919_v0, %v5245_v63  ;;  %v5237_v16 = vld [vmem:[#allocation5 + $0x28] sm:$0xf]  ;;  %v5424_v0 = vld [vmem:[#allocation5 + $0xb0] sm:$0xf0] }
  0x7d   :  { %v5322_v30 = vor.u32 %v6934_v21, %v5319_v22  ;;  %v5250_v9 = vor.u32 %v6917_v1, %v5247_v3  ;;  %v6914_v18 = vld [vmem:[#allocation5 + $0x2c] sm:$0xf]  ;;  %v5213_v21 = vld [vmem:[#allocation5] sm:$0xf]  ;;  %v6911_v22 = vld [vmem:[#allocation5 + $0xc] sm:$0xf0] }
  0x7e   :  { %1044 = vmatpush.bf16.msrb.mxu0 %v5133_v27  ;;  %v5293_v27 = vld [vmem:[#allocation5 + $0xa0] sm:$0xf]  ;;  %v5214_v35 = vor.u32 %v6911_v22, %v5213_v21  ;;  %v5430_v1 = vld [vmem:[#allocation5 + $0xa8] sm:$0xf]  ;;  %v6962_v3 = vld [vmem:[#allocation5 + $0xac] sm:$0xf] }
  0x7f   :  { %1057 = vmatpush.bf16.msrb.mxu1 %v5137_v28  ;;  %v6931_v28 = vld [vmem:[#allocation5 + $0xac] sm:$0xf0]  ;;  %v6953_v22 = vld [vmem:[#allocation5 + $0x64] sm:$0xf] }
  0x80   :  { %1070 = vmatpush.bf16.msrb.mxu2 %v5141_v29  ;;  %1083 = vmatpush.bf16.msrb.mxu3 %v5145_v33  ;;  %v6929_v29 = vld [vmem:[#allocation5 + $0xa4] sm:$0xf]  ;;  %v6932_v33 = vld [vmem:[#allocation5 + $0xb4] sm:$0xf0]  ;;  %v5294_v36 = vor.u32 %v6931_v28, %v5293_v27  ;;  %v5221_v27 = vld [vmem:[#allocation5 + $0x8] sm:$0xf]  ;;  %v5242_v28 = vor.u32 %v6914_v18, %v5239_v19 }
  0x81   :  { %v5298_v37 = vor.u32 %v6929_v29, %v5295_v31  ;;  %v5302_v38 = vor.u32 %v6932_v33, %v5301_v32  ;;  %v6912_v29 = vld [vmem:[#allocation5 + $0x14] sm:$0xf0]  ;;  %v5223_v31 = vld [vmem:[#allocation5 + $0x18] sm:$0xf0]  ;;  %v5454_v32 = vld [vmem:[#allocation5 + $0xe0] sm:$0xf] }
  0x82   :  { %1045 = vmatpush.bf16.msrb.mxu0 %v5117_v39  ;;  %v5277_v39 = vld [vmem:[#allocation5 + $0x80] sm:$0xf]  ;;  %v6971_v33 = vld [vmem:[#allocation5 + $0xec] sm:$0xf0] }
  0x83   :  { %1058 = vmatpush.bf16.msrb.mxu1 %v5121_v40  ;;  %v6927_v40 = vld [vmem:[#allocation5 + $0x8c] sm:$0xf0] }
  0x84   :  { %1071 = vmatpush.bf16.msrb.mxu2 %v5125_v41  ;;  %1084 = vmatpush.bf16.msrb.mxu3 %v5129_v45  ;;  %v6925_v41 = vld [vmem:[#allocation5 + $0x84] sm:$0xf]  ;;  %v6928_v45 = vld [vmem:[#allocation5 + $0x94] sm:$0xf0]  ;;  %v5278_v48 = vor.u32 %v6927_v40, %v5277_v39  ;;  %v5222_v40 = vor.u32 %v6912_v29, %v5221_v27  ;;  %v6955_v21 = vld [vmem:[#allocation5 + $0x6c] sm:$0xf0] }
  0x85   :  { %v5282_v49 = vor.u32 %v6925_v41, %v5279_v43  ;;  %v5286_v50 = vor.u32 %v6928_v45, %v5285_v44  ;;  %v6970_v41 = vld [vmem:[#allocation5 + $0xec] sm:$0xf]  ;;  %v5455_v44 = vor.u32 %v6971_v33, %v5454_v32 }
  0x86   :  { %1046 = vmatpush.bf16.msrb.mxu0 %v5101_v51  ;;  %v5261_v51 = vld [vmem:[#allocation5 + $0x60] sm:$0xf]  ;;  %v6954_v27 = vld [vmem:[#allocation5 + $0x6c] sm:$0xf] }
  0x87   :  { %1059 = vmatpush.bf16.msrb.mxu1 %v5105_v54  ;;  %v5290_v54 = vor.u32 %v6926_v46, %v5287_v47  ;;  %v5262_v60 = vor.u32 %v6923_v52, %v5261_v51  ;;  %v5438_v47 = vld [vmem:[#allocation5 + $0xc0] sm:$0xf]  ;;  %v5440_v51 = vld [vmem:[#allocation5 + $0xd0] sm:$0xf0]  ;;  %v5446_v52 = vld [vmem:[#allocation5 + $0xc8] sm:$0xf] }
  0x88   :  { %1072 = vmatpush.bf16.msrb.mxu2 %v5109_v55  ;;  %1085 = vmatpush.bf16.msrb.mxu3 %v5113_v59  ;;  %v5263_v55 = vld [vmem:[#allocation5 + $0x70] sm:$0xf0]  ;;  %v5271_v59 = vld [vmem:[#allocation5 + $0x78] sm:$0xf0] }
  0x89   :  { %v5266_v61 = vor.u32 %v6921_v53, %v5263_v55  ;;  %v6968_v53 = vld [vmem:[#allocation5 + $0xd4] sm:$0xf0]  ;;  %v5448_v55 = vld [vmem:[#allocation5 + $0xd8] sm:$0xf0] }
  0x8a   :  { %1047 = vmatpush.bf16.msrb.mxu0 %v5085_v2  ;;  %v5274_v2 = vor.u32 %v6922_v58, %v5271_v59  ;;  %v5447_v59 = vor.u32 %v6968_v53, %v5446_v52  ;;  %v6948_v52 = vld [vmem:[#allocation5 + $0x34] sm:$0xf0] }
  0x8b   :  { %1060 = vmatpush.bf16.msrb.mxu1 %v5089_v6  ;;  %v6918_v6 = vld [vmem:[#allocation5 + $0x4c] sm:$0xf] }
  0x8c   :  { %1073 = vmatpush.bf16.msrb.mxu2 %v5093_v7  ;;  %1086 = vmatpush.bf16.msrb.mxu3 %v5097_v10  ;;  %v5255_v7 = vld [vmem:[#allocation5 + $0x58] sm:$0xf0]  ;;  %v5254_v10 = vor.u32 %v6920_v5, %v5253_v4 }
  0x8d   :  { %1048 = vmatmul.bf16.vlgmr.msrb.gmra.mxu0 %v5081_v23  ;;  %v5258_v14 = vor.u32 %v6918_v6, %v5255_v7  ;;  %v5432_v4 = vld [vmem:[#allocation5 + $0xb8] sm:$0xf0] }
  0x8e   :  { %1301 = vmatpush.bf16.msra.mxu0 %v5326_v11  ;;  %1061 = vmatmul.bf16.vlgmr.msrb.gmra.mxu1 %v5081_v23  ;;  %v5229_v11 = vld [vmem:[#allocation5 + $0x20] sm:$0xf] }
  0x8f   :  { %1314 = vmatpush.bf16.msra.mxu1 %v5330_v12  ;;  %1087 = vmatmul.bf16.vlgmr.msrb.gmra.mxu3 %v5081_v23  ;;  %v6915_v12 = vld [vmem:[#allocation5 + $0x2c] sm:$0xf0] }
  0x90   :  { %1327 = vmatpush.bf16.msra.mxu2 %v5334_v13  ;;  %1340 = vmatpush.bf16.msra.mxu3 %v5338_v17  ;;  %v6913_v13 = vld [vmem:[#allocation5 + $0x24] sm:$0xf]  ;;  %v6916_v17 = vld [vmem:[#allocation5 + $0x34] sm:$0xf0]  ;;  %v5230_v20 = vor.u32 %v6915_v12, %v5229_v11  ;;  %v5435_v11 = vor.u32 %v6962_v3, %v5432_v4  ;;  %v5408_v12 = vld [vmem:[#allocation5 + $0x90] sm:$0xf0] }
  0x91   :  { %1074 = vmatmul.bf16.vlgmr.msrb.gmra.mxu2 %v5081_v23  ;;  %v5234_v23 = vor.u32 %v6913_v13, %v5231_v15  ;;  %v5414_v13 = vld [vmem:[#allocation5 + $0x88] sm:$0xf]  ;;  %v6958_v15 = vld [vmem:[#allocation5 + $0x8c] sm:$0xf]  ;;  %v6944_v4 = vld [vmem:[#allocation5 + $0x14] sm:$0xf0] }
  0x92   :  { %1302 = vmatpush.bf16.msra.mxu0 %v5310_v24  ;;  %v5238_v24 = vor.u32 %v6916_v17, %v5237_v16  ;;  %v5416_v16 = vld [vmem:[#allocation5 + $0x98] sm:$0xf0] }
  0x93   :  { %1315 = vmatpush.bf16.msra.mxu1 %v5314_v25  ;;  %v6909_v25 = vld [vmem:[#allocation5 + $0x4] sm:$0xf] }
  0x94   :  { %1328 = vmatpush.bf16.msra.mxu2 %v5318_v26  ;;  %1341 = vmatpush.bf16.msra.mxu3 %v5322_v30  ;;  %v5215_v26 = vld [vmem:[#allocation5 + $0x10] sm:$0xf0]  ;;  %v6910_v30 = vld [vmem:[#allocation5 + $0xc] sm:$0xf] }
  0x95   :  { %v5218_v39 = vor.u32 %v6909_v25, %v5215_v26  ;;  %v5226_v43 = vor.u32 %v6910_v30, %v5223_v31  ;;  %v5398_v25 = vld [vmem:[#allocation5 + $0x68] sm:$0xf]  ;;  %v6956_v26 = vld [vmem:[#allocation5 + $0x74] sm:$0xf0] }
  0x96   :  { %1303 = vmatpush.bf16.msra.mxu0 %v5294_v36  ;;  %v5456_v36 = vld [vmem:[#allocation5 + $0xf0] sm:$0xf0]  ;;  %v5399_v33 = vor.u32 %v6956_v26, %v5398_v25  ;;  %v6997_v25 = vld [vmem:[#allocation5 + $0xc4] sm:$0xf] }
  0x97   :  { %1316 = vmatpush.bf16.msra.mxu1 %v5298_v37  ;;  %v5462_v37 = vld [vmem:[#allocation5 + $0xe8] sm:$0xf]  ;;  %v5459_v45 = vor.u32 %v6969_v34, %v5456_v36  ;;  %v5374_v34 = vld [vmem:[#allocation5 + $0x40] sm:$0xf]  ;;  %v6949_v36 = vld [vmem:[#allocation5 + $0x44] sm:$0xf] }
  0x98   :  { %1329 = vmatpush.bf16.msra.mxu2 %v5302_v38  ;;  %1342 = vmatpush.bf16.msra.mxu3 %v5306_v42  ;;  %v6972_v38 = vld [vmem:[#allocation5 + $0xf4] sm:$0xf0]  ;;  %v5464_v42 = vld [vmem:[#allocation5 + $0xf8] sm:$0xf0] }
  0x99   :  { %v5463_v46 = vor.u32 %v6972_v38, %v5462_v37  ;;  %v5376_v38 = vld [vmem:[#allocation5 + $0x50] sm:$0xf0] }
  0x9a   :  { %1304 = vmatpush.bf16.msra.mxu0 %v5278_v48  ;;  %v6967_v48 = vld [vmem:[#allocation5 + $0xcc] sm:$0xf0] }
  0x9b   :  { %1317 = vmatpush.bf16.msra.mxu1 %v5282_v49  ;;  %v6965_v49 = vld [vmem:[#allocation5 + $0xc4] sm:$0xf]  ;;  %v5439_v57 = vor.u32 %v6967_v48, %v5438_v47  ;;  %v6947_v47 = vld [vmem:[#allocation5 + $0x2c] sm:$0xf0] }
  0x9c   :  { %1330 = vmatpush.bf16.msra.mxu2 %v5286_v50  ;;  %1343 = vmatpush.bf16.msra.mxu3 %v5290_v54  ;;  %v5467_v50 = vor.u32 %v6970_v41, %v5464_v42  ;;  %v6966_v54 = vld [vmem:[#allocation5 + $0xcc] sm:$0xf]  ;;  %v5443_v58 = vor.u32 %v6965_v49, %v5440_v51  ;;  %v5384_v42 = vld [vmem:[#allocation5 + $0x58] sm:$0xf0]  ;;  %v6945_v48 = vld [vmem:[#allocation5 + $0x24] sm:$0xf] }
  0x9d   :  { %v5451_v63 = vor.u32 %v6966_v54, %v5448_v55  ;;  %v6950_v41 = vld [vmem:[#allocation5 + $0x4c] sm:$0xf]  ;;  %v5366_v51 = vld [vmem:[#allocation5 + $0x28] sm:$0xf]  ;;  %v5368_v55 = vld [vmem:[#allocation5 + $0x38] sm:$0xf0] }
  0x9e   :  { %1305 = vmatpush.bf16.msra.mxu0 %v5262_v60  ;;  %v5422_v60 = vld [vmem:[#allocation5 + $0xa0] sm:$0xf]  ;;  %v5387_v49 = vor.u32 %v6950_v41, %v5384_v42  ;;  %v6946_v54 = vld [vmem:[#allocation5 + $0x2c] sm:$0xf]  ;;  %v6993_v41 = vld [vmem:[#allocation5 + $0xa4] sm:$0xf] }
  0x9f   :  { %1318 = vmatpush.bf16.msra.mxu1 %v5266_v61  ;;  %v6963_v61 = vld [vmem:[#allocation5 + $0xac] sm:$0xf0]  ;;  %v5371_v3 = vor.u32 %v6946_v54, %v5368_v55  ;;  %v6989_v54 = vld [vmem:[#allocation5 + $0x84] sm:$0xf] }
  0xa0   :  { %1331 = vmatpush.bf16.msra.mxu2 %v5270_v62  ;;  %1344 = vmatpush.bf16.msra.mxu3 %v5274_v2  ;;  %v6961_v62 = vld [vmem:[#allocation5 + $0xa4] sm:$0xf]  ;;  %v6964_v2 = vld [vmem:[#allocation5 + $0xb4] sm:$0xf0]  ;;  %v5423_v5 = vor.u32 %v6963_v61, %v5422_v60 }
  0xa1   :  { %v5427_v6 = vor.u32 %v6961_v62, %v5424_v0  ;;  %v5431_v7 = vor.u32 %v6964_v2, %v5430_v1  ;;  %v6941_v0 = vld [vmem:[#allocation5 + $0x4] sm:$0xf]  ;;  %v5344_v1 = vld [vmem:[#allocation5 + $0x10] sm:$0xf0]  ;;  %v5350_v2 = vld [vmem:[#allocation5 + $0x8] sm:$0xf] }
  0xa2   :  { %1306 = vmatpush.bf16.msra.mxu0 %v5246_v8  ;;  %v5406_v8 = vld [vmem:[#allocation5 + $0x80] sm:$0xf] }
  0xa3   :  { %1319 = vmatpush.bf16.msra.mxu1 %v5250_v9  ;;  %v6959_v9 = vld [vmem:[#allocation5 + $0x8c] sm:$0xf0] }
  0xa4   :  { %1332 = vmatpush.bf16.msra.mxu2 %v5254_v10  ;;  %1345 = vmatpush.bf16.msra.mxu3 %v5258_v14  ;;  %v6957_v10 = vld [vmem:[#allocation5 + $0x84] sm:$0xf]  ;;  %v6960_v14 = vld [vmem:[#allocation5 + $0x94] sm:$0xf0]  ;;  %v5407_v17 = vor.u32 %v6959_v9, %v5406_v8  ;;  %v7003_v8 = vld [vmem:[#allocation5 + $0xec] sm:$0xf0] }
  0xa5   :  { %v5411_v18 = vor.u32 %v6957_v10, %v5408_v12  ;;  %v5415_v19 = vor.u32 %v6960_v14, %v5414_v13  ;;  %v7001_v9 = vld [vmem:[#allocation5 + $0xe4] sm:$0xf]  ;;  %v5591_v12 = vld [vmem:[#allocation5 + $0xe8] sm:$0xf]  ;;  %v7004_v13 = vld [vmem:[#allocation5 + $0xf4] sm:$0xf0]  ;;  %v5347_v14 = vor.u32 %v6941_v0, %v5344_v1 }
  0xa6   :  { %1307 = vmatpush.bf16.msra.mxu0 %v5230_v20  ;;  %v5390_v20 = vld [vmem:[#allocation5 + $0x60] sm:$0xf] }
  0xa7   :  { %1320 = vmatpush.bf16.msra.mxu1 %v5234_v23  ;;  %v5419_v23 = vor.u32 %v6958_v15, %v5416_v16  ;;  %v5391_v30 = vor.u32 %v6955_v21, %v5390_v20  ;;  %v5351_v15 = vor.u32 %v6944_v4, %v5350_v2  ;;  %v7002_v16 = vld [vmem:[#allocation5 + $0xec] sm:$0xf]  ;;  %v6987_v4 = vld [vmem:[#allocation5 + $0x6c] sm:$0xf0] }
  0xa8   :  { %1333 = vmatpush.bf16.msra.mxu2 %v5238_v24  ;;  %1346 = vmatpush.bf16.msra.mxu3 %v5242_v28  ;;  %v5392_v24 = vld [vmem:[#allocation5 + $0x70] sm:$0xf0]  ;;  %v5400_v28 = vld [vmem:[#allocation5 + $0x78] sm:$0xf0] }
  0xa9   :  { %v5395_v32 = vor.u32 %v6953_v22, %v5392_v24  ;;  %v5403_v37 = vor.u32 %v6954_v27, %v5400_v28  ;;  %v5592_v22 = vor.u32 %v7004_v13, %v5591_v12  ;;  %v6999_v24 = vld [vmem:[#allocation5 + $0xcc] sm:$0xf0]  ;;  %v5569_v27 = vld [vmem:[#allocation5 + $0xd0] sm:$0xf0]  ;;  %v5575_v28 = vld [vmem:[#allocation5 + $0xc8] sm:$0xf] }
  0xaa   :  { %1308 = vmatpush.bf16.msra.mxu0 %v5214_v35  ;;  %v7529_v29 = vpop.f32.mrf.mxu0  ;;  %v6951_v35 = vld [vmem:[#allocation5 + $0x4c] sm:$0xf0] }
  0xab   :  { %1321 = vmatpush.bf16.msra.mxu1 %v5218_v39  ;;  %v7531_v31 = vpop.f32.mrf.mxu1  ;;  %v5382_v39 = vld [vmem:[#allocation5 + $0x48] sm:$0xf] }
  0xac   :  { %1334 = vmatpush.bf16.msra.mxu2 %v5222_v40  ;;  %1347 = vmatpush.bf16.msra.mxu3 %v5226_v43  ;;  %v6952_v40 = vld [vmem:[#allocation5 + $0x54] sm:$0xf0]  ;;  %v5375_v43 = vor.u32 %v6951_v35, %v5374_v34  ;;  %v5577_v34 = vld [vmem:[#allocation5 + $0xd8] sm:$0xf0]  ;;  %v5339_v35 = vld [vmem:[%s7752_s0 + $0x14] sm:$0xf] }
  0xad   :  { %1309 = vmatmul.bf16.vlgmr.msra.gmra.mxu0 %v5210_v56 }
  0xae   :  { %1562 = vmatpush.bf16.msrb.mxu0 %v5455_v44  ;;  %1322 = vmatmul.bf16.vlgmr.msra.gmra.mxu1 %v5210_v56  ;;  %v5379_v44 = vor.u32 %v6949_v36, %v5376_v38 }
  0xaf   :  { %1575 = vmatpush.bf16.msrb.mxu1 %v5459_v45  ;;  %1348 = vmatmul.bf16.vlgmr.msra.gmra.mxu3 %v5210_v56  ;;  %v5383_v45 = vor.u32 %v6952_v40, %v5382_v39  ;;  %v5551_v39 = vld [vmem:[#allocation5 + $0xa0] sm:$0xf]  ;;  %v6995_v40 = vld [vmem:[#allocation5 + $0xac] sm:$0xf0] }
  0xb0   :  { %1588 = vmatpush.bf16.msrb.mxu2 %v5463_v46  ;;  %1601 = vmatpush.bf16.msrb.mxu3 %v5467_v50  ;;  %v5358_v46 = vld [vmem:[#allocation5 + $0x20] sm:$0xf]  ;;  %v5360_v50 = vld [vmem:[#allocation5 + $0x30] sm:$0xf0] }
  0xb1   :  { %1335 = vmatmul.bf16.vlgmr.msra.gmra.mxu2 %v5210_v56  ;;  %v5363_v62 = vor.u32 %v6945_v48, %v5360_v50  ;;  %v5552_v48 = vor.u32 %v6995_v40, %v5551_v39  ;;  %v6978_v39 = vld [vmem:[#allocation5 + $0x2c] sm:$0xf]  ;;  %v5497_v40 = vld [vmem:[#allocation5 + $0x38] sm:$0xf0] }
  0xb2   :  { %1563 = vmatpush.bf16.msrb.mxu0 %v5439_v57  ;;  %v7533_v53 = vpop.f32.mrf.mxu3  ;;  %v269_v56 = vpop.f32.mrf.mxu0  ;;  %v5359_v57 = vor.u32 %v6947_v47, %v5358_v46  ;;  %v6994_v46 = vld [vmem:[#allocation5 + $0xac] sm:$0xf]  ;;  %v5561_v47 = vld [vmem:[#allocation5 + $0xb8] sm:$0xf0] }
  0xb3   :  { %1576 = vmatpush.bf16.msrb.mxu1 %v5443_v58  ;;  %v5342_v58 = vld [vmem:[#allocation5] sm:$0xf]  ;;  %v282_v60 = vpop.f32.mrf.mxu1  ;;  %v5564_v55 = vor.u32 %v6994_v46, %v5561_v47  ;;  %v5537_v56 = vld [vmem:[#allocation5 + $0x90] sm:$0xf0]  ;;  %v6973_v47 = vld [vmem:[#allocation5 + $0x4] sm:$0xf] }
  0xb4   :  { %1589 = vmatpush.bf16.msrb.mxu2 %v5447_v59  ;;  %1602 = vmatpush.bf16.msrb.mxu3 %v5451_v63  ;;  %v6943_v59 = vld [vmem:[#allocation5 + $0xc] sm:$0xf0]  ;;  %v7535_v61 = vpop.f32.mrf.mxu2  ;;  %v5367_v63 = vor.u32 %v6948_v52, %v5366_v51  ;;  %v5535_v51 = vld [vmem:[#allocation5 + $0x80] sm:$0xf]  ;;  %v5545_v60 = vld [vmem:[#allocation5 + $0x98] sm:$0xf0]  ;;  %v5540_v1 = vor.u32 %v6989_v54, %v5537_v56 }
  0xb5   :  { %v5343_v10 = vor.u32 %v6943_v59, %v5342_v58  ;;  %v6991_v52 = vld [vmem:[#allocation5 + $0x8c] sm:$0xf0]  ;;  %v6992_v58 = vld [vmem:[#allocation5 + $0x94] sm:$0xf0]  ;;  %v6990_v59 = vld [vmem:[#allocation5 + $0x8c] sm:$0xf] }
  0xb6   :  { %1564 = vmatpush.bf16.msrb.mxu0 %v5423_v5  ;;  %v6942_v5 = vld [vmem:[#allocation5 + $0xc] sm:$0xf]  ;;  %v5481_v54 = vld [vmem:[#allocation5 + $0x18] sm:$0xf0]  ;;  %v5712_v56 = vld [vmem:[#allocation5 + $0xe0] sm:$0xf] }
  0xb7   :  { %1577 = vmatpush.bf16.msrb.mxu1 %v5427_v6  ;;  %v5352_v6 = vld [vmem:[#allocation5 + $0x18] sm:$0xf0] }
  0xb8   :  { %1590 = vmatpush.bf16.msrb.mxu2 %v5431_v7  ;;  %1603 = vmatpush.bf16.msrb.mxu3 %v5435_v11  ;;  %v5583_v7 = vld [vmem:[#allocation5 + $0xe0] sm:$0xf]  ;;  %v5585_v11 = vld [vmem:[#allocation5 + $0xf0] sm:$0xf0] }
  0xb9   :  { %v5588_v21 = vor.u32 %v7001_v9, %v5585_v11  ;;  %v6988_v9 = vld [vmem:[#allocation5 + $0x74] sm:$0xf0]  ;;  %v5529_v11 = vld [vmem:[#allocation5 + $0x78] sm:$0xf0] }
  0xba   :  { %1565 = vmatpush.bf16.msrb.mxu0 %v5407_v17  ;;  %v5593_v17 = vld [vmem:[#allocation5 + $0xf8] sm:$0xf0]  ;;  %v308_v20 = vpop.f32.mrf.mxu3 }
  0xbb   :  { %1578 = vmatpush.bf16.msrb.mxu1 %v5411_v18  ;;  %v5355_v18 = vor.u32 %v6942_v5, %v5352_v6  ;;  %v5596_v26 = vor.u32 %v7002_v16, %v5593_v17  ;;  %v6985_v5 = vld [vmem:[#allocation5 + $0x64] sm:$0xf]  ;;  %v5548_v6 = vor.u32 %v6990_v59, %v5545_v60  ;;  %v6983_v16 = vld [vmem:[#allocation5 + $0x4c] sm:$0xf0]  ;;  %v5511_v20 = vld [vmem:[#allocation5 + $0x48] sm:$0xf] }
  0xbc   :  { %1591 = vmatpush.bf16.msrb.mxu2 %v5415_v19  ;;  %1604 = vmatpush.bf16.msrb.mxu3 %v5419_v23  ;;  %v5584_v19 = vor.u32 %v7003_v8, %v5583_v7  ;;  %v5567_v23 = vld [vmem:[#allocation5 + $0xc0] sm:$0xf]  ;;  %v5521_v7 = vld [vmem:[#allocation5 + $0x70] sm:$0xf0]  ;;  %v5527_v8 = vld [vmem:[#allocation5 + $0x68] sm:$0xf] }
  0xbd   :  { %v5568_v36 = vor.u32 %v6999_v24, %v5567_v23  ;;  %v5524_v13 = vor.u32 %v6985_v5, %v5521_v7  ;;  %v6981_v17 = vld [vmem:[#allocation5 + $0x44] sm:$0xf]  ;;  %v6982_v23 = vld [vmem:[#allocation5 + $0x4c] sm:$0xf]  ;;  %v5513_v24 = vld [vmem:[#allocation5 + $0x58] sm:$0xf0] }
  0xbe   :  { %1566 = vmatpush.bf16.msrb.mxu0 %v5391_v30  ;;  %v7000_v30 = vld [vmem:[#allocation5 + $0xd4] sm:$0xf0]  ;;  %v5714_v60 = vld [vmem:[#allocation5 + $0xf0] sm:$0xf0]  ;;  %v5722_v5 = vld [vmem:[#allocation5 + $0xf8] sm:$0xf0] }
  0xbf   :  { %1579 = vmatpush.bf16.msrb.mxu1 %v5395_v32  ;;  %v295_v32 = vpop.f32.mrf.mxu2  ;;  %v5576_v38 = vor.u32 %v7000_v30, %v5575_v28 }
  0xc0   :  { %1592 = vmatpush.bf16.msrb.mxu2 %v5399_v33  ;;  %1605 = vmatpush.bf16.msrb.mxu3 %v5403_v37  ;;  %v6998_v33 = vld [vmem:[#allocation5 + $0xcc] sm:$0xf]  ;;  %v5572_v37 = vor.u32 %v6997_v25, %v5569_v27  ;;  %v5487_v32 = vld [vmem:[#allocation5 + $0x20] sm:$0xf] }
  0xc1   :  { %v5580_v42 = vor.u32 %v6998_v33, %v5577_v34  ;;  %v6979_v33 = vld [vmem:[#allocation5 + $0x2c] sm:$0xf0]  ;;  %v6977_v34 = vld [vmem:[#allocation5 + $0x24] sm:$0xf] }
  0xc2   :  { %1567 = vmatpush.bf16.msrb.mxu0 %v5375_v43  ;;  %v5553_v43 = vld [vmem:[#allocation5 + $0xb0] sm:$0xf0] }
  0xc3   :  { %1580 = vmatpush.bf16.msrb.mxu1 %v5379_v44  ;;  %v5559_v44 = vld [vmem:[#allocation5 + $0xa8] sm:$0xf] }
  0xc4   :  { %1593 = vmatpush.bf16.msrb.mxu2 %v5383_v45  ;;  %1606 = vmatpush.bf16.msrb.mxu3 %v5387_v49  ;;  %v6996_v45 = vld [vmem:[#allocation5 + $0xb4] sm:$0xf0]  ;;  %v5556_v49 = vor.u32 %v6993_v41, %v5553_v43  ;;  %v5488_v41 = vor.u32 %v6979_v33, %v5487_v32  ;;  %v6975_v43 = vld [vmem:[#allocation5 + $0xc] sm:$0xf0]  ;;  %v5688_v32 = vld [vmem:[#allocation5 + $0xa8] sm:$0xf] }
  0xc5   :  { %v5560_v50 = vor.u32 %v6996_v45, %v5559_v44  ;;  %v7028_v33 = vld [vmem:[#allocation5 + $0xb4] sm:$0xf0] }
  0xc6   :  { %1568 = vmatpush.bf16.msrb.mxu0 %v5359_v57  ;;  %v5543_v57 = vld [vmem:[#allocation5 + $0x88] sm:$0xf] }
  0xc7   :  { %1581 = vmatpush.bf16.msrb.mxu1 %v5363_v62  ;;  %v5544_v2 = vor.u32 %v6992_v58, %v5543_v57  ;;  %v7035_v57 = vld [vmem:[#allocation5 + $0xec] sm:$0xf0]  ;;  %v7033_v58 = vld [vmem:[#allocation5 + $0xe4] sm:$0xf] }
  0xc8   :  { %1594 = vmatpush.bf16.msrb.mxu2 %v5367_v63  ;;  %1607 = vmatpush.bf16.msrb.mxu3 %v5371_v3  ;;  %v5536_v63 = vor.u32 %v6991_v52, %v5535_v51  ;;  %v5519_v3 = vld [vmem:[#allocation5 + $0x60] sm:$0xf]  ;;  %v6976_v51 = vld [vmem:[#allocation5 + $0x14] sm:$0xf0]  ;;  %v6974_v52 = vld [vmem:[#allocation5 + $0xc] sm:$0xf]  ;;  %v5713_v7 = vor.u32 %v7035_v57, %v5712_v56 }
  0xc9   :  { %v5520_v12 = vor.u32 %v6987_v4, %v5519_v3  ;;  %v7034_v4 = vld [vmem:[#allocation5 + $0xec] sm:$0xf]  ;;  %v7019_v56 = vld [vmem:[#allocation5 + $0x6c] sm:$0xf0]  ;;  %v7017_v57 = vld [vmem:[#allocation5 + $0x64] sm:$0xf] }
  0xca   :  { %1569 = vmatpush.bf16.msrb.mxu0 %v5343_v10  ;;  %v7540_v62 = vpop.f32.mrf.mxu0  ;;  %v6986_v10 = vld [vmem:[#allocation5 + $0x6c] sm:$0xf] }
  0xcb   :  { %1582 = vmatpush.bf16.msrb.mxu1 %v5347_v14  ;;  %v7542_v0 = vpop.f32.mrf.mxu1  ;;  %v5528_v14 = vor.u32 %v6988_v9, %v5527_v8  ;;  %v5717_v8 = vor.u32 %v7033_v58, %v5714_v60  ;;  %v5656_v60 = vld [vmem:[#allocation5 + $0x68] sm:$0xf] }
  0xcc   :  { %1595 = vmatpush.bf16.msrb.mxu2 %v5351_v15  ;;  %1608 = vmatpush.bf16.msrb.mxu3 %v5355_v18  ;;  %v5503_v15 = vld [vmem:[#allocation5 + $0x40] sm:$0xf]  ;;  %v5532_v18 = vor.u32 %v6986_v10, %v5529_v11  ;;  %v7031_v11 = vld [vmem:[#allocation5 + $0xcc] sm:$0xf0] }
  0xcd   :  { %1570 = vmatmul.bf16.vlgmr.msrb.gmra.mxu0 %v5339_v35  ;;  %v5696_v10 = vld [vmem:[#allocation5 + $0xc0] sm:$0xf] }
  0xce   :  { %1823 = vmatpush.bf16.msra.mxu0 %v5584_v19  ;;  %1583 = vmatmul.bf16.vlgmr.msrb.gmra.mxu1 %v5339_v35  ;;  %v5505_v19 = vld [vmem:[#allocation5 + $0x50] sm:$0xf0] }
  0xcf   :  { %1836 = vmatpush.bf16.msra.mxu1 %v5588_v21  ;;  %1609 = vmatmul.bf16.vlgmr.msrb.gmra.mxu3 %v5339_v35  ;;  %v6984_v21 = vld [vmem:[#allocation5 + $0x54] sm:$0xf0]  ;;  %v5508_v28 = vor.u32 %v6981_v17, %v5505_v19  ;;  %v5706_v19 = vld [vmem:[#allocation5 + $0xd8] sm:$0xf0] }
  0xd0   :  { %1849 = vmatpush.bf16.msra.mxu2 %v5592_v22  ;;  %1862 = vmatpush.bf16.msra.mxu3 %v5596_v26  ;;  %v5504_v26 = vor.u32 %v6983_v16, %v5503_v15  ;;  %v5512_v30 = vor.u32 %v6984_v21, %v5511_v20  ;;  %v5704_v15 = vld [vmem:[#allocation5 + $0xc8] sm:$0xf]  ;;  %v7032_v16 = vld [vmem:[#allocation5 + $0xd4] sm:$0xf0]  ;;  %v5697_v21 = vor.u32 %v7031_v11, %v5696_v10  ;;  %v5634_v10 = vld [vmem:[#allocation5 + $0x50] sm:$0xf0] }
  0xd1   :  { %1596 = vmatmul.bf16.vlgmr.msrb.gmra.mxu2 %v5339_v35  ;;  %v5516_v35 = vor.u32 %v6982_v23, %v5513_v24  ;;  %v5468_v20 = vld [vmem:[%s7752_s0 + $0x18] sm:$0xf]  ;;  %v5705_v24 = vor.u32 %v7032_v16, %v5704_v15  ;;  %v5640_v11 = vld [vmem:[#allocation5 + $0x48] sm:$0xf]  ;;  %v5642_v15 = vld [vmem:[#allocation5 + $0x58] sm:$0xf0] }
  0xd2   :  { %1824 = vmatpush.bf16.msra.mxu0 %v5568_v36  ;;  %v7544_v22 = vpop.f32.mrf.mxu3  ;;  %v529_v25 = vpop.f32.mrf.mxu0  ;;  %v5489_v36 = vld [vmem:[#allocation5 + $0x30] sm:$0xf0] }
  0xd3   :  { %1837 = vmatpush.bf16.msra.mxu1 %v5572_v37  ;;  %v542_v27 = vpop.f32.mrf.mxu1  ;;  %v5495_v37 = vld [vmem:[#allocation5 + $0x28] sm:$0xf]  ;;  %v5492_v45 = vor.u32 %v6977_v34, %v5489_v36  ;;  %v5680_v25 = vld [vmem:[#allocation5 + $0xa0] sm:$0xf]  ;;  %v7026_v34 = vld [vmem:[#allocation5 + $0xac] sm:$0xf] }
  0xd4   :  { %1850 = vmatpush.bf16.msra.mxu2 %v5576_v38  ;;  %1863 = vmatpush.bf16.msra.mxu3 %v5580_v42  ;;  %v6980_v38 = vld [vmem:[#allocation5 + $0x34] sm:$0xf0]  ;;  %v5471_v42 = vld [vmem:[#allocation5] sm:$0xf]  ;;  %v7546_v44 = vpop.f32.mrf.mxu2  ;;  %v7025_v27 = vld [vmem:[#allocation5 + $0xa4] sm:$0xf] }
  0xd5   :  { %v5496_v46 = vor.u32 %v6980_v38, %v5495_v37  ;;  %v5472_v59 = vor.u32 %v6975_v43, %v5471_v42  ;;  %v5689_v38 = vor.u32 %v7028_v33, %v5688_v32  ;;  %v5666_v43 = vld [vmem:[#allocation5 + $0x90] sm:$0xf0]  ;;  %v5626_v32 = vld [vmem:[#allocation5 + $0x38] sm:$0xf0] }
  0xd6   :  { %1825 = vmatpush.bf16.msra.mxu0 %v5552_v48  ;;  %v5473_v48 = vld [vmem:[#allocation5 + $0x10] sm:$0xf0] }
  0xd7   :  { %1838 = vmatpush.bf16.msra.mxu1 %v5556_v49  ;;  %v5479_v49 = vld [vmem:[#allocation5 + $0x8] sm:$0xf] }
  0xd8   :  { %1851 = vmatpush.bf16.msra.mxu2 %v5560_v50  ;;  %1864 = vmatpush.bf16.msra.mxu3 %v5564_v55  ;;  %v5500_v50 = vor.u32 %v6978_v39, %v5497_v40  ;;  %v5480_v3 = vor.u32 %v6976_v51, %v5479_v49  ;;  %v5664_v39 = vld [vmem:[#allocation5 + $0x80] sm:$0xf]  ;;  %v7023_v40 = vld [vmem:[#allocation5 + $0x8c] sm:$0xf0] }
  0xda   :  { %1826 = vmatpush.bf16.msra.mxu0 %v5536_v63  ;;  %v568_v55 = vpop.f32.mrf.mxu3  ;;  %v5720_v63 = vld [vmem:[#allocation5 + $0xe8] sm:$0xf] }
  0xdb   :  { %1839 = vmatpush.bf16.msra.mxu1 %v5540_v1  ;;  %v7036_v1 = vld [vmem:[#allocation5 + $0xf4] sm:$0xf0]  ;;  %v5648_v55 = vld [vmem:[#allocation5 + $0x60] sm:$0xf] }
  0xdc   :  { %1852 = vmatpush.bf16.msra.mxu2 %v5544_v2  ;;  %1865 = vmatpush.bf16.msra.mxu3 %v5548_v6  ;;  %v5476_v2 = vor.u32 %v6973_v47, %v5473_v48  ;;  %v5484_v6 = vor.u32 %v6974_v52, %v5481_v54  ;;  %v5721_v9 = vor.u32 %v7036_v1, %v5720_v63  ;;  %v555_v17 = vpop.f32.mrf.mxu2  ;;  %v7022_v47 = vld [vmem:[#allocation5 + $0x8c] sm:$0xf]  ;;  %v5674_v48 = vld [vmem:[#allocation5 + $0x98] sm:$0xf0]  ;;  %v7020_v63 = vld [vmem:[#allocation5 + $0x74] sm:$0xf0] }
  0xdd   :  { %v5677_v58 = vor.u32 %v7022_v47, %v5674_v48  ;;  %v7018_v1 = vld [vmem:[#allocation5 + $0x6c] sm:$0xf]  ;;  %v5840_v48 = vld [vmem:[#allocation7 + $0xe0] sm:$0xf] }
  0xde   :  { %1827 = vmatpush.bf16.msra.mxu0 %v5520_v12  ;;  %v7029_v12 = vld [vmem:[#allocation5 + $0xc4] sm:$0xf] }
  0xdf   :  { %1840 = vmatpush.bf16.msra.mxu1 %v5524_v13  ;;  %v5725_v13 = vor.u32 %v7034_v4, %v5722_v5  ;;  %v5657_v5 = vor.u32 %v7020_v63, %v5656_v60  ;;  %v7066_v60 = vld [vmem:[#allocation7 + $0xec] sm:$0xf]  ;;  %v5850_v63 = vld [vmem:[#allocation7 + $0xf8] sm:$0xf0] }
  0xe0   :  { %1853 = vmatpush.bf16.msra.mxu2 %v5528_v14  ;;  %1866 = vmatpush.bf16.msra.mxu3 %v5532_v18  ;;  %v5698_v14 = vld [vmem:[#allocation5 + $0xd0] sm:$0xf0]  ;;  %v7030_v18 = vld [vmem:[#allocation5 + $0xcc] sm:$0xf] }
  0xe1   :  { %v5701_v23 = vor.u32 %v7029_v12, %v5698_v14  ;;  %v7016_v12 = vld [vmem:[#allocation5 + $0x54] sm:$0xf0]  ;;  %v7014_v14 = vld [vmem:[#allocation5 + $0x4c] sm:$0xf] }
  0xe2   :  { %1828 = vmatpush.bf16.msra.mxu0 %v5504_v26  ;;  %v7027_v26 = vld [vmem:[#allocation5 + $0xac] sm:$0xf0] }
  0xe3   :  { %1841 = vmatpush.bf16.msra.mxu1 %v5508_v28  ;;  %v5709_v28 = vor.u32 %v7030_v18, %v5706_v19  ;;  %v5681_v36 = vor.u32 %v7027_v26, %v5680_v25  ;;  %v5645_v25 = vor.u32 %v7014_v14, %v5642_v15  ;;  %v5618_v26 = vld [vmem:[#allocation5 + $0x30] sm:$0xf0]  ;;  %v7062_v14 = vld [vmem:[#allocation7 + $0xcc] sm:$0xf]  ;;  %v5834_v15 = vld [vmem:[#allocation7 + $0xd8] sm:$0xf0] }
  0xe4   :  { %1854 = vmatpush.bf16.msra.mxu2 %v5512_v30  ;;  %1867 = vmatpush.bf16.msra.mxu3 %v5516_v35  ;;  %v5682_v30 = vld [vmem:[#allocation5 + $0xb0] sm:$0xf0]  ;;  %v5690_v35 = vld [vmem:[#allocation5 + $0xb8] sm:$0xf0] }
  0xe5   :  { %v5685_v37 = vor.u32 %v7025_v27, %v5682_v30  ;;  %v5693_v42 = vor.u32 %v7026_v34, %v5690_v35  ;;  %v5624_v27 = vld [vmem:[#allocation5 + $0x28] sm:$0xf]  ;;  %v7010_v30 = vld [vmem:[#allocation5 + $0x2c] sm:$0xf]  ;;  %v5600_v34 = vld [vmem:[#allocation5] sm:$0xf] }
  0xe6   :  { %1829 = vmatpush.bf16.msra.mxu0 %v5488_v41  ;;  %v7021_v41 = vld [vmem:[#allocation5 + $0x84] sm:$0xf]  ;;  %v7007_v35 = vld [vmem:[#allocation5 + $0xc] sm:$0xf0] }
  0xe7   :  { %1842 = vmatpush.bf16.msra.mxu1 %v5492_v45  ;;  %v5672_v45 = vld [vmem:[#allocation5 + $0x88] sm:$0xf]  ;;  %v5669_v52 = vor.u32 %v7021_v41, %v5666_v43  ;;  %v7008_v43 = vld [vmem:[#allocation5 + $0x14] sm:$0xf0] }
  0xe8   :  { %1855 = vmatpush.bf16.msra.mxu2 %v5496_v46  ;;  %1868 = vmatpush.bf16.msra.mxu3 %v5500_v50  ;;  %v7024_v46 = vld [vmem:[#allocation5 + $0x94] sm:$0xf0]  ;;  %v5665_v50 = vor.u32 %v7023_v40, %v5664_v39  ;;  %v7005_v39 = vld [vmem:[#allocation5 + $0x4] sm:$0xf]  ;;  %v5602_v40 = vld [vmem:[#allocation5 + $0x10] sm:$0xf0] }
  0xe9   :  { %v5673_v54 = vor.u32 %v7024_v46, %v5672_v45  ;;  %v5608_v41 = vld [vmem:[#allocation5 + $0x8] sm:$0xf]  ;;  %v7006_v45 = vld [vmem:[#allocation5 + $0xc] sm:$0xf]  ;;  %v5610_v46 = vld [vmem:[#allocation5 + $0x18] sm:$0xf0] }
  0xea   :  { %1830 = vmatpush.bf16.msra.mxu0 %v5472_v59  ;;  %v7551_v49 = vpop.f32.mrf.mxu0  ;;  %v5650_v59 = vld [vmem:[#allocation5 + $0x70] sm:$0xf0] }
  0xeb   :  { %1843 = vmatpush.bf16.msra.mxu1 %v5476_v2  ;;  %v7553_v51 = vpop.f32.mrf.mxu1  ;;  %v5658_v2 = vld [vmem:[#allocation5 + $0x78] sm:$0xf0]  ;;  %v5653_v4 = vor.u32 %v7017_v57, %v5650_v59  ;;  %v7068_v57 = vld [vmem:[#allocation7 + $0xf4] sm:$0xf0]  ;;  %v5609_v59 = vor.u32 %v7008_v43, %v5608_v41  ;;  %v5800_v41 = vld [vmem:[#allocation7 + $0x88] sm:$0xf] }
  0xec   :  { %1856 = vmatpush.bf16.msra.mxu2 %v5480_v3  ;;  %1869 = vmatpush.bf16.msra.mxu3 %v5484_v6  ;;  %v5649_v3 = vor.u32 %v7019_v56, %v5648_v55  ;;  %v5632_v6 = vld [vmem:[#allocation5 + $0x40] sm:$0xf]  ;;  %v5842_v55 = vld [vmem:[#allocation7 + $0xf0] sm:$0xf0]  ;;  %v5848_v56 = vld [vmem:[#allocation7 + $0xe8] sm:$0xf] }
  0xed   :  { %1831 = vmatmul.bf16.vlgmr.msra.gmra.mxu0 %v5468_v20  ;;  %v7054_v43 = vld [vmem:[#allocation7 + $0x8c] sm:$0xf] }
  0xee   :  { %2084 = vmatpush.bf16.msrb.mxu0 %v5713_v7  ;;  %1844 = vmatmul.bf16.vlgmr.msra.gmra.mxu1 %v5468_v20  ;;  %v7015_v7 = vld [vmem:[#allocation5 + $0x4c] sm:$0xf0] }
  0xef   :  { %2097 = vmatpush.bf16.msrb.mxu1 %v5717_v8  ;;  %1870 = vmatmul.bf16.vlgmr.msra.gmra.mxu3 %v5468_v20  ;;  %v7013_v8 = vld [vmem:[#allocation5 + $0x44] sm:$0xf]  ;;  %v5633_v17 = vor.u32 %v7015_v7, %v5632_v6  ;;  %v7063_v6 = vld [vmem:[#allocation7 + $0xcc] sm:$0xf0] }
  0xf0   :  { %2110 = vmatpush.bf16.msrb.mxu2 %v5721_v9  ;;  %2123 = vmatpush.bf16.msrb.mxu3 %v5725_v13  ;;  %v5661_v9 = vor.u32 %v7018_v1, %v5658_v2  ;;  %v5637_v19 = vor.u32 %v7013_v8, %v5634_v10  ;;  %v5613_v1 = vor.u32 %v7006_v45, %v5610_v46  ;;  %v7061_v7 = vld [vmem:[#allocation7 + $0xc4] sm:$0xf]  ;;  %v5832_v10 = vld [vmem:[#allocation7 + $0xc8] sm:$0xf]  ;;  %v5802_v45 = vld [vmem:[#allocation7 + $0x98] sm:$0xf0] }
  0xf1   :  { %1857 = vmatmul.bf16.vlgmr.msra.gmra.mxu2 %v5468_v20  ;;  %v5641_v20 = vor.u32 %v7016_v12, %v5640_v11  ;;  %v5853_v8 = vor.u32 %v7066_v60, %v5850_v63  ;;  %v7064_v11 = vld [vmem:[#allocation7 + $0xd4] sm:$0xf0]  ;;  %v7050_v63 = vld [vmem:[#allocation7 + $0x6c] sm:$0xf] }
  0xf2   :  { %2085 = vmatpush.bf16.msrb.mxu0 %v5697_v21  ;;  %v7555_v13 = vpop.f32.mrf.mxu3  ;;  %v790_v16 = vpop.f32.mrf.mxu0  ;;  %v5616_v21 = vld [vmem:[#allocation5 + $0x20] sm:$0xf]  ;;  %v7052_v60 = vld [vmem:[#allocation7 + $0x74] sm:$0xf0] }
  0xf3   :  { %2098 = vmatpush.bf16.msrb.mxu1 %v5701_v23  ;;  %v803_v18 = vpop.f32.mrf.mxu1  ;;  %v7011_v23 = vld [vmem:[#allocation5 + $0x2c] sm:$0xf0]  ;;  %v5597_v16 = vld [vmem:[%s7752_s0 + $0x1c] sm:$0xf] }
  0xf4   :  { %2111 = vmatpush.bf16.msrb.mxu2 %v5705_v24  ;;  %2124 = vmatpush.bf16.msrb.mxu3 %v5709_v28  ;;  %v7009_v24 = vld [vmem:[#allocation5 + $0x24] sm:$0xf]  ;;  %v7012_v28 = vld [vmem:[#allocation5 + $0x34] sm:$0xf0]  ;;  %v5617_v33 = vor.u32 %v7011_v23, %v5616_v21  ;;  %v7059_v21 = vld [vmem:[#allocation7 + $0xac] sm:$0xf0] }
  0xf5   :  { %v7057_v23 = vld [vmem:[#allocation7 + $0xa4] sm:$0xf] }
  0xf6   :  { %2086 = vmatpush.bf16.msrb.mxu0 %v5681_v36  ;;  %v7557_v36 = vpop.f32.mrf.mxu2 }
  0xf7   :  { %2099 = vmatpush.bf16.msrb.mxu1 %v5685_v37  ;;  %v5621_v37 = vor.u32 %v7009_v24, %v5618_v26  ;;  %v5837_v24 = vor.u32 %v7062_v14, %v5834_v15  ;;  %v5816_v26 = vld [vmem:[#allocation7 + $0xa8] sm:$0xf]  ;;  %v7046_v14 = vld [vmem:[#allocation7 + $0x4c] sm:$0xf]  ;;  %v5770_v15 = vld [vmem:[#allocation7 + $0x58] sm:$0xf0] }
  0xf8   :  { %2112 = vmatpush.bf16.msrb.mxu2 %v5689_v38  ;;  %2125 = vmatpush.bf16.msrb.mxu3 %v5693_v42  ;;  %v5625_v38 = vor.u32 %v7012_v28, %v5624_v27  ;;  %v5629_v42 = vor.u32 %v7010_v30, %v5626_v32  ;;  %v7060_v27 = vld [vmem:[#allocation7 + $0xb4] sm:$0xf0]  ;;  %v7058_v28 = vld [vmem:[#allocation7 + $0xac] sm:$0xf]  ;;  %v5818_v30 = vld [vmem:[#allocation7 + $0xb8] sm:$0xf0] }
  0xfa   :  { %2087 = vmatpush.bf16.msrb.mxu0 %v5665_v50  ;;  %v829_v47 = vpop.f32.mrf.mxu3  ;;  %v7067_v50 = vld [vmem:[#allocation7 + $0xec] sm:$0xf0] }
  0xfb   :  { %2100 = vmatpush.bf16.msrb.mxu1 %v5669_v52  ;;  %v7065_v52 = vld [vmem:[#allocation7 + $0xe4] sm:$0xf]  ;;  %v5841_v2 = vor.u32 %v7067_v50, %v5840_v48 }
  0xfc   :  { %2113 = vmatpush.bf16.msrb.mxu2 %v5673_v54  ;;  %2126 = vmatpush.bf16.msrb.mxu3 %v5677_v58  ;;  %v5601_v54 = vor.u32 %v7007_v35, %v5600_v34  ;;  %v5605_v58 = vor.u32 %v7005_v39, %v5602_v40  ;;  %v5817_v34 = vor.u32 %v7060_v27, %v5816_v26  ;;  %v5792_v35 = vld [vmem:[#allocation7 + $0x80] sm:$0xf]  ;;  %v5794_v40 = vld [vmem:[#allocation7 + $0x90] sm:$0xf0] }
  0xfd   :  { %v5821_v39 = vor.u32 %v7058_v28, %v5818_v30  ;;  %v5773_v26 = vor.u32 %v7046_v14, %v5770_v15  ;;  %v5746_v27 = vld [vmem:[#allocation7 + $0x30] sm:$0xf0]  ;;  %v5752_v28 = vld [vmem:[#allocation7 + $0x28] sm:$0xf]  ;;  %v7044_v30 = vld [vmem:[#allocation7 + $0x34] sm:$0xf0] }
  0xfe   :  { %2088 = vmatpush.bf16.msrb.mxu0 %v5649_v3  ;;  %v5845_v3 = vor.u32 %v7065_v52, %v5842_v55  ;;  %v816_v12 = vpop.f32.mrf.mxu2  ;;  %v7051_v55 = vld [vmem:[#allocation7 + $0x6c] sm:$0xf0] }
  0xff   :  { %2101 = vmatpush.bf16.msrb.mxu1 %v5653_v4  ;;  %v5849_v4 = vor.u32 %v7068_v57, %v5848_v56  ;;  %v7049_v56 = vld [vmem:[#allocation7 + $0x64] sm:$0xf]  ;;  %v5805_v57 = vor.u32 %v7054_v43, %v5802_v45  ;;  %v5736_v43 = vld [vmem:[#allocation7 + $0x8] sm:$0xf]  ;;  %v7040_v45 = vld [vmem:[#allocation7 + $0x14] sm:$0xf0] }
 0x100   :  { %2114 = vmatpush.bf16.msrb.mxu2 %v5657_v5  ;;  %2127 = vmatpush.bf16.msrb.mxu3 %v5661_v9  ;;  %v5824_v5 = vld [vmem:[#allocation7 + $0xc0] sm:$0xf]  ;;  %v5826_v9 = vld [vmem:[#allocation7 + $0xd0] sm:$0xf0] }
 0x101   :  { %v5829_v18 = vor.u32 %v7061_v7, %v5826_v9  ;;  %v7045_v7 = vld [vmem:[#allocation7 + $0x44] sm:$0xf]  ;;  %v5762_v9 = vld [vmem:[#allocation7 + $0x50] sm:$0xf0] }
 0x102   :  { %2089 = vmatpush.bf16.msrb.mxu0 %v5633_v17  ;;  %v5825_v17 = vor.u32 %v7063_v6, %v5824_v5  ;;  %v5760_v5 = vld [vmem:[#allocation7 + $0x40] sm:$0xf]  ;;  %v7047_v6 = vld [vmem:[#allocation7 + $0x4c] sm:$0xf0] }
 0x103   :  { %2102 = vmatpush.bf16.msrb.mxu1 %v5637_v19  ;;  %v5833_v19 = vor.u32 %v7064_v11, %v5832_v10  ;;  %v5768_v10 = vld [vmem:[#allocation7 + $0x48] sm:$0xf]  ;;  %v7048_v11 = vld [vmem:[#allocation7 + $0x54] sm:$0xf0] }
 0x104   :  { %2115 = vmatpush.bf16.msrb.mxu2 %v5641_v20  ;;  %2128 = vmatpush.bf16.msrb.mxu3 %v5645_v25  ;;  %v5808_v20 = vld [vmem:[#allocation7 + $0xa0] sm:$0xf]  ;;  %v5810_v25 = vld [vmem:[#allocation7 + $0xb0] sm:$0xf0] }
 0x105   :  { %v5809_v32 = vor.u32 %v7059_v21, %v5808_v20  ;;  %v5765_v20 = vor.u32 %v7045_v7, %v5762_v9  ;;  %v5769_v21 = vor.u32 %v7048_v11, %v5768_v10 }
 0x106   :  { %2090 = vmatpush.bf16.msrb.mxu0 %v5617_v33  ;;  %v5813_v33 = vor.u32 %v7057_v23, %v5810_v25  ;;  %v5744_v23 = vld [vmem:[#allocation7 + $0x20] sm:$0xf]  ;;  %v7041_v25 = vld [vmem:[#allocation7 + $0x24] sm:$0xf] }
 0x107   :  { %2103 = vmatpush.bf16.msrb.mxu1 %v5621_v37  ;;  %v7055_v37 = vld [vmem:[#allocation7 + $0x8c] sm:$0xf0] }
 0x108   :  { %2116 = vmatpush.bf16.msrb.mxu2 %v5625_v38  ;;  %2129 = vmatpush.bf16.msrb.mxu3 %v5629_v42  ;;  %v7053_v38 = vld [vmem:[#allocation7 + $0x84] sm:$0xf]  ;;  %v7056_v42 = vld [vmem:[#allocation7 + $0x94] sm:$0xf0]  ;;  %v5793_v47 = vor.u32 %v7055_v37, %v5792_v35  ;;  %v5749_v35 = vor.u32 %v7041_v25, %v5746_v27  ;;  %v5753_v37 = vor.u32 %v7044_v30, %v5752_v28 }
 0x109   :  { %v5797_v50 = vor.u32 %v7053_v38, %v5794_v40  ;;  %v5801_v52 = vor.u32 %v7056_v42, %v5800_v41  ;;  %v5728_v38 = vld [vmem:[#allocation7] sm:$0xf]  ;;  %v7037_v40 = vld [vmem:[#allocation7 + $0x4] sm:$0xf]  ;;  %v5730_v42 = vld [vmem:[#allocation7 + $0x10] sm:$0xf0] }
 0x10a   :  { %2091 = vmatpush.bf16.msrb.mxu0 %v5601_v54  ;;  %v7562_v46 = vpop.f32.mrf.mxu0  ;;  %v5776_v54 = vld [vmem:[#allocation7 + $0x60] sm:$0xf] }
 0x10b   :  { %2104 = vmatpush.bf16.msrb.mxu1 %v5605_v58  ;;  %v7564_v48 = vpop.f32.mrf.mxu1  ;;  %v5778_v58 = vld [vmem:[#allocation7 + $0x70] sm:$0xf0] }
 0x10c   :  { %2117 = vmatpush.bf16.msrb.mxu2 %v5609_v59  ;;  %2130 = vmatpush.bf16.msrb.mxu3 %v5613_v1  ;;  %v5784_v59 = vld [vmem:[#allocation7 + $0x68] sm:$0xf]  ;;  %v5786_v1 = vld [vmem:[#allocation7 + $0x78] sm:$0xf0] }
 0x10d   :  { %2092 = vmatmul.bf16.vlgmr.msrb.gmra.mxu0 %v5597_v16 }
 0x10e   :  { %2340 = vmatpush.bf16.msra.mxu0 %v5841_v2  ;;  %2105 = vmatmul.bf16.vlgmr.msrb.gmra.mxu1 %v5597_v16  ;;  %v5777_v2 = vor.u32 %v7051_v55, %v5776_v54 }
 0x10f   :  { %2353 = vmatpush.bf16.msra.mxu1 %v5845_v3  ;;  %2131 = vmatmul.bf16.vlgmr.msrb.gmra.mxu3 %v5597_v16  ;;  %v5781_v3 = vor.u32 %v7049_v56, %v5778_v58  ;;  %v5733_v56 = vor.u32 %v7037_v40, %v5730_v42  ;;  %v5973_v40 = vld [vmem:[#allocation7 + $0xf0] sm:$0xf0]  ;;  %v7100_v42 = vld [vmem:[#allocation7 + $0xf4] sm:$0xf0] }
 0x110   :  { %2366 = vmatpush.bf16.msra.mxu2 %v5849_v4  ;;  %2379 = vmatpush.bf16.msra.mxu3 %v5853_v8  ;;  %v5785_v4 = vor.u32 %v7052_v60, %v5784_v59  ;;  %v5789_v8 = vor.u32 %v7050_v63, %v5786_v1  ;;  %v7482_v59 = vmov 0.0|0.0  }
 0x111   :  { %2118 = vmatmul.bf16.vlgmr.msrb.gmra.mxu2 %v5597_v16 }
 0x112   :  { %2341 = vmatpush.bf16.msra.mxu0 %v5825_v17  ;;  %v7566_v12 = vpop.f32.mrf.mxu3  ;;  %v1051_v16 = vpop.f32.mrf.mxu0 }
 0x113   :  { %2354 = vmatpush.bf16.msra.mxu1 %v5829_v18  ;;  %v5761_v18 = vor.u32 %v7047_v6, %v5760_v5 }
 0x114   :  { %2367 = vmatpush.bf16.msra.mxu2 %v5833_v19  ;;  %2380 = vmatpush.bf16.msra.mxu3 %v5837_v24  ;;  %v7568_v17 = vpop.f32.mrf.mxu2  ;;  %v1064_v19 = vpop.f32.mrf.mxu1  ;;  %v7043_v24 = vld [vmem:[#allocation7 + $0x2c] sm:$0xf0] }
 0x116   :  { %2342 = vmatpush.bf16.msra.mxu0 %v5809_v32  ;;  %v7042_v32 = vld [vmem:[#allocation7 + $0x2c] sm:$0xf] }
 0x117   :  { %2355 = vmatpush.bf16.msra.mxu1 %v5813_v33  ;;  %v5754_v33 = vld [vmem:[#allocation7 + $0x38] sm:$0xf0] }
 0x118   :  { %2368 = vmatpush.bf16.msra.mxu2 %v5817_v34  ;;  %2381 = vmatpush.bf16.msra.mxu3 %v5821_v39  ;;  %v5745_v34 = vor.u32 %v7043_v24, %v5744_v23  ;;  %v7039_v39 = vld [vmem:[#allocation7 + $0xc] sm:$0xf0]  ;;  %v5757_v41 = vor.u32 %v7042_v32, %v5754_v33 }
 0x119   :  { %v5729_v55 = vor.u32 %v7039_v39, %v5728_v38  ;;  %v7097_v38 = vld [vmem:[#allocation7 + $0xe4] sm:$0xf] }
 0x11a   :  { %2343 = vmatpush.bf16.msra.mxu0 %v5793_v47  ;;  %v1090_v47 = vpop.f32.mrf.mxu3 }
 0x11b   :  { %2356 = vmatpush.bf16.msra.mxu1 %v5797_v50  ;;  %v7038_v50 = vld [vmem:[#allocation7 + $0xc] sm:$0xf] }
 0x11c   :  { %2369 = vmatpush.bf16.msra.mxu2 %v5801_v52  ;;  %2382 = vmatpush.bf16.msra.mxu3 %v5805_v57  ;;  %v5738_v52 = vld [vmem:[#allocation7 + $0x18] sm:$0xf0]  ;;  %v1077_v54 = vpop.f32.mrf.mxu2  ;;  %v5737_v57 = vor.u32 %v7040_v45, %v5736_v43  ;;  %v5976_v43 = vor.u32 %v7097_v38, %v5973_v40  ;;  %v7098_v47 = vld [vmem:[#allocation7 + $0xec] sm:$0xf] }
 0x11d   :  { %v5741_v58 = vor.u32 %v7038_v50, %v5738_v52  ;;  %v5981_v50 = vld [vmem:[#allocation7 + $0xf8] sm:$0xf0]  ;;  %v7090_v40 = vld [vmem:[#allocation7 + $0xac] sm:$0xf] }
 0x11e   :  { %2344 = vmatpush.bf16.msra.mxu0 %v5777_v2  ;;  %v5984_v54 = vor.u32 %v7098_v47, %v5981_v50  ;;  %v5923_v47 = vld [vmem:[#allocation7 + $0x80] sm:$0xf]  ;;  %v7087_v50 = vld [vmem:[#allocation7 + $0x8c] sm:$0xf0] }
 0x11f   :  { %2357 = vmatpush.bf16.msra.mxu1 %v5781_v3 }
 0x120   :  { %2370 = vmatpush.bf16.msra.mxu2 %v5785_v4  ;;  %2383 = vmatpush.bf16.msra.mxu3 %v5789_v8 }
 0x122   :  { %2345 = vmatpush.bf16.msra.mxu0 %v5761_v18 }
 0x123   :  { %2358 = vmatpush.bf16.msra.mxu1 %v5765_v20 }
 0x124   :  { %2371 = vmatpush.bf16.msra.mxu2 %v5769_v21  ;;  %2384 = vmatpush.bf16.msra.mxu3 %v5773_v26 }
 0x126   :  { %2346 = vmatpush.bf16.msra.mxu0 %v5745_v34 }
 0x127   :  { %2359 = vmatpush.bf16.msra.mxu1 %v5749_v35  ;;  %v5971_v35 = vld [vmem:[#allocation7 + $0xe0] sm:$0xf] }
 0x128   :  { %2372 = vmatpush.bf16.msra.mxu2 %v5753_v37  ;;  %2385 = vmatpush.bf16.msra.mxu3 %v5757_v41  ;;  %v7099_v37 = vld [vmem:[#allocation7 + $0xec] sm:$0xf0]  ;;  %v5979_v41 = vld [vmem:[#allocation7 + $0xe8] sm:$0xf] }
 0x129   :  { %v5972_v39 = vor.u32 %v7099_v37, %v5971_v35  ;;  %v5980_v45 = vor.u32 %v7100_v42, %v5979_v41  ;;  %v5947_v35 = vld [vmem:[#allocation7 + $0xa8] sm:$0xf]  ;;  %v7092_v37 = vld [vmem:[#allocation7 + $0xb4] sm:$0xf0]  ;;  %v5949_v41 = vld [vmem:[#allocation7 + $0xb8] sm:$0xf0] }
 0x12a   :  { %2347 = vmatpush.bf16.msra.mxu0 %v5729_v55  ;;  %v7570_v60 = vpop.f32.mrf.mxu0 }
 0x12b   :  { %2360 = vmatpush.bf16.msra.mxu1 %v5733_v56  ;;  %v7572_v63 = vpop.f32.mrf.mxu1  ;;  %v5955_v56 = vld [vmem:[#allocation7 + $0xc0] sm:$0xf] }
 0x12c   :  { %2373 = vmatpush.bf16.msra.mxu2 %v5737_v57  ;;  %2386 = vmatpush.bf16.msra.mxu3 %v5741_v58  ;;  %v7095_v57 = vld [vmem:[#allocation7 + $0xcc] sm:$0xf0]  ;;  %v7093_v58 = vld [vmem:[#allocation7 + $0xc4] sm:$0xf] }
 0x12d   :  { %2348 = vmatmul.bf16.vlgmr.msra.gmra.mxu0 %v7482_v59 }
 0x12e   :  { %2361 = vmatmul.bf16.vlgmr.msra.gmra.mxu1 %v7482_v59  ;;  %2657 = vmatpush.bf16.msrb.mxu0 %v5972_v39  ;;  %v5948_v39 = vor.u32 %v7092_v37, %v5947_v35 }
 0x12f   :  { %2374 = vmatmul.bf16.vlgmr.msra.gmra.mxu2 %v7482_v59  ;;  %2387 = vmatmul.bf16.vlgmr.msra.gmra.mxu3 %v7482_v59  ;;  %v5956_v59 = vor.u32 %v7095_v57, %v5955_v56  ;;  %v5931_v56 = vld [vmem:[#allocation7 + $0x88] sm:$0xf]  ;;  %v7088_v57 = vld [vmem:[#allocation7 + $0x94] sm:$0xf0] }
 0x130   :  { %2670 = vmatpush.bf16.msrb.mxu1 %v5976_v43  ;;  %2683 = vmatpush.bf16.msrb.mxu2 %v5980_v45  ;;  %v5952_v45 = vor.u32 %v7090_v40, %v5949_v41  ;;  %v7082_v40 = vld [vmem:[#allocation7 + $0x6c] sm:$0xf]  ;;  %v5917_v41 = vld [vmem:[#allocation7 + $0x78] sm:$0xf0] }
 0x131   :  { %2696 = vmatpush.bf16.msrb.mxu3 %v5984_v54  ;;  %v5924_v54 = vor.u32 %v7087_v50, %v5923_v47 }
 0x132   :  { %v7574_v1 = vpop.f32.mrf.mxu3  ;;  %v1312_v2 = vpop.f32.mrf.mxu0  ;;  %2658 = vmatpush.bf16.msrb.mxu0 %v5956_v59  ;;  %v5932_v59 = vor.u32 %v7088_v57, %v5931_v56  ;;  %v5899_v57 = vld [vmem:[#allocation7 + $0x48] sm:$0xf] }
 0x133   :  { %v1325_v4 = vpop.f32.mrf.mxu1  ;;  %v5957_v2 = vld [vmem:[#allocation7 + $0xd0] sm:$0xf0] }
 0x134   :  { %v7576_v3 = vpop.f32.mrf.mxu2  ;;  %v5963_v4 = vld [vmem:[#allocation7 + $0xc8] sm:$0xf] }
 0x13a   :  { %v1351_v5 = vpop.f32.mrf.mxu3 }
 0x13b   :  { %v7096_v5 = vld [vmem:[#allocation7 + $0xd4] sm:$0xf0] }
 0x13c   :  { %v1338_v6 = vpop.f32.mrf.mxu2 }
 0x13d   :  { %v5960_v6 = vor.u32 %v7093_v58, %v5957_v2  ;;  %v7086_v2 = vld [vmem:[#allocation7 + $0x8c] sm:$0xf] }
 0x13f   :  { %2671 = vmatpush.bf16.msrb.mxu1 %v5960_v6 }
 0x14a   :  { %v7578_v7 = vpop.f32.mrf.mxu0 }
 0x14b   :  { %v7580_v8 = vpop.f32.mrf.mxu1 }
 0x152   :  { %v7582_v9 = vpop.f32.mrf.mxu3  ;;  %v1573_v10 = vpop.f32.mrf.mxu0 }
 0x153   :  { %v1586_v14 = vpop.f32.mrf.mxu1  ;;  %v5964_v10 = vor.u32 %v7096_v5, %v5963_v4  ;;  %v5933_v4 = vld [vmem:[#allocation7 + $0x98] sm:$0xf0] }
 0x154   :  { %v7584_v11 = vpop.f32.mrf.mxu2  ;;  %v7094_v14 = vld [vmem:[#allocation7 + $0xcc] sm:$0xf]  ;;  %v5936_v5 = vor.u32 %v7086_v2, %v5933_v4  ;;  %v5901_v4 = vld [vmem:[#allocation7 + $0x58] sm:$0xf0] }
 0x155   :  { %2684 = vmatpush.bf16.msrb.mxu2 %v5964_v10  ;;  %v5907_v10 = vld [vmem:[#allocation7 + $0x60] sm:$0xf] }
 0x159   :  { %2685 = vmatpush.bf16.msrb.mxu2 %v5948_v39 }
 0x15a   :  { %v1612_v15 = vpop.f32.mrf.mxu3 }
 0x15b   :  { %v5965_v15 = vld [vmem:[#allocation7 + $0xd8] sm:$0xf0] }
 0x15c   :  { %v1599_v16 = vpop.f32.mrf.mxu2 }
 0x15d   :  { %v7605_v16 = vld [vmem:[%s7755_s3] sm:$0xf]  ;;  %2686 = vmatpush.bf16.msrb.mxu2 %v5932_v59  ;;  %v7078_v59 = vld [vmem:[#allocation7 + $0x4c] sm:$0xf] }
 0x15e   :  { %v90_v42 = vperm.slane %v7605_v16, 0  ;;  %v91_v43 = vperm.slane %v7605_v16, 1 }
 0x160   :  { %v268_v6 = vadd.f32 %v7529_v29, %v90_v42  ;;  %v93_v29 = vperm.slane %v7605_v16, 3 }
 0x16a   :  { %v7586_v18 = vpop.f32.mrf.mxu0 }
 0x16b   :  { %v7588_v19 = vpop.f32.mrf.mxu1 }
 0x172   :  { %v7590_v20 = vpop.f32.mrf.mxu3  ;;  %v1834_v21 = vpop.f32.mrf.mxu0 }
 0x173   :  { %v1847_v24 = vpop.f32.mrf.mxu1  ;;  %v5968_v21 = vor.u32 %v7094_v14, %v5965_v15  ;;  %v7083_v14 = vld [vmem:[#allocation7 + $0x6c] sm:$0xf0]  ;;  %v7081_v15 = vld [vmem:[#allocation7 + $0x64] sm:$0xf] }
 0x174   :  { %v7592_v23 = vpop.f32.mrf.mxu2  ;;  %v5939_v24 = vld [vmem:[#allocation7 + $0xa0] sm:$0xf] }
 0x175   :  { %2697 = vmatpush.bf16.msrb.mxu3 %v5968_v21  ;;  %v281_v21 = vadd.f32 %v7531_v31, %v91_v43  ;;  %v5891_v31 = vld [vmem:[#allocation7 + $0x40] sm:$0xf]  ;;  %v7079_v43 = vld [vmem:[#allocation7 + $0x4c] sm:$0xf0] }
 0x179   :  { %2698 = vmatpush.bf16.msrb.mxu3 %v5952_v45  ;;  %v5920_v45 = vor.u32 %v7082_v40, %v5917_v41 }
 0x17a   :  { %v1873_v25 = vpop.f32.mrf.mxu3 }
 0x17b   :  { %v7091_v25 = vld [vmem:[#allocation7 + $0xac] sm:$0xf0] }
 0x17c   :  { %v1860_v26 = vpop.f32.mrf.mxu2 }
 0x17d   :  { %v7089_v26 = vld [vmem:[#allocation7 + $0xa4] sm:$0xf]  ;;  %2699 = vmatpush.bf16.msrb.mxu3 %v5936_v5  ;;  %v5875_v5 = vld [vmem:[#allocation7 + $0x20] sm:$0xf] }
 0x181   :  { %2700 = vmatpush.bf16.msrb.mxu3 %v5920_v45 }
 0x18a   :  { %v7594_v27 = vpop.f32.mrf.mxu0 }
 0x18b   :  { %v7596_v28 = vpop.f32.mrf.mxu1 }
 0x192   :  { %v7598_v30 = vpop.f32.mrf.mxu3  ;;  %v2095_v32 = vpop.f32.mrf.mxu0 }
 0x193   :  { %v2108_v34 = vpop.f32.mrf.mxu1  ;;  %v5940_v32 = vor.u32 %v7091_v25, %v5939_v24  ;;  %v5908_v25 = vor.u32 %v7083_v14, %v5907_v10  ;;  %v307_v10 = vadd.f32 %v7533_v53, %v93_v29  ;;  %v5859_v53 = vld [vmem:[#allocation7] sm:$0xf]  ;;  %v7071_v29 = vld [vmem:[#allocation7 + $0xc] sm:$0xf0] }
 0x194   :  { %v7600_v33 = vpop.f32.mrf.mxu2  ;;  %v5941_v34 = vld [vmem:[#allocation7 + $0xb0] sm:$0xf0] }
 0x195   :  { %v5944_v38 = vor.u32 %v7089_v26, %v5941_v34  ;;  %2659 = vmatpush.bf16.msrb.mxu0 %v5940_v32  ;;  %v5909_v26 = vld [vmem:[#allocation7 + $0x70] sm:$0xf0]  ;;  %v5915_v32 = vld [vmem:[#allocation7 + $0x68] sm:$0xf]  ;;  %v7084_v34 = vld [vmem:[#allocation7 + $0x74] sm:$0xf0] }
 0x196   :  { %v5916_v39 = vor.u32 %v7084_v34, %v5915_v32 }
 0x197   :  { %2672 = vmatpush.bf16.msrb.mxu1 %v5944_v38  ;;  %v5912_v38 = vor.u32 %v7081_v15, %v5909_v26  ;;  %v5904_v15 = vor.u32 %v7078_v59, %v5901_v4  ;;  %v5883_v26 = vld [vmem:[#allocation7 + $0x28] sm:$0xf] }
 0x198   :  { %2687 = vmatpush.bf16.msrb.mxu2 %v5916_v39  ;;  %v5885_v39 = vld [vmem:[#allocation7 + $0x38] sm:$0xf0] }
 0x199   :  { %2660 = vmatpush.bf16.msrb.mxu0 %v5924_v54  ;;  %v7077_v54 = vld [vmem:[#allocation7 + $0x44] sm:$0xf]  ;;  %2701 = vmatpush.bf16.msrb.mxu3 %v5904_v15 }
 0x19a   :  { %v2134_v52 = vpop.f32.mrf.mxu3 }
 0x19b   :  { %v7085_v52 = vld [vmem:[#allocation7 + $0x84] sm:$0xf] }
 0x19c   :  { %v2121_v55 = vpop.f32.mrf.mxu2 }
 0x19d   :  { %v5925_v55 = vld [vmem:[#allocation7 + $0x90] sm:$0xf0]  ;;  %2661 = vmatpush.bf16.msrb.mxu0 %v5908_v25 }
 0x19e   :  { %v5928_v58 = vor.u32 %v7085_v52, %v5925_v55  ;;  %v5892_v52 = vor.u32 %v7079_v43, %v5891_v31  ;;  %v5893_v55 = vld [vmem:[#allocation7 + $0x50] sm:$0xf0]  ;;  %v5860_v31 = vor.u32 %v7071_v29, %v5859_v53 }
 0x19f   :  { %v5896_v56 = vor.u32 %v7077_v54, %v5893_v55  ;;  %v5877_v25 = vld [vmem:[#allocation7 + $0x30] sm:$0xf0] }
 0x1a0   :  { %2673 = vmatpush.bf16.msrb.mxu1 %v5928_v58  ;;  %v7080_v58 = vld [vmem:[#allocation7 + $0x54] sm:$0xf0]  ;;  %v5861_v43 = vld [vmem:[#allocation7 + $0x10] sm:$0xf0] }
 0x1a1   :  { %2662 = vmatpush.bf16.msrb.mxu0 %v5892_v52  ;;  %v5900_v2 = vor.u32 %v7080_v58, %v5899_v57  ;;  %v7072_v52 = vld [vmem:[#allocation7 + $0x14] sm:$0xf0]  ;;  %v7070_v57 = vld [vmem:[#allocation7 + $0xc] sm:$0xf]  ;;  %v5869_v58 = vld [vmem:[#allocation7 + $0x18] sm:$0xf0] }
 0x1a3   :  { %2688 = vmatpush.bf16.msrb.mxu2 %v5900_v2 }
 0x1a4   :  { %2674 = vmatpush.bf16.msrb.mxu1 %v5912_v38  ;;  %v7074_v38 = vld [vmem:[#allocation7 + $0x2c] sm:$0xf] }
 0x1a5   :  { %v5888_v45 = vor.u32 %v7074_v38, %v5885_v39 }
 0x1a7   :  { %2702 = vmatpush.bf16.msrb.mxu3 %v5888_v45 }
 0x1a8   :  { %2675 = vmatpush.bf16.msrb.mxu1 %v5896_v56 }
 0x1aa   :  { %v2349_v24 = vpop.f32.mrf.mxu0 }
 0x1ab   :  { %v2392_v35 = vadd.f32 %v2349_v24, %v268_v6  ;;  %v2362_v37 = vpop.f32.mrf.mxu1  ;;  %v7075_v6 = vld [vmem:[#allocation7 + $0x2c] sm:$0xf0]  ;;  %v7073_v24 = vld [vmem:[#allocation7 + $0x24] sm:$0xf] }
 0x1ac   :  { %v2393_v42 = vadd.f32 %v2362_v37, %v281_v21  ;;  %v5876_v21 = vor.u32 %v7075_v6, %v5875_v5  ;;  %v7076_v37 = vld [vmem:[#allocation7 + $0x34] sm:$0xf0]  ;;  %v5872_v6 = vor.u32 %v7070_v57, %v5869_v58 }
 0x1ad   :  { %v5854_v47 = vmul.f32 -1.442695, %v2392_v35  ;;  %v5880_v35 = vor.u32 %v7073_v24, %v5877_v25 }
 0x1ae   :  { %v5855_v50 = vmul.f32 -1.442695, %v2393_v42  ;;  %v5884_v42 = vor.u32 %v7076_v37, %v5883_v26  ;;  %2663 = vmatpush.bf16.msrb.mxu0 %v5876_v21  ;;  %2703 = vmatpush.bf16.msrb.mxu3 %v5872_v6 }
 0x1af   :  { %7298 = vpow2.f32 %v5854_v47  ;;  %v7069_v47 = vld [vmem:[#allocation7 + $0x4] sm:$0xf]  ;;  %2676 = vmatpush.bf16.msrb.mxu1 %v5880_v35 }
 0x1b0   :  { %7300 = vpow2.f32 %v5855_v50  ;;  %v5867_v50 = vld [vmem:[#allocation7 + $0x8] sm:$0xf]  ;;  %v5864_v56 = vor.u32 %v7069_v47, %v5861_v43  ;;  %2689 = vmatpush.bf16.msrb.mxu2 %v5884_v42 }
 0x1b1   :  { %v5868_v4 = vor.u32 %v7072_v52, %v5867_v50 }
 0x1b2   :  { %v2375_v14 = vpop.f32.mrf.mxu2  ;;  %v2388_v32 = vpop.f32.mrf.mxu3  ;;  %2664 = vmatpush.bf16.msrb.mxu0 %v5860_v31 }
 0x1b3   :  { %v2351_v34 = vpop.f32.mrf.mxu0  ;;  %v2395_v40 = vadd.f32 %v2388_v32, %v307_v10  ;;  %v2364_v41 = vpop.f32.mrf.mxu1  ;;  %v92_v10 = vperm.slane %v7605_v16, 2  ;;  %2677 = vmatpush.bf16.msrb.mxu1 %v5864_v56 }
 0x1b4   :  { %2690 = vmatpush.bf16.msrb.mxu2 %v5868_v4 }
 0x1b5   :  { %v7299_v54 = vpop.eup %7298  ;;  %v5856_v55 = vmul.f32 -1.442695, %v2395_v40  ;;  %v294_v24 = vadd.f32 %v7535_v61, %v92_v10 }
 0x1b6   :  { %v7301_v59 = vpop.eup %7300  ;;  %v2399_v2 = vadd.f32 1.0, %v7299_v54 }
 0x1b7   :  { %v2418_v5 = vadd.f32 1.0, %v7301_v59  ;;  %7302 = vpow2.f32 %v5856_v55  ;;  %v2394_v32 = vadd.f32 %v2375_v14, %v294_v24 }
 0x1b8   :  { %7304 = vrcp.f32 %v2399_v2  ;;  %v2411_v40 = vand.u32 2147483648, %v2399_v2  ;;  %v2409_v45 = vand.u32 2147483647, %v2399_v2  ;;  %vm2405_vm2 = vweird.f32 %v2399_v2 }
 0x1b9   :  { %7306 = vrcp.f32 %v2418_v5  ;;  %v2430_v41 = vand.u32 2147483648, %v2418_v5  ;;  %v2428_v29 = vand.u32 2147483647, %v2418_v5  ;;  %vm2424_vm3 = vweird.f32 %v2418_v5 }
 0x1ba   :  { %v2377_v15 = vpop.f32.mrf.mxu2  ;;  %v2390_v21 = vpop.f32.mrf.mxu3  ;;  %v2412_v14 = vor.u32 1.1754944e-38, %v2411_v40  ;;  %vm2410_vm5 = vcmp.eq.f32.partialorder %v2409_v45, 8.507059e+37  ;;  %v6111_v40 = vld [vmem:[#allocation7 + $0xe8] sm:$0xf] }
 0x1bb   :  { %v2431_v43 = vor.u32 1.1754944e-38, %v2430_v41  ;;  %vm2429_vm7 = vcmp.eq.f32.partialorder %v2428_v29, 8.507059e+37  ;;  %v7132_v41 = vld [vmem:[#allocation7 + $0xf4] sm:$0xf0]  ;;  %v6113_v29 = vld [vmem:[#allocation7 + $0xf8] sm:$0xf0] }
 0x1bc   :  { %v6112_v45 = vor.u32 %v7132_v41, %v6111_v40  ;;  %v7119_v40 = vld [vmem:[#allocation7 + $0x8c] sm:$0xf0]  ;;  %v7117_v41 = vld [vmem:[#allocation7 + $0x84] sm:$0xf] }
 0x1bd   :  { %v7303_v25 = vpop.eup %7302 }
 0x1be   :  { %v7305_v26 = vpop.eup %7304  ;;  %v2438_v34 = vadd.f32 1.0, %v7303_v25  ;;  %3001 = vmatpush.bf16.msra.mxu2 %v6112_v45  ;;  %v6057_v45 = vld [vmem:[#allocation7 + $0x90] sm:$0xf0] }
 0x1bf   :  { %v7307_v35 = vpop.eup %7306  ;;  %v2401_v37 = vmul.f32 %v7305_v26, %v2399_v2  ;;  %vm2406_vm0 = vweird.f32 %v7305_v26 }
 0x1c0   :  { %v2420_v38 = vmul.f32 %v7307_v35, %v2418_v5  ;;  %7308 = vrcp.f32 %v2438_v34  ;;  %vm2425_vm1 = vweird.f32 %v7307_v35  ;;  %vm2407_vm4 = vmor %vm2405_vm2, %vm2406_vm0  ;;  %v2450_v10 = vand.u32 2147483648, %v2438_v34 }
 0x1c1   :  { %v2402_v39 = vsub.f32 1.0, %v2401_v37  ;;  %7310 = vtanh.f32 %v2394_v32  ;;  %vm2426_vm6 = vmor %vm2424_vm3, %vm2425_vm1  ;;  %vm2444_vm9 = vweird.f32 %v2438_v34  ;;  %v2448_v15 = vand.u32 2147483647, %v2438_v34  ;;  %v6103_v37 = vld [vmem:[#allocation7 + $0xe0] sm:$0xf] }
 0x1c2   :  { %v2421_v16 = vsub.f32 1.0, %v2420_v38  ;;  %v2451_v24 = vor.u32 1.1754944e-38, %v2450_v10  ;;  %v7131_v38 = vld [vmem:[#allocation7 + $0xec] sm:$0xf0]  ;;  %v7121_v10 = vld [vmem:[#allocation7 + $0xa4] sm:$0xf] }
 0x1c3   :  { %v2403_v42 = vmul.f32 %v7305_v26, %v2402_v39  ;;  %vm2449_vm11 = vcmp.eq.f32.partialorder %v2448_v15, 8.507059e+37  ;;  %v7129_v39 = vld [vmem:[#allocation7 + $0xe4] sm:$0xf] }
 0x1c4   :  { %v2422_v53 = vmul.f32 %v7307_v35, %v2421_v16  ;;  %v6105_v16 = vld [vmem:[#allocation7 + $0xf0] sm:$0xf0] }
 0x1c5   :  { %v2404_v61 = vadd.f32 %v7305_v26, %v2403_v42  ;;  %v6108_v42 = vor.u32 %v7129_v39, %v6105_v16  ;;  %v6055_v16 = vld [vmem:[#allocation7 + $0x80] sm:$0xf] }
 0x1c6   :  { %v7309_v47 = vpop.eup %7308  ;;  %v2423_v31 = vadd.f32 %v7307_v35, %v2422_v53  ;;  %v7130_v53 = vld [vmem:[#allocation7 + $0xec] sm:$0xf] }
 0x1c7   :  { %v2408_v50 = vsel %vm2407_vm4, %v7305_v26, %v2404_v61  ;;  %v2440_v52 = vmul.f32 %v7309_v47, %v2438_v34  ;;  %v7311_v54 = vpop.eup %7310  ;;  %vm2445_vm8 = vweird.f32 %v7309_v47  ;;  %v6104_v34 = vor.u32 %v7131_v38, %v6103_v37  ;;  %2988 = vmatpush.bf16.msra.mxu1 %v6108_v42  ;;  %v6081_v37 = vld [vmem:[#allocation7 + $0xb8] sm:$0xf0] }
 0x1c8   :  { %v2413_v55 = vsel %vm2410_vm5, %v2412_v14, %v2408_v50  ;;  %v2427_v56 = vsel %vm2426_vm6, %v7307_v35, %v2423_v31  ;;  %vm2446_vm10 = vmor %vm2444_vm9, %vm2445_vm8  ;;  %v6116_v61 = vor.u32 %v7130_v53, %v6113_v29  ;;  %v7127_v14 = vld [vmem:[#allocation7 + $0xcc] sm:$0xf0]  ;;  %v7125_v31 = vld [vmem:[#allocation7 + $0xc4] sm:$0xf]  ;;  %v6056_v42 = vor.u32 %v7119_v40, %v6055_v16 }
 0x1c9   :  { %v2432_v57 = vsel %vm2429_vm7, %v2431_v43, %v2427_v56  ;;  %v2455_v58 = vmul.f32 %v7311_v54, %v2413_v55  ;;  %v2441_v59 = vsub.f32 1.0, %v2440_v52  ;;  %2975 = vmatpush.bf16.msra.mxu0 %v6104_v34  ;;  %v6089_v50 = vld [vmem:[#allocation7 + $0xd0] sm:$0xf0]  ;;  %v6095_v52 = vld [vmem:[#allocation7 + $0xc8] sm:$0xf] }
 0x1ca   :  { %v2454_v4 = vmul.f32 0.0, %v2432_v57  ;;  %3014 = vmatpush.bf16.msra.mxu3 %v6116_v61  ;;  %v7128_v54 = vld [vmem:[#allocation7 + $0xd4] sm:$0xf0]  ;;  %v6092_v55 = vor.u32 %v7125_v31, %v6089_v50  ;;  %v7126_v57 = vld [vmem:[#allocation7 + $0xcc] sm:$0xf]  ;;  %v6060_v61 = vor.u32 %v7117_v41, %v6057_v45 }
 0x1cb   :  { %v2442_v6 = vmul.f32 %v7309_v47, %v2441_v59  ;;  %v6096_v56 = vor.u32 %v7128_v54, %v6095_v52  ;;  %v7624_v59 = vld [vmem:[%s7755_s3] sm:$0xf]  ;;  %v6063_v53 = vld [vmem:[#allocation7 + $0x88] sm:$0xf]  ;;  %v7120_v29 = vld [vmem:[#allocation7 + $0x94] sm:$0xf0] }
 0x1cc   :  { %v7615_v2 = vadd.f32 %v2455_v58, %v2454_v4  ;;  %v6097_v58 = vld [vmem:[#allocation7 + $0xd8] sm:$0xf0]  ;;  %2989 = vmatpush.bf16.msra.mxu1 %v6092_v55  ;;  %v350_v38 = vperm.slane %v7624_v59, 0  ;;  %v351_v39 = vperm.slane %v7624_v59, 1  ;;  %v6039_v50 = vld [vmem:[#allocation7 + $0x60] sm:$0xf] }
 0x1cd   :  { %v2443_v5 = vadd.f32 %v7309_v47, %v2442_v6  ;;  %v6100_v4 = vor.u32 %v7126_v57, %v6097_v58  ;;  %3002 = vmatpush.bf16.msra.mxu2 %v6096_v56  ;;  %v6071_v6 = vld [vmem:[#allocation7 + $0xa0] sm:$0xf]  ;;  %v6065_v31 = vld [vmem:[#allocation7 + $0x98] sm:$0xf0]  ;;  %v7115_v52 = vld [vmem:[#allocation7 + $0x6c] sm:$0xf0] }
 0x1ce   :  { %7312 = vtanh.f32 %v7615_v2  ;;  %v7113_v54 = vld [vmem:[#allocation7 + $0x64] sm:$0xf]  ;;  %v528_v55 = vadd.f32 %v7540_v62, %v350_v38  ;;  %v541_v56 = vadd.f32 %v7542_v0, %v351_v39  ;;  %v6040_v57 = vor.u32 %v7115_v52, %v6039_v50  ;;  %v6041_v58 = vld [vmem:[#allocation7 + $0x70] sm:$0xf0]  ;;  %v6023_v62 = vld [vmem:[#allocation7 + $0x40] sm:$0xf] }
 0x1cf   :  { %v2447_v21 = vsel %vm2446_vm10, %v7309_v47, %v2443_v5  ;;  %v6087_v47 = vld [vmem:[#allocation7 + $0xc0] sm:$0xf]  ;;  %v7123_v5 = vld [vmem:[#allocation7 + $0xac] sm:$0xf0]  ;;  %3015 = vmatpush.bf16.msra.mxu3 %v6100_v4  ;;  %v6047_v4 = vld [vmem:[#allocation7 + $0x68] sm:$0xf] }
 0x1d0   :  { %v2452_v26 = vsel %vm2449_vm11, %v2451_v24, %v2447_v21  ;;  %v6088_v43 = vor.u32 %v7127_v14, %v6087_v47  ;;  %v6072_v15 = vor.u32 %v7123_v5, %v6071_v6  ;;  %v6073_v21 = vld [vmem:[#allocation7 + $0xb0] sm:$0xf0]  ;;  %v6079_v24 = vld [vmem:[#allocation7 + $0xa8] sm:$0xf]  ;;  %v6064_v47 = vor.u32 %v7120_v29, %v6063_v53  ;;  %v7118_v14 = vld [vmem:[#allocation7 + $0x8c] sm:$0xf] }
 0x1d1   :  { %v7116_v6 = vld [vmem:[#allocation7 + $0x74] sm:$0xf0]  ;;  %v7111_v0 = vld [vmem:[#allocation7 + $0x4c] sm:$0xf0]  ;;  %v7109_v38 = vld [vmem:[#allocation7 + $0x44] sm:$0xf] }
 0x1d2   :  { %2976 = vmatpush.bf16.msra.mxu0 %v6088_v43  ;;  %v6068_v43 = vor.u32 %v7118_v14, %v6065_v31  ;;  %v6024_v16 = vor.u32 %v7111_v0, %v6023_v62  ;;  %v6025_v40 = vld [vmem:[#allocation7 + $0x50] sm:$0xf0]  ;;  %v7112_v45 = vld [vmem:[#allocation7 + $0x54] sm:$0xf0]  ;;  %v7110_v53 = vld [vmem:[#allocation7 + $0x4c] sm:$0xf] }
 0x1d3   :  { %v6028_v41 = vor.u32 %v7109_v38, %v6025_v40  ;;  %v7107_v14 = vld [vmem:[#allocation7 + $0x2c] sm:$0xf0]  ;;  %v7105_v52 = vld [vmem:[#allocation7 + $0x24] sm:$0xf]  ;;  %v5999_v62 = vld [vmem:[#allocation7 + $0x8] sm:$0xf] }
 0x1d4   :  { %v7313_v25 = vpop.eup %7312  ;;  %v7104_v0 = vld [vmem:[#allocation7 + $0x14] sm:$0xf0] }
 0x1d5   :  { %v2458_v32 = vmul.f32 %v7313_v25, %v2452_v26  ;;  %v7124_v25 = vld [vmem:[#allocation7 + $0xb4] sm:$0xf0]  ;;  %v6076_v26 = vor.u32 %v7121_v10, %v6073_v21  ;;  %v6048_v21 = vor.u32 %v7116_v6, %v6047_v4  ;;  %v7106_v6 = vld [vmem:[#allocation7 + $0x2c] sm:$0xf] }
 0x1d6   :  { %2977 = vmatpush.bf16.msra.mxu0 %v6072_v15  ;;  %v6044_v15 = vor.u32 %v7113_v54, %v6041_v58  ;;  %v6009_v54 = vld [vmem:[#allocation7 + $0x30] sm:$0xf0]  ;;  %v7108_v4 = vld [vmem:[#allocation7 + $0x34] sm:$0xf0] }
 0x1d7   :  { %v2459_v35 = vpack.c.bf16 %v2458_v32, %v2458_v32  ;;  %v6080_v32 = vor.u32 %v7124_v25, %v6079_v24  ;;  %2990 = vmatpush.bf16.msra.mxu1 %v6076_v26  ;;  %v7114_v24 = vld [vmem:[#allocation7 + $0x6c] sm:$0xf]  ;;  %v6049_v25 = vld [vmem:[#allocation7 + $0x78] sm:$0xf0]  ;;  %v353_v26 = vperm.slane %v7624_v59, 3  ;;  %v6012_v58 = vor.u32 %v7105_v52, %v6009_v54 }
 0x1d9   :  { %2460 = vst [vmem:[%s7756_s4] sm:$0xf] %v2459_v35  ;;  %2665 = vmatmul.bf16.vlgmr.msrb.gmra.mxu0 %v2459_v35  ;;  %2678 = vmatmul.bf16.vlgmr.msrb.gmra.mxu1 %v2459_v35  ;;  %v567_v31 = vadd.f32 %v7544_v22, %v353_v26  ;;  %v7103_v26 = vld [vmem:[#allocation7 + $0xc] sm:$0xf0] }
 0x1da   :  { %2691 = vmatmul.bf16.vlgmr.msrb.gmra.mxu2 %v2459_v35  ;;  %2704 = vmatmul.bf16.vlgmr.msrb.gmra.mxu3 %v2459_v35  ;;  %v7122_v35 = vld [vmem:[#allocation7 + $0xac] sm:$0xf] }
 0x1db   :  { %v6084_v34 = vor.u32 %v7122_v35, %v6081_v37  ;;  %3003 = vmatpush.bf16.msra.mxu2 %v6080_v32  ;;  %2978 = vmatpush.bf16.msra.mxu0 %v6056_v42  ;;  %v6052_v37 = vor.u32 %v7114_v24, %v6049_v25  ;;  %v6031_v42 = vld [vmem:[#allocation7 + $0x48] sm:$0xf]  ;;  %v5991_v25 = vld [vmem:[#allocation7] sm:$0xf] }
 0x1dc   :  { %2991 = vmatpush.bf16.msra.mxu1 %v6060_v61  ;;  %v6032_v29 = vor.u32 %v7112_v45, %v6031_v42  ;;  %v6033_v61 = vld [vmem:[#allocation7 + $0x58] sm:$0xf0] }
 0x1dd   :  { %3016 = vmatpush.bf16.msra.mxu3 %v6084_v34 }
 0x1df   :  { %3004 = vmatpush.bf16.msra.mxu2 %v6064_v47  ;;  %2979 = vmatpush.bf16.msra.mxu0 %v6040_v57  ;;  %v6007_v47 = vld [vmem:[#allocation7 + $0x20] sm:$0xf] }
 0x1e0   :  { %2992 = vmatpush.bf16.msra.mxu1 %v6044_v15  ;;  %v6008_v50 = vor.u32 %v7107_v14, %v6007_v47 }
 0x1e1   :  { %3017 = vmatpush.bf16.msra.mxu3 %v6068_v43  ;;  %v6036_v43 = vor.u32 %v7110_v53, %v6033_v61  ;;  %v352_v61 = vperm.slane %v7624_v59, 2 }
 0x1e3   :  { %3005 = vmatpush.bf16.msra.mxu2 %v6048_v21  ;;  %2980 = vmatpush.bf16.msra.mxu0 %v6024_v16  ;;  %v6001_v16 = vld [vmem:[#allocation7 + $0x18] sm:$0xf0] }
 0x1e4   :  { %2993 = vmatpush.bf16.msra.mxu1 %v6028_v41  ;;  %v6000_v41 = vor.u32 %v7104_v0, %v5999_v62 }
 0x1e5   :  { %3018 = vmatpush.bf16.msra.mxu3 %v6052_v37  ;;  %v5993_v37 = vld [vmem:[#allocation7 + $0x10] sm:$0xf0] }
 0x1e7   :  { %3006 = vmatpush.bf16.msra.mxu2 %v6032_v29  ;;  %2981 = vmatpush.bf16.msra.mxu0 %v6008_v50 }
 0x1e8   :  { %2994 = vmatpush.bf16.msra.mxu1 %v6012_v58 }
 0x1e9   :  { %3019 = vmatpush.bf16.msra.mxu3 %v6036_v43  ;;  %v554_v43 = vadd.f32 %v7546_v44, %v352_v61 }
 0x256   :  { %v2666_v5 = vpop.f32.mrf.mxu0  ;;  %v2679_v10 = vpop.f32.mrf.mxu1 }
 0x257   :  { %v2709_v32 = vadd.f32 %v2666_v5, %v528_v55  ;;  %v2710_v35 = vadd.f32 %v2679_v10, %v541_v56  ;;  %v6015_v55 = vld [vmem:[#allocation7 + $0x28] sm:$0xf]  ;;  %v6017_v5 = vld [vmem:[#allocation7 + $0x38] sm:$0xf0] }
 0x258   :  { %v6016_v24 = vor.u32 %v7108_v4, %v6015_v55  ;;  %v6020_v22 = vor.u32 %v7106_v6, %v6017_v5 }
 0x259   :  { %v5985_v39 = vmul.f32 -1.442695, %v2709_v32  ;;  %v5986_v34 = vmul.f32 -1.442695, %v2710_v35  ;;  %v7101_v32 = vld [vmem:[#allocation7 + $0x4] sm:$0xf]  ;;  %v5992_v35 = vor.u32 %v7103_v26, %v5991_v25 }
 0x25a   :  { %3007 = vmatpush.bf16.msra.mxu2 %v6016_v24  ;;  %3020 = vmatpush.bf16.msra.mxu3 %v6020_v22 }
 0x25b   :  { %7314 = vpow2.f32 %v5985_v39  ;;  %v5996_v39 = vor.u32 %v7101_v32, %v5993_v37  ;;  %2982 = vmatpush.bf16.msra.mxu0 %v5992_v35 }
 0x25c   :  { %7316 = vpow2.f32 %v5986_v34  ;;  %v7102_v34 = vld [vmem:[#allocation7 + $0xc] sm:$0xf] }
 0x25d   :  { %v2692_v56 = vpop.f32.mrf.mxu2  ;;  %v2705_v57 = vpop.f32.mrf.mxu3  ;;  %v6004_v53 = vor.u32 %v7102_v34, %v6001_v16  ;;  %2995 = vmatpush.bf16.msra.mxu1 %v5996_v39 }
 0x25e   :  { %v2712_v10 = vadd.f32 %v2705_v57, %v567_v31  ;;  %v2668_v15 = vpop.f32.mrf.mxu0  ;;  %v2681_v21 = vpop.f32.mrf.mxu1  ;;  %3008 = vmatpush.bf16.msra.mxu2 %v6000_v41  ;;  %v2711_v54 = vadd.f32 %v2692_v56, %v554_v43 }
 0x25f   :  { %3021 = vmatpush.bf16.msra.mxu3 %v6004_v53 }
 0x260   :  { %v5987_v38 = vmul.f32 -1.442695, %v2712_v10 }
 0x261   :  { %v7315_v40 = vpop.eup %7314 }
 0x262   :  { %v7317_v42 = vpop.eup %7316  ;;  %v2716_v45 = vadd.f32 1.0, %v7315_v40  ;;  %7318 = vpow2.f32 %v5987_v38 }
 0x263   :  { %v2735_v29 = vadd.f32 1.0, %v7317_v42 }
 0x264   :  { %7320 = vrcp.f32 %v2716_v45  ;;  %v2728_v59 = vand.u32 2147483648, %v2716_v45  ;;  %v2726_v15 = vand.u32 2147483647, %v2716_v45  ;;  %vm2722_vm14 = vweird.f32 %v2716_v45 }
 0x265   :  { %7322 = vrcp.f32 %v2735_v29  ;;  %v2694_v47 = vpop.f32.mrf.mxu2  ;;  %v2707_v14 = vpop.f32.mrf.mxu3  ;;  %v2747_v5 = vand.u32 2147483648, %v2735_v29  ;;  %v2745_v24 = vand.u32 2147483647, %v2735_v29  ;;  %vm2741_vm15 = vweird.f32 %v2735_v29 }
 0x266   :  { %v2729_v56 = vor.u32 1.1754944e-38, %v2728_v59  ;;  %vm2727_vm2 = vcmp.eq.f32.partialorder %v2726_v15, 8.507059e+37  ;;  %v7162_v59 = vld [vmem:[#allocation7 + $0xec] sm:$0xf]  ;;  %v6219_v15 = vld [vmem:[#allocation7 + $0xc0] sm:$0xf] }
 0x267   :  { %v2748_v32 = vor.u32 1.1754944e-38, %v2747_v5  ;;  %vm2746_vm3 = vcmp.eq.f32.partialorder %v2745_v24, 8.507059e+37  ;;  %v6245_v5 = vld [vmem:[#allocation7 + $0xf8] sm:$0xf0]  ;;  %v7157_v24 = vld [vmem:[#allocation7 + $0xc4] sm:$0xf] }
 0x268   :  { %v7319_v31 = vpop.eup %7318 }
 0x269   :  { %v2755_v50 = vadd.f32 1.0, %v7319_v31 }
 0x26a   :  { %v7321_v52 = vpop.eup %7320 }
 0x26b   :  { %v7323_v55 = vpop.eup %7322  ;;  %v2718_v57 = vmul.f32 %v7321_v52, %v2716_v45  ;;  %7324 = vrcp.f32 %v2755_v50  ;;  %vm2723_vm12 = vweird.f32 %v7321_v52  ;;  %v2767_v45 = vand.u32 2147483648, %v2755_v50 }
 0x26c   :  { %v2737_v58 = vmul.f32 %v7323_v55, %v2735_v29  ;;  %7326 = vtanh.f32 %v2711_v54  ;;  %vm2742_vm13 = vweird.f32 %v7323_v55  ;;  %vm2724_vm0 = vmor %vm2722_vm14, %vm2723_vm12  ;;  %vm2761_vm5 = vweird.f32 %v2755_v50  ;;  %v7161_v54 = vld [vmem:[#allocation7 + $0xe4] sm:$0xf] }
 0x26d   :  { %v2719_v4 = vsub.f32 1.0, %v2718_v57  ;;  %vm2743_vm1 = vmor %vm2741_vm15, %vm2742_vm13  ;;  %v2765_v53 = vand.u32 2147483647, %v2755_v50  ;;  %v2768_v61 = vor.u32 1.1754944e-38, %v2767_v45  ;;  %v6243_v57 = vld [vmem:[#allocation7 + $0xe8] sm:$0xf] }
 0x26e   :  { %v2738_v6 = vsub.f32 1.0, %v2737_v58  ;;  %v7164_v58 = vld [vmem:[#allocation7 + $0xf4] sm:$0xf0] }
 0x26f   :  { %v2720_v10 = vmul.f32 %v7321_v52, %v2719_v4  ;;  %vm2766_vm7 = vcmp.eq.f32.partialorder %v2765_v53, 8.507059e+37  ;;  %v7156_v45 = vld [vmem:[#allocation7 + $0xb4] sm:$0xf0] }
 0x270   :  { %v2739_v21 = vmul.f32 %v7323_v55, %v2738_v6  ;;  %v6244_v6 = vor.u32 %v7164_v58, %v6243_v57  ;;  %v6195_v57 = vld [vmem:[#allocation7 + $0x88] sm:$0xf]  ;;  %v7152_v58 = vld [vmem:[#allocation7 + $0x94] sm:$0xf0] }
 0x271   :  { %v7325_v22 = vpop.eup %7324  ;;  %v2721_v44 = vadd.f32 %v7321_v52, %v2720_v10  ;;  %v6248_v10 = vor.u32 %v7162_v59, %v6245_v5  ;;  %v7150_v59 = vld [vmem:[#allocation7 + $0x8c] sm:$0xf]  ;;  %v6197_v5 = vld [vmem:[#allocation7 + $0x98] sm:$0xf0] }
 0x272   :  { %v2740_v25 = vadd.f32 %v7323_v55, %v2739_v21  ;;  %v2757_v26 = vmul.f32 %v7325_v22, %v2755_v50  ;;  %v7327_v37 = vpop.eup %7326  ;;  %vm2762_vm4 = vweird.f32 %v7325_v22  ;;  %3319 = vmatpush.bf16.msrb.mxu2 %v6244_v6  ;;  %v7159_v21 = vld [vmem:[#allocation7 + $0xcc] sm:$0xf0]  ;;  %v6196_v6 = vor.u32 %v7152_v58, %v6195_v57 }
 0x273   :  { %v2725_v35 = vsel %vm2724_vm0, %v7321_v52, %v2721_v44  ;;  %vm2763_vm6 = vmor %vm2761_vm5, %vm2762_vm4  ;;  %v7163_v52 = vld [vmem:[#allocation7 + $0xec] sm:$0xf0]  ;;  %3332 = vmatpush.bf16.msrb.mxu3 %v6248_v10  ;;  %v6221_v44 = vld [vmem:[#allocation7 + $0xd0] sm:$0xf0]  ;;  %v6200_v10 = vor.u32 %v7150_v59, %v6197_v5 }
 0x274   :  { %v2730_v62 = vsel %vm2727_vm2, %v2729_v56, %v2725_v35  ;;  %v2744_v0 = vsel %vm2743_vm1, %v7323_v55, %v2740_v25  ;;  %v2758_v38 = vsub.f32 1.0, %v2757_v26  ;;  %v6237_v55 = vld [vmem:[#allocation7 + $0xf0] sm:$0xf0]  ;;  %v6227_v56 = vld [vmem:[#allocation7 + $0xc8] sm:$0xf]  ;;  %v6224_v26 = vor.u32 %v7157_v24, %v6221_v44 }
 0x275   :  { %v2749_v39 = vsel %vm2746_vm3, %v2748_v32, %v2744_v0  ;;  %v2772_v34 = vmul.f32 %v7327_v37, %v2730_v62  ;;  %v6240_v4 = vor.u32 %v7161_v54, %v6237_v55  ;;  %v7160_v25 = vld [vmem:[#allocation7 + $0xd4] sm:$0xf0]  ;;  %v7158_v35 = vld [vmem:[#allocation7 + $0xcc] sm:$0xf]  ;;  %v6229_v37 = vld [vmem:[#allocation7 + $0xd8] sm:$0xf0] }
 0x276   :  { %v2771_v16 = vmul.f32 %v2749_v39, %v7615_v2  ;;  %v2759_v40 = vmul.f32 %v7325_v22, %v2758_v38  ;;  %v6235_v2 = vld [vmem:[#allocation7 + $0xe0] sm:$0xf]  ;;  %v6228_v32 = vor.u32 %v7160_v25, %v6227_v56  ;;  %v6232_v0 = vor.u32 %v7158_v35, %v6229_v37  ;;  %v7155_v39 = vld [vmem:[#allocation7 + $0xac] sm:$0xf0]  ;;  %v7149_v54 = vld [vmem:[#allocation7 + $0x84] sm:$0xf] }
 0x277   :  { %v6236_v50 = vor.u32 %v7163_v52, %v6235_v2  ;;  %3306 = vmatpush.bf16.msrb.mxu1 %v6240_v4  ;;  %v7644_v62 = vld [vmem:[%s7755_s3] sm:$0xf]  ;;  %v7151_v52 = vld [vmem:[#allocation7 + $0x8c] sm:$0xf0]  ;;  %v6189_v55 = vld [vmem:[#allocation7 + $0x90] sm:$0xf0] }
 0x278   :  { %v7635_v41 = vadd.f32 %v2772_v34, %v2771_v16  ;;  %v2760_v42 = vadd.f32 %v7325_v22, %v2759_v40  ;;  %3320 = vmatpush.bf16.msrb.mxu2 %v6228_v32  ;;  %v6203_v38 = vld [vmem:[#allocation7 + $0xa0] sm:$0xf]  ;;  %v7153_v34 = vld [vmem:[#allocation7 + $0xa4] sm:$0xf]  ;;  %3333 = vmatpush.bf16.msrb.mxu3 %v6232_v0  ;;  %v6205_v40 = vld [vmem:[#allocation7 + $0xb0] sm:$0xf0]  ;;  %v6192_v4 = vor.u32 %v7149_v54, %v6189_v55 }
 0x279   :  { %3293 = vmatpush.bf16.msrb.mxu0 %v6236_v50  ;;  %v6204_v16 = vor.u32 %v7155_v39, %v6203_v38  ;;  %v6208_v53 = vor.u32 %v7153_v34, %v6205_v40  ;;  %v6187_v2 = vld [vmem:[#allocation7 + $0x80] sm:$0xf]  ;;  %v7145_v24 = vld [vmem:[#allocation7 + $0x64] sm:$0xf]  ;;  %v6173_v25 = vld [vmem:[#allocation7 + $0x70] sm:$0xf0] }
 0x27a   :  { %7328 = vtanh.f32 %v7635_v41  ;;  %v2764_v29 = vsel %vm2763_vm6, %v7325_v22, %v2760_v42  ;;  %v6220_v22 = vor.u32 %v7159_v21, %v6219_v15  ;;  %v6211_v42 = vld [vmem:[#allocation7 + $0xa8] sm:$0xf]  ;;  %v6188_v50 = vor.u32 %v7151_v52, %v6187_v2  ;;  %v6171_v15 = vld [vmem:[#allocation7 + $0x60] sm:$0xf]  ;;  %v7147_v21 = vld [vmem:[#allocation7 + $0x6c] sm:$0xf0] }
 0x27b   :  { %v2769_v14 = vsel %vm2766_vm7, %v2768_v61, %v2764_v29  ;;  %3307 = vmatpush.bf16.msrb.mxu1 %v6224_v26  ;;  %v6212_v29 = vor.u32 %v7156_v45, %v6211_v42  ;;  %v7154_v61 = vld [vmem:[#allocation7 + $0xac] sm:$0xf]  ;;  %v6172_v56 = vor.u32 %v7147_v21, %v6171_v15  ;;  %v6179_v26 = vld [vmem:[#allocation7 + $0x68] sm:$0xf]  ;;  %v7148_v32 = vld [vmem:[#allocation7 + $0x74] sm:$0xf0]  ;;  %v6176_v0 = vor.u32 %v7145_v24, %v6173_v25 }
 0x27c   :  { %v6180_v38 = vor.u32 %v7148_v32, %v6179_v26  ;;  %v7146_v39 = vld [vmem:[#allocation7 + $0x6c] sm:$0xf]  ;;  %v6181_v34 = vld [vmem:[#allocation7 + $0x78] sm:$0xf0]  ;;  %v7144_v2 = vld [vmem:[#allocation7 + $0x54] sm:$0xf0] }
 0x27d   :  { %3294 = vmatpush.bf16.msrb.mxu0 %v6220_v22  ;;  %3321 = vmatpush.bf16.msrb.mxu2 %v6212_v29  ;;  %v6184_v45 = vor.u32 %v7146_v39, %v6181_v34  ;;  %v7142_v52 = vld [vmem:[#allocation7 + $0x4c] sm:$0xf]  ;;  %v6139_v55 = vld [vmem:[#allocation7 + $0x20] sm:$0xf]  ;;  %v7139_v57 = vld [vmem:[#allocation7 + $0x2c] sm:$0xf0] }
 0x27e   :  { %v7137_v59 = vld [vmem:[#allocation7 + $0x24] sm:$0xf]  ;;  %v6141_v5 = vld [vmem:[#allocation7 + $0x30] sm:$0xf0] }
 0x27f   :  { %3308 = vmatpush.bf16.msrb.mxu1 %v6208_v53  ;;  %v7141_v53 = vld [vmem:[#allocation7 + $0x44] sm:$0xf]  ;;  %v6144_v24 = vor.u32 %v7137_v59, %v6141_v5  ;;  %v6125_v34 = vld [vmem:[#allocation7 + $0x10] sm:$0xf0] }
 0x280   :  { %v7329_v47 = vpop.eup %7328 }
 0x281   :  { %v2775_v31 = vmul.f32 %v7329_v47, %v2769_v14  ;;  %v6213_v47 = vld [vmem:[#allocation7 + $0xb8] sm:$0xf0]  ;;  %v611_v14 = vperm.slane %v7644_v62, 0  ;;  %3295 = vmatpush.bf16.msrb.mxu0 %v6204_v16  ;;  %3322 = vmatpush.bf16.msrb.mxu2 %v6196_v6  ;;  %v614_v16 = vperm.slane %v7644_v62, 3  ;;  %v6140_v6 = vor.u32 %v7139_v57, %v6139_v55 }
 0x283   :  { %v2776_v43 = vpack.c.bf16 %v2775_v31, %v2775_v31  ;;  %v612_v31 = vperm.slane %v7644_v62, 1  ;;  %3309 = vmatpush.bf16.msrb.mxu1 %v6192_v4  ;;  %v789_v22 = vadd.f32 %v7551_v49, %v611_v14  ;;  %v6155_v49 = vld [vmem:[#allocation7 + $0x40] sm:$0xf]  ;;  %v6157_v14 = vld [vmem:[#allocation7 + $0x50] sm:$0xf0]  ;;  %v828_v58 = vadd.f32 %v7555_v13, %v614_v16 }
 0x284   :  { %v6131_v16 = vld [vmem:[#allocation7 + $0x8] sm:$0xf] }
 0x285   :  { %5988 = vst [vmem:[%s7756_s4 + $0x4] sm:$0xf] %v2776_v43  ;;  %2983 = vmatmul.bf16.vlgmr.msra.gmra.mxu0 %v2776_v43  ;;  %2996 = vmatmul.bf16.vlgmr.msra.gmra.mxu1 %v2776_v43  ;;  %v802_v44 = vadd.f32 %v7553_v51, %v612_v31  ;;  %v7143_v51 = vld [vmem:[#allocation7 + $0x4c] sm:$0xf0]  ;;  %v6160_v31 = vor.u32 %v7141_v53, %v6157_v14 }
 0x286   :  { %3009 = vmatmul.bf16.vlgmr.msra.gmra.mxu2 %v2776_v43  ;;  %3022 = vmatmul.bf16.vlgmr.msra.gmra.mxu3 %v2776_v43  ;;  %v6216_v43 = vor.u32 %v7154_v61, %v6213_v47  ;;  %v6156_v47 = vor.u32 %v7143_v51, %v6155_v49  ;;  %v7134_v49 = vld [vmem:[#allocation7 + $0xc] sm:$0xf]  ;;  %v6133_v51 = vld [vmem:[#allocation7 + $0x18] sm:$0xf0] }
 0x287   :  { %3296 = vmatpush.bf16.msrb.mxu0 %v6188_v50  ;;  %3310 = vmatpush.bf16.msrb.mxu1 %v6176_v0  ;;  %v6165_v50 = vld [vmem:[#allocation7 + $0x58] sm:$0xf0]  ;;  %v7135_v0 = vld [vmem:[#allocation7 + $0xc] sm:$0xf0]  ;;  %v6136_v14 = vor.u32 %v7134_v49, %v6133_v51 }
 0x288   :  { %3334 = vmatpush.bf16.msrb.mxu3 %v6216_v43  ;;  %3323 = vmatpush.bf16.msrb.mxu2 %v6180_v38  ;;  %v6163_v43 = vld [vmem:[#allocation7 + $0x48] sm:$0xf]  ;;  %v6168_v4 = vor.u32 %v7142_v52, %v6165_v50  ;;  %v7133_v38 = vld [vmem:[#allocation7 + $0x4] sm:$0xf] }
 0x289   :  { %v6164_v54 = vor.u32 %v7144_v2, %v6163_v43  ;;  %v613_v43 = vperm.slane %v7644_v62, 2 }
 0x28b   :  { %3297 = vmatpush.bf16.msrb.mxu0 %v6172_v56  ;;  %3311 = vmatpush.bf16.msrb.mxu1 %v6160_v31  ;;  %v6149_v56 = vld [vmem:[#allocation7 + $0x38] sm:$0xf0]  ;;  %v815_v50 = vadd.f32 %v7557_v36, %v613_v43 }
 0x28c   :  { %3335 = vmatpush.bf16.msrb.mxu3 %v6200_v10  ;;  %v6147_v10 = vld [vmem:[#allocation7 + $0x28] sm:$0xf]  ;;  %3324 = vmatpush.bf16.msrb.mxu2 %v6164_v54 }
 0x28f   :  { %3298 = vmatpush.bf16.msrb.mxu0 %v6156_v47  ;;  %3312 = vmatpush.bf16.msrb.mxu1 %v6144_v24 }
 0x290   :  { %3336 = vmatpush.bf16.msrb.mxu3 %v6184_v45  ;;  %v6128_v45 = vor.u32 %v7133_v38, %v6125_v34 }
 0x293   :  { %3299 = vmatpush.bf16.msrb.mxu0 %v6140_v6  ;;  %3313 = vmatpush.bf16.msrb.mxu1 %v6128_v45 }
 0x294   :  { %3337 = vmatpush.bf16.msrb.mxu3 %v6168_v4 }
 0x302   :  { %v2984_v35 = vpop.f32.mrf.mxu0  ;;  %v2997_v37 = vpop.f32.mrf.mxu1 }
 0x303   :  { %v3027_v40 = vadd.f32 %v2984_v35, %v789_v22  ;;  %v3028_v42 = vadd.f32 %v2997_v37, %v802_v44  ;;  %v7140_v22 = vld [vmem:[#allocation7 + $0x34] sm:$0xf0]  ;;  %v7138_v44 = vld [vmem:[#allocation7 + $0x2c] sm:$0xf]  ;;  %v6123_v37 = vld [vmem:[#allocation7] sm:$0xf] }
 0x304   :  { %v6148_v35 = vor.u32 %v7140_v22, %v6147_v10  ;;  %v6152_v13 = vor.u32 %v7138_v44, %v6149_v56  ;;  %v6124_v39 = vor.u32 %v7135_v0, %v6123_v37 }
 0x305   :  { %v6117_v29 = vmul.f32 -1.442695, %v3027_v40  ;;  %v6118_v61 = vmul.f32 -1.442695, %v3028_v42  ;;  %v7136_v40 = vld [vmem:[#allocation7 + $0x14] sm:$0xf0] }
 0x306   :  { %3325 = vmatpush.bf16.msrb.mxu2 %v6148_v35  ;;  %3338 = vmatpush.bf16.msrb.mxu3 %v6152_v13 }
 0x307   :  { %7330 = vpow2.f32 %v6117_v29  ;;  %v6132_v29 = vor.u32 %v7136_v40, %v6131_v16  ;;  %3300 = vmatpush.bf16.msrb.mxu0 %v6124_v39 }
 0x308   :  { %7332 = vpow2.f32 %v6118_v61 }
 0x309   :  { %v3010_v15 = vpop.f32.mrf.mxu2  ;;  %v3023_v21 = vpop.f32.mrf.mxu3 }
 0x30a   :  { %v3030_v25 = vadd.f32 %v3023_v21, %v828_v58  ;;  %v2986_v26 = vpop.f32.mrf.mxu0  ;;  %v2999_v32 = vpop.f32.mrf.mxu1  ;;  %3326 = vmatpush.bf16.msrb.mxu2 %v6132_v29  ;;  %3339 = vmatpush.bf16.msrb.mxu3 %v6136_v14  ;;  %v3029_v58 = vadd.f32 %v3010_v15, %v815_v50  ;;  %v6369_v50 = vld [vmem:[#allocation7 + $0xf0] sm:$0xf0] }
 0x30c   :  { %v6119_v42 = vmul.f32 -1.442695, %v3030_v25 }
 0x30d   :  { %v7331_v53 = vpop.eup %7330 }
 0x30e   :  { %v7333_v61 = vpop.eup %7332  ;;  %v3034_v47 = vadd.f32 1.0, %v7331_v53  ;;  %7334 = vpow2.f32 %v6119_v42 }
 0x30f   :  { %v3053_v31 = vadd.f32 1.0, %v7333_v61 }
 0x310   :  { %7336 = vrcp.f32 %v3034_v47  ;;  %v3046_v62 = vand.u32 2147483648, %v3034_v47  ;;  %v3044_v22 = vand.u32 2147483647, %v3034_v47  ;;  %vm3040_vm10 = vweird.f32 %v3034_v47 }
 0x311   :  { %7338 = vrcp.f32 %v3053_v31  ;;  %v3012_v2 = vpop.f32.mrf.mxu2  ;;  %v3025_v52 = vpop.f32.mrf.mxu3  ;;  %v3065_v21 = vand.u32 2147483648, %v3053_v31  ;;  %v3063_v56 = vand.u32 2147483647, %v3053_v31  ;;  %vm3059_vm11 = vweird.f32 %v3053_v31 }
 0x312   :  { %v3047_v15 = vor.u32 1.1754944e-38, %v3046_v62  ;;  %vm3045_vm14 = vcmp.eq.f32.partialorder %v3044_v22, 8.507059e+37  ;;  %v7195_v2 = vld [vmem:[#allocation7 + $0xec] sm:$0xf0]  ;;  %v7193_v52 = vld [vmem:[#allocation7 + $0xe4] sm:$0xf] }
 0x313   :  { %v3066_v35 = vor.u32 1.1754944e-38, %v3065_v21  ;;  %vm3064_vm15 = vcmp.eq.f32.partialorder %v3063_v56, 8.507059e+37  ;;  %v7191_v62 = vld [vmem:[#allocation7 + $0xcc] sm:$0xf0]  ;;  %v7189_v21 = vld [vmem:[#allocation7 + $0xc4] sm:$0xf] }
 0x314   :  { %v7335_v54 = vpop.eup %7334  ;;  %v6353_v22 = vld [vmem:[#allocation7 + $0xd0] sm:$0xf0]  ;;  %v7192_v56 = vld [vmem:[#allocation7 + $0xd4] sm:$0xf0] }
 0x315   :  { %v3073_v55 = vadd.f32 1.0, %v7335_v54 }
 0x316   :  { %v7337_v57 = vpop.eup %7336 }
 0x317   :  { %v7339_v4 = vpop.eup %7338  ;;  %v3036_v6 = vmul.f32 %v7337_v57, %v3034_v47  ;;  %7340 = vrcp.f32 %v3073_v55  ;;  %vm3041_vm8 = vweird.f32 %v7337_v57  ;;  %v3085_v51 = vand.u32 2147483648, %v3073_v55 }
 0x318   :  { %v3055_v59 = vmul.f32 %v7339_v4, %v3053_v31  ;;  %7342 = vtanh.f32 %v3029_v58  ;;  %vm3060_vm9 = vweird.f32 %v7339_v4  ;;  %vm3042_vm12 = vmor %vm3040_vm10, %vm3041_vm8  ;;  %vm3079_vm1 = vweird.f32 %v3073_v55 }
 0x319   :  { %v3037_v5 = vsub.f32 1.0, %v3036_v6  ;;  %vm3061_vm13 = vmor %vm3059_vm11, %vm3060_vm9  ;;  %v3083_v53 = vand.u32 2147483647, %v3073_v55  ;;  %v3086_v61 = vor.u32 1.1754944e-38, %v3085_v51  ;;  %v6372_v58 = vor.u32 %v7193_v52, %v6369_v50  ;;  %v7194_v6 = vld [vmem:[#allocation7 + $0xec] sm:$0xf] }
 0x31a   :  { %v3056_v10 = vsub.f32 1.0, %v3055_v59  ;;  %v6377_v59 = vld [vmem:[#allocation7 + $0xf8] sm:$0xf0]  ;;  %v7184_v52 = vld [vmem:[#allocation7 + $0x94] sm:$0xf0] }
 0x31b   :  { %v3038_v24 = vmul.f32 %v7337_v57, %v3037_v5  ;;  %vm3084_vm3 = vcmp.eq.f32.partialorder %v3083_v53, 8.507059e+37  ;;  %v6380_v5 = vor.u32 %v7194_v6, %v6377_v59  ;;  %3624 = vmatpush.bf16.msra.mxu1 %v6372_v58  ;;  %v6345_v51 = vld [vmem:[#allocation7 + $0xb8] sm:$0xf0]  ;;  %v7179_v6 = vld [vmem:[#allocation7 + $0x6c] sm:$0xf0] }
 0x31c   :  { %v3057_v44 = vmul.f32 %v7339_v4, %v3056_v10  ;;  %v6351_v10 = vld [vmem:[#allocation7 + $0xc0] sm:$0xf]  ;;  %v7177_v59 = vld [vmem:[#allocation7 + $0x64] sm:$0xf] }
 0x31d   :  { %v7341_v25 = vpop.eup %7340  ;;  %v3039_v36 = vadd.f32 %v7337_v57, %v3038_v24  ;;  %3650 = vmatpush.bf16.msra.mxu3 %v6380_v5  ;;  %v6352_v24 = vor.u32 %v7191_v62, %v6351_v10 }
 0x31e   :  { %v3058_v26 = vadd.f32 %v7339_v4, %v3057_v44  ;;  %v3075_v32 = vmul.f32 %v7341_v25, %v3073_v55  ;;  %v7343_v37 = vpop.eup %7342  ;;  %vm3080_vm0 = vweird.f32 %v7341_v25  ;;  %v6375_v55 = vld [vmem:[#allocation7 + $0xe8] sm:$0xf] }
 0x31f   :  { %v3043_v13 = vsel %vm3042_vm12, %v7337_v57, %v3039_v36  ;;  %vm3081_vm2 = vmor %vm3079_vm1, %vm3080_vm0  ;;  %v7196_v57 = vld [vmem:[#allocation7 + $0xf4] sm:$0xf0]  ;;  %v6359_v44 = vld [vmem:[#allocation7 + $0xc8] sm:$0xf] }
 0x320   :  { %v3048_v0 = vsel %vm3045_vm14, %v3047_v15, %v3043_v13  ;;  %v3062_v38 = vsel %vm3061_vm13, %v7339_v4, %v3058_v26  ;;  %v3076_v39 = vsub.f32 1.0, %v3075_v32  ;;  %v6376_v4 = vor.u32 %v7196_v57, %v6375_v55  ;;  %v7190_v15 = vld [vmem:[#allocation7 + $0xcc] sm:$0xf]  ;;  %v6361_v26 = vld [vmem:[#allocation7 + $0xd8] sm:$0xf0] }
 0x321   :  { %v3067_v34 = vsel %vm3064_vm15, %v3066_v35, %v3062_v38  ;;  %v3090_v16 = vmul.f32 %v7343_v37, %v3048_v0  ;;  %v6360_v36 = vor.u32 %v7192_v56, %v6359_v44  ;;  %v7664_v32 = vld [vmem:[%s7755_s3] sm:$0xf]  ;;  %v6364_v35 = vor.u32 %v7190_v15, %v6361_v26  ;;  %v7187_v37 = vld [vmem:[#allocation7 + $0xac] sm:$0xf0]  ;;  %v7185_v0 = vld [vmem:[#allocation7 + $0xa4] sm:$0xf] }
 0x322   :  { %v3089_v40 = vmul.f32 %v3067_v34, %v7635_v41  ;;  %v3077_v42 = vmul.f32 %v7341_v25, %v3076_v39  ;;  %v6367_v41 = vld [vmem:[#allocation7 + $0xe0] sm:$0xf]  ;;  %3637 = vmatpush.bf16.msra.mxu2 %v6376_v4  ;;  %v6337_v39 = vld [vmem:[#allocation7 + $0xb0] sm:$0xf0]  ;;  %v6343_v34 = vld [vmem:[#allocation7 + $0xa8] sm:$0xf] }
 0x323   :  { %v6368_v54 = vor.u32 %v7195_v2, %v6367_v41  ;;  %v6335_v13 = vld [vmem:[#allocation7 + $0xa0] sm:$0xf]  ;;  %3651 = vmatpush.bf16.msra.mxu3 %v6364_v35  ;;  %v872_v53 = vperm.slane %v7664_v32, 0  ;;  %v6321_v41 = vld [vmem:[#allocation7 + $0x90] sm:$0xf0]  ;;  %v875_v35 = vperm.slane %v7664_v32, 3 }
 0x324   :  { %v7655_v45 = vadd.f32 %v3090_v16, %v3089_v40  ;;  %v3078_v49 = vadd.f32 %v7341_v25, %v3077_v42  ;;  %v6336_v38 = vor.u32 %v7187_v37, %v6335_v13  ;;  %v7188_v16 = vld [vmem:[#allocation7 + $0xb4] sm:$0xf0]  ;;  %v6340_v40 = vor.u32 %v7185_v0, %v6337_v39  ;;  %v6327_v2 = vld [vmem:[#allocation7 + $0x88] sm:$0xf]  ;;  %v7182_v55 = vld [vmem:[#allocation7 + $0x8c] sm:$0xf] }
 0x325   :  { %3611 = vmatpush.bf16.msra.mxu0 %v6368_v54  ;;  %v6344_v42 = vor.u32 %v7188_v16, %v6343_v34  ;;  %v6328_v50 = vor.u32 %v7184_v52, %v6327_v2  ;;  %v6329_v57 = vld [vmem:[#allocation7 + $0x98] sm:$0xf0]  ;;  %v6303_v4 = vld [vmem:[#allocation7 + $0x60] sm:$0xf]  ;;  %v1050_v5 = vadd.f32 %v7562_v46, %v872_v53  ;;  %v7178_v15 = vld [vmem:[#allocation7 + $0x6c] sm:$0xf] }
 0x326   :  { %7344 = vtanh.f32 %v7655_v45  ;;  %v3082_v29 = vsel %vm3081_vm2, %v7341_v25, %v3078_v49  ;;  %v6356_v25 = vor.u32 %v7189_v21, %v6353_v22  ;;  %3638 = vmatpush.bf16.msra.mxu2 %v6360_v36  ;;  %v7186_v49 = vld [vmem:[#allocation7 + $0xac] sm:$0xf]  ;;  %v6332_v58 = vor.u32 %v7182_v55, %v6329_v57  ;;  %v6305_v21 = vld [vmem:[#allocation7 + $0x70] sm:$0xf0]  ;;  %v7180_v22 = vld [vmem:[#allocation7 + $0x74] sm:$0xf0] }
 0x327   :  { %v3087_v14 = vsel %vm3084_vm3, %v3086_v61, %v3082_v29  ;;  %v873_v29 = vperm.slane %v7664_v32, 1  ;;  %v6348_v61 = vor.u32 %v7186_v49, %v6345_v51  ;;  %v6304_v62 = vor.u32 %v7179_v6, %v6303_v4  ;;  %v6313_v26 = vld [vmem:[#allocation7 + $0x78] sm:$0xf0]  ;;  %v6287_v46 = vld [vmem:[#allocation7 + $0x40] sm:$0xf] }
 0x328   :  { %3625 = vmatpush.bf16.msra.mxu1 %v6356_v25  ;;  %v6308_v25 = vor.u32 %v7177_v59, %v6305_v21  ;;  %v6316_v0 = vor.u32 %v7178_v15, %v6313_v26  ;;  %v6295_v49 = vld [vmem:[#allocation7 + $0x48] sm:$0xf]  ;;  %v7176_v51 = vld [vmem:[#allocation7 + $0x54] sm:$0xf0]  ;;  %v7174_v53 = vld [vmem:[#allocation7 + $0x4c] sm:$0xf] }
 0x329   :  { %3612 = vmatpush.bf16.msra.mxu0 %v6352_v24  ;;  %3652 = vmatpush.bf16.msra.mxu3 %v6348_v61  ;;  %v1063_v10 = vadd.f32 %v7564_v48, %v873_v29  ;;  %v6311_v24 = vld [vmem:[#allocation7 + $0x68] sm:$0xf]  ;;  %v7175_v48 = vld [vmem:[#allocation7 + $0x4c] sm:$0xf0]  ;;  %v6296_v29 = vor.u32 %v7176_v51, %v6295_v49  ;;  %v6297_v61 = vld [vmem:[#allocation7 + $0x58] sm:$0xf0] }
 0x32a   :  { %3639 = vmatpush.bf16.msra.mxu2 %v6344_v42  ;;  %v6312_v36 = vor.u32 %v7180_v22, %v6311_v24  ;;  %v6288_v16 = vor.u32 %v7175_v48, %v6287_v46  ;;  %v7169_v2 = vld [vmem:[#allocation7 + $0x24] sm:$0xf]  ;;  %v6273_v52 = vld [vmem:[#allocation7 + $0x30] sm:$0xf0]  ;;  %v7170_v4 = vld [vmem:[#allocation7 + $0x2c] sm:$0xf] }
 0x32b   :  { %v6276_v57 = vor.u32 %v7169_v2, %v6273_v52  ;;  %v6281_v6 = vld [vmem:[#allocation7 + $0x38] sm:$0xf0]  ;;  %v6255_v21 = vld [vmem:[#allocation7] sm:$0xf]  ;;  %v7167_v24 = vld [vmem:[#allocation7 + $0xc] sm:$0xf0] }
 0x32c   :  { %v7345_v47 = vpop.eup %7344  ;;  %3626 = vmatpush.bf16.msra.mxu1 %v6340_v40  ;;  %v6289_v40 = vld [vmem:[#allocation7 + $0x50] sm:$0xf0]  ;;  %v7165_v22 = vld [vmem:[#allocation7 + $0x4] sm:$0xf] }
 0x32d   :  { %v3093_v31 = vmul.f32 %v7345_v47, %v3087_v14  ;;  %3613 = vmatpush.bf16.msra.mxu0 %v6336_v38  ;;  %v6319_v47 = vld [vmem:[#allocation7 + $0x80] sm:$0xf]  ;;  %v7183_v14 = vld [vmem:[#allocation7 + $0x8c] sm:$0xf0]  ;;  %3653 = vmatpush.bf16.msra.mxu3 %v6332_v58  ;;  %v7173_v38 = vld [vmem:[#allocation7 + $0x44] sm:$0xf] }
 0x32e   :  { %3640 = vmatpush.bf16.msra.mxu2 %v6328_v50  ;;  %v6292_v42 = vor.u32 %v7173_v38, %v6289_v40  ;;  %v7172_v58 = vld [vmem:[#allocation7 + $0x34] sm:$0xf0] }
 0x32f   :  { %v3094_v43 = vpack.c.bf16 %v3093_v31, %v3093_v31  ;;  %v7181_v31 = vld [vmem:[#allocation7 + $0x84] sm:$0xf] }
 0x330   :  { %v6324_v54 = vor.u32 %v7181_v31, %v6321_v41  ;;  %v1089_v31 = vadd.f32 %v7566_v12, %v875_v35  ;;  %v6284_v12 = vor.u32 %v7170_v4, %v6281_v6  ;;  %v7166_v35 = vld [vmem:[#allocation7 + $0xc] sm:$0xf] }
 0x331   :  { %6120 = vst [vmem:[%s7756_s4 + $0x8] sm:$0xf] %v3094_v43  ;;  %3301 = vmatmul.bf16.vlgmr.msrb.gmra.mxu0 %v3094_v43  ;;  %3314 = vmatmul.bf16.vlgmr.msrb.gmra.mxu1 %v3094_v43 }
 0x332   :  { %3327 = vmatmul.bf16.vlgmr.msrb.gmra.mxu2 %v3094_v43  ;;  %3340 = vmatmul.bf16.vlgmr.msrb.gmra.mxu3 %v3094_v43  ;;  %v6320_v43 = vor.u32 %v7183_v14, %v6319_v47  ;;  %v6271_v47 = vld [vmem:[#allocation7 + $0x20] sm:$0xf]  ;;  %v7171_v14 = vld [vmem:[#allocation7 + $0x2c] sm:$0xf0] }
 0x333   :  { %3627 = vmatpush.bf16.msra.mxu1 %v6324_v54  ;;  %3641 = vmatpush.bf16.msra.mxu2 %v6312_v36  ;;  %v6272_v41 = vor.u32 %v7171_v14, %v6271_v47  ;;  %v6279_v54 = vld [vmem:[#allocation7 + $0x28] sm:$0xf]  ;;  %v7168_v36 = vld [vmem:[#allocation7 + $0x14] sm:$0xf0] }
 0x334   :  { %3614 = vmatpush.bf16.msra.mxu0 %v6320_v43  ;;  %3654 = vmatpush.bf16.msra.mxu3 %v6316_v0  ;;  %v6300_v43 = vor.u32 %v7174_v53, %v6297_v61 }
 0x337   :  { %3628 = vmatpush.bf16.msra.mxu1 %v6308_v25  ;;  %3642 = vmatpush.bf16.msra.mxu2 %v6296_v29  ;;  %v6263_v25 = vld [vmem:[#allocation7 + $0x8] sm:$0xf] }
 0x338   :  { %3615 = vmatpush.bf16.msra.mxu0 %v6304_v62  ;;  %3655 = vmatpush.bf16.msra.mxu3 %v6300_v43  ;;  %v6280_v62 = vor.u32 %v7172_v58, %v6279_v54  ;;  %v6264_v0 = vor.u32 %v7168_v36, %v6263_v25 }
 0x33b   :  { %3629 = vmatpush.bf16.msra.mxu1 %v6292_v42  ;;  %3643 = vmatpush.bf16.msra.mxu2 %v6280_v62 }
 0x33c   :  { %3616 = vmatpush.bf16.msra.mxu0 %v6288_v16  ;;  %3656 = vmatpush.bf16.msra.mxu3 %v6284_v12 }
 0x33f   :  { %3630 = vmatpush.bf16.msra.mxu1 %v6276_v57  ;;  %3644 = vmatpush.bf16.msra.mxu2 %v6264_v0 }
 0x340   :  { %3617 = vmatpush.bf16.msra.mxu0 %v6272_v41 }
 0x3ae   :  { %v3302_v44 = vpop.f32.mrf.mxu0  ;;  %v3315_v56 = vpop.f32.mrf.mxu1 }
 0x3af   :  { %v3345_v13 = vadd.f32 %v3302_v44, %v1050_v5  ;;  %v3346_v37 = vadd.f32 %v3315_v56, %v1063_v10  ;;  %v6256_v44 = vor.u32 %v7167_v24, %v6255_v21  ;;  %v6257_v56 = vld [vmem:[#allocation7 + $0x10] sm:$0xf0] }
 0x3b0   :  { %v6260_v26 = vor.u32 %v7165_v22, %v6257_v56 }
 0x3b1   :  { %v6249_v39 = vmul.f32 -1.442695, %v3345_v13  ;;  %v6250_v34 = vmul.f32 -1.442695, %v3346_v37  ;;  %v6265_v13 = vld [vmem:[#allocation7 + $0x18] sm:$0xf0]  ;;  %3618 = vmatpush.bf16.msra.mxu0 %v6256_v44 }
 0x3b2   :  { %v6268_v38 = vor.u32 %v7166_v35, %v6265_v13  ;;  %3631 = vmatpush.bf16.msra.mxu1 %v6260_v26 }
 0x3b3   :  { %7346 = vpow2.f32 %v6249_v39 }
 0x3b4   :  { %7348 = vpow2.f32 %v6250_v34  ;;  %v874_v34 = vperm.slane %v7664_v32, 2  ;;  %3657 = vmatpush.bf16.msra.mxu3 %v6268_v38  ;;  %v7225_v38 = vld [vmem:[#allocation7 + $0xe4] sm:$0xf] }
 0x3b5   :  { %v3328_v50 = vpop.f32.mrf.mxu2  ;;  %v3341_v55 = vpop.f32.mrf.mxu3 }
 0x3b6   :  { %v3348_v59 = vadd.f32 %v3341_v55, %v1089_v31  ;;  %v3304_v5 = vpop.f32.mrf.mxu0  ;;  %v3317_v10 = vpop.f32.mrf.mxu1  ;;  %v1076_v49 = vadd.f32 %v7568_v17, %v874_v34  ;;  %v6501_v34 = vld [vmem:[#allocation7 + $0xf0] sm:$0xf0] }
 0x3b8   :  { %v6251_v15 = vmul.f32 -1.442695, %v3348_v59  ;;  %v3347_v29 = vadd.f32 %v3328_v50, %v1076_v49 }
 0x3b9   :  { %v7347_v37 = vpop.eup %7346 }
 0x3ba   :  { %v7349_v46 = vpop.eup %7348  ;;  %v3352_v48 = vadd.f32 1.0, %v7347_v37  ;;  %7350 = vpow2.f32 %v6251_v15 }
 0x3bb   :  { %v3371_v39 = vadd.f32 1.0, %v7349_v46 }
 0x3bc   :  { %7352 = vrcp.f32 %v3352_v48  ;;  %v3364_v32 = vand.u32 2147483648, %v3352_v48  ;;  %v3362_v52 = vand.u32 2147483647, %v3352_v48  ;;  %vm3358_vm6 = vweird.f32 %v3352_v48 }
 0x3bd   :  { %7354 = vrcp.f32 %v3371_v39  ;;  %v3330_v16 = vpop.f32.mrf.mxu2  ;;  %v3343_v40 = vpop.f32.mrf.mxu3  ;;  %v3383_v41 = vand.u32 2147483648, %v3371_v39  ;;  %v3381_v55 = vand.u32 2147483647, %v3371_v39  ;;  %vm3377_vm7 = vweird.f32 %v3371_v39 }
 0x3be   :  { %v3365_v50 = vor.u32 1.1754944e-38, %v3364_v32  ;;  %vm3363_vm10 = vcmp.eq.f32.partialorder %v3362_v52, 8.507059e+37  ;;  %v6507_v16 = vld [vmem:[#allocation7 + $0xe8] sm:$0xf]  ;;  %v7228_v40 = vld [vmem:[#allocation7 + $0xf4] sm:$0xf0] }
 0x3bf   :  { %v3384_v6 = vor.u32 1.1754944e-38, %v3383_v41  ;;  %vm3382_vm11 = vcmp.eq.f32.partialorder %v3381_v55, 8.507059e+37  ;;  %v6508_v49 = vor.u32 %v7228_v40, %v6507_v16  ;;  %v6491_v32 = vld [vmem:[#allocation7 + $0xc8] sm:$0xf]  ;;  %v7224_v41 = vld [vmem:[#allocation7 + $0xd4] sm:$0xf0] }
 0x3c0   :  { %v7351_v42 = vpop.eup %7350  ;;  %v6492_v52 = vor.u32 %v7224_v41, %v6491_v32  ;;  %v6493_v55 = vld [vmem:[#allocation7 + $0xd8] sm:$0xf0]  ;;  %v7211_v16 = vld [vmem:[#allocation7 + $0x6c] sm:$0xf0]  ;;  %v7209_v40 = vld [vmem:[#allocation7 + $0x64] sm:$0xf] }
 0x3c1   :  { %v3391_v51 = vadd.f32 1.0, %v7351_v42  ;;  %v6504_v42 = vor.u32 %v7225_v38, %v6501_v34  ;;  %3955 = vmatpush.bf16.msrb.mxu2 %v6508_v49  ;;  %v6461_v38 = vld [vmem:[#allocation7 + $0x98] sm:$0xf0]  ;;  %v6435_v34 = vld [vmem:[#allocation7 + $0x60] sm:$0xf] }
 0x3c2   :  { %v7353_v53 = vpop.eup %7352  ;;  %v7210_v32 = vld [vmem:[#allocation7 + $0x6c] sm:$0xf]  ;;  %v6445_v41 = vld [vmem:[#allocation7 + $0x78] sm:$0xf0] }
 0x3c3   :  { %v7355_v61 = vpop.eup %7354  ;;  %v3354_v47 = vmul.f32 %v7353_v53, %v3352_v48  ;;  %7356 = vrcp.f32 %v3391_v51  ;;  %vm3359_vm4 = vweird.f32 %v7353_v53  ;;  %v3403_v36 = vand.u32 2147483648, %v3391_v51  ;;  %v7227_v48 = vld [vmem:[#allocation7 + $0xec] sm:$0xf0]  ;;  %3942 = vmatpush.bf16.msrb.mxu1 %v6504_v42 }
 0x3c4   :  { %v3373_v14 = vmul.f32 %v7355_v61, %v3371_v39  ;;  %7358 = vtanh.f32 %v3347_v29  ;;  %vm3378_vm5 = vweird.f32 %v7355_v61  ;;  %vm3360_vm8 = vmor %vm3358_vm6, %vm3359_vm4  ;;  %vm3397_vm13 = vweird.f32 %v3391_v51 }
 0x3c5   :  { %v3355_v31 = vsub.f32 1.0, %v3354_v47  ;;  %vm3379_vm9 = vmor %vm3377_vm7, %vm3378_vm5  ;;  %v3401_v15 = vand.u32 2147483647, %v3391_v51  ;;  %v3404_v35 = vor.u32 1.1754944e-38, %v3403_v36  ;;  %v7223_v47 = vld [vmem:[#allocation7 + $0xcc] sm:$0xf0]  ;;  %3956 = vmatpush.bf16.msrb.mxu2 %v6492_v52 }
 0x3c6   :  { %v3374_v43 = vsub.f32 1.0, %v3373_v14  ;;  %v7221_v14 = vld [vmem:[#allocation7 + $0xc4] sm:$0xf]  ;;  %v6451_v36 = vld [vmem:[#allocation7 + $0x80] sm:$0xf] }
 0x3c7   :  { %v3356_v2 = vmul.f32 %v7353_v53, %v3355_v31  ;;  %vm3402_vm15 = vcmp.eq.f32.partialorder %v3401_v15, 8.507059e+37  ;;  %v7215_v15 = vld [vmem:[#allocation7 + $0x8c] sm:$0xf0] }
 0x3c8   :  { %v3375_v54 = vmul.f32 %v7355_v61, %v3374_v43  ;;  %v6485_v43 = vld [vmem:[#allocation7 + $0xd0] sm:$0xf0] }
 0x3c9   :  { %v7357_v57 = vpop.eup %7356  ;;  %v3357_v17 = vadd.f32 %v7353_v53, %v3356_v2  ;;  %v6488_v2 = vor.u32 %v7221_v14, %v6485_v43 }
 0x3ca   :  { %v3376_v58 = vadd.f32 %v7355_v61, %v3375_v54  ;;  %v3393_v4 = vmul.f32 %v7357_v57, %v3391_v51  ;;  %v7359_v5 = vpop.eup %7358  ;;  %vm3398_vm12 = vweird.f32 %v7357_v57  ;;  %v7226_v51 = vld [vmem:[#allocation7 + $0xec] sm:$0xf] }
 0x3cb   :  { %v3361_v59 = vsel %vm3360_vm8, %v7353_v53, %v3357_v17  ;;  %vm3399_vm14 = vmor %vm3397_vm13, %vm3398_vm12  ;;  %v6509_v53 = vld [vmem:[#allocation7 + $0xf8] sm:$0xf0]  ;;  %v7222_v54 = vld [vmem:[#allocation7 + $0xcc] sm:$0xf]  ;;  %3943 = vmatpush.bf16.msrb.mxu1 %v6488_v2 }
 0x3cc   :  { %v3366_v10 = vsel %vm3363_vm10, %v3365_v50, %v3361_v59  ;;  %v3380_v62 = vsel %vm3379_vm9, %v7355_v61, %v3376_v58  ;;  %v3394_v12 = vsub.f32 1.0, %v3393_v4  ;;  %v6512_v29 = vor.u32 %v7226_v51, %v6509_v53  ;;  %v6483_v61 = vld [vmem:[#allocation7 + $0xc0] sm:$0xf]  ;;  %v7219_v58 = vld [vmem:[#allocation7 + $0xac] sm:$0xf0] }
 0x3cd   :  { %v3385_v21 = vsel %vm3382_vm11, %v3384_v6, %v3380_v62  ;;  %v3408_v24 = vmul.f32 %v7359_v5, %v3366_v10  ;;  %v6484_v31 = vor.u32 %v7223_v47, %v6483_v61  ;;  %v6496_v17 = vor.u32 %v7222_v54, %v6493_v55  ;;  %v6467_v50 = vld [vmem:[#allocation7 + $0xa0] sm:$0xf]  ;;  %v7217_v4 = vld [vmem:[#allocation7 + $0xa4] sm:$0xf]  ;;  %v6469_v59 = vld [vmem:[#allocation7 + $0xb0] sm:$0xf0] }
 0x3ce   :  { %v3407_v22 = vmul.f32 %v3385_v21, %v7655_v45  ;;  %v3395_v44 = vmul.f32 %v7357_v57, %v3394_v12  ;;  %v6499_v45 = vld [vmem:[#allocation7 + $0xe0] sm:$0xf]  ;;  %3968 = vmatpush.bf16.msrb.mxu3 %v6512_v29  ;;  %v6468_v6 = vor.u32 %v7219_v58, %v6467_v50  ;;  %v6475_v5 = vld [vmem:[#allocation7 + $0xa8] sm:$0xf]  ;;  %v7220_v10 = vld [vmem:[#allocation7 + $0xb4] sm:$0xf0]  ;;  %v6472_v62 = vor.u32 %v7217_v4, %v6469_v59 }
 0x3cf   :  { %v6500_v39 = vor.u32 %v7227_v48, %v6499_v45  ;;  %v6476_v12 = vor.u32 %v7220_v10, %v6475_v5  ;;  %v7218_v21 = vld [vmem:[#allocation7 + $0xac] sm:$0xf]  ;;  %v6436_v51 = vor.u32 %v7211_v16, %v6435_v34  ;;  %v6437_v53 = vld [vmem:[#allocation7 + $0x70] sm:$0xf0]  ;;  %v6443_v29 = vld [vmem:[#allocation7 + $0x68] sm:$0xf]  ;;  %v6448_v55 = vor.u32 %v7210_v32, %v6445_v41 }
 0x3d0   :  { %v7675_v56 = vadd.f32 %v3408_v24, %v3407_v22  ;;  %v3396_v25 = vadd.f32 %v7357_v57, %v3395_v44  ;;  %v6477_v24 = vld [vmem:[#allocation7 + $0xb8] sm:$0xf0]  ;;  %3944 = vmatpush.bf16.msrb.mxu1 %v6472_v62  ;;  %v7214_v48 = vld [vmem:[#allocation7 + $0x8c] sm:$0xf]  ;;  %v7212_v61 = vld [vmem:[#allocation7 + $0x74] sm:$0xf0] }
 0x3d1   :  { %3929 = vmatpush.bf16.msrb.mxu0 %v6500_v39  ;;  %3957 = vmatpush.bf16.msrb.mxu2 %v6476_v12  ;;  %v6464_v39 = vor.u32 %v7214_v48, %v6461_v38  ;;  %v6444_v43 = vor.u32 %v7212_v61, %v6443_v29  ;;  %v6427_v5 = vld [vmem:[#allocation7 + $0x48] sm:$0xf]  ;;  %v7208_v10 = vld [vmem:[#allocation7 + $0x54] sm:$0xf0]  ;;  %v7206_v62 = vld [vmem:[#allocation7 + $0x4c] sm:$0xf] }
 0x3d2   :  { %7360 = vtanh.f32 %v7675_v56  ;;  %v3400_v26 = vsel %vm3399_vm14, %v7357_v57, %v3396_v25  ;;  %v7684_v57 = vld [vmem:[%s7755_s3] sm:$0xf]  ;;  %3969 = vmatpush.bf16.msrb.mxu3 %v6496_v17  ;;  %v6480_v25 = vor.u32 %v7218_v21, %v6477_v24  ;;  %v7205_v17 = vld [vmem:[#allocation7 + $0x44] sm:$0xf]  ;;  %v6428_v12 = vor.u32 %v7208_v10, %v6427_v5  ;;  %v6429_v21 = vld [vmem:[#allocation7 + $0x58] sm:$0xf0] }
 0x3d3   :  { %v3405_v37 = vsel %vm3402_vm15, %v3404_v35, %v3400_v26  ;;  %v1133_v22 = vperm.slane %v7684_v57, 0  ;;  %v1134_v44 = vperm.slane %v7684_v57, 1  ;;  %v7213_v26 = vld [vmem:[#allocation7 + $0x84] sm:$0xf]  ;;  %v6452_v35 = vor.u32 %v7215_v15, %v6451_v36  ;;  %v6403_v24 = vld [vmem:[#allocation7 + $0x20] sm:$0xf] }
 0x3d4   :  { %v1136_v2 = vperm.slane %v7684_v57, 3  ;;  %v7201_v15 = vld [vmem:[#allocation7 + $0x24] sm:$0xf]  ;;  %v6413_v48 = vld [vmem:[#allocation7 + $0x38] sm:$0xf0] }
 0x3d5   :  { %3930 = vmatpush.bf16.msrb.mxu0 %v6484_v31  ;;  %v1311_v42 = vadd.f32 %v7570_v60, %v1133_v22  ;;  %v1324_v49 = vadd.f32 %v7572_v63, %v1134_v44  ;;  %v6440_v31 = vor.u32 %v7209_v40, %v6437_v53  ;;  %v6419_v60 = vld [vmem:[#allocation7 + $0x40] sm:$0xf]  ;;  %v7207_v63 = vld [vmem:[#allocation7 + $0x4c] sm:$0xf0]  ;;  %v6389_v53 = vld [vmem:[#allocation7 + $0x10] sm:$0xf0] }
 0x3d6   :  { %3970 = vmatpush.bf16.msrb.mxu3 %v6480_v25  ;;  %v6420_v4 = vor.u32 %v7207_v63, %v6419_v60  ;;  %v7203_v22 = vld [vmem:[#allocation7 + $0x2c] sm:$0xf0]  ;;  %v1350_v44 = vadd.f32 %v7574_v1, %v1136_v2  ;;  %v6432_v25 = vor.u32 %v7206_v62, %v6429_v21  ;;  %v6387_v40 = vld [vmem:[#allocation7] sm:$0xf]  ;;  %v6395_v29 = vld [vmem:[#allocation7 + $0x8] sm:$0xf] }
 0x3d7   :  { %v6404_v36 = vor.u32 %v7203_v22, %v6403_v24  ;;  %v7200_v61 = vld [vmem:[#allocation7 + $0x14] sm:$0xf0]  ;;  %v1135_v60 = vperm.slane %v7684_v57, 2 }
 0x3d8   :  { %v7361_v13 = vpop.eup %7360  ;;  %v6396_v41 = vor.u32 %v7200_v61, %v6395_v29 }
 0x3d9   :  { %v3411_v0 = vmul.f32 %v7361_v13, %v3405_v37  ;;  %3931 = vmatpush.bf16.msrb.mxu0 %v6468_v6  ;;  %v6453_v13 = vld [vmem:[#allocation7 + $0x90] sm:$0xf0]  ;;  %v6459_v37 = vld [vmem:[#allocation7 + $0x88] sm:$0xf] }
 0x3da   :  { %3971 = vmatpush.bf16.msrb.mxu3 %v6464_v39  ;;  %v6421_v6 = vld [vmem:[#allocation7 + $0x50] sm:$0xf0] }
 0x3db   :  { %v3412_v46 = vpack.c.bf16 %v3411_v0, %v3411_v0  ;;  %v7216_v0 = vld [vmem:[#allocation7 + $0x94] sm:$0xf0]  ;;  %v6424_v59 = vor.u32 %v7205_v17, %v6421_v6 }
 0x3dc   :  { %v6460_v45 = vor.u32 %v7216_v0, %v6459_v37 }
 0x3dd   :  { %6252 = vst [vmem:[%s7756_s4 + $0xc] sm:$0xf] %v3412_v46  ;;  %3619 = vmatmul.bf16.vlgmr.msra.gmra.mxu0 %v3412_v46  ;;  %3632 = vmatmul.bf16.vlgmr.msra.gmra.mxu1 %v3412_v46 }
 0x3de   :  { %3645 = vmatmul.bf16.vlgmr.msra.gmra.mxu2 %v3412_v46  ;;  %3658 = vmatmul.bf16.vlgmr.msra.gmra.mxu3 %v3412_v46  ;;  %v6456_v46 = vor.u32 %v7213_v26, %v6453_v13  ;;  %v6405_v26 = vld [vmem:[#allocation7 + $0x30] sm:$0xf0] }
 0x3df   :  { %3932 = vmatpush.bf16.msrb.mxu0 %v6452_v35  ;;  %3958 = vmatpush.bf16.msrb.mxu2 %v6460_v45  ;;  %v6411_v35 = vld [vmem:[#allocation7 + $0x28] sm:$0xf]  ;;  %v6408_v0 = vor.u32 %v7201_v15, %v6405_v26  ;;  %v7202_v45 = vld [vmem:[#allocation7 + $0x2c] sm:$0xf] }
 0x3e0   :  { %3945 = vmatpush.bf16.msrb.mxu1 %v6456_v46  ;;  %3972 = vmatpush.bf16.msrb.mxu3 %v6448_v55  ;;  %v7204_v46 = vld [vmem:[#allocation7 + $0x34] sm:$0xf0]  ;;  %v6416_v1 = vor.u32 %v7202_v45, %v6413_v48 }
 0x3e1   :  { %v6412_v16 = vor.u32 %v7204_v46, %v6411_v35 }
 0x3e3   :  { %3933 = vmatpush.bf16.msrb.mxu0 %v6436_v51  ;;  %3959 = vmatpush.bf16.msrb.mxu2 %v6444_v43  ;;  %v6397_v43 = vld [vmem:[#allocation7 + $0x18] sm:$0xf0] }
 0x3e4   :  { %3946 = vmatpush.bf16.msrb.mxu1 %v6440_v31  ;;  %3973 = vmatpush.bf16.msrb.mxu3 %v6432_v25  ;;  %v7198_v31 = vld [vmem:[#allocation7 + $0xc] sm:$0xf] }
 0x3e7   :  { %3934 = vmatpush.bf16.msrb.mxu0 %v6420_v4  ;;  %3960 = vmatpush.bf16.msrb.mxu2 %v6428_v12 }
 0x3e8   :  { %3947 = vmatpush.bf16.msrb.mxu1 %v6424_v59  ;;  %3974 = vmatpush.bf16.msrb.mxu3 %v6416_v1 }
 0x3eb   :  { %3935 = vmatpush.bf16.msrb.mxu0 %v6404_v36  ;;  %3961 = vmatpush.bf16.msrb.mxu2 %v6412_v16 }
 0x3ec   :  { %3948 = vmatpush.bf16.msrb.mxu1 %v6408_v0 }
 0x3ef   :  { %3962 = vmatpush.bf16.msrb.mxu2 %v6396_v41 }
 0x45a   :  { %v3620_v47 = vpop.f32.mrf.mxu0  ;;  %v3633_v14 = vpop.f32.mrf.mxu1 }
 0x45b   :  { %v3663_v52 = vadd.f32 %v3620_v47, %v1311_v42  ;;  %v3664_v54 = vadd.f32 %v3633_v14, %v1324_v49  ;;  %v7199_v42 = vld [vmem:[#allocation7 + $0xc] sm:$0xf0]  ;;  %v7197_v49 = vld [vmem:[#allocation7 + $0x4] sm:$0xf] }
 0x45c   :  { %v6388_v51 = vor.u32 %v7199_v42, %v6387_v40  ;;  %v6392_v14 = vor.u32 %v7197_v49, %v6389_v53 }
 0x45d   :  { %v6381_v50 = vmul.f32 -1.442695, %v3663_v52  ;;  %v6382_v58 = vmul.f32 -1.442695, %v3664_v54  ;;  %v6400_v54 = vor.u32 %v7198_v31, %v6397_v43  ;;  %v7259_v43 = vld [vmem:[#allocation7 + $0xec] sm:$0xf0] }
 0x45e   :  { %3936 = vmatpush.bf16.msrb.mxu0 %v6388_v51  ;;  %3949 = vmatpush.bf16.msrb.mxu1 %v6392_v14 }
 0x45f   :  { %7362 = vpow2.f32 %v6381_v50  ;;  %3975 = vmatpush.bf16.msrb.mxu3 %v6400_v54  ;;  %v7260_v54 = vld [vmem:[#allocation7 + $0xf4] sm:$0xf0] }
 0x460   :  { %7364 = vpow2.f32 %v6382_v58  ;;  %v1337_v58 = vadd.f32 %v7576_v3, %v1135_v60 }
 0x461   :  { %v3646_v13 = vpop.f32.mrf.mxu2  ;;  %v3659_v37 = vpop.f32.mrf.mxu3 }
 0x462   :  { %v3666_v38 = vadd.f32 %v3659_v37, %v1350_v44  ;;  %v3622_v39 = vpop.f32.mrf.mxu0  ;;  %v3635_v34 = vpop.f32.mrf.mxu1  ;;  %v3665_v59 = vadd.f32 %v3646_v13, %v1337_v58  ;;  %v6615_v58 = vld [vmem:[#allocation7 + $0xc0] sm:$0xf] }
 0x464   :  { %v6383_v47 = vmul.f32 -1.442695, %v3666_v38 }
 0x465   :  { %v7363_v32 = vpop.eup %7362 }
 0x466   :  { %v7365_v2 = vpop.eup %7364  ;;  %v3670_v52 = vadd.f32 1.0, %v7363_v32  ;;  %7366 = vpow2.f32 %v6383_v47  ;;  %v7257_v32 = vld [vmem:[#allocation7 + $0xe4] sm:$0xf] }
 0x467   :  { %v3689_v55 = vadd.f32 1.0, %v7365_v2  ;;  %v6633_v2 = vld [vmem:[#allocation7 + $0xf0] sm:$0xf0] }
 0x468   :  { %7368 = vrcp.f32 %v3670_v52  ;;  %v3682_v57 = vand.u32 2147483648, %v3670_v52  ;;  %v3680_v44 = vand.u32 2147483647, %v3670_v52  ;;  %vm3676_vm2 = vweird.f32 %v3670_v52 }
 0x469   :  { %7370 = vrcp.f32 %v3689_v55  ;;  %v3648_v63 = vpop.f32.mrf.mxu2  ;;  %v3661_v17 = vpop.f32.mrf.mxu3  ;;  %v3701_v24 = vand.u32 2147483648, %v3689_v55  ;;  %v3699_v36 = vand.u32 2147483647, %v3689_v55  ;;  %vm3695_vm3 = vweird.f32 %v3689_v55 }
 0x46a   :  { %v3683_v26 = vor.u32 1.1754944e-38, %v3682_v57  ;;  %vm3681_vm6 = vcmp.eq.f32.partialorder %v3680_v44, 8.507059e+37  ;;  %v7258_v63 = vld [vmem:[#allocation7 + $0xec] sm:$0xf]  ;;  %v6641_v17 = vld [vmem:[#allocation7 + $0xf8] sm:$0xf0] }
 0x46b   :  { %v3702_v37 = vor.u32 1.1754944e-38, %v3701_v24  ;;  %vm3700_vm7 = vcmp.eq.f32.partialorder %v3699_v36, 8.507059e+37  ;;  %v7254_v57 = vld [vmem:[#allocation7 + $0xcc] sm:$0xf]  ;;  %v6625_v24 = vld [vmem:[#allocation7 + $0xd8] sm:$0xf0] }
 0x46c   :  { %v7367_v50 = vpop.eup %7366  ;;  %v6628_v44 = vor.u32 %v7254_v57, %v6625_v24  ;;  %v7251_v36 = vld [vmem:[#allocation7 + $0xac] sm:$0xf0] }
 0x46d   :  { %v3709_v4 = vadd.f32 1.0, %v7367_v50  ;;  %v6644_v50 = vor.u32 %v7258_v63, %v6641_v17 }
 0x46e   :  { %v7369_v6 = vpop.eup %7368 }
 0x46f   :  { %v7371_v5 = vpop.eup %7370  ;;  %v3672_v10 = vmul.f32 %v7369_v6, %v3670_v52  ;;  %7372 = vrcp.f32 %v3709_v4  ;;  %vm3677_vm0 = vweird.f32 %v7369_v6  ;;  %v3721_v49 = vand.u32 2147483648, %v3709_v4  ;;  %v6639_v52 = vld [vmem:[#allocation7 + $0xe8] sm:$0xf]  ;;  %4286 = vmatpush.bf16.msra.mxu3 %v6644_v50 }
 0x470   :  { %v3691_v62 = vmul.f32 %v7371_v5, %v3689_v55  ;;  %7374 = vtanh.f32 %v3665_v59  ;;  %vm3696_vm1 = vweird.f32 %v7371_v5  ;;  %vm3678_vm4 = vmor %vm3676_vm2, %vm3677_vm0  ;;  %vm3715_vm9 = vweird.f32 %v3709_v4 }
 0x471   :  { %v3673_v12 = vsub.f32 1.0, %v3672_v10  ;;  %vm3697_vm5 = vmor %vm3695_vm3, %vm3696_vm1  ;;  %v3719_v51 = vand.u32 2147483647, %v3709_v4  ;;  %v3722_v29 = vor.u32 1.1754944e-38, %v3721_v49  ;;  %v6636_v55 = vor.u32 %v7257_v32, %v6633_v2  ;;  %v6623_v10 = vld [vmem:[#allocation7 + $0xc8] sm:$0xf] }
 0x472   :  { %v3692_v21 = vsub.f32 1.0, %v3691_v62  ;;  %v6640_v60 = vor.u32 %v7260_v54, %v6639_v52  ;;  %v7256_v62 = vld [vmem:[#allocation7 + $0xd4] sm:$0xf0]  ;;  %v6585_v49 = vld [vmem:[#allocation7 + $0x90] sm:$0xf0] }
 0x473   :  { %v3674_v22 = vmul.f32 %v7369_v6, %v3673_v12  ;;  %vm3720_vm11 = vcmp.eq.f32.partialorder %v3719_v51, 8.507059e+37  ;;  %4260 = vmatpush.bf16.msra.mxu1 %v6636_v55  ;;  %4287 = vmatpush.bf16.msra.mxu3 %v6628_v44  ;;  %v6591_v51 = vld [vmem:[#allocation7 + $0x88] sm:$0xf]  ;;  %v7241_v32 = vld [vmem:[#allocation7 + $0x64] sm:$0xf] }
 0x474   :  { %v3693_v25 = vmul.f32 %v7371_v5, %v3692_v21  ;;  %4273 = vmatpush.bf16.msra.mxu2 %v6640_v60  ;;  %v6624_v21 = vor.u32 %v7256_v62, %v6623_v10  ;;  %v6569_v54 = vld [vmem:[#allocation7 + $0x70] sm:$0xf0]  ;;  %v6575_v55 = vld [vmem:[#allocation7 + $0x68] sm:$0xf]  ;;  %v7244_v60 = vld [vmem:[#allocation7 + $0x74] sm:$0xf0] }
 0x475   :  { %v7373_v15 = vpop.eup %7372  ;;  %v3675_v3 = vadd.f32 %v7369_v6, %v3674_v22  ;;  %v7704_v22 = vld [vmem:[%s7755_s3] sm:$0xf]  ;;  %v6572_v50 = vor.u32 %v7241_v32, %v6569_v54  ;;  %v6553_v44 = vld [vmem:[#allocation7 + $0x50] sm:$0xf0] }
 0x476   :  { %v3694_v35 = vadd.f32 %v7371_v5, %v3693_v25  ;;  %v3711_v13 = vmul.f32 %v7373_v15, %v3709_v4  ;;  %v7375_v46 = vpop.eup %7374  ;;  %vm3716_vm8 = vweird.f32 %v7373_v15  ;;  %v7255_v4 = vld [vmem:[#allocation7 + $0xcc] sm:$0xf0]  ;;  %v6599_v25 = vld [vmem:[#allocation7 + $0xa0] sm:$0xf]  ;;  %v6521_v32 = vld [vmem:[#allocation7 + $0x10] sm:$0xf0] }
 0x477   :  { %v3679_v0 = vsel %vm3678_vm4, %v7369_v6, %v3675_v3  ;;  %vm3717_vm10 = vmor %vm3715_vm9, %vm3716_vm8  ;;  %v7253_v6 = vld [vmem:[#allocation7 + $0xc4] sm:$0xf]  ;;  %v6616_v59 = vor.u32 %v7255_v4, %v6615_v58  ;;  %v6600_v3 = vor.u32 %v7251_v36, %v6599_v25  ;;  %v6576_v58 = vor.u32 %v7244_v60, %v6575_v55  ;;  %v7242_v4 = vld [vmem:[#allocation7 + $0x6c] sm:$0xf] }
 0x478   :  { %v3684_v45 = vsel %vm3681_vm6, %v3683_v26, %v3679_v0  ;;  %v3698_v48 = vsel %vm3697_vm5, %v7371_v5, %v3694_v35  ;;  %v3712_v38 = vsub.f32 1.0, %v3711_v13  ;;  %v6617_v5 = vld [vmem:[#allocation7 + $0xd0] sm:$0xf0]  ;;  %4274 = vmatpush.bf16.msra.mxu2 %v6624_v21  ;;  %v6607_v35 = vld [vmem:[#allocation7 + $0xa8] sm:$0xf] }
 0x479   :  { %v3703_v39 = vsel %vm3700_vm7, %v3702_v37, %v3698_v48  ;;  %v3726_v34 = vmul.f32 %v7375_v46, %v3684_v45  ;;  %v6620_v12 = vor.u32 %v7253_v6, %v6617_v5  ;;  %v6601_v26 = vld [vmem:[#allocation7 + $0xb0] sm:$0xf0]  ;;  %v7252_v13 = vld [vmem:[#allocation7 + $0xb4] sm:$0xf0]  ;;  %v7250_v46 = vld [vmem:[#allocation7 + $0xac] sm:$0xf] }
 0x47a   :  { %v3725_v16 = vmul.f32 %v3703_v39, %v7675_v56  ;;  %v3713_v1 = vmul.f32 %v7373_v15, %v3712_v38  ;;  %v6631_v56 = vld [vmem:[#allocation7 + $0xe0] sm:$0xf]  ;;  %v6608_v0 = vor.u32 %v7252_v13, %v6607_v35  ;;  %v6609_v45 = vld [vmem:[#allocation7 + $0xb8] sm:$0xf0]  ;;  %v1394_v48 = vperm.slane %v7704_v22, 0 }
 0x47b   :  { %v6632_v41 = vor.u32 %v7259_v43, %v6631_v56  ;;  %4261 = vmatpush.bf16.msra.mxu1 %v6620_v12  ;;  %v1395_v38 = vperm.slane %v7704_v22, 1  ;;  %v6612_v39 = vor.u32 %v7250_v46, %v6609_v45  ;;  %v6567_v56 = vld [vmem:[#allocation7 + $0x60] sm:$0xf]  ;;  %v7243_v43 = vld [vmem:[#allocation7 + $0x6c] sm:$0xf0] }
 0x47c   :  { %v7695_v40 = vadd.f32 %v3726_v34, %v3725_v16  ;;  %v3714_v42 = vadd.f32 %v7373_v15, %v3713_v1  ;;  %4275 = vmatpush.bf16.msra.mxu2 %v6608_v0  ;;  %v6583_v34 = vld [vmem:[#allocation7 + $0x80] sm:$0xf]  ;;  %v7247_v16 = vld [vmem:[#allocation7 + $0x8c] sm:$0xf0]  ;;  %v7245_v1 = vld [vmem:[#allocation7 + $0x84] sm:$0xf]  ;;  %v6568_v52 = vor.u32 %v7243_v43, %v6567_v56 }
 0x47d   :  { %4247 = vmatpush.bf16.msra.mxu0 %v6632_v41  ;;  %4288 = vmatpush.bf16.msra.mxu3 %v6612_v39  ;;  %v1572_v41 = vadd.f32 %v7578_v7, %v1394_v48  ;;  %v1585_v2 = vadd.f32 %v7580_v8, %v1395_v38  ;;  %v6577_v6 = vld [vmem:[#allocation7 + $0x78] sm:$0xf0]  ;;  %v6551_v7 = vld [vmem:[#allocation7 + $0x40] sm:$0xf]  ;;  %v7239_v8 = vld [vmem:[#allocation7 + $0x4c] sm:$0xf0] }
 0x47e   :  { %7376 = vtanh.f32 %v7695_v40  ;;  %v3718_v53 = vsel %vm3717_vm10, %v7373_v15, %v3714_v42  ;;  %v7249_v15 = vld [vmem:[#allocation7 + $0xa4] sm:$0xf]  ;;  %v6584_v42 = vor.u32 %v7247_v16, %v6583_v34  ;;  %v6580_v62 = vor.u32 %v7242_v4, %v6577_v6  ;;  %v6559_v36 = vld [vmem:[#allocation7 + $0x48] sm:$0xf]  ;;  %v6561_v35 = vld [vmem:[#allocation7 + $0x58] sm:$0xf0] }
 0x47f   :  { %v3723_v47 = vsel %vm3720_vm11, %v3722_v29, %v3718_v53  ;;  %v6604_v37 = vor.u32 %v7249_v15, %v6601_v26  ;;  %v7248_v53 = vld [vmem:[#allocation7 + $0x94] sm:$0xf0]  ;;  %v6588_v29 = vor.u32 %v7245_v1, %v6585_v49  ;;  %v7237_v12 = vld [vmem:[#allocation7 + $0x44] sm:$0xf]  ;;  %v6552_v24 = vor.u32 %v7239_v8, %v6551_v7  ;;  %v6535_v13 = vld [vmem:[#allocation7 + $0x20] sm:$0xf] }
 0x480   :  { %v6556_v25 = vor.u32 %v7237_v12, %v6553_v44  ;;  %v7240_v15 = vld [vmem:[#allocation7 + $0x54] sm:$0xf0]  ;;  %v7233_v48 = vld [vmem:[#allocation7 + $0x24] sm:$0xf]  ;;  %v6537_v38 = vld [vmem:[#allocation7 + $0x30] sm:$0xf0] }
 0x481   :  { %4248 = vmatpush.bf16.msra.mxu0 %v6616_v59  ;;  %4262 = vmatpush.bf16.msra.mxu1 %v6604_v37  ;;  %v1397_v59 = vperm.slane %v7704_v22, 3  ;;  %v6560_v26 = vor.u32 %v7240_v15, %v6559_v36  ;;  %v7235_v37 = vld [vmem:[#allocation7 + $0x2c] sm:$0xf0]  ;;  %v6543_v39 = vld [vmem:[#allocation7 + $0x28] sm:$0xf]  ;;  %v6540_v1 = vor.u32 %v7233_v48, %v6537_v38 }
 0x482   :  { %v6536_v45 = vor.u32 %v7235_v37, %v6535_v13  ;;  %v7234_v49 = vld [vmem:[#allocation7 + $0x2c] sm:$0xf]  ;;  %v7229_v56 = vld [vmem:[#allocation7 + $0x4] sm:$0xf]  ;;  %v6529_v60 = vld [vmem:[#allocation7 + $0x18] sm:$0xf0] }
 0x483   :  { %v1611_v0 = vadd.f32 %v7582_v9, %v1397_v59  ;;  %v6524_v54 = vor.u32 %v7229_v56, %v6521_v32  ;;  %v7230_v55 = vld [vmem:[#allocation7 + $0xc] sm:$0xf]  ;;  %v1396_v59 = vperm.slane %v7704_v22, 2 }
 0x484   :  { %v7377_v61 = vpop.eup %7376  ;;  %v6532_v4 = vor.u32 %v7230_v55, %v6529_v60  ;;  %v6765_v55 = vld [vmem:[#allocation7 + $0xf0] sm:$0xf0]  ;;  %v6771_v60 = vld [vmem:[#allocation7 + $0xe8] sm:$0xf] }
 0x485   :  { %v3729_v14 = vmul.f32 %v7377_v61, %v3723_v47  ;;  %4249 = vmatpush.bf16.msra.mxu0 %v6600_v3  ;;  %v6592_v61 = vor.u32 %v7248_v53, %v6591_v51  ;;  %v7246_v47 = vld [vmem:[#allocation7 + $0x8c] sm:$0xf]  ;;  %4263 = vmatpush.bf16.msra.mxu1 %v6588_v29  ;;  %v6545_v51 = vld [vmem:[#allocation7 + $0x38] sm:$0xf0]  ;;  %v1598_v7 = vadd.f32 %v7584_v11, %v1396_v59  ;;  %v6747_v59 = vld [vmem:[#allocation7 + $0xc0] sm:$0xf] }
 0x486   :  { %v7238_v3 = vld [vmem:[#allocation7 + $0x4c] sm:$0xf]  ;;  %v6548_v9 = vor.u32 %v7234_v49, %v6545_v51 }
 0x487   :  { %v3730_v31 = vpack.c.bf16 %v3729_v14, %v3729_v14  ;;  %v6593_v14 = vld [vmem:[#allocation7 + $0x98] sm:$0xf0]  ;;  %4276 = vmatpush.bf16.msra.mxu2 %v6592_v61  ;;  %v6564_v46 = vor.u32 %v7238_v3, %v6561_v35 }
 0x489   :  { %6384 = vst [vmem:[%s7756_s4 + $0x10] sm:$0xf] %v3730_v31  ;;  %3937 = vmatmul.bf16.vlgmr.msrb.gmra.mxu0 %v3730_v31  ;;  %3950 = vmatmul.bf16.vlgmr.msrb.gmra.mxu1 %v3730_v31 }
 0x48a   :  { %3963 = vmatmul.bf16.vlgmr.msrb.gmra.mxu2 %v3730_v31  ;;  %3976 = vmatmul.bf16.vlgmr.msrb.gmra.mxu3 %v3730_v31  ;;  %v6596_v31 = vor.u32 %v7246_v47, %v6593_v14  ;;  %v6519_v14 = vld [vmem:[#allocation7] sm:$0xf] }
 0x48b   :  { %4250 = vmatpush.bf16.msra.mxu0 %v6584_v42  ;;  %4264 = vmatpush.bf16.msra.mxu1 %v6572_v50  ;;  %v7236_v42 = vld [vmem:[#allocation7 + $0x34] sm:$0xf0] }
 0x48c   :  { %4289 = vmatpush.bf16.msra.mxu3 %v6596_v31  ;;  %4277 = vmatpush.bf16.msra.mxu2 %v6576_v58  ;;  %v6544_v47 = vor.u32 %v7236_v42, %v6543_v39  ;;  %v7231_v31 = vld [vmem:[#allocation7 + $0xc] sm:$0xf0] }
 0x48d   :  { %v6520_v43 = vor.u32 %v7231_v31, %v6519_v14 }
 0x48f   :  { %4251 = vmatpush.bf16.msra.mxu0 %v6568_v52  ;;  %4265 = vmatpush.bf16.msra.mxu1 %v6556_v25 }
 0x490   :  { %4290 = vmatpush.bf16.msra.mxu3 %v6580_v62  ;;  %4278 = vmatpush.bf16.msra.mxu2 %v6560_v26 }
 0x493   :  { %4252 = vmatpush.bf16.msra.mxu0 %v6552_v24  ;;  %4266 = vmatpush.bf16.msra.mxu1 %v6540_v1 }
 0x494   :  { %4291 = vmatpush.bf16.msra.mxu3 %v6564_v46  ;;  %4279 = vmatpush.bf16.msra.mxu2 %v6544_v47 }
 0x497   :  { %4253 = vmatpush.bf16.msra.mxu0 %v6536_v45  ;;  %4267 = vmatpush.bf16.msra.mxu1 %v6524_v54 }
 0x498   :  { %4292 = vmatpush.bf16.msra.mxu3 %v6548_v9 }
 0x49b   :  { %4254 = vmatpush.bf16.msra.mxu0 %v6520_v43 }
 0x49c   :  { %4293 = vmatpush.bf16.msra.mxu3 %v6532_v4  ;;  %v6773_v4 = vld [vmem:[#allocation7 + $0xf8] sm:$0xf0] }
 0x506   :  { %v3938_v63 = vpop.f32.mrf.mxu0  ;;  %v3951_v17 = vpop.f32.mrf.mxu1 }
 0x507   :  { %v3981_v5 = vadd.f32 %v3938_v63, %v1572_v41  ;;  %v3982_v10 = vadd.f32 %v3951_v17, %v1585_v2  ;;  %v6527_v41 = vld [vmem:[#allocation7 + $0x8] sm:$0xf]  ;;  %v7232_v2 = vld [vmem:[#allocation7 + $0x14] sm:$0xf0] }
 0x508   :  { %v6528_v17 = vor.u32 %v7232_v2, %v6527_v41  ;;  %v7291_v2 = vld [vmem:[#allocation7 + $0xec] sm:$0xf0] }
 0x509   :  { %v6513_v21 = vmul.f32 -1.442695, %v3981_v5  ;;  %v6514_v57 = vmul.f32 -1.442695, %v3982_v10 }
 0x50a   :  { %4280 = vmatpush.bf16.msra.mxu2 %v6528_v17 }
 0x50b   :  { %7378 = vpow2.f32 %v6513_v21 }
 0x50c   :  { %7380 = vpow2.f32 %v6514_v57 }
 0x50d   :  { %v3964_v34 = vpop.f32.mrf.mxu2  ;;  %v3977_v16 = vpop.f32.mrf.mxu3 }
 0x50e   :  { %v3984_v53 = vadd.f32 %v3977_v16, %v1611_v0  ;;  %v3940_v29 = vpop.f32.mrf.mxu0  ;;  %v3953_v61 = vpop.f32.mrf.mxu1  ;;  %v3983_v21 = vadd.f32 %v3964_v34, %v1598_v7  ;;  %v6749_v7 = vld [vmem:[#allocation7 + $0xd0] sm:$0xf0] }
 0x510   :  { %v6515_v52 = vmul.f32 -1.442695, %v3984_v53 }
 0x511   :  { %v7379_v63 = vpop.eup %7378 }
 0x512   :  { %v7381_v50 = vpop.eup %7380  ;;  %v3988_v58 = vadd.f32 1.0, %v7379_v63  ;;  %7382 = vpow2.f32 %v6515_v52  ;;  %v7289_v52 = vld [vmem:[#allocation7 + $0xe4] sm:$0xf]  ;;  %v7292_v63 = vld [vmem:[#allocation7 + $0xf4] sm:$0xf0] }
 0x513   :  { %v4007_v6 = vadd.f32 1.0, %v7381_v50  ;;  %v6768_v17 = vor.u32 %v7289_v52, %v6765_v55  ;;  %v6772_v50 = vor.u32 %v7292_v63, %v6771_v60  ;;  %v6701_v52 = vld [vmem:[#allocation7 + $0x70] sm:$0xf0]  ;;  %v7276_v55 = vld [vmem:[#allocation7 + $0x74] sm:$0xf0] }
 0x514   :  { %7384 = vrcp.f32 %v3988_v58  ;;  %v4000_v22 = vand.u32 2147483648, %v3988_v58  ;;  %v3998_v26 = vand.u32 2147483647, %v3988_v58  ;;  %vm3994_vm14 = vweird.f32 %v3988_v58 }
 0x515   :  { %7386 = vrcp.f32 %v4007_v6  ;;  %v3966_v5 = vpop.f32.mrf.mxu2  ;;  %v3979_v10 = vpop.f32.mrf.mxu3  ;;  %v4019_v15 = vand.u32 2147483648, %v4007_v6  ;;  %v4017_v13 = vand.u32 2147483647, %v4007_v6  ;;  %vm4013_vm15 = vweird.f32 %v4007_v6  ;;  %4578 = vmatpush.bf16.msrb.mxu1 %v6768_v17  ;;  %4591 = vmatpush.bf16.msrb.mxu2 %v6772_v50 }
 0x516   :  { %v4001_v0 = vor.u32 1.1754944e-38, %v4000_v22  ;;  %vm3999_vm2 = vcmp.eq.f32.partialorder %v3998_v26, 8.507059e+37  ;;  %v7287_v5 = vld [vmem:[#allocation7 + $0xcc] sm:$0xf0]  ;;  %v7285_v10 = vld [vmem:[#allocation7 + $0xc4] sm:$0xf] }
 0x517   :  { %v4020_v48 = vor.u32 1.1754944e-38, %v4019_v15  ;;  %vm4018_vm3 = vcmp.eq.f32.partialorder %v4017_v13, 8.507059e+37  ;;  %v6731_v22 = vld [vmem:[#allocation7 + $0xa0] sm:$0xf]  ;;  %v7283_v15 = vld [vmem:[#allocation7 + $0xac] sm:$0xf0] }
 0x518   :  { %v7383_v62 = vpop.eup %7382  ;;  %v6732_v26 = vor.u32 %v7283_v15, %v6731_v22  ;;  %v6739_v13 = vld [vmem:[#allocation7 + $0xa8] sm:$0xf]  ;;  %v6693_v15 = vld [vmem:[#allocation7 + $0x58] sm:$0xf0] }
 0x519   :  { %v4027_v8 = vadd.f32 1.0, %v7383_v62  ;;  %v6748_v62 = vor.u32 %v7287_v5, %v6747_v59 }
 0x51a   :  { %v7385_v12 = vpop.eup %7384 }
 0x51b   :  { %v7387_v57 = vpop.eup %7386  ;;  %v3990_v24 = vmul.f32 %v7385_v12, %v3988_v58  ;;  %7388 = vrcp.f32 %v4027_v8  ;;  %vm3995_vm12 = vweird.f32 %v7385_v12  ;;  %v4039_v47 = vand.u32 2147483648, %v4027_v8  ;;  %v7290_v58 = vld [vmem:[#allocation7 + $0xec] sm:$0xf] }
 0x51c   :  { %v4009_v44 = vmul.f32 %v7387_v57, %v4007_v6  ;;  %7390 = vtanh.f32 %v3983_v21  ;;  %vm4014_vm13 = vweird.f32 %v7387_v57  ;;  %vm3996_vm0 = vmor %vm3994_vm14, %vm3995_vm12  ;;  %vm4033_vm5 = vweird.f32 %v4027_v8 }
 0x51d   :  { %v3991_v25 = vsub.f32 1.0, %v3990_v24  ;;  %vm4015_vm1 = vmor %vm4013_vm15, %vm4014_vm13  ;;  %v4037_v9 = vand.u32 2147483647, %v4027_v8  ;;  %v4040_v31 = vor.u32 1.1754944e-38, %v4039_v47  ;;  %v6776_v6 = vor.u32 %v7290_v58, %v6773_v4  ;;  %v7286_v24 = vld [vmem:[#allocation7 + $0xcc] sm:$0xf] }
 0x51e   :  { %v4010_v36 = vsub.f32 1.0, %v4009_v44  ;;  %v6752_v21 = vor.u32 %v7285_v10, %v6749_v7  ;;  %v6757_v44 = vld [vmem:[#allocation7 + $0xd8] sm:$0xf0]  ;;  %v7274_v58 = vld [vmem:[#allocation7 + $0x6c] sm:$0xf] }
 0x51f   :  { %v3992_v3 = vmul.f32 %v7385_v12, %v3991_v25  ;;  %vm4038_vm7 = vcmp.eq.f32.partialorder %v4037_v9, 8.507059e+37  ;;  %4604 = vmatpush.bf16.msrb.mxu3 %v6776_v6  ;;  %v7724_v25 = vld [vmem:[%s7755_s3] sm:$0xf]  ;;  %v7278_v9 = vld [vmem:[#allocation7 + $0x8c] sm:$0xf] }
 0x520   :  { %v4011_v35 = vmul.f32 %v7387_v57, %v4010_v36  ;;  %v6760_v36 = vor.u32 %v7286_v24, %v6757_v44  ;;  %4579 = vmatpush.bf16.msrb.mxu1 %v6752_v21  ;;  %v6709_v4 = vld [vmem:[#allocation7 + $0x78] sm:$0xf0]  ;;  %v1658_v6 = vperm.slane %v7724_v25, 3  ;;  %v6685_v21 = vld [vmem:[#allocation7 + $0x50] sm:$0xf0] }
 0x521   :  { %v7389_v37 = vpop.eup %7388  ;;  %v3993_v11 = vadd.f32 %v7385_v12, %v3992_v3  ;;  %v7281_v3 = vld [vmem:[#allocation7 + $0xa4] sm:$0xf]  ;;  %v6712_v10 = vor.u32 %v7274_v58, %v6709_v4  ;;  %v6691_v24 = vld [vmem:[#allocation7 + $0x48] sm:$0xf]  ;;  %v7272_v44 = vld [vmem:[#allocation7 + $0x54] sm:$0xf0] }
 0x522   :  { %v4012_v46 = vadd.f32 %v7387_v57, %v4011_v35  ;;  %v4029_v45 = vmul.f32 %v7389_v37, %v4027_v8  ;;  %v7391_v39 = vpop.eup %7390  ;;  %vm4034_vm4 = vweird.f32 %v7389_v37  ;;  %v6755_v8 = vld [vmem:[#allocation7 + $0xc8] sm:$0xf]  ;;  %v6733_v35 = vld [vmem:[#allocation7 + $0xb0] sm:$0xf0]  ;;  %v6692_v22 = vor.u32 %v7272_v44, %v6691_v24 }
 0x523   :  { %v3997_v38 = vsel %vm3996_vm0, %v7385_v12, %v3993_v11  ;;  %vm4035_vm6 = vmor %vm4033_vm5, %vm4034_vm4  ;;  %v7288_v12 = vld [vmem:[#allocation7 + $0xd4] sm:$0xf0]  ;;  %4605 = vmatpush.bf16.msrb.mxu3 %v6760_v36  ;;  %v6736_v11 = vor.u32 %v7281_v3, %v6733_v35  ;;  %v7270_v36 = vld [vmem:[#allocation7 + $0x4c] sm:$0xf]  ;;  %v1872_v35 = vadd.f32 %v7590_v20, %v1658_v6 }
 0x524   :  { %v4002_v34 = vsel %vm3999_vm2, %v4001_v0, %v3997_v38  ;;  %v4016_v16 = vsel %vm4015_vm1, %v7387_v57, %v4012_v46  ;;  %v4030_v1 = vsub.f32 1.0, %v4029_v45  ;;  %v6756_v57 = vor.u32 %v7288_v12, %v6755_v8  ;;  %v7282_v46 = vld [vmem:[#allocation7 + $0xac] sm:$0xf]  ;;  %v6741_v45 = vld [vmem:[#allocation7 + $0xb8] sm:$0xf0] }
 0x525   :  { %v4021_v42 = vsel %vm4018_vm3, %v4020_v48, %v4016_v16  ;;  %v4044_v49 = vmul.f32 %v7391_v39, %v4002_v34  ;;  %v1655_v48 = vperm.slane %v7724_v25, 0  ;;  %v1656_v38 = vperm.slane %v7724_v25, 1  ;;  %4580 = vmatpush.bf16.msrb.mxu1 %v6736_v11  ;;  %v6715_v34 = vld [vmem:[#allocation7 + $0x80] sm:$0xf]  ;;  %v7279_v16 = vld [vmem:[#allocation7 + $0x8c] sm:$0xf0] }
 0x526   :  { %v4043_v51 = vmul.f32 %v4021_v42, %v7695_v40  ;;  %v4031_v53 = vmul.f32 %v7389_v37, %v4030_v1  ;;  %v6763_v40 = vld [vmem:[#allocation7 + $0xe0] sm:$0xf]  ;;  %4592 = vmatpush.bf16.msrb.mxu2 %v6756_v57  ;;  %v6744_v39 = vor.u32 %v7282_v46, %v6741_v45  ;;  %v7277_v1 = vld [vmem:[#allocation7 + $0x84] sm:$0xf]  ;;  %v6716_v42 = vor.u32 %v7279_v16, %v6715_v34  ;;  %v6675_v46 = vld [vmem:[#allocation7 + $0x28] sm:$0xf] }
 0x527   :  { %v6764_v54 = vor.u32 %v7291_v2, %v6763_v40  ;;  %v1846_v40 = vadd.f32 %v7588_v19, %v1656_v38  ;;  %v7271_v19 = vld [vmem:[#allocation7 + $0x4c] sm:$0xf0]  ;;  %v6667_v3 = vld [vmem:[#allocation7 + $0x20] sm:$0xf]  ;;  %v7265_v11 = vld [vmem:[#allocation7 + $0x24] sm:$0xf] }
 0x528   :  { %v7715_v29 = vadd.f32 %v4044_v49, %v4043_v51  ;;  %v4032_v61 = vadd.f32 %v7389_v37, %v4031_v53  ;;  %4606 = vmatpush.bf16.msrb.mxu3 %v6744_v39  ;;  %v6717_v49 = vld [vmem:[#allocation7 + $0x90] sm:$0xf0]  ;;  %v6723_v51 = vld [vmem:[#allocation7 + $0x88] sm:$0xf]  ;;  %v7280_v53 = vld [vmem:[#allocation7 + $0x94] sm:$0xf0] }
 0x529   :  { %4565 = vmatpush.bf16.msrb.mxu0 %v6764_v54  ;;  %v6724_v47 = vor.u32 %v7280_v53, %v6723_v51  ;;  %v6707_v54 = vld [vmem:[#allocation7 + $0x68] sm:$0xf]  ;;  %v7268_v39 = vld [vmem:[#allocation7 + $0x34] sm:$0xf0]  ;;  %v7266_v34 = vld [vmem:[#allocation7 + $0x2c] sm:$0xf] }
 0x52a   :  { %7392 = vtanh.f32 %v7715_v29  ;;  %v4036_v14 = vsel %vm4035_vm6, %v7389_v37, %v4032_v61  ;;  %v7284_v37 = vld [vmem:[#allocation7 + $0xb4] sm:$0xf0]  ;;  %v6720_v61 = vor.u32 %v7277_v1, %v6717_v49  ;;  %v6708_v50 = vor.u32 %v7276_v55, %v6707_v54  ;;  %v6677_v16 = vld [vmem:[#allocation7 + $0x38] sm:$0xf0]  ;;  %v6651_v53 = vld [vmem:[#allocation7] sm:$0xf] }
 0x52b   :  { %v4041_v43 = vsel %vm4038_vm7, %v4040_v31, %v4036_v14  ;;  %v6740_v0 = vor.u32 %v7284_v37, %v6739_v13  ;;  %v6725_v14 = vld [vmem:[#allocation7 + $0x98] sm:$0xf0]  ;;  %v6696_v13 = vor.u32 %v7270_v36, %v6693_v15  ;;  %v6676_v51 = vor.u32 %v7268_v39, %v6675_v46 }
 0x52c   :  { %v6728_v31 = vor.u32 %v7278_v9, %v6725_v14  ;;  %4581 = vmatpush.bf16.msrb.mxu1 %v6720_v61  ;;  %v6680_v20 = vor.u32 %v7266_v34, %v6677_v16  ;;  %v7263_v61 = vld [vmem:[#allocation7 + $0xc] sm:$0xf0]  ;;  %v6653_v14 = vld [vmem:[#allocation7 + $0x10] sm:$0xf0] }
 0x52d   :  { %4566 = vmatpush.bf16.msrb.mxu0 %v6748_v62  ;;  %4593 = vmatpush.bf16.msrb.mxu2 %v6740_v0  ;;  %v7269_v62 = vld [vmem:[#allocation7 + $0x44] sm:$0xf]  ;;  %v6669_v0 = vld [vmem:[#allocation7 + $0x30] sm:$0xf0]  ;;  %v6652_v9 = vor.u32 %v7263_v61, %v6651_v53 }
 0x52e   :  { %4607 = vmatpush.bf16.msrb.mxu3 %v6728_v31  ;;  %v6688_v57 = vor.u32 %v7269_v62, %v6685_v21  ;;  %v6672_v38 = vor.u32 %v7265_v11, %v6669_v0  ;;  %v6659_v31 = vld [vmem:[#allocation7 + $0x8] sm:$0xf] }
 0x530   :  { %v7393_v56 = vpop.eup %7392 }
 0x531   :  { %v4047_v32 = vmul.f32 %v7393_v56, %v4041_v43  ;;  %4567 = vmatpush.bf16.msrb.mxu0 %v6732_v26  ;;  %4594 = vmatpush.bf16.msrb.mxu2 %v6724_v47  ;;  %v6699_v56 = vld [vmem:[#allocation7 + $0x60] sm:$0xf]  ;;  %v7275_v43 = vld [vmem:[#allocation7 + $0x6c] sm:$0xf0]  ;;  %v7261_v47 = vld [vmem:[#allocation7 + $0x4] sm:$0xf] }
 0x532   :  { %v6700_v2 = vor.u32 %v7275_v43, %v6699_v56  ;;  %4608 = vmatpush.bf16.msrb.mxu3 %v6712_v10  ;;  %v7267_v26 = vld [vmem:[#allocation7 + $0x2c] sm:$0xf0]  ;;  %v7264_v56 = vld [vmem:[#allocation7 + $0x14] sm:$0xf0] }
 0x533   :  { %v4048_v41 = vpack.c.bf16 %v4047_v32, %v4047_v32  ;;  %v7273_v32 = vld [vmem:[#allocation7 + $0x64] sm:$0xf]  ;;  %v6668_v37 = vor.u32 %v7267_v26, %v6667_v3 }
 0x534   :  { %v6704_v17 = vor.u32 %v7273_v32, %v6701_v52  ;;  %v6656_v32 = vor.u32 %v7261_v47, %v6653_v14  ;;  %v6660_v52 = vor.u32 %v7264_v56, %v6659_v31 }
 0x535   :  { %6516 = vst [vmem:[%s7756_s4 + $0x14] sm:$0xf] %v4048_v41  ;;  %4255 = vmatmul.bf16.vlgmr.msra.gmra.mxu0 %v4048_v41  ;;  %4268 = vmatmul.bf16.vlgmr.msra.gmra.mxu1 %v4048_v41 }
 0x536   :  { %4281 = vmatmul.bf16.vlgmr.msra.gmra.mxu2 %v4048_v41  ;;  %4294 = vmatmul.bf16.vlgmr.msra.gmra.mxu3 %v4048_v41  ;;  %v1833_v41 = vadd.f32 %v7586_v18, %v1655_v48  ;;  %v6683_v18 = vld [vmem:[#allocation7 + $0x40] sm:$0xf] }
 0x537   :  { %4568 = vmatpush.bf16.msrb.mxu0 %v6716_v42  ;;  %4582 = vmatpush.bf16.msrb.mxu1 %v6704_v17  ;;  %v6684_v12 = vor.u32 %v7271_v19, %v6683_v18  ;;  %v1657_v17 = vperm.slane %v7724_v25, 2 }
 0x538   :  { %4595 = vmatpush.bf16.msrb.mxu2 %v6708_v50  ;;  %4609 = vmatpush.bf16.msrb.mxu3 %v6696_v13 }
 0x539   :  { %v1859_v6 = vadd.f32 %v7592_v23, %v1657_v17 }
 0x53b   :  { %4569 = vmatpush.bf16.msrb.mxu0 %v6700_v2  ;;  %4583 = vmatpush.bf16.msrb.mxu1 %v6688_v57 }
 0x53c   :  { %4596 = vmatpush.bf16.msrb.mxu2 %v6692_v22  ;;  %4610 = vmatpush.bf16.msrb.mxu3 %v6680_v20 }
 0x53f   :  { %4570 = vmatpush.bf16.msrb.mxu0 %v6684_v12  ;;  %4584 = vmatpush.bf16.msrb.mxu1 %v6672_v38 }
 0x540   :  { %4597 = vmatpush.bf16.msrb.mxu2 %v6676_v51 }
 0x543   :  { %4571 = vmatpush.bf16.msrb.mxu0 %v6668_v37  ;;  %4585 = vmatpush.bf16.msrb.mxu1 %v6656_v32 }
 0x544   :  { %4598 = vmatpush.bf16.msrb.mxu2 %v6660_v52 }
 0x547   :  { %4572 = vmatpush.bf16.msrb.mxu0 %v6652_v9 }
 0x5b2   :  { %v4256_v60 = vpop.f32.mrf.mxu0  ;;  %v4269_v63 = vpop.f32.mrf.mxu1 }
 0x5b3   :  { %v4299_v59 = vadd.f32 %v4256_v60, %v1833_v41  ;;  %v4300_v5 = vadd.f32 %v4269_v63, %v1846_v40  ;;  %v7262_v41 = vld [vmem:[#allocation7 + $0xc] sm:$0xf]  ;;  %v6661_v40 = vld [vmem:[#allocation7 + $0x18] sm:$0xf0] }
 0x5b4   :  { %v6664_v60 = vor.u32 %v7262_v41, %v6661_v40 }
 0x5b5   :  { %v6645_v7 = vmul.f32 -1.442695, %v4299_v59  ;;  %v6646_v8 = vmul.f32 -1.442695, %v4300_v5 }
 0x5b6   :  { %4611 = vmatpush.bf16.msrb.mxu3 %v6664_v60 }
 0x5b7   :  { %7394 = vpow2.f32 %v6645_v7 }
 0x5b8   :  { %7396 = vpow2.f32 %v6646_v8 }
 0x5b9   :  { %v4282_v45 = vpop.f32.mrf.mxu2  ;;  %v4295_v48 = vpop.f32.mrf.mxu3 }
 0x5ba   :  { %v4302_v1 = vadd.f32 %v4295_v48, %v1872_v35  ;;  %v4258_v42 = vpop.f32.mrf.mxu0  ;;  %v4271_v49 = vpop.f32.mrf.mxu1  ;;  %v4301_v10 = vadd.f32 %v4282_v45, %v1859_v6 }
 0x5bc   :  { %v6647_v43 = vmul.f32 -1.442695, %v4302_v1 }
 0x5bd   :  { %v7395_v2 = vpop.eup %7394 }
 0x5be   :  { %v7397_v54 = vpop.eup %7396  ;;  %v4306_v55 = vadd.f32 1.0, %v7395_v2  ;;  %7398 = vpow2.f32 %v6647_v43 }
 0x5bf   :  { %v4325_v63 = vadd.f32 1.0, %v7397_v54 }
 0x5c0   :  { %7400 = vrcp.f32 %v4306_v55  ;;  %v4318_v25 = vand.u32 2147483648, %v4306_v55  ;;  %v4316_v57 = vand.u32 2147483647, %v4306_v55  ;;  %vm4312_vm10 = vweird.f32 %v4306_v55 }
 0x5c1   :  { %7402 = vrcp.f32 %v4325_v63  ;;  %v4284_v50 = vpop.f32.mrf.mxu2  ;;  %v4297_v58 = vpop.f32.mrf.mxu3  ;;  %v4337_v12 = vand.u32 2147483648, %v4325_v63  ;;  %v4335_v44 = vand.u32 2147483647, %v4325_v63  ;;  %vm4331_vm11 = vweird.f32 %v4325_v63 }
 0x5c2   :  { %v4319_v22 = vor.u32 1.1754944e-38, %v4318_v25  ;;  %vm4317_vm14 = vcmp.eq.f32.partialorder %v4316_v57, 8.507059e+37 }
 0x5c3   :  { %v4338_v26 = vor.u32 1.1754944e-38, %v4337_v12  ;;  %vm4336_vm15 = vcmp.eq.f32.partialorder %v4335_v44, 8.507059e+37 }
 0x5c4   :  { %v7399_v4 = vpop.eup %7398 }
 0x5c5   :  { %v4345_v59 = vadd.f32 1.0, %v7399_v4 }
 0x5c6   :  { %v7401_v5 = vpop.eup %7400 }
 0x5c7   :  { %v7403_v18 = vpop.eup %7402  ;;  %v4308_v19 = vmul.f32 %v7401_v5, %v4306_v55  ;;  %7404 = vrcp.f32 %v4345_v59  ;;  %vm4313_vm8 = vweird.f32 %v7401_v5  ;;  %v4357_v16 = vand.u32 2147483648, %v4345_v59 }
 0x5c8   :  { %v4327_v62 = vmul.f32 %v7403_v18, %v4325_v63  ;;  %7406 = vtanh.f32 %v4301_v10  ;;  %vm4332_vm9 = vweird.f32 %v7403_v18  ;;  %vm4314_vm12 = vmor %vm4312_vm10, %vm4313_vm8  ;;  %vm4351_vm1 = vweird.f32 %v4345_v59 }
 0x5c9   :  { %v4309_v7 = vsub.f32 1.0, %v4308_v19  ;;  %vm4333_vm13 = vmor %vm4331_vm11, %vm4332_vm9  ;;  %v4355_v1 = vand.u32 2147483647, %v4345_v59  ;;  %v4358_v49 = vor.u32 1.1754944e-38, %v4357_v16 }
 0x5ca   :  { %v4328_v8 = vsub.f32 1.0, %v4327_v62 }
 0x5cb   :  { %v4310_v21 = vmul.f32 %v7401_v5, %v4309_v7  ;;  %vm4356_vm3 = vcmp.eq.f32.partialorder %v4355_v1, 8.507059e+37 }
 0x5cc   :  { %v4329_v24 = vmul.f32 %v7403_v18, %v4328_v8 }
 0x5cd   :  { %v7405_v36 = vpop.eup %7404  ;;  %v4311_v23 = vadd.f32 %v7401_v5, %v4310_v21 }
 0x5ce   :  { %v4330_v15 = vadd.f32 %v7403_v18, %v4329_v24  ;;  %v4347_v3 = vmul.f32 %v7405_v36, %v4345_v59  ;;  %v7407_v13 = vpop.eup %7406  ;;  %vm4352_vm0 = vweird.f32 %v7405_v36 }
 0x5cf   :  { %v4315_v35 = vsel %vm4314_vm12, %v7401_v5, %v4311_v23  ;;  %vm4353_vm2 = vmor %vm4351_vm1, %vm4352_vm0 }
 0x5d0   :  { %v4320_v37 = vsel %vm4317_vm14, %v4319_v22, %v4315_v35  ;;  %v4334_v11 = vsel %vm4333_vm13, %v7403_v18, %v4330_v15  ;;  %v4348_v0 = vsub.f32 1.0, %v4347_v3 }
 0x5d1   :  { %v4339_v46 = vsel %vm4336_vm15, %v4338_v26, %v4334_v11  ;;  %v4362_v45 = vmul.f32 %v7407_v13, %v4320_v37 }
 0x5d2   :  { %v4361_v48 = vmul.f32 %v4339_v46, %v7715_v29  ;;  %v4349_v38 = vmul.f32 %v7405_v36, %v4348_v0  ;;  %v1914_v29 = vld [vmem:[%s7755_s3] sm:$0xf] }
 0x5d3   :  { %v1916_v47 = vperm.slane %v1914_v29, 0  ;;  %v1917_v9 = vperm.slane %v1914_v29, 1  ;;  %v1919_v40 = vperm.slane %v1914_v29, 3  ;;  %v1918_v59 = vperm.slane %v1914_v29, 2 }
 0x5d4   :  { %v7735_v39 = vadd.f32 %v4362_v45, %v4361_v48  ;;  %v4350_v34 = vadd.f32 %v7405_v36, %v4349_v38 }
 0x5d5   :  { %v2094_v14 = vadd.f32 %v7594_v27, %v1916_v47  ;;  %v2107_v31 = vadd.f32 %v7596_v28, %v1917_v9  ;;  %v2133_v54 = vadd.f32 %v7598_v30, %v1919_v40  ;;  %v2120_v30 = vadd.f32 %v7600_v33, %v1918_v59 }
 0x5d6   :  { %7408 = vtanh.f32 %v7735_v39  ;;  %v4354_v42 = vsel %vm4353_vm2, %v7405_v36, %v4350_v34 }
 0x5d7   :  { %v4359_v20 = vsel %vm4356_vm3, %v4358_v49, %v4354_v42 }
 0x5dc   :  { %v7409_v51 = vpop.eup %7408 }
 0x5dd   :  { %v4365_v53 = vmul.f32 %v7409_v51, %v4359_v20 }
 0x5df   :  { %v4366_v61 = vpack.c.bf16 %v4365_v53, %v4365_v53 }
 0x5e1   :  { %6648 = vst [vmem:[%s7756_s4 + $0x18] sm:$0xf] %v4366_v61  ;;  %4573 = vmatmul.bf16.vlgmr.msrb.gmra.mxu0 %v4366_v61  ;;  %4586 = vmatmul.bf16.vlgmr.msrb.gmra.mxu1 %v4366_v61 }
 0x5e2   :  { %4599 = vmatmul.bf16.vlgmr.msrb.gmra.mxu2 %v4366_v61  ;;  %4612 = vmatmul.bf16.vlgmr.msrb.gmra.mxu3 %v4366_v61 }
 0x65e   :  { %v4574_v56 = vpop.f32.mrf.mxu0  ;;  %v4587_v43 = vpop.f32.mrf.mxu1 }
 0x65f   :  { %v4617_v32 = vadd.f32 %v4574_v56, %v2094_v14  ;;  %v4618_v41 = vadd.f32 %v4587_v43, %v2107_v31 }
 0x661   :  { %v6777_v2 = vmul.f32 -1.442695, %v4617_v32  ;;  %v6778_v52 = vmul.f32 -1.442695, %v4618_v41 }
 0x663   :  { %7410 = vpow2.f32 %v6777_v2 }
 0x664   :  { %7412 = vpow2.f32 %v6778_v52 }
 0x665   :  { %v4600_v55 = vpop.f32.mrf.mxu2  ;;  %v4613_v60 = vpop.f32.mrf.mxu3 }
 0x666   :  { %v4620_v63 = vadd.f32 %v4613_v60, %v2133_v54  ;;  %v4576_v17 = vpop.f32.mrf.mxu0  ;;  %v4589_v50 = vpop.f32.mrf.mxu1  ;;  %v4619_v7 = vadd.f32 %v4600_v55, %v2120_v30 }
 0x668   :  { %v6779_v58 = vmul.f32 -1.442695, %v4620_v63 }
 0x669   :  { %v7411_v27 = vpop.eup %7410 }
 0x66a   :  { %v7413_v4 = vpop.eup %7412  ;;  %v4624_v28 = vadd.f32 1.0, %v7411_v27  ;;  %7414 = vpow2.f32 %v6779_v58 }
 0x66b   :  { %v4643_v6 = vadd.f32 1.0, %v7413_v4 }
 0x66c   :  { %7416 = vrcp.f32 %v4624_v28  ;;  %v4636_v24 = vand.u32 2147483648, %v4624_v28  ;;  %v4634_v23 = vand.u32 2147483647, %v4624_v28  ;;  %vm4630_vm6 = vweird.f32 %v4624_v28 }
 0x66d   :  { %7418 = vrcp.f32 %v4643_v6  ;;  %v4602_v5 = vpop.f32.mrf.mxu2  ;;  %v4615_v10 = vpop.f32.mrf.mxu3  ;;  %v4655_v44 = vand.u32 2147483648, %v4643_v6  ;;  %v4653_v15 = vand.u32 2147483647, %v4643_v6  ;;  %vm4649_vm7 = vweird.f32 %v4643_v6 }
 0x66e   :  { %v4637_v26 = vor.u32 1.1754944e-38, %v4636_v24  ;;  %vm4635_vm10 = vcmp.eq.f32.partialorder %v4634_v23, 8.507059e+37 }
 0x66f   :  { %v4656_v37 = vor.u32 1.1754944e-38, %v4655_v44  ;;  %vm4654_vm11 = vcmp.eq.f32.partialorder %v4653_v15, 8.507059e+37 }
 0x670   :  { %v7415_v18 = vpop.eup %7414 }
 0x671   :  { %v4663_v19 = vadd.f32 1.0, %v7415_v18 }
 0x672   :  { %v7417_v62 = vpop.eup %7416 }
 0x673   :  { %v7419_v8 = vpop.eup %7418  ;;  %v4626_v25 = vmul.f32 %v7417_v62, %v4624_v28  ;;  %7420 = vrcp.f32 %v4663_v19  ;;  %vm4631_vm4 = vweird.f32 %v7417_v62  ;;  %v4675_v51 = vand.u32 2147483648, %v4663_v19 }
 0x674   :  { %v4645_v12 = vmul.f32 %v7419_v8, %v4643_v6  ;;  %7422 = vtanh.f32 %v4619_v7  ;;  %vm4650_vm5 = vweird.f32 %v7419_v8  ;;  %vm4632_vm8 = vmor %vm4630_vm6, %vm4631_vm4  ;;  %vm4669_vm13 = vweird.f32 %v4663_v19 }
 0x675   :  { %v4627_v21 = vsub.f32 1.0, %v4626_v25  ;;  %vm4651_vm9 = vmor %vm4649_vm7, %vm4650_vm5  ;;  %v4673_v20 = vand.u32 2147483647, %v4663_v19  ;;  %v4676_v61 = vor.u32 1.1754944e-38, %v4675_v51 }
 0x676   :  { %v4646_v57 = vsub.f32 1.0, %v4645_v12 }
 0x677   :  { %v4628_v36 = vmul.f32 %v7417_v62, %v4627_v21  ;;  %vm4674_vm15 = vcmp.eq.f32.partialorder %v4673_v20, 8.507059e+37 }
 0x678   :  { %v4647_v22 = vmul.f32 %v7419_v8, %v4646_v57 }
 0x679   :  { %v7421_v3 = vpop.eup %7420  ;;  %v4629_v33 = vadd.f32 %v7417_v62, %v4628_v36 }
 0x67a   :  { %v4648_v35 = vadd.f32 %v7419_v8, %v4647_v22  ;;  %v4665_v13 = vmul.f32 %v7421_v3, %v4663_v19  ;;  %v7423_v0 = vpop.eup %7422  ;;  %vm4670_vm12 = vweird.f32 %v7421_v3 }
 0x67b   :  { %v4633_v11 = vsel %vm4632_vm8, %v7417_v62, %v4629_v33  ;;  %vm4671_vm14 = vmor %vm4669_vm13, %vm4670_vm12 }
 0x67c   :  { %v4638_v46 = vsel %vm4635_vm10, %v4637_v26, %v4633_v11  ;;  %v4652_v45 = vsel %vm4651_vm9, %v7419_v8, %v4648_v35  ;;  %v4666_v48 = vsub.f32 1.0, %v4665_v13 }
 0x67d   :  { %v4657_v38 = vsel %vm4654_vm11, %v4656_v37, %v4652_v45  ;;  %v4680_v34 = vmul.f32 %v7423_v0, %v4638_v46 }
 0x67e   :  { %v4679_v16 = vmul.f32 %v4657_v38, %v7735_v39  ;;  %v4667_v1 = vmul.f32 %v7421_v3, %v4666_v48 }
 0x680   :  { %v4681_v42 = vadd.f32 %v4680_v34, %v4679_v16  ;;  %v4668_v49 = vadd.f32 %v7421_v3, %v4667_v1 }
 0x682   :  { %7424 = vtanh.f32 %v4681_v42  ;;  %v4672_v53 = vsel %vm4671_vm14, %v7421_v3, %v4668_v49 }
 0x683   :  { %v4677_v47 = vsel %vm4674_vm15, %v4676_v61, %v4672_v53 }
 0x688   :  { %v7425_v29 = vpop.eup %7424 }
 0x689   :  { %v4683_v9 = vmul.f32 %v7425_v29, %v4677_v47 }
 0x68b   :  { %v4684_v14 = vpack.c.bf16 %v4683_v9, %v4683_v9 }
 0x68d   :  { %6780 = vst [vmem:[%s7756_s4 + $0x1c] sm:$0xf] %v4684_v14 }
 0x68e   :  { %4693 = vsyncpa [#allocation6], 1 }
 0x68f   :  { %4694 = vsyncpa [#allocation8], 1 }

</bundles_post_ra>
